<compile_context>
chip_gen: v7x
topology: tpu7x:2x2x1
jax: 0.10.0
libtpu: 0.0.40
codegen_flags: <defaults>
</compile_context>

<pallas_src>
import functools

import jax
import jax.numpy as jnp
from jax.experimental import pallas as pl
from jax.experimental.pallas import tpu as pltpu


# ----------------------------- Pallas kernels ------------------------------ #

def _build_cols_and_gemm(w_ref, x_ref, cols_ref, *, c_in, kh, kw, wp, m_p,
                         k_valid):
    """Build cols[K_p, m_p] in VMEM from the flattened padded image and run the
    MXU GEMM.  Tap (ky, kx) of the stride-1 conv is the contiguous slice
    xflat[:, ky*wp+kx : ky*wp+kx+m_p] because the M axis is flattened as
    m = oy*Wp + ox (the kw-1 'wrap' columns per row are garbage that callers
    mask out of the BN statistics and never store)."""
    for ky in range(kh):
        for kx in range(kw):
            t = ky * kw + kx
            off = ky * wp + kx                       # static lane offset
            cols_ref[t * c_in:(t + 1) * c_in, :] = x_ref[:, off:off + m_p]
    k_p = cols_ref.shape[0]
    if k_p > k_valid:                                # zero padded K rows
        cols_ref[k_valid:, :] = jnp.zeros((k_p - k_valid, m_p), cols_ref.dtype)
    # bf16 MXU GEMM, f32 accumulation; Cout rows stay at 16 on purpose.
    return jnp.dot(w_ref[...], cols_ref[...], preferred_element_type=jnp.float32)


def _stats_kernel(w_ref, x_ref, mask_ref, s_ref, ss_ref, cols_ref, *,
                  c_in, kh, kw, wp, m_p, k_valid):
    """Per-image channel sum / sum-of-squares of the conv output (pre-BN)."""
    y = _build_cols_and_gemm(w_ref, x_ref, cols_ref, c_in=c_in, kh=kh, kw=kw,
                             wp=wp, m_p=m_p, k_valid=k_valid)
    ym = y * mask_ref[...]                           # drop garbage/pad columns
    s_ref[...] = jnp.sum(ym, axis=1, keepdims=True)
    ss_ref[...] = jnp.sum(ym * y, axis=1, keepdims=True)


def _deconv_kernel(w_ref, x_ref, scale_ref, shift_ref, o_ref, cols_ref, y_ref,
                   *, c_in, kh, kw, wp, wo, ho, m_p, k_valid, activation_type):
    """GEMM + BatchNorm (precomputed scale/shift) + activation + NCHW store."""
    y = _build_cols_and_gemm(w_ref, x_ref, cols_ref, c_in=c_in, kh=kh, kw=kw,
                             wp=wp, m_p=m_p, k_valid=k_valid)
    # Fused BN in f32 (scale = rsqrt(var+eps), shift = -mean*scale; identity
    # when BN is disabled).
    y = y * scale_ref[...] + shift_ref[...]

    if activation_type == "relu":
        y = jnp.maximum(y, 0.0)
    elif activation_type == "leakyrelu":
        y = jnp.where(y > 0, y, 0.2 * y)
    elif activation_type == "elu":
        y = jnp.where(y > 0, y, jnp.expm1(y))
    elif activation_type == "selu":
        scale_c, alpha = 1.0507009873554805, 1.6732632423543772
        y = scale_c * jnp.where(y > 0, y, alpha * jnp.expm1(y))

    y_ref[...] = y
    # Per-row extraction of the Wo valid columns from the Ho*Wp slab -> the
    # output lands directly in NCHW, no XLA epilogue transpose/slice.
    for r in range(ho):
        o_ref[:, r, :] = y_ref[:, r * wp:r * wp + wo]


# ------------------------------- JAX wrapper -------------------------------- #

def _round_up(v, m):
    return ((v + m - 1) // m) * m


def deconv_block_forward(x, w_deconv, *, stride, pad=None, output_pad=0,
                         use_bn=True, norm_type="batchnorm",
                         activation_type="leakyrelu", eps=1e-5):
    """Forward of DeConvBlock: ConvTranspose2d(bias=False) + BN(train) + act."""
    n, c_in, h, w_in = x.shape
    ni, no, ks_h, ks_w = w_deconv.shape            # PyTorch ConvTranspose2d layout
    assert ni == c_in and ks_h == ks_w
    ks = ks_h
    if pad is None:
        pad = ks // 2 // stride
    lo = ks - 1 - pad
    hi = lo + output_pad
    assert lo >= 0, "unsupported padding for this lowering"

    # ---- XLA-side layout prep (tiny, bf16 before any expansion) ------------
    xb = x.astype(jnp.bfloat16)
    if stride > 1:
        hd, wd = (h - 1) * stride + 1, (w_in - 1) * stride + 1
        xd = jnp.zeros((n, c_in, hd, wd), jnp.bfloat16)
        xd = xd.at[:, :, ::stride, ::stride].set(xb)
    else:
        xd = xb
    xp = jnp.pad(xd, ((0, 0), (0, 0), (lo, hi), (lo, hi)))
    hp, wp = int(xp.shape[2]), int(xp.shape[3])
    ho, wo = hp - ks + 1, wp - ks + 1

    m_p = _round_up(ho * wp, 128)                  # GEMM N dim (lane-dense)
    max_off = (ks - 1) * wp + (ks - 1)
    l_len = _round_up(max_off + m_p, 128)
    xflat = jnp.pad(xp.reshape(n, c_in, hp * wp),
                    ((0, 0), (0, 0), (0, l_len - hp * wp)))

    k_valid = ks * ks * c_in
    k_p = _round_up(k_valid, 16)                   # bf16 sublane packing
    c_p = _round_up(no, 8)                         # do NOT pad past this (review)

    # ConvTranspose2d weight -> stride-1 conv weight, K ordered (ky, kx, ci)
    # to match the tap-major cols layout built in-kernel.
    w_conv = jnp.transpose(w_deconv, (1, 0, 2, 3))[:, :, ::-1, ::-1]   # [no,ni,k,k]
    w_mat = jnp.transpose(w_conv, (0, 2, 3, 1)).reshape(no, k_valid)
    w_p = jnp.pad(w_mat, ((0, c_p - no), (0, k_p - k_valid))).astype(jnp.bfloat16)

    # Column-validity mask for the BN statistics (1 = real output column).
    col = jnp.arange(m_p, dtype=jnp.int32)
    mask = (((col % wp) < wo) & (col < ho * wp)).astype(jnp.float32)[None, :]

    do_bn = bool(use_bn) and norm_type == "batchnorm"

    common_in_specs = [
        pl.BlockSpec((c_p, k_p), lambda i: (0, 0)),              # weight, resident
        pl.BlockSpec((None, c_in, l_len), lambda i: (i, 0, 0)),  # per-image act
    ]

    bytes_needed = (2 * c_p * k_p * 2 + 2 * c_in * l_len * 2 + 2 * m_p * 4 +
                    4 * c_p * 4 + 2 * c_p * ho * wo * 4 +
                    k_p * m_p * 2 + c_p * m_p * 4)
    # 48 MiB cap keeps double-buffer headroom inside v7x's 64 MiB VMEM; larger
    # layers should add an output-row grid axis instead of raising this.
    vmem_limit = int(min(max(2 * bytes_needed, 32 * 1024 * 1024),
                         48 * 1024 * 1024))
    cparams = pltpu.CompilerParams(dimension_semantics=("parallel",),
                                   vmem_limit_bytes=vmem_limit)

    # ---- Pass 1: lightweight batch-stats kernel (only when BN is on) -------
    if do_bn:
        stats_kernel = functools.partial(_stats_kernel, c_in=c_in, kh=ks, kw=ks,
                                         wp=wp, m_p=m_p, k_valid=k_valid)
        s_img, ss_img = pl.pallas_call(
            stats_kernel,
            grid=(n,),
            out_shape=(jax.ShapeDtypeStruct((n, c_p, 1), jnp.float32),
                       jax.ShapeDtypeStruct((n, c_p, 1), jnp.float32)),
            in_specs=common_in_specs + [pl.BlockSpec((1, m_p), lambda i: (0, 0))],
            out_specs=(pl.BlockSpec((None, c_p, 1), lambda i: (i, 0, 0)),
                       pl.BlockSpec((None, c_p, 1), lambda i: (i, 0, 0))),
            scratch_shapes=[pltpu.VMEM((k_p, m_p), jnp.bfloat16)],
            compiler_params=cparams,
        )(w_p, xflat, mask)
        cnt = float(n * ho * wo)
        mean = jnp.sum(s_img, axis=0) / cnt                       # (c_p, 1)
        var = jnp.maximum(jnp.sum(ss_img, axis=0) / cnt - mean * mean, 0.0)
        rstd = jax.lax.rsqrt(var + eps)
        scale = rstd
        shift = -mean * rstd
    else:
        scale = jnp.ones((c_p, 1), jnp.float32)
        shift = jnp.zeros((c_p, 1), jnp.float32)

    # ---- Pass 2: fused GEMM + BN + activation + NCHW store -----------------
    main_kernel = functools.partial(_deconv_kernel, c_in=c_in, kh=ks, kw=ks,
                                    wp=wp, wo=wo, ho=ho, m_p=m_p,
                                    k_valid=k_valid,
                                    activation_type=activation_type)
    out = pl.pallas_call(
        main_kernel,
        grid=(n,),
        out_shape=jax.ShapeDtypeStruct((n, c_p, ho, wo), jnp.float32),
        in_specs=common_in_specs + [
            pl.BlockSpec((c_p, 1), lambda i: (0, 0)),
            pl.BlockSpec((c_p, 1), lambda i: (0, 0)),
        ],
        out_specs=pl.BlockSpec((None, c_p, ho, wo), lambda i: (i, 0, 0, 0)),
        scratch_shapes=[pltpu.VMEM((k_p, m_p), jnp.bfloat16),
                        pltpu.VMEM((c_p, m_p), jnp.float32)],
        compiler_params=cparams,
    )(w_p, xflat, scale, shift)

    if c_p != no:
        out = out[:, :no]
    return out


# ---------------------------- Pure-JAX reference ---------------------------- #

def reference_deconv_block(x, w_deconv, *, stride, pad, output_pad,
                           use_bn=True, eps=1e-5, slope=0.2):
    ni, no, ks, _ = w_deconv.shape
    w_conv = jnp.transpose(w_deconv, (1, 0, 2, 3))[:, :, ::-1, ::-1]
    lo = ks - 1 - pad
    hi = ks - 1 - pad + output_pad
    y = jax.lax.conv_general_dilated(
        x, w_conv, window_strides=(1, 1),
        padding=[(lo, hi), (lo, hi)],
        lhs_dilation=(stride, stride), rhs_dilation=(1, 1),
        dimension_numbers=("NCHW", "OIHW", "NCHW"),
        precision=jax.lax.Precision.HIGHEST)
    if use_bn:
        mean = jnp.mean(y, axis=(0, 2, 3), keepdims=True)
        var = jnp.mean(jnp.square(y - mean), axis=(0, 2, 3), keepdims=True)
        y = (y - mean) * jax.lax.rsqrt(var + eps)
    return jnp.where(y > 0, y, slope * y)


# ---------------------------------- Main ------------------------------------ #

if __name__ == "__main__":
    # DeConvBlock(ni=8, no=16, ks=4, stride=2) -> pad = ks//2//stride = 1
    N, ni, no, H, W = 2, 8, 16, 16, 16
    ks, stride, output_pad = 4, 2, 0
    pad = ks // 2 // stride

    key = jax.random.PRNGKey(0)
    k_x, k_w = jax.random.split(key)
    x = jax.random.normal(k_x, (N, ni, H, W), dtype=jnp.float32)
    # ConvTranspose2d weight layout: [in_channels, out_channels, kH, kW]
    w = 0.05 * jax.random.normal(k_w, (ni, no, ks, ks), dtype=jnp.float32)

    fwd = jax.jit(functools.partial(deconv_block_forward, stride=stride,
                                    output_pad=output_pad))
    out = fwd(x, w)
    jax.block_until_ready(out)

    ref = reference_deconv_block(x, w, stride=stride, pad=pad,
                                 output_pad=output_pad)

    Ho = (H - 1) * stride - 2 * pad + ks + output_pad
    assert out.shape == (N, no, Ho, Ho), out.shape
    assert bool(jnp.all(jnp.isfinite(out)))
    max_err = float(jnp.max(jnp.abs(out - ref)))
    assert max_err < 1e-1, f"max abs err vs f32 reference: {max_err}"
    print("KERNEL_OK")
</pallas_src>

<mosaic_0001>
module attributes {stable_mosaic.version = 11 : i64} {
  func.func @_stats_kernel(%arg0: i32, %arg1: memref<16x128xbf16, #tpu.memory_space<vmem>>, %arg2: memref<1x8x1280xbf16, #tpu.memory_space<vmem>>, %arg3: memref<1x1152xf32, #tpu.memory_space<vmem>>, %arg4: memref<1x16x1xf32, #tpu.memory_space<vmem>>, %arg5: memref<1x16x1xf32, #tpu.memory_space<vmem>>, %arg6: memref<128x1152xbf16, #tpu.memory_space<vmem>>) attributes {dimension_semantics = [#tpu.dimension_semantics<parallel>], iteration_bounds = array<i64: 2>, scalar_prefetch = 0 : i64, scratch_operands = 1 : i64, tpu.core_type = #tpu.core_type<tc>, window_params = [{pipeline_mode = #tpu.pipeline_mode<synchronous>, transform_indices = @transform_0, window_bounds = array<i64: 16, 128>}, {transform_indices = @transform_1, window_bounds = array<i64: 1, 8, 1280>}, {pipeline_mode = #tpu.pipeline_mode<synchronous>, transform_indices = @transform_2, window_bounds = array<i64: 1, 1152>}, {transform_indices = @transform_3, window_bounds = array<i64: 1, 16, 1>}, {transform_indices = @transform_4, window_bounds = array<i64: 1, 16, 1>}]} {
    %c0 = arith.constant 0 : index
    %c0_0 = arith.constant 0 : index
    %c0_1 = arith.constant 0 : index
    %0 = vector.load %arg2[%c0, %c0_0, %c0_1] : memref<1x8x1280xbf16, #tpu.memory_space<vmem>>, vector<1x8x1152xbf16>
    %1 = vector.shape_cast %0 : vector<1x8x1152xbf16> to vector<8x1152xbf16>
    %c0_2 = arith.constant 0 : index
    %c0_3 = arith.constant 0 : index
    %2 = vector.load %arg6[%c0_2, %c0_3] : memref<128x1152xbf16, #tpu.memory_space<vmem>>, vector<8x1152xbf16>
    tpu.vector_store %arg6[%c0_2, %c0_3], %1 {strides = array<i32>} : memref<128x1152xbf16, #tpu.memory_space<vmem>>, vector<8x1152xbf16>,
    %c0_4 = arith.constant 0 : index
    %c0_5 = arith.constant 0 : index
    %c1 = arith.constant 1 : index
    %3 = vector.load %arg2[%c0_4, %c0_5, %c1] : memref<1x8x1280xbf16, #tpu.memory_space<vmem>>, vector<1x8x1152xbf16>
    %4 = vector.shape_cast %3 : vector<1x8x1152xbf16> to vector<8x1152xbf16>
    %c8 = arith.constant 8 : index
    %c0_6 = arith.constant 0 : index
    %5 = vector.load %arg6[%c8, %c0_6] : memref<128x1152xbf16, #tpu.memory_space<vmem>>, vector<8x1152xbf16>
    tpu.vector_store %arg6[%c8, %c0_6], %4 {strides = array<i32>} : memref<128x1152xbf16, #tpu.memory_space<vmem>>, vector<8x1152xbf16>,
    %c0_7 = arith.constant 0 : index
    %c0_8 = arith.constant 0 : index
    %c2 = arith.constant 2 : index
    %6 = vector.load %arg2[%c0_7, %c0_8, %c2] : memref<1x8x1280xbf16, #tpu.memory_space<vmem>>, vector<1x8x1152xbf16>
    %7 = vector.shape_cast %6 : vector<1x8x1152xbf16> to vector<8x1152xbf16>
    %c16 = arith.constant 16 : index
    %c0_9 = arith.constant 0 : index
    %8 = vector.load %arg6[%c16, %c0_9] : memref<128x1152xbf16, #tpu.memory_space<vmem>>, vector<8x1152xbf16>
    tpu.vector_store %arg6[%c16, %c0_9], %7 {strides = array<i32>} : memref<128x1152xbf16, #tpu.memory_space<vmem>>, vector<8x1152xbf16>,
    %c0_10 = arith.constant 0 : index
    %c0_11 = arith.constant 0 : index
    %c3 = arith.constant 3 : index
    %9 = vector.load %arg2[%c0_10, %c0_11, %c3] : memref<1x8x1280xbf16, #tpu.memory_space<vmem>>, vector<1x8x1152xbf16>
    %10 = vector.shape_cast %9 : vector<1x8x1152xbf16> to vector<8x1152xbf16>
    %c24 = arith.constant 24 : index
    %c0_12 = arith.constant 0 : index
    %11 = vector.load %arg6[%c24, %c0_12] : memref<128x1152xbf16, #tpu.memory_space<vmem>>, vector<8x1152xbf16>
    tpu.vector_store %arg6[%c24, %c0_12], %10 {strides = array<i32>} : memref<128x1152xbf16, #tpu.memory_space<vmem>>, vector<8x1152xbf16>,
    %c0_13 = arith.constant 0 : index
    %c0_14 = arith.constant 0 : index
    %c35 = arith.constant 35 : index
    %12 = vector.load %arg2[%c0_13, %c0_14, %c35] : memref<1x8x1280xbf16, #tpu.memory_space<vmem>>, vector<1x8x1152xbf16>
    %13 = vector.shape_cast %12 : vector<1x8x1152xbf16> to vector<8x1152xbf16>
    %c32 = arith.constant 32 : index
    %c0_15 = arith.constant 0 : index
    %14 = vector.load %arg6[%c32, %c0_15] : memref<128x1152xbf16, #tpu.memory_space<vmem>>, vector<8x1152xbf16>
    tpu.vector_store %arg6[%c32, %c0_15], %13 {strides = array<i32>} : memref<128x1152xbf16, #tpu.memory_space<vmem>>, vector<8x1152xbf16>,
    %c0_16 = arith.constant 0 : index
    %c0_17 = arith.constant 0 : index
    %c36 = arith.constant 36 : index
    %15 = vector.load %arg2[%c0_16, %c0_17, %c36] : memref<1x8x1280xbf16, #tpu.memory_space<vmem>>, vector<1x8x1152xbf16>
    %16 = vector.shape_cast %15 : vector<1x8x1152xbf16> to vector<8x1152xbf16>
    %c40 = arith.constant 40 : index
    %c0_18 = arith.constant 0 : index
    %17 = vector.load %arg6[%c40, %c0_18] : memref<128x1152xbf16, #tpu.memory_space<vmem>>, vector<8x1152xbf16>
    tpu.vector_store %arg6[%c40, %c0_18], %16 {strides = array<i32>} : memref<128x1152xbf16, #tpu.memory_space<vmem>>, vector<8x1152xbf16>,
    %c0_19 = arith.constant 0 : index
    %c0_20 = arith.constant 0 : index
    %c37 = arith.constant 37 : index
    %18 = vector.load %arg2[%c0_19, %c0_20, %c37] : memref<1x8x1280xbf16, #tpu.memory_space<vmem>>, vector<1x8x1152xbf16>
    %19 = vector.shape_cast %18 : vector<1x8x1152xbf16> to vector<8x1152xbf16>
    %c48 = arith.constant 48 : index
    %c0_21 = arith.constant 0 : index
    %20 = vector.load %arg6[%c48, %c0_21] : memref<128x1152xbf16, #tpu.memory_space<vmem>>, vector<8x1152xbf16>
    tpu.vector_store %arg6[%c48, %c0_21], %19 {strides = array<i32>} : memref<128x1152xbf16, #tpu.memory_space<vmem>>, vector<8x1152xbf16>,
    %c0_22 = arith.constant 0 : index
    %c0_23 = arith.constant 0 : index
    %c38 = arith.constant 38 : index
    %21 = vector.load %arg2[%c0_22, %c0_23, %c38] : memref<1x8x1280xbf16, #tpu.memory_space<vmem>>, vector<1x8x1152xbf16>
    %22 = vector.shape_cast %21 : vector<1x8x1152xbf16> to vector<8x1152xbf16>
    %c56 = arith.constant 56 : index
    %c0_24 = arith.constant 0 : index
    %23 = vector.load %arg6[%c56, %c0_24] : memref<128x1152xbf16, #tpu.memory_space<vmem>>, vector<8x1152xbf16>
    tpu.vector_store %arg6[%c56, %c0_24], %22 {strides = array<i32>} : memref<128x1152xbf16, #tpu.memory_space<vmem>>, vector<8x1152xbf16>,
    %c0_25 = arith.constant 0 : index
    %c0_26 = arith.constant 0 : index
    %c70 = arith.constant 70 : index
    %24 = vector.load %arg2[%c0_25, %c0_26, %c70] : memref<1x8x1280xbf16, #tpu.memory_space<vmem>>, vector<1x8x1152xbf16>
    %25 = vector.shape_cast %24 : vector<1x8x1152xbf16> to vector<8x1152xbf16>
    %c64 = arith.constant 64 : index
    %c0_27 = arith.constant 0 : index
    %26 = vector.load %arg6[%c64, %c0_27] : memref<128x1152xbf16, #tpu.memory_space<vmem>>, vector<8x1152xbf16>
    tpu.vector_store %arg6[%c64, %c0_27], %25 {strides = array<i32>} : memref<128x1152xbf16, #tpu.memory_space<vmem>>, vector<8x1152xbf16>,
    %c0_28 = arith.constant 0 : index
    %c0_29 = arith.constant 0 : index
    %c71 = arith.constant 71 : index
    %27 = vector.load %arg2[%c0_28, %c0_29, %c71] : memref<1x8x1280xbf16, #tpu.memory_space<vmem>>, vector<1x8x1152xbf16>
    %28 = vector.shape_cast %27 : vector<1x8x1152xbf16> to vector<8x1152xbf16>
    %c72 = arith.constant 72 : index
    %c0_30 = arith.constant 0 : index
    %29 = vector.load %arg6[%c72, %c0_30] : memref<128x1152xbf16, #tpu.memory_space<vmem>>, vector<8x1152xbf16>
    tpu.vector_store %arg6[%c72, %c0_30], %28 {strides = array<i32>} : memref<128x1152xbf16, #tpu.memory_space<vmem>>, vector<8x1152xbf16>,
    %c0_31 = arith.constant 0 : index
    %c0_32 = arith.constant 0 : index
    %c72_33 = arith.constant 72 : index
    %30 = vector.load %arg2[%c0_31, %c0_32, %c72_33] : memref<1x8x1280xbf16, #tpu.memory_space<vmem>>, vector<1x8x1152xbf16>
    %31 = vector.shape_cast %30 : vector<1x8x1152xbf16> to vector<8x1152xbf16>
    %c80 = arith.constant 80 : index
    %c0_34 = arith.constant 0 : index
    %32 = vector.load %arg6[%c80, %c0_34] : memref<128x1152xbf16, #tpu.memory_space<vmem>>, vector<8x1152xbf16>
    tpu.vector_store %arg6[%c80, %c0_34], %31 {strides = array<i32>} : memref<128x1152xbf16, #tpu.memory_space<vmem>>, vector<8x1152xbf16>,
    %c0_35 = arith.constant 0 : index
    %c0_36 = arith.constant 0 : index
    %c73 = arith.constant 73 : index
    %33 = vector.load %arg2[%c0_35, %c0_36, %c73] : memref<1x8x1280xbf16, #tpu.memory_space<vmem>>, vector<1x8x1152xbf16>
    %34 = vector.shape_cast %33 : vector<1x8x1152xbf16> to vector<8x1152xbf16>
    %c88 = arith.constant 88 : index
    %c0_37 = arith.constant 0 : index
    %35 = vector.load %arg6[%c88, %c0_37] : memref<128x1152xbf16, #tpu.memory_space<vmem>>, vector<8x1152xbf16>
    tpu.vector_store %arg6[%c88, %c0_37], %34 {strides = array<i32>} : memref<128x1152xbf16, #tpu.memory_space<vmem>>, vector<8x1152xbf16>,
    %c0_38 = arith.constant 0 : index
    %c0_39 = arith.constant 0 : index
    %c105 = arith.constant 105 : index
    %36 = vector.load %arg2[%c0_38, %c0_39, %c105] : memref<1x8x1280xbf16, #tpu.memory_space<vmem>>, vector<1x8x1152xbf16>
    %37 = vector.shape_cast %36 : vector<1x8x1152xbf16> to vector<8x1152xbf16>
    %c96 = arith.constant 96 : index
    %c0_40 = arith.constant 0 : index
    %38 = vector.load %arg6[%c96, %c0_40] : memref<128x1152xbf16, #tpu.memory_space<vmem>>, vector<8x1152xbf16>
    tpu.vector_store %arg6[%c96, %c0_40], %37 {strides = array<i32>} : memref<128x1152xbf16, #tpu.memory_space<vmem>>, vector<8x1152xbf16>,
    %c0_41 = arith.constant 0 : index
    %c0_42 = arith.constant 0 : index
    %c106 = arith.constant 106 : index
    %39 = vector.load %arg2[%c0_41, %c0_42, %c106] : memref<1x8x1280xbf16, #tpu.memory_space<vmem>>, vector<1x8x1152xbf16>
    %40 = vector.shape_cast %39 : vector<1x8x1152xbf16> to vector<8x1152xbf16>
    %c104 = arith.constant 104 : index
    %c0_43 = arith.constant 0 : index
    %41 = vector.load %arg6[%c104, %c0_43] : memref<128x1152xbf16, #tpu.memory_space<vmem>>, vector<8x1152xbf16>
    tpu.vector_store %arg6[%c104, %c0_43], %40 {strides = array<i32>} : memref<128x1152xbf16, #tpu.memory_space<vmem>>, vector<8x1152xbf16>,
    %c0_44 = arith.constant 0 : index
    %c0_45 = arith.constant 0 : index
    %c107 = arith.constant 107 : index
    %42 = vector.load %arg2[%c0_44, %c0_45, %c107] : memref<1x8x1280xbf16, #tpu.memory_space<vmem>>, vector<1x8x1152xbf16>
    %43 = vector.shape_cast %42 : vector<1x8x1152xbf16> to vector<8x1152xbf16>
    %c112 = arith.constant 112 : index
    %c0_46 = arith.constant 0 : index
    %44 = vector.load %arg6[%c112, %c0_46] : memref<128x1152xbf16, #tpu.memory_space<vmem>>, vector<8x1152xbf16>
    tpu.vector_store %arg6[%c112, %c0_46], %43 {strides = array<i32>} : memref<128x1152xbf16, #tpu.memory_space<vmem>>, vector<8x1152xbf16>,
    %c0_47 = arith.constant 0 : index
    %c0_48 = arith.constant 0 : index
    %c108 = arith.constant 108 : index
    %45 = vector.load %arg2[%c0_47, %c0_48, %c108] : memref<1x8x1280xbf16, #tpu.memory_space<vmem>>, vector<1x8x1152xbf16>
    %46 = vector.shape_cast %45 : vector<1x8x1152xbf16> to vector<8x1152xbf16>
    %c120 = arith.constant 120 : index
    %c0_49 = arith.constant 0 : index
    %47 = vector.load %arg6[%c120, %c0_49] : memref<128x1152xbf16, #tpu.memory_space<vmem>>, vector<8x1152xbf16>
    tpu.vector_store %arg6[%c120, %c0_49], %46 {strides = array<i32>} : memref<128x1152xbf16, #tpu.memory_space<vmem>>, vector<8x1152xbf16>,
    %c0_50 = arith.constant 0 : index
    %c0_51 = arith.constant 0 : index
    %48 = vector.load %arg1[%c0_50, %c0_51] : memref<16x128xbf16, #tpu.memory_space<vmem>>, vector<16x128xbf16>
    %c0_52 = arith.constant 0 : index
    %c0_53 = arith.constant 0 : index
    %49 = vector.load %arg6[%c0_52, %c0_53] : memref<128x1152xbf16, #tpu.memory_space<vmem>>, vector<128x1152xbf16>
    %cst = arith.constant dense<0.000000e+00> : vector<16x1152xf32>
    %50 = tpu.matmul %48, %49, %cst {dimension_numbers = #tpu.dot_dimension_numbers<[1], [0], [0], [1], [0, 0, 1, 1], [], []>} : vector<16x128xbf16>, vector<128x1152xbf16>, vector<16x1152xf32> -> vector<16x1152xf32>
    %c0_54 = arith.constant 0 : index
    %c0_55 = arith.constant 0 : index
    %51 = vector.load %arg3[%c0_54, %c0_55] : memref<1x1152xf32, #tpu.memory_space<vmem>>, vector<1x1152xf32>
    %52 = vector.broadcast %51 : vector<1x1152xf32> to vector<16x1152xf32>
    %53 = arith.mulf %50, %52 : vector<16x1152xf32>
    %cst_56 = arith.constant dense<0.000000e+00> : vector<16xf32>
    %54 = vector.multi_reduction <add>, %53, %cst_56 [1] : vector<16x1152xf32> to vector<16xf32>
    %55 = vector.shape_cast %54 : vector<16xf32> to vector<16x1xf32>
    %c0_57 = arith.constant 0 : index
    %c0_58 = arith.constant 0 : index
    %c0_59 = arith.constant 0 : index
    %56 = vector.load %arg4[%c0_57, %c0_58, %c0_59] : memref<1x16x1xf32, #tpu.memory_space<vmem>>, vector<1x16x1xf32>
    %57 = vector.shape_cast %56 : vector<1x16x1xf32> to vector<16x1xf32>
    %58 = vector.shape_cast %55 : vector<16x1xf32> to vector<1x16x1xf32>
    tpu.vector_store %arg4[%c0_57, %c0_58, %c0_59], %58 {strides = array<i32>} : memref<1x16x1xf32, #tpu.memory_space<vmem>>, vector<1x16x1xf32>,
    %59 = arith.mulf %53, %50 : vector<16x1152xf32>
    %cst_60 = arith.constant dense<0.000000e+00> : vector<16xf32>
    %60 = vector.multi_reduction <add>, %59, %cst_60 [1] : vector<16x1152xf32> to vector<16xf32>
    %61 = vector.shape_cast %60 : vector<16xf32> to vector<16x1xf32>
    %c0_61 = arith.constant 0 : index
    %c0_62 = arith.constant 0 : index
    %c0_63 = arith.constant 0 : index
    %62 = vector.load %arg5[%c0_61, %c0_62, %c0_63] : memref<1x16x1xf32, #tpu.memory_space<vmem>>, vector<1x16x1xf32>
    %63 = vector.shape_cast %62 : vector<1x16x1xf32> to vector<16x1xf32>
    %64 = vector.shape_cast %61 : vector<16x1xf32> to vector<1x16x1xf32>
    tpu.vector_store %arg5[%c0_61, %c0_62, %c0_63], %64 {strides = array<i32>} : memref<1x16x1xf32, #tpu.memory_space<vmem>>, vector<1x16x1xf32>,
    return
  }
  func.func @transform_0(%arg0: i32) -> (i32, i32) {
    %c0_i32 = arith.constant 0 : i32
    %c0_i32_0 = arith.constant 0 : i32
    %c0_i32_1 = arith.constant 0 : i32
    return %c0_i32, %c0_i32_0 : i32, i32
  }
  func.func @transform_1(%arg0: i32) -> (i32, i32, i32) {
    %c0_i32 = arith.constant 0 : i32
    %c0_i32_0 = arith.constant 0 : i32
    %c0_i32_1 = arith.constant 0 : i32
    return %arg0, %c0_i32, %c0_i32_0 : i32, i32, i32
  }
  func.func @transform_2(%arg0: i32) -> (i32, i32) {
    %c0_i32 = arith.constant 0 : i32
    %c0_i32_0 = arith.constant 0 : i32
    %c0_i32_1 = arith.constant 0 : i32
    return %c0_i32, %c0_i32_0 : i32, i32
  }
  func.func @transform_3(%arg0: i32) -> (i32, i32, i32) {
    %c0_i32 = arith.constant 0 : i32
    %c0_i32_0 = arith.constant 0 : i32
    %c0_i32_1 = arith.constant 0 : i32
    return %arg0, %c0_i32, %c0_i32_0 : i32, i32, i32
  }
  func.func @transform_4(%arg0: i32) -> (i32, i32, i32) {
    %c0_i32 = arith.constant 0 : i32
    %c0_i32_0 = arith.constant 0 : i32
    %c0_i32_1 = arith.constant 0 : i32
    return %arg0, %c0_i32, %c0_i32_0 : i32, i32, i32
  }
}

module attributes {stable_mosaic.version = 11 : i64} {
  func.func @_deconv_kernel(%arg0: i32, %arg1: memref<16x128xbf16, #tpu.memory_space<vmem>>, %arg2: memref<1x8x1280xbf16, #tpu.memory_space<vmem>>, %arg3: memref<16x1xf32, #tpu.memory_space<vmem>>, %arg4: memref<16x1xf32, #tpu.memory_space<vmem>>, %arg5: memref<1x16x32x32xf32, #tpu.memory_space<vmem>>, %arg6: memref<128x1152xbf16, #tpu.memory_space<vmem>>, %arg7: memref<16x1152xf32, #tpu.memory_space<vmem>>) attributes {dimension_semantics = [#tpu.dimension_semantics<parallel>], iteration_bounds = array<i64: 2>, scalar_prefetch = 0 : i64, scratch_operands = 2 : i64, tpu.core_type = #tpu.core_type<tc>, window_params = [{pipeline_mode = #tpu.pipeline_mode<synchronous>, transform_indices = @transform_0, window_bounds = array<i64: 16, 128>}, {transform_indices = @transform_1, window_bounds = array<i64: 1, 8, 1280>}, {pipeline_mode = #tpu.pipeline_mode<synchronous>, transform_indices = @transform_2, window_bounds = array<i64: 16, 1>}, {pipeline_mode = #tpu.pipeline_mode<synchronous>, transform_indices = @transform_3, window_bounds = array<i64: 16, 1>}, {transform_indices = @transform_4, window_bounds = array<i64: 1, 16, 32, 32>}]} {
    %c0 = arith.constant 0 : index
    %c0_0 = arith.constant 0 : index
    %c0_1 = arith.constant 0 : index
    %0 = vector.load %arg2[%c0, %c0_0, %c0_1] : memref<1x8x1280xbf16, #tpu.memory_space<vmem>>, vector<1x8x1152xbf16>
    %1 = vector.shape_cast %0 : vector<1x8x1152xbf16> to vector<8x1152xbf16>
    %c0_2 = arith.constant 0 : index
    %c0_3 = arith.constant 0 : index
    %2 = vector.load %arg6[%c0_2, %c0_3] : memref<128x1152xbf16, #tpu.memory_space<vmem>>, vector<8x1152xbf16>
    tpu.vector_store %arg6[%c0_2, %c0_3], %1 {strides = array<i32>} : memref<128x1152xbf16, #tpu.memory_space<vmem>>, vector<8x1152xbf16>,
    %c0_4 = arith.constant 0 : index
    %c0_5 = arith.constant 0 : index
    %c1 = arith.constant 1 : index
    %3 = vector.load %arg2[%c0_4, %c0_5, %c1] : memref<1x8x1280xbf16, #tpu.memory_space<vmem>>, vector<1x8x1152xbf16>
    %4 = vector.shape_cast %3 : vector<1x8x1152xbf16> to vector<8x1152xbf16>
    %c8 = arith.constant 8 : index
    %c0_6 = arith.constant 0 : index
    %5 = vector.load %arg6[%c8, %c0_6] : memref<128x1152xbf16, #tpu.memory_space<vmem>>, vector<8x1152xbf16>
    tpu.vector_store %arg6[%c8, %c0_6], %4 {strides = array<i32>} : memref<128x1152xbf16, #tpu.memory_space<vmem>>, vector<8x1152xbf16>,
    %c0_7 = arith.constant 0 : index
    %c0_8 = arith.constant 0 : index
    %c2 = arith.constant 2 : index
    %6 = vector.load %arg2[%c0_7, %c0_8, %c2] : memref<1x8x1280xbf16, #tpu.memory_space<vmem>>, vector<1x8x1152xbf16>
    %7 = vector.shape_cast %6 : vector<1x8x1152xbf16> to vector<8x1152xbf16>
    %c16 = arith.constant 16 : index
    %c0_9 = arith.constant 0 : index
    %8 = vector.load %arg6[%c16, %c0_9] : memref<128x1152xbf16, #tpu.memory_space<vmem>>, vector<8x1152xbf16>
    tpu.vector_store %arg6[%c16, %c0_9], %7 {strides = array<i32>} : memref<128x1152xbf16, #tpu.memory_space<vmem>>, vector<8x1152xbf16>,
    %c0_10 = arith.constant 0 : index
    %c0_11 = arith.constant 0 : index
    %c3 = arith.constant 3 : index
    %9 = vector.load %arg2[%c0_10, %c0_11, %c3] : memref<1x8x1280xbf16, #tpu.memory_space<vmem>>, vector<1x8x1152xbf16>
    %10 = vector.shape_cast %9 : vector<1x8x1152xbf16> to vector<8x1152xbf16>
    %c24 = arith.constant 24 : index
    %c0_12 = arith.constant 0 : index
    %11 = vector.load %arg6[%c24, %c0_12] : memref<128x1152xbf16, #tpu.memory_space<vmem>>, vector<8x1152xbf16>
    tpu.vector_store %arg6[%c24, %c0_12], %10 {strides = array<i32>} : memref<128x1152xbf16, #tpu.memory_space<vmem>>, vector<8x1152xbf16>,
    %c0_13 = arith.constant 0 : index
    %c0_14 = arith.constant 0 : index
    %c35 = arith.constant 35 : index
    %12 = vector.load %arg2[%c0_13, %c0_14, %c35] : memref<1x8x1280xbf16, #tpu.memory_space<vmem>>, vector<1x8x1152xbf16>
    %13 = vector.shape_cast %12 : vector<1x8x1152xbf16> to vector<8x1152xbf16>
    %c32 = arith.constant 32 : index
    %c0_15 = arith.constant 0 : index
    %14 = vector.load %arg6[%c32, %c0_15] : memref<128x1152xbf16, #tpu.memory_space<vmem>>, vector<8x1152xbf16>
    tpu.vector_store %arg6[%c32, %c0_15], %13 {strides = array<i32>} : memref<128x1152xbf16, #tpu.memory_space<vmem>>, vector<8x1152xbf16>,
    %c0_16 = arith.constant 0 : index
    %c0_17 = arith.constant 0 : index
    %c36 = arith.constant 36 : index
    %15 = vector.load %arg2[%c0_16, %c0_17, %c36] : memref<1x8x1280xbf16, #tpu.memory_space<vmem>>, vector<1x8x1152xbf16>
    %16 = vector.shape_cast %15 : vector<1x8x1152xbf16> to vector<8x1152xbf16>
    %c40 = arith.constant 40 : index
    %c0_18 = arith.constant 0 : index
    %17 = vector.load %arg6[%c40, %c0_18] : memref<128x1152xbf16, #tpu.memory_space<vmem>>, vector<8x1152xbf16>
    tpu.vector_store %arg6[%c40, %c0_18], %16 {strides = array<i32>} : memref<128x1152xbf16, #tpu.memory_space<vmem>>, vector<8x1152xbf16>,
    %c0_19 = arith.constant 0 : index
    %c0_20 = arith.constant 0 : index
    %c37 = arith.constant 37 : index
    %18 = vector.load %arg2[%c0_19, %c0_20, %c37] : memref<1x8x1280xbf16, #tpu.memory_space<vmem>>, vector<1x8x1152xbf16>
    %19 = vector.shape_cast %18 : vector<1x8x1152xbf16> to vector<8x1152xbf16>
    %c48 = arith.constant 48 : index
    %c0_21 = arith.constant 0 : index
    %20 = vector.load %arg6[%c48, %c0_21] : memref<128x1152xbf16, #tpu.memory_space<vmem>>, vector<8x1152xbf16>
    tpu.vector_store %arg6[%c48, %c0_21], %19 {strides = array<i32>} : memref<128x1152xbf16, #tpu.memory_space<vmem>>, vector<8x1152xbf16>,
    %c0_22 = arith.constant 0 : index
    %c0_23 = arith.constant 0 : index
    %c38 = arith.constant 38 : index
    %21 = vector.load %arg2[%c0_22, %c0_23, %c38] : memref<1x8x1280xbf16, #tpu.memory_space<vmem>>, vector<1x8x1152xbf16>
    %22 = vector.shape_cast %21 : vector<1x8x1152xbf16> to vector<8x1152xbf16>
    %c56 = arith.constant 56 : index
    %c0_24 = arith.constant 0 : index
    %23 = vector.load %arg6[%c56, %c0_24] : memref<128x1152xbf16, #tpu.memory_space<vmem>>, vector<8x1152xbf16>
    tpu.vector_store %arg6[%c56, %c0_24], %22 {strides = array<i32>} : memref<128x1152xbf16, #tpu.memory_space<vmem>>, vector<8x1152xbf16>,
    %c0_25 = arith.constant 0 : index
    %c0_26 = arith.constant 0 : index
    %c70 = arith.constant 70 : index
    %24 = vector.load %arg2[%c0_25, %c0_26, %c70] : memref<1x8x1280xbf16, #tpu.memory_space<vmem>>, vector<1x8x1152xbf16>
    %25 = vector.shape_cast %24 : vector<1x8x1152xbf16> to vector<8x1152xbf16>
    %c64 = arith.constant 64 : index
    %c0_27 = arith.constant 0 : index
    %26 = vector.load %arg6[%c64, %c0_27] : memref<128x1152xbf16, #tpu.memory_space<vmem>>, vector<8x1152xbf16>
    tpu.vector_store %arg6[%c64, %c0_27], %25 {strides = array<i32>} : memref<128x1152xbf16, #tpu.memory_space<vmem>>, vector<8x1152xbf16>,
    %c0_28 = arith.constant 0 : index
    %c0_29 = arith.constant 0 : index
    %c71 = arith.constant 71 : index
    %27 = vector.load %arg2[%c0_28, %c0_29, %c71] : memref<1x8x1280xbf16, #tpu.memory_space<vmem>>, vector<1x8x1152xbf16>
    %28 = vector.shape_cast %27 : vector<1x8x1152xbf16> to vector<8x1152xbf16>
    %c72 = arith.constant 72 : index
    %c0_30 = arith.constant 0 : index
    %29 = vector.load %arg6[%c72, %c0_30] : memref<128x1152xbf16, #tpu.memory_space<vmem>>, vector<8x1152xbf16>
    tpu.vector_store %arg6[%c72, %c0_30], %28 {strides = array<i32>} : memref<128x1152xbf16, #tpu.memory_space<vmem>>, vector<8x1152xbf16>,
    %c0_31 = arith.constant 0 : index
    %c0_32 = arith.constant 0 : index
    %c72_33 = arith.constant 72 : index
    %30 = vector.load %arg2[%c0_31, %c0_32, %c72_33] : memref<1x8x1280xbf16, #tpu.memory_space<vmem>>, vector<1x8x1152xbf16>
    %31 = vector.shape_cast %30 : vector<1x8x1152xbf16> to vector<8x1152xbf16>
    %c80 = arith.constant 80 : index
    %c0_34 = arith.constant 0 : index
    %32 = vector.load %arg6[%c80, %c0_34] : memref<128x1152xbf16, #tpu.memory_space<vmem>>, vector<8x1152xbf16>
    tpu.vector_store %arg6[%c80, %c0_34], %31 {strides = array<i32>} : memref<128x1152xbf16, #tpu.memory_space<vmem>>, vector<8x1152xbf16>,
    %c0_35 = arith.constant 0 : index
    %c0_36 = arith.constant 0 : index
    %c73 = arith.constant 73 : index
    %33 = vector.load %arg2[%c0_35, %c0_36, %c73] : memref<1x8x1280xbf16, #tpu.memory_space<vmem>>, vector<1x8x1152xbf16>
    %34 = vector.shape_cast %33 : vector<1x8x1152xbf16> to vector<8x1152xbf16>
    %c88 = arith.constant 88 : index
    %c0_37 = arith.constant 0 : index
    %35 = vector.load %arg6[%c88, %c0_37] : memref<128x1152xbf16, #tpu.memory_space<vmem>>, vector<8x1152xbf16>
    tpu.vector_store %arg6[%c88, %c0_37], %34 {strides = array<i32>} : memref<128x1152xbf16, #tpu.memory_space<vmem>>, vector<8x1152xbf16>,
    %c0_38 = arith.constant 0 : index
    %c0_39 = arith.constant 0 : index
    %c105 = arith.constant 105 : index
    %36 = vector.load %arg2[%c0_38, %c0_39, %c105] : memref<1x8x1280xbf16, #tpu.memory_space<vmem>>, vector<1x8x1152xbf16>
    %37 = vector.shape_cast %36 : vector<1x8x1152xbf16> to vector<8x1152xbf16>
    %c96 = arith.constant 96 : index
    %c0_40 = arith.constant 0 : index
    %38 = vector.load %arg6[%c96, %c0_40] : memref<128x1152xbf16, #tpu.memory_space<vmem>>, vector<8x1152xbf16>
    tpu.vector_store %arg6[%c96, %c0_40], %37 {strides = array<i32>} : memref<128x1152xbf16, #tpu.memory_space<vmem>>, vector<8x1152xbf16>,
    %c0_41 = arith.constant 0 : index
    %c0_42 = arith.constant 0 : index
    %c106 = arith.constant 106 : index
    %39 = vector.load %arg2[%c0_41, %c0_42, %c106] : memref<1x8x1280xbf16, #tpu.memory_space<vmem>>, vector<1x8x1152xbf16>
    %40 = vector.shape_cast %39 : vector<1x8x1152xbf16> to vector<8x1152xbf16>
    %c104 = arith.constant 104 : index
    %c0_43 = arith.constant 0 : index
    %41 = vector.load %arg6[%c104, %c0_43] : memref<128x1152xbf16, #tpu.memory_space<vmem>>, vector<8x1152xbf16>
    tpu.vector_store %arg6[%c104, %c0_43], %40 {strides = array<i32>} : memref<128x1152xbf16, #tpu.memory_space<vmem>>, vector<8x1152xbf16>,
    %c0_44 = arith.constant 0 : index
    %c0_45 = arith.constant 0 : index
    %c107 = arith.constant 107 : index
    %42 = vector.load %arg2[%c0_44, %c0_45, %c107] : memref<1x8x1280xbf16, #tpu.memory_space<vmem>>, vector<1x8x1152xbf16>
    %43 = vector.shape_cast %42 : vector<1x8x1152xbf16> to vector<8x1152xbf16>
    %c112 = arith.constant 112 : index
    %c0_46 = arith.constant 0 : index
    %44 = vector.load %arg6[%c112, %c0_46] : memref<128x1152xbf16, #tpu.memory_space<vmem>>, vector<8x1152xbf16>
    tpu.vector_store %arg6[%c112, %c0_46], %43 {strides = array<i32>} : memref<128x1152xbf16, #tpu.memory_space<vmem>>, vector<8x1152xbf16>,
    %c0_47 = arith.constant 0 : index
    %c0_48 = arith.constant 0 : index
    %c108 = arith.constant 108 : index
    %45 = vector.load %arg2[%c0_47, %c0_48, %c108] : memref<1x8x1280xbf16, #tpu.memory_space<vmem>>, vector<1x8x1152xbf16>
    %46 = vector.shape_cast %45 : vector<1x8x1152xbf16> to vector<8x1152xbf16>
    %c120 = arith.constant 120 : index
    %c0_49 = arith.constant 0 : index
    %47 = vector.load %arg6[%c120, %c0_49] : memref<128x1152xbf16, #tpu.memory_space<vmem>>, vector<8x1152xbf16>
    tpu.vector_store %arg6[%c120, %c0_49], %46 {strides = array<i32>} : memref<128x1152xbf16, #tpu.memory_space<vmem>>, vector<8x1152xbf16>,
    %c0_50 = arith.constant 0 : index
    %c0_51 = arith.constant 0 : index
    %48 = vector.load %arg1[%c0_50, %c0_51] : memref<16x128xbf16, #tpu.memory_space<vmem>>, vector<16x128xbf16>
    %c0_52 = arith.constant 0 : index
    %c0_53 = arith.constant 0 : index
    %49 = vector.load %arg6[%c0_52, %c0_53] : memref<128x1152xbf16, #tpu.memory_space<vmem>>, vector<128x1152xbf16>
    %cst = arith.constant dense<0.000000e+00> : vector<16x1152xf32>
    %50 = tpu.matmul %48, %49, %cst {dimension_numbers = #tpu.dot_dimension_numbers<[1], [0], [0], [1], [0, 0, 1, 1], [], []>} : vector<16x128xbf16>, vector<128x1152xbf16>, vector<16x1152xf32> -> vector<16x1152xf32>
    %c0_54 = arith.constant 0 : index
    %c0_55 = arith.constant 0 : index
    %51 = vector.load %arg3[%c0_54, %c0_55] : memref<16x1xf32, #tpu.memory_space<vmem>>, vector<16x1xf32>
    %52 = vector.broadcast %51 : vector<16x1xf32> to vector<16x1152xf32>
    %53 = arith.mulf %50, %52 : vector<16x1152xf32>
    %c0_56 = arith.constant 0 : index
    %c0_57 = arith.constant 0 : index
    %54 = vector.load %arg4[%c0_56, %c0_57] : memref<16x1xf32, #tpu.memory_space<vmem>>, vector<16x1xf32>
    %55 = vector.broadcast %54 : vector<16x1xf32> to vector<16x1152xf32>
    %56 = arith.addf %53, %55 : vector<16x1152xf32>
    %cst_58 = arith.constant 0.000000e+00 : f32
    %57 = vector.broadcast %cst_58 : f32 to vector<16x1152xf32>
    %58 = arith.cmpf ogt, %56, %57 : vector<16x1152xf32>
    %cst_59 = arith.constant 2.000000e-01 : f32
    %59 = vector.broadcast %cst_59 : f32 to vector<16x1152xf32>
    %60 = arith.mulf %59, %56 : vector<16x1152xf32>
    %61 = arith.select %58, %56, %60 : vector<16x1152xi1>, vector<16x1152xf32>
    %c0_60 = arith.constant 0 : index
    %c0_61 = arith.constant 0 : index
    %62 = vector.load %arg7[%c0_60, %c0_61] : memref<16x1152xf32, #tpu.memory_space<vmem>>, vector<16x1152xf32>
    tpu.vector_store %arg7[%c0_60, %c0_61], %61 {strides = array<i32>} : memref<16x1152xf32, #tpu.memory_space<vmem>>, vector<16x1152xf32>,
    %c0_62 = arith.constant 0 : index
    %c0_63 = arith.constant 0 : index
    %63 = vector.load %arg7[%c0_62, %c0_63] : memref<16x1152xf32, #tpu.memory_space<vmem>>, vector<16x32xf32>
    %c0_64 = arith.constant 0 : index
    %c0_65 = arith.constant 0 : index
    %c0_66 = arith.constant 0 : index
    %c0_67 = arith.constant 0 : index
    %64 = vector.load %arg5[%c0_64, %c0_65, %c0_66, %c0_67] : memref<1x16x32x32xf32, #tpu.memory_space<vmem>>, vector<1x16x1x32xf32>
    %65 = vector.shape_cast %64 : vector<1x16x1x32xf32> to vector<16x32xf32>
    %66 = vector.shape_cast %63 : vector<16x32xf32> to vector<1x16x1x32xf32>
    tpu.vector_store %arg5[%c0_64, %c0_65, %c0_66, %c0_67], %66 {strides = array<i32>} : memref<1x16x32x32xf32, #tpu.memory_space<vmem>>, vector<1x16x1x32xf32>,
    %c0_68 = arith.constant 0 : index
    %c35_69 = arith.constant 35 : index
    %67 = vector.load %arg7[%c0_68, %c35_69] : memref<16x1152xf32, #tpu.memory_space<vmem>>, vector<16x32xf32>
    %c0_70 = arith.constant 0 : index
    %c0_71 = arith.constant 0 : index
    %c1_72 = arith.constant 1 : index
    %c0_73 = arith.constant 0 : index
    %68 = vector.load %arg5[%c0_70, %c0_71, %c1_72, %c0_73] : memref<1x16x32x32xf32, #tpu.memory_space<vmem>>, vector<1x16x1x32xf32>
    %69 = vector.shape_cast %68 : vector<1x16x1x32xf32> to vector<16x32xf32>
    %70 = vector.shape_cast %67 : vector<16x32xf32> to vector<1x16x1x32xf32>
    tpu.vector_store %arg5[%c0_70, %c0_71, %c1_72, %c0_73], %70 {strides = array<i32>} : memref<1x16x32x32xf32, #tpu.memory_space<vmem>>, vector<1x16x1x32xf32>,
    %c0_74 = arith.constant 0 : index
    %c70_75 = arith.constant 70 : index
    %71 = vector.load %arg7[%c0_74, %c70_75] : memref<16x1152xf32, #tpu.memory_space<vmem>>, vector<16x32xf32>
    %c0_76 = arith.constant 0 : index
    %c0_77 = arith.constant 0 : index
    %c2_78 = arith.constant 2 : index
    %c0_79 = arith.constant 0 : index
    %72 = vector.load %arg5[%c0_76, %c0_77, %c2_78, %c0_79] : memref<1x16x32x32xf32, #tpu.memory_space<vmem>>, vector<1x16x1x32xf32>
    %73 = vector.shape_cast %72 : vector<1x16x1x32xf32> to vector<16x32xf32>
    %74 = vector.shape_cast %71 : vector<16x32xf32> to vector<1x16x1x32xf32>
    tpu.vector_store %arg5[%c0_76, %c0_77, %c2_78, %c0_79], %74 {strides = array<i32>} : memref<1x16x32x32xf32, #tpu.memory_space<vmem>>, vector<1x16x1x32xf32>,
    %c0_80 = arith.constant 0 : index
    %c105_81 = arith.constant 105 : index
    %75 = vector.load %arg7[%c0_80, %c105_81] : memref<16x1152xf32, #tpu.memory_space<vmem>>, vector<16x32xf32>
    %c0_82 = arith.constant 0 : index
    %c0_83 = arith.constant 0 : index
    %c3_84 = arith.constant 3 : index
    %c0_85 = arith.constant 0 : index
    %76 = vector.load %arg5[%c0_82, %c0_83, %c3_84, %c0_85] : memref<1x16x32x32xf32, #tpu.memory_space<vmem>>, vector<1x16x1x32xf32>
    %77 = vector.shape_cast %76 : vector<1x16x1x32xf32> to vector<16x32xf32>
    %78 = vector.shape_cast %75 : vector<16x32xf32> to vector<1x16x1x32xf32>
    tpu.vector_store %arg5[%c0_82, %c0_83, %c3_84, %c0_85], %78 {strides = array<i32>} : memref<1x16x32x32xf32, #tpu.memory_space<vmem>>, vector<1x16x1x32xf32>,
    %c0_86 = arith.constant 0 : index
    %c140 = arith.constant 140 : index
    %79 = vector.load %arg7[%c0_86, %c140] : memref<16x1152xf32, #tpu.memory_space<vmem>>, vector<16x32xf32>
    %c0_87 = arith.constant 0 : index
    %c0_88 = arith.constant 0 : index
    %c4 = arith.constant 4 : index
    %c0_89 = arith.constant 0 : index
    %80 = vector.load %arg5[%c0_87, %c0_88, %c4, %c0_89] : memref<1x16x32x32xf32, #tpu.memory_space<vmem>>, vector<1x16x1x32xf32>
    %81 = vector.shape_cast %80 : vector<1x16x1x32xf32> to vector<16x32xf32>
    %82 = vector.shape_cast %79 : vector<16x32xf32> to vector<1x16x1x32xf32>
    tpu.vector_store %arg5[%c0_87, %c0_88, %c4, %c0_89], %82 {strides = array<i32>} : memref<1x16x32x32xf32, #tpu.memory_space<vmem>>, vector<1x16x1x32xf32>,
    %c0_90 = arith.constant 0 : index
    %c175 = arith.constant 175 : index
    %83 = vector.load %arg7[%c0_90, %c175] : memref<16x1152xf32, #tpu.memory_space<vmem>>, vector<16x32xf32>
    %c0_91 = arith.constant 0 : index
    %c0_92 = arith.constant 0 : index
    %c5 = arith.constant 5 : index
    %c0_93 = arith.constant 0 : index
    %84 = vector.load %arg5[%c0_91, %c0_92, %c5, %c0_93] : memref<1x16x32x32xf32, #tpu.memory_space<vmem>>, vector<1x16x1x32xf32>
    %85 = vector.shape_cast %84 : vector<1x16x1x32xf32> to vector<16x32xf32>
    %86 = vector.shape_cast %83 : vector<16x32xf32> to vector<1x16x1x32xf32>
    tpu.vector_store %arg5[%c0_91, %c0_92, %c5, %c0_93], %86 {strides = array<i32>} : memref<1x16x32x32xf32, #tpu.memory_space<vmem>>, vector<1x16x1x32xf32>,
    %c0_94 = arith.constant 0 : index
    %c210 = arith.constant 210 : index
    %87 = vector.load %arg7[%c0_94, %c210] : memref<16x1152xf32, #tpu.memory_space<vmem>>, vector<16x32xf32>
    %c0_95 = arith.constant 0 : index
    %c0_96 = arith.constant 0 : index
    %c6 = arith.constant 6 : index
    %c0_97 = arith.constant 0 : index
    %88 = vector.load %arg5[%c0_95, %c0_96, %c6, %c0_97] : memref<1x16x32x32xf32, #tpu.memory_space<vmem>>, vector<1x16x1x32xf32>
    %89 = vector.shape_cast %88 : vector<1x16x1x32xf32> to vector<16x32xf32>
    %90 = vector.shape_cast %87 : vector<16x32xf32> to vector<1x16x1x32xf32>
    tpu.vector_store %arg5[%c0_95, %c0_96, %c6, %c0_97], %90 {strides = array<i32>} : memref<1x16x32x32xf32, #tpu.memory_space<vmem>>, vector<1x16x1x32xf32>,
    %c0_98 = arith.constant 0 : index
    %c245 = arith.constant 245 : index
    %91 = vector.load %arg7[%c0_98, %c245] : memref<16x1152xf32, #tpu.memory_space<vmem>>, vector<16x32xf32>
    %c0_99 = arith.constant 0 : index
    %c0_100 = arith.constant 0 : index
    %c7 = arith.constant 7 : index
    %c0_101 = arith.constant 0 : index
    %92 = vector.load %arg5[%c0_99, %c0_100, %c7, %c0_101] : memref<1x16x32x32xf32, #tpu.memory_space<vmem>>, vector<1x16x1x32xf32>
    %93 = vector.shape_cast %92 : vector<1x16x1x32xf32> to vector<16x32xf32>
    %94 = vector.shape_cast %91 : vector<16x32xf32> to vector<1x16x1x32xf32>
    tpu.vector_store %arg5[%c0_99, %c0_100, %c7, %c0_101], %94 {strides = array<i32>} : memref<1x16x32x32xf32, #tpu.memory_space<vmem>>, vector<1x16x1x32xf32>,
    %c0_102 = arith.constant 0 : index
    %c280 = arith.constant 280 : index
    %95 = vector.load %arg7[%c0_102, %c280] : memref<16x1152xf32, #tpu.memory_space<vmem>>, vector<16x32xf32>
    %c0_103 = arith.constant 0 : index
    %c0_104 = arith.constant 0 : index
    %c8_105 = arith.constant 8 : index
    %c0_106 = arith.constant 0 : index
    %96 = vector.load %arg5[%c0_103, %c0_104, %c8_105, %c0_106] : memref<1x16x32x32xf32, #tpu.memory_space<vmem>>, vector<1x16x1x32xf32>
    %97 = vector.shape_cast %96 : vector<1x16x1x32xf32> to vector<16x32xf32>
    %98 = vector.shape_cast %95 : vector<16x32xf32> to vector<1x16x1x32xf32>
    tpu.vector_store %arg5[%c0_103, %c0_104, %c8_105, %c0_106], %98 {strides = array<i32>} : memref<1x16x32x32xf32, #tpu.memory_space<vmem>>, vector<1x16x1x32xf32>,
    %c0_107 = arith.constant 0 : index
    %c315 = arith.constant 315 : index
    %99 = vector.load %arg7[%c0_107, %c315] : memref<16x1152xf32, #tpu.memory_space<vmem>>, vector<16x32xf32>
    %c0_108 = arith.constant 0 : index
    %c0_109 = arith.constant 0 : index
    %c9 = arith.constant 9 : index
    %c0_110 = arith.constant 0 : index
    %100 = vector.load %arg5[%c0_108, %c0_109, %c9, %c0_110] : memref<1x16x32x32xf32, #tpu.memory_space<vmem>>, vector<1x16x1x32xf32>
    %101 = vector.shape_cast %100 : vector<1x16x1x32xf32> to vector<16x32xf32>
    %102 = vector.shape_cast %99 : vector<16x32xf32> to vector<1x16x1x32xf32>
    tpu.vector_store %arg5[%c0_108, %c0_109, %c9, %c0_110], %102 {strides = array<i32>} : memref<1x16x32x32xf32, #tpu.memory_space<vmem>>, vector<1x16x1x32xf32>,
    %c0_111 = arith.constant 0 : index
    %c350 = arith.constant 350 : index
    %103 = vector.load %arg7[%c0_111, %c350] : memref<16x1152xf32, #tpu.memory_space<vmem>>, vector<16x32xf32>
    %c0_112 = arith.constant 0 : index
    %c0_113 = arith.constant 0 : index
    %c10 = arith.constant 10 : index
    %c0_114 = arith.constant 0 : index
    %104 = vector.load %arg5[%c0_112, %c0_113, %c10, %c0_114] : memref<1x16x32x32xf32, #tpu.memory_space<vmem>>, vector<1x16x1x32xf32>
    %105 = vector.shape_cast %104 : vector<1x16x1x32xf32> to vector<16x32xf32>
    %106 = vector.shape_cast %103 : vector<16x32xf32> to vector<1x16x1x32xf32>
    tpu.vector_store %arg5[%c0_112, %c0_113, %c10, %c0_114], %106 {strides = array<i32>} : memref<1x16x32x32xf32, #tpu.memory_space<vmem>>, vector<1x16x1x32xf32>,
    %c0_115 = arith.constant 0 : index
    %c385 = arith.constant 385 : index
    %107 = vector.load %arg7[%c0_115, %c385] : memref<16x1152xf32, #tpu.memory_space<vmem>>, vector<16x32xf32>
    %c0_116 = arith.constant 0 : index
    %c0_117 = arith.constant 0 : index
    %c11 = arith.constant 11 : index
    %c0_118 = arith.constant 0 : index
    %108 = vector.load %arg5[%c0_116, %c0_117, %c11, %c0_118] : memref<1x16x32x32xf32, #tpu.memory_space<vmem>>, vector<1x16x1x32xf32>
    %109 = vector.shape_cast %108 : vector<1x16x1x32xf32> to vector<16x32xf32>
    %110 = vector.shape_cast %107 : vector<16x32xf32> to vector<1x16x1x32xf32>
    tpu.vector_store %arg5[%c0_116, %c0_117, %c11, %c0_118], %110 {strides = array<i32>} : memref<1x16x32x32xf32, #tpu.memory_space<vmem>>, vector<1x16x1x32xf32>,
    %c0_119 = arith.constant 0 : index
    %c420 = arith.constant 420 : index
    %111 = vector.load %arg7[%c0_119, %c420] : memref<16x1152xf32, #tpu.memory_space<vmem>>, vector<16x32xf32>
    %c0_120 = arith.constant 0 : index
    %c0_121 = arith.constant 0 : index
    %c12 = arith.constant 12 : index
    %c0_122 = arith.constant 0 : index
    %112 = vector.load %arg5[%c0_120, %c0_121, %c12, %c0_122] : memref<1x16x32x32xf32, #tpu.memory_space<vmem>>, vector<1x16x1x32xf32>
    %113 = vector.shape_cast %112 : vector<1x16x1x32xf32> to vector<16x32xf32>
    %114 = vector.shape_cast %111 : vector<16x32xf32> to vector<1x16x1x32xf32>
    tpu.vector_store %arg5[%c0_120, %c0_121, %c12, %c0_122], %114 {strides = array<i32>} : memref<1x16x32x32xf32, #tpu.memory_space<vmem>>, vector<1x16x1x32xf32>,
    %c0_123 = arith.constant 0 : index
    %c455 = arith.constant 455 : index
    %115 = vector.load %arg7[%c0_123, %c455] : memref<16x1152xf32, #tpu.memory_space<vmem>>, vector<16x32xf32>
    %c0_124 = arith.constant 0 : index
    %c0_125 = arith.constant 0 : index
    %c13 = arith.constant 13 : index
    %c0_126 = arith.constant 0 : index
    %116 = vector.load %arg5[%c0_124, %c0_125, %c13, %c0_126] : memref<1x16x32x32xf32, #tpu.memory_space<vmem>>, vector<1x16x1x32xf32>
    %117 = vector.shape_cast %116 : vector<1x16x1x32xf32> to vector<16x32xf32>
    %118 = vector.shape_cast %115 : vector<16x32xf32> to vector<1x16x1x32xf32>
    tpu.vector_store %arg5[%c0_124, %c0_125, %c13, %c0_126], %118 {strides = array<i32>} : memref<1x16x32x32xf32, #tpu.memory_space<vmem>>, vector<1x16x1x32xf32>,
    %c0_127 = arith.constant 0 : index
    %c490 = arith.constant 490 : index
    %119 = vector.load %arg7[%c0_127, %c490] : memref<16x1152xf32, #tpu.memory_space<vmem>>, vector<16x32xf32>
    %c0_128 = arith.constant 0 : index
    %c0_129 = arith.constant 0 : index
    %c14 = arith.constant 14 : index
    %c0_130 = arith.constant 0 : index
    %120 = vector.load %arg5[%c0_128, %c0_129, %c14, %c0_130] : memref<1x16x32x32xf32, #tpu.memory_space<vmem>>, vector<1x16x1x32xf32>
    %121 = vector.shape_cast %120 : vector<1x16x1x32xf32> to vector<16x32xf32>
    %122 = vector.shape_cast %119 : vector<16x32xf32> to vector<1x16x1x32xf32>
    tpu.vector_store %arg5[%c0_128, %c0_129, %c14, %c0_130], %122 {strides = array<i32>} : memref<1x16x32x32xf32, #tpu.memory_space<vmem>>, vector<1x16x1x32xf32>,
    %c0_131 = arith.constant 0 : index
    %c525 = arith.constant 525 : index
    %123 = vector.load %arg7[%c0_131, %c525] : memref<16x1152xf32, #tpu.memory_space<vmem>>, vector<16x32xf32>
    %c0_132 = arith.constant 0 : index
    %c0_133 = arith.constant 0 : index
    %c15 = arith.constant 15 : index
    %c0_134 = arith.constant 0 : index
    %124 = vector.load %arg5[%c0_132, %c0_133, %c15, %c0_134] : memref<1x16x32x32xf32, #tpu.memory_space<vmem>>, vector<1x16x1x32xf32>
    %125 = vector.shape_cast %124 : vector<1x16x1x32xf32> to vector<16x32xf32>
    %126 = vector.shape_cast %123 : vector<16x32xf32> to vector<1x16x1x32xf32>
    tpu.vector_store %arg5[%c0_132, %c0_133, %c15, %c0_134], %126 {strides = array<i32>} : memref<1x16x32x32xf32, #tpu.memory_space<vmem>>, vector<1x16x1x32xf32>,
    %c0_135 = arith.constant 0 : index
    %c560 = arith.constant 560 : index
    %127 = vector.load %arg7[%c0_135, %c560] : memref<16x1152xf32, #tpu.memory_space<vmem>>, vector<16x32xf32>
    %c0_136 = arith.constant 0 : index
    %c0_137 = arith.constant 0 : index
    %c16_138 = arith.constant 16 : index
    %c0_139 = arith.constant 0 : index
    %128 = vector.load %arg5[%c0_136, %c0_137, %c16_138, %c0_139] : memref<1x16x32x32xf32, #tpu.memory_space<vmem>>, vector<1x16x1x32xf32>
    %129 = vector.shape_cast %128 : vector<1x16x1x32xf32> to vector<16x32xf32>
    %130 = vector.shape_cast %127 : vector<16x32xf32> to vector<1x16x1x32xf32>
    tpu.vector_store %arg5[%c0_136, %c0_137, %c16_138, %c0_139], %130 {strides = array<i32>} : memref<1x16x32x32xf32, #tpu.memory_space<vmem>>, vector<1x16x1x32xf32>,
    %c0_140 = arith.constant 0 : index
    %c595 = arith.constant 595 : index
    %131 = vector.load %arg7[%c0_140, %c595] : memref<16x1152xf32, #tpu.memory_space<vmem>>, vector<16x32xf32>
    %c0_141 = arith.constant 0 : index
    %c0_142 = arith.constant 0 : index
    %c17 = arith.constant 17 : index
    %c0_143 = arith.constant 0 : index
    %132 = vector.load %arg5[%c0_141, %c0_142, %c17, %c0_143] : memref<1x16x32x32xf32, #tpu.memory_space<vmem>>, vector<1x16x1x32xf32>
    %133 = vector.shape_cast %132 : vector<1x16x1x32xf32> to vector<16x32xf32>
    %134 = vector.shape_cast %131 : vector<16x32xf32> to vector<1x16x1x32xf32>
    tpu.vector_store %arg5[%c0_141, %c0_142, %c17, %c0_143], %134 {strides = array<i32>} : memref<1x16x32x32xf32, #tpu.memory_space<vmem>>, vector<1x16x1x32xf32>,
    %c0_144 = arith.constant 0 : index
    %c630 = arith.constant 630 : index
    %135 = vector.load %arg7[%c0_144, %c630] : memref<16x1152xf32, #tpu.memory_space<vmem>>, vector<16x32xf32>
    %c0_145 = arith.constant 0 : index
    %c0_146 = arith.constant 0 : index
    %c18 = arith.constant 18 : index
    %c0_147 = arith.constant 0 : index
    %136 = vector.load %arg5[%c0_145, %c0_146, %c18, %c0_147] : memref<1x16x32x32xf32, #tpu.memory_space<vmem>>, vector<1x16x1x32xf32>
    %137 = vector.shape_cast %136 : vector<1x16x1x32xf32> to vector<16x32xf32>
    %138 = vector.shape_cast %135 : vector<16x32xf32> to vector<1x16x1x32xf32>
    tpu.vector_store %arg5[%c0_145, %c0_146, %c18, %c0_147], %138 {strides = array<i32>} : memref<1x16x32x32xf32, #tpu.memory_space<vmem>>, vector<1x16x1x32xf32>,
    %c0_148 = arith.constant 0 : index
    %c665 = arith.constant 665 : index
    %139 = vector.load %arg7[%c0_148, %c665] : memref<16x1152xf32, #tpu.memory_space<vmem>>, vector<16x32xf32>
    %c0_149 = arith.constant 0 : index
    %c0_150 = arith.constant 0 : index
    %c19 = arith.constant 19 : index
    %c0_151 = arith.constant 0 : index
    %140 = vector.load %arg5[%c0_149, %c0_150, %c19, %c0_151] : memref<1x16x32x32xf32, #tpu.memory_space<vmem>>, vector<1x16x1x32xf32>
    %141 = vector.shape_cast %140 : vector<1x16x1x32xf32> to vector<16x32xf32>
    %142 = vector.shape_cast %139 : vector<16x32xf32> to vector<1x16x1x32xf32>
    tpu.vector_store %arg5[%c0_149, %c0_150, %c19, %c0_151], %142 {strides = array<i32>} : memref<1x16x32x32xf32, #tpu.memory_space<vmem>>, vector<1x16x1x32xf32>,
    %c0_152 = arith.constant 0 : index
    %c700 = arith.constant 700 : index
    %143 = vector.load %arg7[%c0_152, %c700] : memref<16x1152xf32, #tpu.memory_space<vmem>>, vector<16x32xf32>
    %c0_153 = arith.constant 0 : index
    %c0_154 = arith.constant 0 : index
    %c20 = arith.constant 20 : index
    %c0_155 = arith.constant 0 : index
    %144 = vector.load %arg5[%c0_153, %c0_154, %c20, %c0_155] : memref<1x16x32x32xf32, #tpu.memory_space<vmem>>, vector<1x16x1x32xf32>
    %145 = vector.shape_cast %144 : vector<1x16x1x32xf32> to vector<16x32xf32>
    %146 = vector.shape_cast %143 : vector<16x32xf32> to vector<1x16x1x32xf32>
    tpu.vector_store %arg5[%c0_153, %c0_154, %c20, %c0_155], %146 {strides = array<i32>} : memref<1x16x32x32xf32, #tpu.memory_space<vmem>>, vector<1x16x1x32xf32>,
    %c0_156 = arith.constant 0 : index
    %c735 = arith.constant 735 : index
    %147 = vector.load %arg7[%c0_156, %c735] : memref<16x1152xf32, #tpu.memory_space<vmem>>, vector<16x32xf32>
    %c0_157 = arith.constant 0 : index
    %c0_158 = arith.constant 0 : index
    %c21 = arith.constant 21 : index
    %c0_159 = arith.constant 0 : index
    %148 = vector.load %arg5[%c0_157, %c0_158, %c21, %c0_159] : memref<1x16x32x32xf32, #tpu.memory_space<vmem>>, vector<1x16x1x32xf32>
    %149 = vector.shape_cast %148 : vector<1x16x1x32xf32> to vector<16x32xf32>
    %150 = vector.shape_cast %147 : vector<16x32xf32> to vector<1x16x1x32xf32>
    tpu.vector_store %arg5[%c0_157, %c0_158, %c21, %c0_159], %150 {strides = array<i32>} : memref<1x16x32x32xf32, #tpu.memory_space<vmem>>, vector<1x16x1x32xf32>,
    %c0_160 = arith.constant 0 : index
    %c770 = arith.constant 770 : index
    %151 = vector.load %arg7[%c0_160, %c770] : memref<16x1152xf32, #tpu.memory_space<vmem>>, vector<16x32xf32>
    %c0_161 = arith.constant 0 : index
    %c0_162 = arith.constant 0 : index
    %c22 = arith.constant 22 : index
    %c0_163 = arith.constant 0 : index
    %152 = vector.load %arg5[%c0_161, %c0_162, %c22, %c0_163] : memref<1x16x32x32xf32, #tpu.memory_space<vmem>>, vector<1x16x1x32xf32>
    %153 = vector.shape_cast %152 : vector<1x16x1x32xf32> to vector<16x32xf32>
    %154 = vector.shape_cast %151 : vector<16x32xf32> to vector<1x16x1x32xf32>
    tpu.vector_store %arg5[%c0_161, %c0_162, %c22, %c0_163], %154 {strides = array<i32>} : memref<1x16x32x32xf32, #tpu.memory_space<vmem>>, vector<1x16x1x32xf32>,
    %c0_164 = arith.constant 0 : index
    %c805 = arith.constant 805 : index
    %155 = vector.load %arg7[%c0_164, %c805] : memref<16x1152xf32, #tpu.memory_space<vmem>>, vector<16x32xf32>
    %c0_165 = arith.constant 0 : index
    %c0_166 = arith.constant 0 : index
    %c23 = arith.constant 23 : index
    %c0_167 = arith.constant 0 : index
    %156 = vector.load %arg5[%c0_165, %c0_166, %c23, %c0_167] : memref<1x16x32x32xf32, #tpu.memory_space<vmem>>, vector<1x16x1x32xf32>
    %157 = vector.shape_cast %156 : vector<1x16x1x32xf32> to vector<16x32xf32>
    %158 = vector.shape_cast %155 : vector<16x32xf32> to vector<1x16x1x32xf32>
    tpu.vector_store %arg5[%c0_165, %c0_166, %c23, %c0_167], %158 {strides = array<i32>} : memref<1x16x32x32xf32, #tpu.memory_space<vmem>>, vector<1x16x1x32xf32>,
    %c0_168 = arith.constant 0 : index
    %c840 = arith.constant 840 : index
    %159 = vector.load %arg7[%c0_168, %c840] : memref<16x1152xf32, #tpu.memory_space<vmem>>, vector<16x32xf32>
    %c0_169 = arith.constant 0 : index
    %c0_170 = arith.constant 0 : index
    %c24_171 = arith.constant 24 : index
    %c0_172 = arith.constant 0 : index
    %160 = vector.load %arg5[%c0_169, %c0_170, %c24_171, %c0_172] : memref<1x16x32x32xf32, #tpu.memory_space<vmem>>, vector<1x16x1x32xf32>
    %161 = vector.shape_cast %160 : vector<1x16x1x32xf32> to vector<16x32xf32>
    %162 = vector.shape_cast %159 : vector<16x32xf32> to vector<1x16x1x32xf32>
    tpu.vector_store %arg5[%c0_169, %c0_170, %c24_171, %c0_172], %162 {strides = array<i32>} : memref<1x16x32x32xf32, #tpu.memory_space<vmem>>, vector<1x16x1x32xf32>,
    %c0_173 = arith.constant 0 : index
    %c875 = arith.constant 875 : index
    %163 = vector.load %arg7[%c0_173, %c875] : memref<16x1152xf32, #tpu.memory_space<vmem>>, vector<16x32xf32>
    %c0_174 = arith.constant 0 : index
    %c0_175 = arith.constant 0 : index
    %c25 = arith.constant 25 : index
    %c0_176 = arith.constant 0 : index
    %164 = vector.load %arg5[%c0_174, %c0_175, %c25, %c0_176] : memref<1x16x32x32xf32, #tpu.memory_space<vmem>>, vector<1x16x1x32xf32>
    %165 = vector.shape_cast %164 : vector<1x16x1x32xf32> to vector<16x32xf32>
    %166 = vector.shape_cast %163 : vector<16x32xf32> to vector<1x16x1x32xf32>
    tpu.vector_store %arg5[%c0_174, %c0_175, %c25, %c0_176], %166 {strides = array<i32>} : memref<1x16x32x32xf32, #tpu.memory_space<vmem>>, vector<1x16x1x32xf32>,
    %c0_177 = arith.constant 0 : index
    %c910 = arith.constant 910 : index
    %167 = vector.load %arg7[%c0_177, %c910] : memref<16x1152xf32, #tpu.memory_space<vmem>>, vector<16x32xf32>
    %c0_178 = arith.constant 0 : index
    %c0_179 = arith.constant 0 : index
    %c26 = arith.constant 26 : index
    %c0_180 = arith.constant 0 : index
    %168 = vector.load %arg5[%c0_178, %c0_179, %c26, %c0_180] : memref<1x16x32x32xf32, #tpu.memory_space<vmem>>, vector<1x16x1x32xf32>
    %169 = vector.shape_cast %168 : vector<1x16x1x32xf32> to vector<16x32xf32>
    %170 = vector.shape_cast %167 : vector<16x32xf32> to vector<1x16x1x32xf32>
    tpu.vector_store %arg5[%c0_178, %c0_179, %c26, %c0_180], %170 {strides = array<i32>} : memref<1x16x32x32xf32, #tpu.memory_space<vmem>>, vector<1x16x1x32xf32>,
    %c0_181 = arith.constant 0 : index
    %c945 = arith.constant 945 : index
    %171 = vector.load %arg7[%c0_181, %c945] : memref<16x1152xf32, #tpu.memory_space<vmem>>, vector<16x32xf32>
    %c0_182 = arith.constant 0 : index
    %c0_183 = arith.constant 0 : index
    %c27 = arith.constant 27 : index
    %c0_184 = arith.constant 0 : index
    %172 = vector.load %arg5[%c0_182, %c0_183, %c27, %c0_184] : memref<1x16x32x32xf32, #tpu.memory_space<vmem>>, vector<1x16x1x32xf32>
    %173 = vector.shape_cast %172 : vector<1x16x1x32xf32> to vector<16x32xf32>
    %174 = vector.shape_cast %171 : vector<16x32xf32> to vector<1x16x1x32xf32>
    tpu.vector_store %arg5[%c0_182, %c0_183, %c27, %c0_184], %174 {strides = array<i32>} : memref<1x16x32x32xf32, #tpu.memory_space<vmem>>, vector<1x16x1x32xf32>,
    %c0_185 = arith.constant 0 : index
    %c980 = arith.constant 980 : index
    %175 = vector.load %arg7[%c0_185, %c980] : memref<16x1152xf32, #tpu.memory_space<vmem>>, vector<16x32xf32>
    %c0_186 = arith.constant 0 : index
    %c0_187 = arith.constant 0 : index
    %c28 = arith.constant 28 : index
    %c0_188 = arith.constant 0 : index
    %176 = vector.load %arg5[%c0_186, %c0_187, %c28, %c0_188] : memref<1x16x32x32xf32, #tpu.memory_space<vmem>>, vector<1x16x1x32xf32>
    %177 = vector.shape_cast %176 : vector<1x16x1x32xf32> to vector<16x32xf32>
    %178 = vector.shape_cast %175 : vector<16x32xf32> to vector<1x16x1x32xf32>
    tpu.vector_store %arg5[%c0_186, %c0_187, %c28, %c0_188], %178 {strides = array<i32>} : memref<1x16x32x32xf32, #tpu.memory_space<vmem>>, vector<1x16x1x32xf32>,
    %c0_189 = arith.constant 0 : index
    %c1015 = arith.constant 1015 : index
    %179 = vector.load %arg7[%c0_189, %c1015] : memref<16x1152xf32, #tpu.memory_space<vmem>>, vector<16x32xf32>
    %c0_190 = arith.constant 0 : index
    %c0_191 = arith.constant 0 : index
    %c29 = arith.constant 29 : index
    %c0_192 = arith.constant 0 : index
    %180 = vector.load %arg5[%c0_190, %c0_191, %c29, %c0_192] : memref<1x16x32x32xf32, #tpu.memory_space<vmem>>, vector<1x16x1x32xf32>
    %181 = vector.shape_cast %180 : vector<1x16x1x32xf32> to vector<16x32xf32>
    %182 = vector.shape_cast %179 : vector<16x32xf32> to vector<1x16x1x32xf32>
    tpu.vector_store %arg5[%c0_190, %c0_191, %c29, %c0_192], %182 {strides = array<i32>} : memref<1x16x32x32xf32, #tpu.memory_space<vmem>>, vector<1x16x1x32xf32>,
    %c0_193 = arith.constant 0 : index
    %c1050 = arith.constant 1050 : index
    %183 = vector.load %arg7[%c0_193, %c1050] : memref<16x1152xf32, #tpu.memory_space<vmem>>, vector<16x32xf32>
    %c0_194 = arith.constant 0 : index
    %c0_195 = arith.constant 0 : index
    %c30 = arith.constant 30 : index
    %c0_196 = arith.constant 0 : index
    %184 = vector.load %arg5[%c0_194, %c0_195, %c30, %c0_196] : memref<1x16x32x32xf32, #tpu.memory_space<vmem>>, vector<1x16x1x32xf32>
    %185 = vector.shape_cast %184 : vector<1x16x1x32xf32> to vector<16x32xf32>
    %186 = vector.shape_cast %183 : vector<16x32xf32> to vector<1x16x1x32xf32>
    tpu.vector_store %arg5[%c0_194, %c0_195, %c30, %c0_196], %186 {strides = array<i32>} : memref<1x16x32x32xf32, #tpu.memory_space<vmem>>, vector<1x16x1x32xf32>,
    %c0_197 = arith.constant 0 : index
    %c1085 = arith.constant 1085 : index
    %187 = vector.load %arg7[%c0_197, %c1085] : memref<16x1152xf32, #tpu.memory_space<vmem>>, vector<16x32xf32>
    %c0_198 = arith.constant 0 : index
    %c0_199 = arith.constant 0 : index
    %c31 = arith.constant 31 : index
    %c0_200 = arith.constant 0 : index
    %188 = vector.load %arg5[%c0_198, %c0_199, %c31, %c0_200] : memref<1x16x32x32xf32, #tpu.memory_space<vmem>>, vector<1x16x1x32xf32>
    %189 = vector.shape_cast %188 : vector<1x16x1x32xf32> to vector<16x32xf32>
    %190 = vector.shape_cast %187 : vector<16x32xf32> to vector<1x16x1x32xf32>
    tpu.vector_store %arg5[%c0_198, %c0_199, %c31, %c0_200], %190 {strides = array<i32>} : memref<1x16x32x32xf32, #tpu.memory_space<vmem>>, vector<1x16x1x32xf32>,
    return
  }
  func.func @transform_0(%arg0: i32) -> (i32, i32) {
    %c0_i32 = arith.constant 0 : i32
    %c0_i32_0 = arith.constant 0 : i32
    %c0_i32_1 = arith.constant 0 : i32
    return %c0_i32, %c0_i32_0 : i32, i32
  }
  func.func @transform_1(%arg0: i32) -> (i32, i32, i32) {
    %c0_i32 = arith.constant 0 : i32
    %c0_i32_0 = arith.constant 0 : i32
    %c0_i32_1 = arith.constant 0 : i32
    return %arg0, %c0_i32, %c0_i32_0 : i32, i32, i32
  }
  func.func @transform_2(%arg0: i32) -> (i32, i32) {
    %c0_i32 = arith.constant 0 : i32
    %c0_i32_0 = arith.constant 0 : i32
    %c0_i32_1 = arith.constant 0 : i32
    return %c0_i32, %c0_i32_0 : i32, i32
  }
  func.func @transform_3(%arg0: i32) -> (i32, i32) {
    %c0_i32 = arith.constant 0 : i32
    %c0_i32_0 = arith.constant 0 : i32
    %c0_i32_1 = arith.constant 0 : i32
    return %c0_i32, %c0_i32_0 : i32, i32
  }
  func.func @transform_4(%arg0: i32) -> (i32, i32, i32, i32) {
    %c0_i32 = arith.constant 0 : i32
    %c0_i32_0 = arith.constant 0 : i32
    %c0_i32_1 = arith.constant 0 : i32
    %c0_i32_2 = arith.constant 0 : i32
    return %arg0, %c0_i32, %c0_i32_0, %c0_i32_1 : i32, i32, i32, i32
  }
}

</mosaic_0001>

<bundles_post_ra>
// kernel: deconv_block_forward.2
= control target key start
LH: loop header
LB: loop body
LE: loop exit
PB: predicated region body
PF: predicated region fallthrough
CT: control target
= control target key end

     0   :  { %s2236_s15 = smov 0   ;;  %s2905_s0 = inlined_call_operand.vmem [shape: bf16[16,128], index: 0, kind: input, shape index: {}]   ;;  %s2906_s1 = inlined_call_operand.vmem [shape: bf16[2,8,1280], index: 1, kind: input, shape index: {}]   ;;  %s2907_s2 = inlined_call_operand.vmem [shape: f32[1,1152], index: 2, kind: input, shape index: {}]   ;;  %s2908_s3 = inlined_call_operand.vmem [shape: f32[2,16,1], index: 3, kind: output, shape index: {0}]   ;;  %s2909_s4 = inlined_call_operand.vmem [shape: f32[2,16,1], index: 4, kind: output, shape index: {1}]  }
   0x1 LB: > { %s1939_s16 = sadd.s32 4294967295, %s2191_s15   ;;  %p1943_p0 = scmp.ge.s32.totalorder %s2191_s15, 1  ;;  %s2191_s15 = sphi %s2236_s15, %s15_s15  }
   0x2   : > { %p165_p1 = scmp.lt.s32.totalorder %s2191_s15, 3 }
   0x4   : > { %p166_p2 = pnand %p1943_p0, %p165_p1 }
   0x5   : > { %p196_p3 = scmp.lt.s32.totalorder (!%p166_p2), %s1939_s16, 1  ;;  %s2193_s21 = smov (!%p166_p2), 127   ;;  %v2208_v11 = vmov (!%p166_p2), 0   ;;  %vm308_vm0 = vcmask (!%p166_p2), 1039360   ;;  %vm386_vm1 = vcmask (!%p166_p2), 1031168   ;;  %vm464_vm2 = vcmask (!%p166_p2), 1022976  }
   0x6   : > { %169 = sbr.rel (%p166_p2) target bundleno = 810 (0x32a), region = 32  ;;  %s2194_s22 = smov (!%p166_p2), 126   ;;  %1540 = vmatprep.mubr.bf16.mxu0 (!%p166_p2), %v2208_v11  ;;  %1583 = vmatprep.mubr.bf16.mxu1 (!%p166_p2), %v2208_v11  ;;  %vm542_vm3 = vcmask (!%p166_p2), 760832   ;;  %vm620_vm4 = vcmask (!%p166_p2), 752640   ;;  %vm698_vm5 = vcmask (!%p166_p2), 744448   ;;  %vm776_vm6 = vcmask (!%p166_p2), 736256  }
   0x7   : > { %s2195_s23 = smov (!%p166_p2), 125   ;;  %s2196_s24 = smov (!%p166_p2), 93   ;;  %vm854_vm7 = vcmask (!%p166_p2), 474112   ;;  %vm932_vm8 = vcmask (!%p166_p2), 465920   ;;  %vm1010_vm9 = vcmask (!%p166_p2), 457728   ;;  %vm1088_vm10 = vcmask (!%p166_p2), 449536  }
   0x8   : > { %s2197_s25 = smov (!%p166_p2), 92   ;;  %s2198_s26 = smov (!%p166_p2), 91   ;;  %vm1166_vm11 = vcmask (!%p166_p2), 187392   ;;  %vm1244_vm12 = vcmask (!%p166_p2), 179200   ;;  %vm1322_vm13 = vcmask (!%p166_p2), 171008   ;;  %vm1400_vm14 = vcmask (!%p166_p2), 162816  }
   0x9   : > { %s2199_s27 = smov (!%p166_p2), 90   ;;  %s2200_s28 = smov (!%p166_p2), 58   ;;  %vm2210_vm15 = vmmov (!%p166_p2), 0  }
   0xa   : > { %s2201_s29 = smov (!%p166_p2), 57   ;;  %s2202_s30 = smov (!%p166_p2), 56  }
   0xb   : > { %s2203_s5 = smov (!%p166_p2), 55   ;;  %s2204_s6 = smov (!%p166_p2), 23  }
   0xc   : > { %s2205_s7 = smov (!%p166_p2), 22   ;;  %s2206_s8 = smov (!%p166_p2), 21  }
   0xd   : > { %s2911_s16 = smov (!%p196_p3, %s1939_s16), 1  ;;  %s2207_s9 = smov 20  }
   0xe   : > { %s2143_s17 = smul.u32 40, %s2911_s16  ;;  %s2112_s18 = sshll.u32 %s2911_s16, 4 }
  0x10   : > { %s2250_s20 = scalar_lea.vmem %s2906_s1, %s2143_s17 }
  0x11   : > { %v258_v0 = vld [vmem:[%s2250_s20] sm:$0xff]  ;;  %v259_v1 = vld [vmem:[%s2250_s20 + $0x8] sm:$0xff]  ;;  %v260_v2 = vld [vmem:[%s2250_s20 + $0x10] sm:$0xff] }
  0x12   : > { %v2255_v3 = vcombine.high %v258_v0, %v258_v0  ;;  %v2257_v4 = vcombine.low %v258_v0, %v258_v0  ;;  %v2259_v5 = vcombine.low %v259_v1, %v259_v1  ;;  %v2261_v6 = vcombine.high %v259_v1, %v259_v1  ;;  %v2366_v9 = vld [vmem:[%s2250_s20 + $0x18] sm:$0xff] }
  0x13   : > { %v2263_v7 = vcombine.low %v260_v2, %v260_v2  ;;  %v2265_v8 = vcombine.high %v260_v2, %v260_v2  ;;  %v2374_v10 = vcombine.low %v2366_v9, %v2366_v9 }
  0x14   : > { %290 = vrot.lane.b32.xlu0 %v2255_v3, %s2193_s21  ;;  %288 = vrot.lane.b32.xlu1 %v2257_v4, %s2193_s21  ;;  %250 = vst [vmem:[#allocation2 + $0x8] sm:$0xf] %v2255_v3  ;;  %249 = vst [vmem:[#allocation2] sm:$0xf] %v2257_v4 }
  0x15   : > { %252 = vst [vmem:[#allocation2 + $0x18] sm:$0xf] %v2261_v6  ;;  %251 = vst [vmem:[#allocation2 + $0x10] sm:$0xf] %v2259_v5 }
  0x16   : > { %254 = vst [vmem:[#allocation2 + $0x28] sm:$0xf] %v2265_v8  ;;  %253 = vst [vmem:[#allocation2 + $0x20] sm:$0xf] %v2263_v7 }
  0x18   : > { %292 = vrot.lane.b32.xlu0 %v2259_v5, %s2193_s21  ;;  %368 = vrot.lane.b32.xlu1 %v2255_v3, %s2194_s22 }
  0x1c   : > { %370 = vrot.lane.b32.xlu0 %v2259_v5, %s2194_s22  ;;  %446 = vrot.lane.b32.xlu1 %v2255_v3, %s2195_s23 }
  0x20   : > { %448 = vrot.lane.b32.xlu0 %v2259_v5, %s2195_s23  ;;  %366 = vrot.lane.b32.xlu1 %v2257_v4, %s2194_s22 }
  0x24   : > { %444 = vrot.lane.b32.xlu0 %v2257_v4, %s2195_s23  ;;  %524 = vrot.lane.b32.xlu1 %v2255_v3, %s2196_s24 }
  0x28   : > { %526 = vrot.lane.b32.xlu0 %v2259_v5, %s2196_s24  ;;  %602 = vrot.lane.b32.xlu1 %v2255_v3, %s2197_s25 }
  0x2c   : > { %604 = vrot.lane.b32.xlu0 %v2259_v5, %s2197_s25  ;;  %522 = vrot.lane.b32.xlu1 %v2257_v4, %s2196_s24 }
  0x30   : > { %600 = vrot.lane.b32.xlu0 %v2257_v4, %s2197_s25  ;;  %680 = vrot.lane.b32.xlu1 %v2255_v3, %s2198_s26 }
  0x34   : > { %682 = vrot.lane.b32.xlu0 %v2259_v5, %s2198_s26  ;;  %758 = vrot.lane.b32.xlu1 %v2255_v3, %s2199_s27 }
  0x38   : > { %760 = vrot.lane.b32.xlu0 %v2259_v5, %s2199_s27  ;;  %678 = vrot.lane.b32.xlu1 %v2257_v4, %s2198_s26 }
  0x3c   : > { %756 = vrot.lane.b32.xlu0 %v2257_v4, %s2199_s27  ;;  %836 = vrot.lane.b32.xlu1 %v2255_v3, %s2200_s28 }
  0x40   : > { %838 = vrot.lane.b32.xlu0 %v2259_v5, %s2200_s28  ;;  %914 = vrot.lane.b32.xlu1 %v2255_v3, %s2201_s29 }
  0x44   : > { %916 = vrot.lane.b32.xlu0 %v2259_v5, %s2201_s29  ;;  %834 = vrot.lane.b32.xlu1 %v2257_v4, %s2200_s28 }
  0x48   : > { %912 = vrot.lane.b32.xlu0 %v2257_v4, %s2201_s29  ;;  %992 = vrot.lane.b32.xlu1 %v2255_v3, %s2202_s30 }
  0x4c   : > { %994 = vrot.lane.b32.xlu0 %v2259_v5, %s2202_s30  ;;  %1070 = vrot.lane.b32.xlu1 %v2255_v3, %s2203_s5 }
  0x50   : > { %1072 = vrot.lane.b32.xlu0 %v2259_v5, %s2203_s5  ;;  %990 = vrot.lane.b32.xlu1 %v2257_v4, %s2202_s30 }
  0x54   : > { %1068 = vrot.lane.b32.xlu0 %v2257_v4, %s2203_s5  ;;  %1148 = vrot.lane.b32.xlu1 %v2255_v3, %s2204_s6 }
  0x58   : > { %1150 = vrot.lane.b32.xlu0 %v2259_v5, %s2204_s6  ;;  %1226 = vrot.lane.b32.xlu1 %v2255_v3, %s2205_s7 }
  0x5c   : > { %1228 = vrot.lane.b32.xlu0 %v2259_v5, %s2205_s7  ;;  %1146 = vrot.lane.b32.xlu1 %v2257_v4, %s2204_s6 }
  0x60   : > { %1224 = vrot.lane.b32.xlu0 %v2257_v4, %s2205_s7  ;;  %294 = vrot.lane.b32.xlu1 %v2261_v6, %s2193_s21 }
  0x64   : > { %296 = vrot.lane.b32.xlu0 %v2263_v7, %s2193_s21  ;;  %1304 = vrot.lane.b32.xlu1 %v2255_v3, %s2206_s8 }
  0x68   : > { %1306 = vrot.lane.b32.xlu0 %v2259_v5, %s2206_s8  ;;  %1382 = vrot.lane.b32.xlu1 %v2255_v3, %s2207_s9 }
  0x6c   : > { %1384 = vrot.lane.b32.xlu0 %v2259_v5, %s2207_s9  ;;  %1302 = vrot.lane.b32.xlu1 %v2257_v4, %s2206_s8 }
  0x70   : > { %1380 = vrot.lane.b32.xlu0 %v2257_v4, %s2207_s9  ;;  %298 = vrot.lane.b32.xlu1 %v2265_v8, %s2193_s21 }
  0x74   : > { %300 = vrot.lane.b32.xlu0 %v2374_v10, %s2193_s21  ;;  %372 = vrot.lane.b32.xlu1 %v2261_v6, %s2194_s22 }
  0x78   : > { %374 = vrot.lane.b32.xlu0 %v2263_v7, %s2194_s22  ;;  %450 = vrot.lane.b32.xlu1 %v2261_v6, %s2195_s23 }
  0x7c   : > { %452 = vrot.lane.b32.xlu0 %v2263_v7, %s2195_s23  ;;  %376 = vrot.lane.b32.xlu1 %v2265_v8, %s2194_s22 }
  0x80   : > { %378 = vrot.lane.b32.xlu0 %v2374_v10, %s2194_s22  ;;  %454 = vrot.lane.b32.xlu1 %v2265_v8, %s2195_s23 }
  0x84   : > { %456 = vrot.lane.b32.xlu0 %v2374_v10, %s2195_s23  ;;  %528 = vrot.lane.b32.xlu1 %v2261_v6, %s2196_s24 }
  0x86   : > { %v291_v12 = vpop.permute.xlu0 %290  ;;  %v289_v13 = vpop.permute.xlu1 %288 }
  0x87   : > { %v309_v14 = vsel %vm308_vm0, %v289_v13, %v291_v12 }
  0x88   : > { %327 = vst [vmem:[#allocation2] sm:$0xf0] %v309_v14  ;;  %530 = vrot.lane.b32.xlu0 %v2263_v7, %s2196_s24  ;;  %606 = vrot.lane.b32.xlu1 %v2261_v6, %s2197_s25 }
  0x8a   : > { %v2403_v15 = vpop.permute.xlu0 %292  ;;  %v369_v16 = vpop.permute.xlu1 %368 }
  0x8b   : > { %v310_v17 = vsel %vm308_vm0, %v291_v12, %v2403_v15 }
  0x8c   : > { %328 = vst [vmem:[#allocation2 + $0x8] sm:$0xf0] %v310_v17  ;;  %608 = vrot.lane.b32.xlu0 %v2263_v7, %s2197_s25  ;;  %532 = vrot.lane.b32.xlu1 %v2265_v8, %s2196_s24 }
  0x8e   : > { %v2411_v18 = vpop.permute.xlu0 %370  ;;  %v447_v19 = vpop.permute.xlu1 %446 }
  0x8f   : > { %v388_v20 = vsel %vm386_vm1, %v369_v16, %v2411_v18  ;;  %v1430_v26 = vld [vmem:[#allocation2] sm:$0xff] }
  0x90   : > { %406 = vst [vmem:[#allocation2 + $0x50] sm:$0xf] %v388_v20  ;;  %534 = vrot.lane.b32.xlu0 %v2374_v10, %s2196_s24  ;;  %610 = vrot.lane.b32.xlu1 %v2265_v8, %s2197_s25 }
  0x92   : > { %v2419_v21 = vpop.permute.xlu0 %448  ;;  %v367_v22 = vpop.permute.xlu1 %366 }
  0x93   : > { %v466_v23 = vsel %vm464_vm2, %v447_v19, %v2419_v21  ;;  %v387_v24 = vsel %vm386_vm1, %v367_v22, %v369_v16  ;;  %v1431_v25 = vld [vmem:[#allocation2 + $0x8] sm:$0xff] }
  0x94   : > { %484 = vst [vmem:[#allocation2 + $0x50] sm:$0xf0] %v466_v23  ;;  %405 = vst [vmem:[#allocation2 + $0x48] sm:$0xf] %v387_v24  ;;  %612 = vrot.lane.b32.xlu0 %v2374_v10, %s2197_s25  ;;  %684 = vrot.lane.b32.xlu1 %v2261_v6, %s2198_s26 }
  0x95   : > { %1508 = vmatprep.subr.bf16.mxu0 %v1431_v25 }
  0x96   : > { %1509 = vmatpush1.bf16.msra.mxu0 %v1430_v26  ;;  %v445_v27 = vpop.permute.xlu0 %444  ;;  %v525_v28 = vpop.permute.xlu1 %524 }
  0x97   : > { %v465_v29 = vsel %vm464_vm2, %v445_v27, %v447_v19 }
  0x98   : > { %483 = vst [vmem:[#allocation2 + $0x48] sm:$0xf0] %v465_v29  ;;  %686 = vrot.lane.b32.xlu0 %v2263_v7, %s2198_s26  ;;  %762 = vrot.lane.b32.xlu1 %v2261_v6, %s2199_s27  ;;  %v215_v29 = vld [vmem:[%s2250_s20 + $0x18] sm:$0xff] }
  0x9a   : > { %v2433_v30 = vpop.permute.xlu0 %526  ;;  %v603_v31 = vpop.permute.xlu1 %602 }
  0x9b   : > { %v544_v32 = vsel %vm542_vm3, %v525_v28, %v2433_v30  ;;  %v1440_v33 = vld [vmem:[#allocation2 + $0x50] sm:$0xff] }
  0x9c   : > { %562 = vst [vmem:[#allocation2 + $0x98] sm:$0xf] %v544_v32  ;;  %764 = vrot.lane.b32.xlu0 %v2263_v7, %s2199_s27  ;;  %688 = vrot.lane.b32.xlu1 %v2265_v8, %s2198_s26 }
  0x9d   : > { %1510 = vmatprep.subr.bf16.mxu0 %v1440_v33 }
  0x9e   : > { %v2441_v34 = vpop.permute.xlu0 %604  ;;  %v523_v35 = vpop.permute.xlu1 %522 }
  0x9f   : > { %v622_v36 = vsel %vm620_vm4, %v603_v31, %v2441_v34  ;;  %v543_v37 = vsel %vm542_vm3, %v523_v35, %v525_v28  ;;  %v1439_v38 = vld [vmem:[#allocation2 + $0x48] sm:$0xff]  ;;  %v1955_v35 = vcombine.low %v215_v29, %v215_v29 }
  0xa0   : > { %640 = vst [vmem:[#allocation2 + $0x98] sm:$0xf0] %v622_v36  ;;  %561 = vst [vmem:[#allocation2 + $0x90] sm:$0xf] %v543_v37  ;;  %690 = vrot.lane.b32.xlu0 %v2374_v10, %s2198_s26  ;;  %766 = vrot.lane.b32.xlu1 %v2265_v8, %s2199_s27 }
  0xa1   : > { %1511 = vmatpush1.bf16.msra.mxu0 %v1439_v38  ;;  %255 = vst [vmem:[#allocation2 + $0x30] sm:$0xf] %v1955_v35 }
  0xa2   : > { %v601_v39 = vpop.permute.xlu0 %600  ;;  %v681_v40 = vpop.permute.xlu1 %680 }
  0xa3   : > { %v621_v41 = vsel %vm620_vm4, %v601_v39, %v603_v31 }
  0xa4   : > { %639 = vst [vmem:[#allocation2 + $0x90] sm:$0xf0] %v621_v41  ;;  %768 = vrot.lane.b32.xlu0 %v2374_v10, %s2199_s27  ;;  %840 = vrot.lane.b32.xlu1 %v2261_v6, %s2200_s28 }
  0xa6   : > { %v2455_v42 = vpop.permute.xlu0 %682  ;;  %v759_v43 = vpop.permute.xlu1 %758 }
  0xa7   : > { %v700_v44 = vsel %vm698_vm5, %v681_v40, %v2455_v42  ;;  %v1449_v45 = vld [vmem:[#allocation2 + $0x98] sm:$0xff] }
  0xa8   : > { %718 = vst [vmem:[#allocation2 + $0xe0] sm:$0xf] %v700_v44  ;;  %842 = vrot.lane.b32.xlu0 %v2263_v7, %s2200_s28  ;;  %918 = vrot.lane.b32.xlu1 %v2261_v6, %s2201_s29 }
  0xa9   : > { %1512 = vmatprep.subr.bf16.mxu0 %v1449_v45 }
  0xaa   : > { %v2463_v46 = vpop.permute.xlu0 %760  ;;  %v679_v47 = vpop.permute.xlu1 %678 }
  0xab   : > { %v778_v48 = vsel %vm776_vm6, %v759_v43, %v2463_v46  ;;  %v699_v49 = vsel %vm698_vm5, %v679_v47, %v681_v40  ;;  %v1448_v50 = vld [vmem:[#allocation2 + $0x90] sm:$0xff]  ;;  %v1956_v40 = vcombine.high %v215_v29, %v215_v29  ;;  %v2549_v47 = vcombine.high %v2366_v9, %v2366_v9 }
  0xac   : > { %796 = vst [vmem:[#allocation2 + $0xe0] sm:$0xf0] %v778_v48  ;;  %717 = vst [vmem:[#allocation2 + $0xd8] sm:$0xf] %v699_v49  ;;  %920 = vrot.lane.b32.xlu0 %v2263_v7, %s2201_s29  ;;  %844 = vrot.lane.b32.xlu1 %v2265_v8, %s2200_s28 }
  0xad   : > { %1513 = vmatpush1.bf16.msra.mxu0 %v1448_v50  ;;  %256 = vst [vmem:[#allocation2 + $0x38] sm:$0xf] %v1956_v40 }
  0xae   : > { %v757_v51 = vpop.permute.xlu0 %756  ;;  %v837_v52 = vpop.permute.xlu1 %836 }
  0xaf   : > { %v777_v53 = vsel %vm776_vm6, %v757_v51, %v759_v43 }
  0xb0   : > { %795 = vst [vmem:[#allocation2 + $0xd8] sm:$0xf0] %v777_v53  ;;  %846 = vrot.lane.b32.xlu0 %v2374_v10, %s2200_s28  ;;  %922 = vrot.lane.b32.xlu1 %v2265_v8, %s2201_s29 }
  0xb2   : > { %v2477_v54 = vpop.permute.xlu0 %838  ;;  %v915_v55 = vpop.permute.xlu1 %914 }
  0xb3   : > { %v856_v56 = vsel %vm854_vm7, %v837_v52, %v2477_v54  ;;  %v1458_v57 = vld [vmem:[#allocation2 + $0xe0] sm:$0xff] }
  0xb4   : > { %874 = vst [vmem:[#allocation2 + $0x128] sm:$0xf] %v856_v56  ;;  %924 = vrot.lane.b32.xlu0 %v2374_v10, %s2201_s29  ;;  %996 = vrot.lane.b32.xlu1 %v2261_v6, %s2202_s30 }
  0xb5   : > { %1514 = vmatprep.subr.bf16.mxu0 %v1458_v57 }
  0xb6   : > { %v2485_v58 = vpop.permute.xlu0 %916  ;;  %v835_v59 = vpop.permute.xlu1 %834 }
  0xb7   : > { %v934_v60 = vsel %vm932_vm8, %v915_v55, %v2485_v58  ;;  %v855_v61 = vsel %vm854_vm7, %v835_v59, %v837_v52  ;;  %v1457_v62 = vld [vmem:[#allocation2 + $0xd8] sm:$0xff] }
  0xb8   : > { %952 = vst [vmem:[#allocation2 + $0x128] sm:$0xf0] %v934_v60  ;;  %873 = vst [vmem:[#allocation2 + $0x120] sm:$0xf] %v855_v61  ;;  %998 = vrot.lane.b32.xlu0 %v2263_v7, %s2202_s30  ;;  %1074 = vrot.lane.b32.xlu1 %v2261_v6, %s2203_s5 }
  0xb9   : > { %1515 = vmatpush1.bf16.msra.mxu0 %v1457_v62  ;;  %v2184_v62 = vld [vmem:[%s2250_s20 + $0x20] ss:$0 sps:$4 sm:$0xff]  }
  0xba   : > { %v913_v63 = vpop.permute.xlu0 %912  ;;  %v993_v0 = vpop.permute.xlu1 %992  ;;  %257 = vst [vmem:[#allocation2 + $0x40] sm:$0xf] %v2184_v62 }
  0xbb   : > { %v933_v1 = vsel %vm932_vm8, %v913_v63, %v915_v55 }
  0xbc   : > { %951 = vst [vmem:[#allocation2 + $0x120] sm:$0xf0] %v933_v1  ;;  %1076 = vrot.lane.b32.xlu0 %v2263_v7, %s2203_s5  ;;  %1000 = vrot.lane.b32.xlu1 %v2265_v8, %s2202_s30 }
  0xbe   : > { %v2499_v2 = vpop.permute.xlu0 %994  ;;  %v1071_v3 = vpop.permute.xlu1 %1070 }
  0xbf   : > { %v1012_v4 = vsel %vm1010_vm9, %v993_v0, %v2499_v2  ;;  %v1467_v5 = vld [vmem:[#allocation2 + $0x128] sm:$0xff] }
  0xc0   : > { %1030 = vst [vmem:[#allocation2 + $0x170] sm:$0xf] %v1012_v4  ;;  %1002 = vrot.lane.b32.xlu0 %v2374_v10, %s2202_s30  ;;  %1078 = vrot.lane.b32.xlu1 %v2265_v8, %s2203_s5 }
  0xc1   : > { %1516 = vmatprep.subr.bf16.mxu0 %v1467_v5 }
  0xc2   : > { %v2507_v12 = vpop.permute.xlu0 %1072  ;;  %v991_v13 = vpop.permute.xlu1 %990 }
  0xc3   : > { %v1090_v14 = vsel %vm1088_vm10, %v1071_v3, %v2507_v12  ;;  %v1011_v16 = vsel %vm1010_vm9, %v991_v13, %v993_v0  ;;  %v1466_v17 = vld [vmem:[#allocation2 + $0x120] sm:$0xff] }
  0xc4   : > { %1108 = vst [vmem:[#allocation2 + $0x170] sm:$0xf0] %v1090_v14  ;;  %1029 = vst [vmem:[#allocation2 + $0x168] sm:$0xf] %v1011_v16  ;;  %1080 = vrot.lane.b32.xlu0 %v2374_v10, %s2203_s5  ;;  %1152 = vrot.lane.b32.xlu1 %v2261_v6, %s2204_s6 }
  0xc5   : > { %1517 = vmatpush1.bf16.msra.mxu0 %v1466_v17 }
  0xc6   : > { %v1069_v19 = vpop.permute.xlu0 %1068  ;;  %v1149_v20 = vpop.permute.xlu1 %1148 }
  0xc7   : > { %v1089_v22 = vsel %vm1088_vm10, %v1069_v19, %v1071_v3 }
  0xc8   : > { %1107 = vst [vmem:[#allocation2 + $0x168] sm:$0xf0] %v1089_v22  ;;  %1154 = vrot.lane.b32.xlu0 %v2263_v7, %s2204_s6  ;;  %1230 = vrot.lane.b32.xlu1 %v2261_v6, %s2205_s7 }
  0xca   : > { %v2521_v23 = vpop.permute.xlu0 %1150  ;;  %v1227_v24 = vpop.permute.xlu1 %1226 }
  0xcb   : > { %v1168_v25 = vsel %vm1166_vm11, %v1149_v20, %v2521_v23  ;;  %v1476_v26 = vld [vmem:[#allocation2 + $0x170] sm:$0xff] }
  0xcc   : > { %1186 = vst [vmem:[#allocation2 + $0x1b8] sm:$0xf] %v1168_v25  ;;  %1232 = vrot.lane.b32.xlu0 %v2263_v7, %s2205_s7  ;;  %1156 = vrot.lane.b32.xlu1 %v2265_v8, %s2204_s6 }
  0xcd   : > { %1518 = vmatprep.subr.bf16.mxu0 %v1476_v26 }
  0xce   : > { %v2529_v27 = vpop.permute.xlu0 %1228  ;;  %v1147_v28 = vpop.permute.xlu1 %1146 }
  0xcf   : > { %v1246_v31 = vsel %vm1244_vm12, %v1227_v24, %v2529_v27  ;;  %v1167_v32 = vsel %vm1166_vm11, %v1147_v28, %v1149_v20  ;;  %v1475_v33 = vld [vmem:[#allocation2 + $0x168] sm:$0xff] }
  0xd0   : > { %1264 = vst [vmem:[#allocation2 + $0x1b8] sm:$0xf0] %v1246_v31  ;;  %1185 = vst [vmem:[#allocation2 + $0x1b0] sm:$0xf] %v1167_v32  ;;  %1158 = vrot.lane.b32.xlu0 %v2374_v10, %s2204_s6  ;;  %1234 = vrot.lane.b32.xlu1 %v2265_v8, %s2205_s7 }
  0xd1   : > { %1519 = vmatpush1.bf16.msra.mxu0 %v1475_v33 }
  0xd2   : > { %v1225_v36 = vpop.permute.xlu0 %1224  ;;  %v295_v37 = vpop.permute.xlu1 %294 }
  0xd3   : > { %v1245_v38 = vsel %vm1244_vm12, %v1225_v36, %v1227_v24  ;;  %v311_v39 = vsel %vm308_vm0, %v2403_v15, %v295_v37  ;;  %v262_v15 = vld [vmem:[%s2250_s20 + $0x20] sm:$0xff] }
  0xd4   : > { %1263 = vst [vmem:[#allocation2 + $0x1b0] sm:$0xf0] %v1245_v38  ;;  %329 = vst [vmem:[#allocation2 + $0x10] sm:$0xf0] %v311_v39  ;;  %1236 = vrot.lane.b32.xlu0 %v2374_v10, %s2205_s7  ;;  %1308 = vrot.lane.b32.xlu1 %v2261_v6, %s2206_s8  ;;  %v2564_v9 = vcombine.low %v262_v15, %v262_v15 }
  0xd6   : > { %v297_v41 = vpop.permute.xlu0 %296  ;;  %v1305_v43 = vpop.permute.xlu1 %1304 }
  0xd7   : > { %v312_v44 = vsel %vm308_vm0, %v295_v37, %v297_v41  ;;  %v1485_v45 = vld [vmem:[#allocation2 + $0x1b8] sm:$0xff] }
  0xd8   : > { %330 = vst [vmem:[#allocation2 + $0x18] sm:$0xf0] %v312_v44  ;;  %1310 = vrot.lane.b32.xlu0 %v2263_v7, %s2206_s8  ;;  %1386 = vrot.lane.b32.xlu1 %v2261_v6, %s2207_s9 }
  0xd9   : > { %1520 = vmatprep.subr.bf16.mxu0 %v1485_v45 }
  0xda   : > { %v2556_v48 = vpop.permute.xlu0 %1306  ;;  %v1383_v49 = vpop.permute.xlu1 %1382 }
  0xdb   : > { %v1324_v50 = vsel %vm1322_vm13, %v1305_v43, %v2556_v48  ;;  %v1484_v51 = vld [vmem:[#allocation2 + $0x1b0] sm:$0xff] }
  0xdc   : > { %1342 = vst [vmem:[#allocation2 + $0x200] sm:$0xf] %v1324_v50  ;;  %1388 = vrot.lane.b32.xlu0 %v2263_v7, %s2207_s9  ;;  %302 = vrot.lane.b32.xlu1 %v2549_v47, %s2193_s21  ;;  %v1432_v7 = vld [vmem:[#allocation2 + $0x10] sm:$0xff] }
  0xdd   : > { %1521 = vmatpush1.bf16.msra.mxu0 %v1484_v51 }
  0xde   : > { %v2566_v6 = vpop.permute.xlu0 %1384  ;;  %v1303_v52 = vpop.permute.xlu1 %1302 }
  0xdf   : > { %v1402_v53 = vsel %vm1400_vm14, %v1383_v49, %v2566_v6  ;;  %v1323_v55 = vsel %vm1322_vm13, %v1303_v52, %v1305_v43  ;;  %v1433_v56 = vld [vmem:[#allocation2 + $0x18] sm:$0xff] }
  0xe0   : > { %1420 = vst [vmem:[#allocation2 + $0x200] sm:$0xf0] %v1402_v53  ;;  %1341 = vst [vmem:[#allocation2 + $0x1f8] sm:$0xf] %v1323_v55  ;;  %304 = vrot.lane.b32.xlu0 %v2564_v9, %s2193_s21  ;;  %1312 = vrot.lane.b32.xlu1 %v2265_v8, %s2206_s8 }
  0xe1   : > { %1551 = vmatprep.subr.bf16.mxu1 %v1433_v56 }
  0xe2   : > { %1552 = vmatpush1.bf16.msra.mxu1 %v1432_v7  ;;  %v1381_v57 = vpop.permute.xlu0 %1380  ;;  %v299_v59 = vpop.permute.xlu1 %298 }
  0xe3   : > { %v1401_v60 = vsel %vm1400_vm14, %v1381_v57, %v1383_v49  ;;  %v313_v61 = vsel %vm308_vm0, %v297_v41, %v299_v59 }
  0xe4   : > { %1419 = vst [vmem:[#allocation2 + $0x1f8] sm:$0xf0] %v1401_v60  ;;  %331 = vst [vmem:[#allocation2 + $0x20] sm:$0xf0] %v313_v61  ;;  %1314 = vrot.lane.b32.xlu0 %v2374_v10, %s2206_s8  ;;  %1390 = vrot.lane.b32.xlu1 %v2265_v8, %s2207_s9 }
  0xe6   : > { %v2582_v63 = vpop.permute.xlu0 %300  ;;  %v373_v0 = vpop.permute.xlu1 %372 }
  0xe7   : > { %v314_v1 = vsel %vm308_vm0, %v299_v59, %v2582_v63  ;;  %v389_v3 = vsel %vm386_vm1, %v2411_v18, %v373_v0  ;;  %v1494_v4 = vld [vmem:[#allocation2 + $0x200] sm:$0xff] }
  0xe8   : > { %332 = vst [vmem:[#allocation2 + $0x28] sm:$0xf0] %v314_v1  ;;  %407 = vst [vmem:[#allocation2 + $0x58] sm:$0xf] %v389_v3  ;;  %1392 = vrot.lane.b32.xlu0 %v2374_v10, %s2207_s9  ;;  %380 = vrot.lane.b32.xlu1 %v2549_v47, %s2194_s22  ;;  %v2599_v10 = vcombine.high %v262_v15, %v262_v15  ;;  %v2604_v18 = vld [vmem:[%s2905_s0] sm:$0xff]  }
  0xe9   : > { %1522 = vmatprep.subr.bf16.mxu0 %v1494_v4 }
  0xea   : > { %v375_v8 = vpop.permute.xlu0 %374  ;;  %v451_v5 = vpop.permute.xlu1 %450 }
  0xeb   : > { %v390_v13 = vsel %vm386_vm1, %v373_v0, %v375_v8  ;;  %v467_v14 = vsel %vm464_vm2, %v2419_v21, %v451_v5  ;;  %v1493_v16 = vld [vmem:[#allocation2 + $0x1f8] sm:$0xff]  ;;  %v1434_v24 = vld [vmem:[#allocation2 + $0x20] sm:$0xff] }
  0xec   : > { %408 = vst [vmem:[#allocation2 + $0x60] sm:$0xf] %v390_v13  ;;  %485 = vst [vmem:[#allocation2 + $0x58] sm:$0xf0] %v467_v14  ;;  %382 = vrot.lane.b32.xlu0 %v2564_v9, %s2194_s22  ;;  %458 = vrot.lane.b32.xlu1 %v2549_v47, %s2195_s23 }
  0xed   : > { %1523 = vmatpush1.bf16.msra.mxu0 %v1493_v16 }
  0xee   : > { %v453_v17 = vpop.permute.xlu0 %452  ;;  %v377_v19 = vpop.permute.xlu1 %376 }
  0xef   : > { %v468_v21 = vsel %vm464_vm2, %v451_v5, %v453_v17  ;;  %v391_v20 = vsel %vm386_vm1, %v375_v8, %v377_v19  ;;  %v1435_v22 = vld [vmem:[#allocation2 + $0x28] sm:$0xff] }
  0xf0   : > { %486 = vst [vmem:[#allocation2 + $0x60] sm:$0xf0] %v468_v21  ;;  %409 = vst [vmem:[#allocation2 + $0x68] sm:$0xf] %v391_v20  ;;  %460 = vrot.lane.b32.xlu0 %v2564_v9, %s2195_s23  ;;  %306 = vrot.lane.b32.xlu1 %v2599_v10, %s2193_s21  ;;  %s205_s21 = scalar_lea.vmem %s2908_s3, %s2112_s18 }
  0xf1   : > { %1594 = vmatprep.subr.bf16.mxu0 %v1435_v22  ;;  %1541 = vmatmul.mubr.bf16.vlgmr.msra.gmra.mrb[0].mxu0 %v2604_v18 }
  0xf2   : > { %1595 = vmatpush1.bf16.msra.mxu0 %v1434_v24  ;;  %v2613_v25 = vpop.permute.xlu0 %378  ;;  %v455_v26 = vpop.permute.xlu1 %454  ;;  %1626 = vmatprep.mubr.bf16.mxu0 %v2208_v11 }
  0xf3   : > { %v392_v28 = vsel %vm386_vm1, %v377_v19, %v2613_v25  ;;  %v469_v29 = vsel %vm464_vm2, %v453_v17, %v455_v26  ;;  %v1441_v37 = vld [vmem:[#allocation2 + $0x58] sm:$0xff] }
  0xf4   : > { %410 = vst [vmem:[#allocation2 + $0x70] sm:$0xf] %v392_v28  ;;  %487 = vst [vmem:[#allocation2 + $0x68] sm:$0xf0] %v469_v29  ;;  %536 = vrot.lane.b32.xlu0 %v2549_v47, %s2196_s24  ;;  %538 = vrot.lane.b32.xlu1 %v2564_v9, %s2196_s24 }
  0xf6   : > { %v2623_v31 = vpop.permute.xlu0 %456  ;;  %v529_v32 = vpop.permute.xlu1 %528 }
  0xf7   : > { %v470_v33 = vsel %vm464_vm2, %v455_v26, %v2623_v31  ;;  %v545_v35 = vsel %vm542_vm3, %v2433_v30, %v529_v32  ;;  %v1442_v36 = vld [vmem:[#allocation2 + $0x60] sm:$0xff] }
  0xf8   : > { %488 = vst [vmem:[#allocation2 + $0x70] sm:$0xf0] %v470_v33  ;;  %563 = vst [vmem:[#allocation2 + $0xa0] sm:$0xf] %v545_v35  ;;  %614 = vrot.lane.b32.xlu0 %v2549_v47, %s2197_s25  ;;  %616 = vrot.lane.b32.xlu1 %v2564_v9, %s2197_s25 }
  0xf9   : > { %1553 = vmatprep.subr.bf16.mxu1 %v1442_v36 }
  0xfa   : > { %1554 = vmatpush1.bf16.msra.mxu1 %v1441_v37  ;;  %v531_v38 = vpop.permute.xlu0 %530  ;;  %v607_v39 = vpop.permute.xlu1 %606 }
  0xfb   : > { %v546_v40 = vsel %vm542_vm3, %v529_v32, %v531_v38  ;;  %v623_v41 = vsel %vm620_vm4, %v2441_v34, %v607_v39  ;;  %v1443_v34 = vld [vmem:[#allocation2 + $0x68] sm:$0xff] }
  0xfc   : > { %564 = vst [vmem:[#allocation2 + $0xa8] sm:$0xf] %v546_v40  ;;  %641 = vst [vmem:[#allocation2 + $0xa0] sm:$0xf0] %v623_v41  ;;  %384 = vrot.lane.b32.xlu0 %v2599_v10, %s2194_s22  ;;  %462 = vrot.lane.b32.xlu1 %v2599_v10, %s2195_s23 }
  0xfe   : > { %v609_v30 = vpop.permute.xlu0 %608  ;;  %v533_v43 = vpop.permute.xlu1 %532 }
  0xff   : > { %v624_v44 = vsel %vm620_vm4, %v607_v39, %v609_v30  ;;  %v547_v45 = vsel %vm542_vm3, %v531_v38, %v533_v43  ;;  %v1444_v15 = vld [vmem:[#allocation2 + $0x70] sm:$0xff] }
 0x100   : > { %642 = vst [vmem:[#allocation2 + $0xa8] sm:$0xf0] %v624_v44  ;;  %565 = vst [vmem:[#allocation2 + $0xb0] sm:$0xf] %v547_v45  ;;  %692 = vrot.lane.b32.xlu0 %v2549_v47, %s2198_s26  ;;  %694 = vrot.lane.b32.xlu1 %v2564_v9, %s2198_s26 }
 0x101   : > { %1596 = vmatprep.subr.bf16.mxu0 %v1444_v15 }
 0x102   : > { %1597 = vmatpush1.bf16.msra.mxu0 %v1443_v34  ;;  %v2646_v49 = vpop.permute.xlu0 %534  ;;  %v611_v50 = vpop.permute.xlu1 %610 }
 0x103   : > { %v548_v51 = vsel %vm542_vm3, %v533_v43, %v2646_v49  ;;  %v625_v52 = vsel %vm620_vm4, %v609_v30, %v611_v50  ;;  %v1450_v59 = vld [vmem:[#allocation2 + $0xa0] sm:$0xff] }
 0x104   : > { %566 = vst [vmem:[#allocation2 + $0xb8] sm:$0xf] %v548_v51  ;;  %643 = vst [vmem:[#allocation2 + $0xb0] sm:$0xf0] %v625_v52  ;;  %770 = vrot.lane.b32.xlu0 %v2549_v47, %s2199_s27  ;;  %772 = vrot.lane.b32.xlu1 %v2564_v9, %s2199_s27 }
 0x106   : > { %v2655_v53 = vpop.permute.xlu0 %612  ;;  %v685_v55 = vpop.permute.xlu1 %684 }
 0x107   : > { %v626_v56 = vsel %vm620_vm4, %v611_v50, %v2655_v53  ;;  %v701_v7 = vsel %vm698_vm5, %v2455_v42, %v685_v55  ;;  %v1451_v57 = vld [vmem:[#allocation2 + $0xa8] sm:$0xff] }
 0x108   : > { %644 = vst [vmem:[#allocation2 + $0xb8] sm:$0xf0] %v626_v56  ;;  %719 = vst [vmem:[#allocation2 + $0xe8] sm:$0xf] %v701_v7  ;;  %540 = vrot.lane.b32.xlu0 %v2599_v10, %s2196_s24  ;;  %618 = vrot.lane.b32.xlu1 %v2599_v10, %s2197_s25  ;;  %s210_s24 = scalar_lea.vmem %s2909_s4, %s2112_s18 }
 0x109   : > { %1555 = vmatprep.subr.bf16.mxu1 %v1451_v57 }
 0x10a   : > { %1556 = vmatpush1.bf16.msra.mxu1 %v1450_v59  ;;  %v687_v60 = vpop.permute.xlu0 %686  ;;  %v763_v61 = vpop.permute.xlu1 %762 }
 0x10b   : > { %v702_v62 = vsel %vm698_vm5, %v685_v55, %v687_v60  ;;  %v779_v0 = vsel %vm776_vm6, %v2463_v46, %v763_v61  ;;  %v1452_v46 = vld [vmem:[#allocation2 + $0xb0] sm:$0xff] }
 0x10c   : > { %720 = vst [vmem:[#allocation2 + $0xf0] sm:$0xf] %v702_v62  ;;  %797 = vst [vmem:[#allocation2 + $0xe8] sm:$0xf0] %v779_v0  ;;  %848 = vrot.lane.b32.xlu0 %v2549_v47, %s2200_s28  ;;  %850 = vrot.lane.b32.xlu1 %v2564_v9, %s2200_s28 }
 0x10e   : > { %v765_v42 = vpop.permute.xlu0 %764  ;;  %v689_v1 = vpop.permute.xlu1 %688 }
 0x10f   : > { %v780_v3 = vsel %vm776_vm6, %v763_v61, %v765_v42  ;;  %v703_v4 = vsel %vm698_vm5, %v687_v60, %v689_v1  ;;  %v1453_v8 = vld [vmem:[#allocation2 + $0xb8] sm:$0xff] }
 0x110   : > { %798 = vst [vmem:[#allocation2 + $0xf0] sm:$0xf0] %v780_v3  ;;  %721 = vst [vmem:[#allocation2 + $0xf8] sm:$0xf] %v703_v4  ;;  %926 = vrot.lane.b32.xlu0 %v2549_v47, %s2201_s29  ;;  %928 = vrot.lane.b32.xlu1 %v2564_v9, %s2201_s29 }
 0x111   : > { %1598 = vmatprep.subr.bf16.mxu0 %v1453_v8 }
 0x112   : > { %1599 = vmatpush1.bf16.msra.mxu0 %v1452_v46  ;;  %v2678_v5 = vpop.permute.xlu0 %690  ;;  %v767_v13 = vpop.permute.xlu1 %766 }
 0x113   : > { %v704_v14 = vsel %vm698_vm5, %v689_v1, %v2678_v5  ;;  %v781_v16 = vsel %vm776_vm6, %v765_v42, %v767_v13  ;;  %v1459_v24 = vld [vmem:[#allocation2 + $0xe8] sm:$0xff] }
 0x114   : > { %722 = vst [vmem:[#allocation2 + $0x100] sm:$0xf] %v704_v14  ;;  %799 = vst [vmem:[#allocation2 + $0xf8] sm:$0xf0] %v781_v16  ;;  %696 = vrot.lane.b32.xlu0 %v2599_v10, %s2198_s26  ;;  %774 = vrot.lane.b32.xlu1 %v2599_v10, %s2199_s27 }
 0x116   : > { %v2687_v17 = vpop.permute.xlu0 %768  ;;  %v841_v19 = vpop.permute.xlu1 %840 }
 0x117   : > { %v782_v21 = vsel %vm776_vm6, %v767_v13, %v2687_v17  ;;  %v857_v20 = vsel %vm854_vm7, %v2477_v54, %v841_v19  ;;  %v1460_v22 = vld [vmem:[#allocation2 + $0xf0] sm:$0xff] }
 0x118   : > { %800 = vst [vmem:[#allocation2 + $0x100] sm:$0xf0] %v782_v21  ;;  %875 = vst [vmem:[#allocation2 + $0x130] sm:$0xf] %v857_v20  ;;  %1004 = vrot.lane.b32.xlu0 %v2549_v47, %s2202_s30  ;;  %1006 = vrot.lane.b32.xlu1 %v2564_v9, %s2202_s30 }
 0x119   : > { %1557 = vmatprep.subr.bf16.mxu1 %v1460_v22 }
 0x11a   : > { %1558 = vmatpush1.bf16.msra.mxu1 %v1459_v24  ;;  %v843_v26 = vpop.permute.xlu0 %842  ;;  %v919_v28 = vpop.permute.xlu1 %918 }
 0x11b   : > { %v858_v29 = vsel %vm854_vm7, %v841_v19, %v843_v26  ;;  %v935_v32 = vsel %vm932_vm8, %v2485_v58, %v919_v28  ;;  %v1461_v58 = vld [vmem:[#allocation2 + $0xf8] sm:$0xff] }
 0x11c   : > { %876 = vst [vmem:[#allocation2 + $0x138] sm:$0xf] %v858_v29  ;;  %953 = vst [vmem:[#allocation2 + $0x130] sm:$0xf0] %v935_v32  ;;  %1082 = vrot.lane.b32.xlu0 %v2549_v47, %s2203_s5  ;;  %1084 = vrot.lane.b32.xlu1 %v2564_v9, %s2203_s5 }
 0x11e   : > { %v921_v54 = vpop.permute.xlu0 %920  ;;  %v845_v33 = vpop.permute.xlu1 %844 }
 0x11f   : > { %v936_v35 = vsel %vm932_vm8, %v919_v28, %v921_v54  ;;  %v859_v36 = vsel %vm854_vm7, %v843_v26, %v845_v33  ;;  %v1462_v37 = vld [vmem:[#allocation2 + $0x100] sm:$0xff] }
 0x120   : > { %954 = vst [vmem:[#allocation2 + $0x138] sm:$0xf0] %v936_v35  ;;  %877 = vst [vmem:[#allocation2 + $0x140] sm:$0xf] %v859_v36  ;;  %852 = vrot.lane.b32.xlu0 %v2599_v10, %s2200_s28  ;;  %930 = vrot.lane.b32.xlu1 %v2599_v10, %s2201_s29 }
 0x121   : > { %1600 = vmatprep.subr.bf16.mxu0 %v1462_v37 }
 0x122   : > { %1601 = vmatpush1.bf16.msra.mxu0 %v1461_v58  ;;  %v2710_v38 = vpop.permute.xlu0 %846  ;;  %v923_v39 = vpop.permute.xlu1 %922 }
 0x123   : > { %v860_v40 = vsel %vm854_vm7, %v845_v33, %v2710_v38  ;;  %v937_v41 = vsel %vm932_vm8, %v921_v54, %v923_v39  ;;  %v1468_v34 = vld [vmem:[#allocation2 + $0x130] sm:$0xff] }
 0x124   : > { %878 = vst [vmem:[#allocation2 + $0x148] sm:$0xf] %v860_v40  ;;  %955 = vst [vmem:[#allocation2 + $0x140] sm:$0xf0] %v937_v41  ;;  %1160 = vrot.lane.b32.xlu0 %v2549_v47, %s2204_s6  ;;  %1162 = vrot.lane.b32.xlu1 %v2564_v9, %s2204_s6 }
 0x126   : > { %v2719_v30 = vpop.permute.xlu0 %924  ;;  %v997_v43 = vpop.permute.xlu1 %996 }
 0x127   : > { %v938_v44 = vsel %vm932_vm8, %v923_v39, %v2719_v30  ;;  %v1013_v45 = vsel %vm1010_vm9, %v2499_v2, %v997_v43  ;;  %v1469_v15 = vld [vmem:[#allocation2 + $0x138] sm:$0xff] }
 0x128   : > { %956 = vst [vmem:[#allocation2 + $0x148] sm:$0xf0] %v938_v44  ;;  %1031 = vst [vmem:[#allocation2 + $0x178] sm:$0xf] %v1013_v45  ;;  %1238 = vrot.lane.b32.xlu0 %v2549_v47, %s2205_s7  ;;  %1240 = vrot.lane.b32.xlu1 %v2564_v9, %s2205_s7 }
 0x129   : > { %1559 = vmatprep.subr.bf16.mxu1 %v1469_v15 }
 0x12a   : > { %1560 = vmatpush1.bf16.msra.mxu1 %v1468_v34  ;;  %v999_v50 = vpop.permute.xlu0 %998  ;;  %v1075_v51 = vpop.permute.xlu1 %1074 }
 0x12b   : > { %v1014_v52 = vsel %vm1010_vm9, %v997_v43, %v999_v50  ;;  %v1091_v55 = vsel %vm1088_vm10, %v2507_v12, %v1075_v51  ;;  %v1470_v12 = vld [vmem:[#allocation2 + $0x140] sm:$0xff] }
 0x12c   : > { %1032 = vst [vmem:[#allocation2 + $0x180] sm:$0xf] %v1014_v52  ;;  %1109 = vst [vmem:[#allocation2 + $0x178] sm:$0xf0] %v1091_v55  ;;  %1008 = vrot.lane.b32.xlu0 %v2599_v10, %s2202_s30  ;;  %1086 = vrot.lane.b32.xlu1 %v2599_v10, %s2203_s5 }
 0x12e   : > { %v1077_v2 = vpop.permute.xlu0 %1076  ;;  %v1001_v56 = vpop.permute.xlu1 %1000 }
 0x12f   : > { %v1092_v7 = vsel %vm1088_vm10, %v1075_v51, %v1077_v2  ;;  %v1015_v57 = vsel %vm1010_vm9, %v999_v50, %v1001_v56  ;;  %v1471_v59 = vld [vmem:[#allocation2 + $0x148] sm:$0xff] }
 0x130   : > { %1110 = vst [vmem:[#allocation2 + $0x180] sm:$0xf0] %v1092_v7  ;;  %1033 = vst [vmem:[#allocation2 + $0x188] sm:$0xf] %v1015_v57  ;;  %1316 = vrot.lane.b32.xlu0 %v2549_v47, %s2206_s8  ;;  %1318 = vrot.lane.b32.xlu1 %v2564_v9, %s2206_s8 }
 0x131   : > { %1602 = vmatprep.subr.bf16.mxu0 %v1471_v59 }
 0x132   : > { %1603 = vmatpush1.bf16.msra.mxu0 %v1470_v12  ;;  %v2742_v60 = vpop.permute.xlu0 %1002  ;;  %v1079_v61 = vpop.permute.xlu1 %1078 }
 0x133   : > { %v1016_v62 = vsel %vm1010_vm9, %v1001_v56, %v2742_v60  ;;  %v1093_v0 = vsel %vm1088_vm10, %v1077_v2, %v1079_v61 }
 0x134   : > { %1034 = vst [vmem:[#allocation2 + $0x190] sm:$0xf] %v1016_v62  ;;  %1111 = vst [vmem:[#allocation2 + $0x188] sm:$0xf0] %v1093_v0  ;;  %1394 = vrot.lane.b32.xlu0 %v2549_v47, %s2207_s9  ;;  %1396 = vrot.lane.b32.xlu1 %v2564_v9, %s2207_s9  ;;  %v1477_v47 = vld [vmem:[#allocation2 + $0x178] sm:$0xff] }
 0x136   : > { %v2751_v42 = vpop.permute.xlu0 %1080  ;;  %v1153_v1 = vpop.permute.xlu1 %1152 }
 0x137   : > { %v1094_v3 = vsel %vm1088_vm10, %v1079_v61, %v2751_v42  ;;  %v1169_v4 = vsel %vm1166_vm11, %v2521_v23, %v1153_v1  ;;  %v1478_v8 = vld [vmem:[#allocation2 + $0x180] sm:$0xff] }
 0x138   : > { %1112 = vst [vmem:[#allocation2 + $0x190] sm:$0xf0] %v1094_v3  ;;  %1187 = vst [vmem:[#allocation2 + $0x1c0] sm:$0xf] %v1169_v4  ;;  %1164 = vrot.lane.b32.xlu0 %v2599_v10, %s2204_s6  ;;  %1242 = vrot.lane.b32.xlu1 %v2599_v10, %s2205_s7 }
 0x139   : > { %1561 = vmatprep.subr.bf16.mxu1 %v1478_v8 }
 0x13a   : > { %1562 = vmatpush1.bf16.msra.mxu1 %v1477_v47  ;;  %v1155_v9 = vpop.permute.xlu0 %1154  ;;  %v1231_v46 = vpop.permute.xlu1 %1230 }
 0x13b   : > { %v1170_v13 = vsel %vm1166_vm11, %v1153_v1, %v1155_v9  ;;  %v1247_v14 = vsel %vm1244_vm12, %v2529_v27, %v1231_v46  ;;  %v1479_v22 = vld [vmem:[#allocation2 + $0x188] sm:$0xff] }
 0x13c   : > { %1188 = vst [vmem:[#allocation2 + $0x1c8] sm:$0xf] %v1170_v13  ;;  %1265 = vst [vmem:[#allocation2 + $0x1c0] sm:$0xf0] %v1247_v14  ;;  %1320 = vrot.lane.b32.xlu0 %v2599_v10, %s2206_s8  ;;  %1398 = vrot.lane.b32.xlu1 %v2599_v10, %s2207_s9 }
 0x13e   : > { %v1233_v23 = vpop.permute.xlu0 %1232  ;;  %v1157_v16 = vpop.permute.xlu1 %1156 }
 0x13f   : > { %v1248_v19 = vsel %vm1244_vm12, %v1231_v46, %v1233_v23  ;;  %v1171_v21 = vsel %vm1166_vm11, %v1155_v9, %v1157_v16  ;;  %v1480_v20 = vld [vmem:[#allocation2 + $0x190] sm:$0xff] }
 0x140   : > { %1266 = vst [vmem:[#allocation2 + $0x1c8] sm:$0xf0] %v1248_v19  ;;  %1189 = vst [vmem:[#allocation2 + $0x1d0] sm:$0xf] %v1171_v21  ;;  %1604 = vmatprep.subr.bf16.mxu0 %v1480_v20 }
 0x141   : > { %1605 = vmatpush1.bf16.msra.mxu0 %v1479_v22 }
 0x142   : > { %v2770_v27 = vpop.permute.xlu0 %1158  ;;  %v1235_v24 = vpop.permute.xlu1 %1234 }
 0x143   : > { %v1172_v26 = vsel %vm1166_vm11, %v1157_v16, %v2770_v27  ;;  %v1249_v10 = vsel %vm1244_vm12, %v1233_v23, %v1235_v24  ;;  %v1486_v35 = vld [vmem:[#allocation2 + $0x1c0] sm:$0xff]  ;;  %v2209_v23 = vmov 0.0  }
 0x144   : > { %1190 = vst [vmem:[#allocation2 + $0x1d8] sm:$0xf] %v1172_v26  ;;  %1267 = vst [vmem:[#allocation2 + $0x1d0] sm:$0xf0] %v1249_v10 }
 0x146   : > { %v2775_v28 = vpop.permute.xlu0 %1236  ;;  %v1309_v29 = vpop.permute.xlu1 %1308 }
 0x147   : > { %v1250_v32 = vsel %vm1244_vm12, %v1235_v24, %v2775_v28  ;;  %v1325_v54 = vsel %vm1322_vm13, %v2556_v48, %v1309_v29  ;;  %v1487_v33 = vld [vmem:[#allocation2 + $0x1c8] sm:$0xff] }
 0x148   : > { %1268 = vst [vmem:[#allocation2 + $0x1d8] sm:$0xf0] %v1250_v32  ;;  %1343 = vst [vmem:[#allocation2 + $0x208] sm:$0xf] %v1325_v54  ;;  %1563 = vmatprep.subr.bf16.mxu1 %v1487_v33 }
 0x149   : > { %1564 = vmatpush1.bf16.msra.mxu1 %v1486_v35 }
 0x14a   : > { %v1311_v36 = vpop.permute.xlu0 %1310  ;;  %v1387_v37 = vpop.permute.xlu1 %1386 }
 0x14b   : > { %v1326_v58 = vsel %vm1322_vm13, %v1309_v29, %v1311_v36  ;;  %v1403_v39 = vsel %vm1400_vm14, %v2566_v6, %v1387_v37  ;;  %v1488_v45 = vld [vmem:[#allocation2 + $0x1d0] sm:$0xff] }
 0x14c   : > { %1344 = vst [vmem:[#allocation2 + $0x210] sm:$0xf] %v1326_v58  ;;  %1421 = vst [vmem:[#allocation2 + $0x208] sm:$0xf0] %v1403_v39 }
 0x14e   : > { %v1389_v40 = vpop.permute.xlu0 %1388  ;;  %v303_v41 = vpop.permute.xlu1 %302 }
 0x14f   : > { %v1404_v43 = vsel %vm1400_vm14, %v1387_v37, %v1389_v40  ;;  %v315_v48 = vsel %vm308_vm0, %v2582_v63, %v303_v41  ;;  %v1489_v44 = vld [vmem:[#allocation2 + $0x1d8] sm:$0xff] }
 0x150   : > { %1422 = vst [vmem:[#allocation2 + $0x210] sm:$0xf0] %v1404_v43  ;;  %333 = vst [vmem:[#allocation2 + $0x30] sm:$0xf0] %v315_v48  ;;  %1606 = vmatprep.subr.bf16.mxu0 %v1489_v44 }
 0x151   : > { %1607 = vmatpush1.bf16.msra.mxu0 %v1488_v45 }
 0x152   : > { %v305_v15 = vpop.permute.xlu0 %304  ;;  %v1313_v34 = vpop.permute.xlu1 %1312 }
 0x153   : > { %v316_v50 = vsel %vm308_vm0, %v303_v41, %v305_v15  ;;  %v1327_v6 = vsel %vm1322_vm13, %v1311_v36, %v1313_v34  ;;  %v1495_v56 = vld [vmem:[#allocation2 + $0x208] sm:$0xff] }
 0x154   : > { %334 = vst [vmem:[#allocation2 + $0x38] sm:$0xf0] %v316_v50  ;;  %1345 = vst [vmem:[#allocation2 + $0x218] sm:$0xf] %v1327_v6 }
 0x156   : > { %v2789_v51 = vpop.permute.xlu0 %1314  ;;  %v1391_v52 = vpop.permute.xlu1 %1390 }
 0x157   : > { %v1328_v63 = vsel %vm1322_vm13, %v1313_v34, %v2789_v51  ;;  %v1405_v55 = vsel %vm1400_vm14, %v1389_v40, %v1391_v52  ;;  %v1496_v2 = vld [vmem:[#allocation2 + $0x210] sm:$0xff] }
 0x158   : > { %1346 = vst [vmem:[#allocation2 + $0x220] sm:$0xf] %v1328_v63  ;;  %1423 = vst [vmem:[#allocation2 + $0x218] sm:$0xf0] %v1405_v55  ;;  %1565 = vmatprep.subr.bf16.mxu1 %v1496_v2  ;;  %v1436_v62 = vld [vmem:[#allocation2 + $0x30] sm:$0xff] }
 0x159   : > { %1566 = vmatpush1.bf16.msra.mxu1 %v1495_v56 }
 0x15a   : > { %v2794_v7 = vpop.permute.xlu0 %1392  ;;  %v381_v57 = vpop.permute.xlu1 %380 }
 0x15b   : > { %v1406_v59 = vsel %vm1400_vm14, %v1391_v52, %v2794_v7  ;;  %v393_v12 = vsel %vm386_vm1, %v2613_v25, %v381_v57  ;;  %v1437_v61 = vld [vmem:[#allocation2 + $0x38] sm:$0xff] }
 0x15c   : > { %1424 = vst [vmem:[#allocation2 + $0x220] sm:$0xf0] %v1406_v59  ;;  %411 = vst [vmem:[#allocation2 + $0x78] sm:$0xf] %v393_v12  ;;  %1637 = vmatprep.subr.bf16.mxu1 %v1437_v61  ;;  %1584 = vmatmul.mubr.bf16.vlgmr.msra.gmra.mrb[0].mxu1 %v2604_v18 }
 0x15d   : > { %1638 = vmatpush1.bf16.msra.mxu1 %v1436_v62  ;;  %1669 = vmatprep.mubr.bf16.mxu1 %v2208_v11 }
 0x15e   : > { %v383_v0 = vpop.permute.xlu0 %382  ;;  %v459_v1 = vpop.permute.xlu1 %458 }
 0x15f   : > { %v394_v3 = vsel %vm386_vm1, %v381_v57, %v383_v0  ;;  %v471_v4 = vsel %vm464_vm2, %v2623_v31, %v459_v1  ;;  %v1497_v11 = vld [vmem:[#allocation2 + $0x218] sm:$0xff] }
 0x160   : > { %412 = vst [vmem:[#allocation2 + $0x80] sm:$0xf] %v394_v3  ;;  %489 = vst [vmem:[#allocation2 + $0x78] sm:$0xf0] %v471_v4 }
 0x162   : > { %v461_v25 = vpop.permute.xlu0 %460  ;;  %v307_v8 = vpop.permute.xlu1 %306 }
 0x163   : > { %v472_v47 = vsel %vm464_vm2, %v459_v1, %v461_v25  ;;  %v317_v9 = vsel %vm308_vm0, %v305_v15, %v307_v8  ;;  %v1498_v46 = vld [vmem:[#allocation2 + $0x220] sm:$0xff]  ;;  %vm1808_vm0 = vcmask 7168  }
 0x164   : > { %490 = vst [vmem:[#allocation2 + $0x80] sm:$0xf0] %v472_v47  ;;  %335 = vst [vmem:[#allocation2 + $0x40] sm:$0xf0] %v317_v9  ;;  %1608 = vmatprep.subr.bf16.mxu0 %v1498_v46 }
 0x165   : > { %1609 = vmatpush1.bf16.msra.mxu0 %v1497_v11 }
 0x166   : > { %v537_v13 = vpop.permute.xlu0 %536  ;;  %v539_v14 = vpop.permute.xlu1 %538  ;;  %2123 = vmatprep.subr.bf16.mxu0 %v2209_v23 }
 0x167   : > { %v549_v31 = vsel %vm542_vm3, %v2646_v49, %v537_v13  ;;  %v550_v16 = vsel %vm542_vm3, %v537_v13, %v539_v14  ;;  %v1445_v49 = vld [vmem:[#allocation2 + $0x78] sm:$0xff] }
 0x168   : > { %567 = vst [vmem:[#allocation2 + $0xc0] sm:$0xf] %v549_v31  ;;  %568 = vst [vmem:[#allocation2 + $0xc8] sm:$0xf] %v550_v16  ;;  %1627 = vmatmul.mubr.bf16.vlgmr.msra.gmra.mrb[4].mxu0 %v2604_v18 }
 0x169   : > { %2139 = vmatprep.mubr.msk.bf16.mxu0 %vm2210_vm15, %v2209_v23 }
 0x16a   : > { %v615_v19 = vpop.permute.xlu0 %614  ;;  %v617_v21 = vpop.permute.xlu1 %616 }
 0x16b   : > { %v627_v20 = vsel %vm620_vm4, %v2655_v53, %v615_v19  ;;  %v628_v22 = vsel %vm620_vm4, %v615_v19, %v617_v21  ;;  %v1446_v24 = vld [vmem:[#allocation2 + $0x80] sm:$0xff] }
 0x16c   : > { %v1438_v26 = vld [vmem:[#allocation2 + $0x40] sm:$0xff]  ;;  %645 = vst [vmem:[#allocation2 + $0xc0] sm:$0xf0] %v627_v20  ;;  %646 = vst [vmem:[#allocation2 + $0xc8] sm:$0xf0] %v628_v22  ;;  %1639 = vmatprep.subr.bf16.mxu1 %v1446_v24 }
 0x16d   : > { %2124 = vmatpush3.bf16.msra.mxu0 %v1438_v26  ;;  %1640 = vmatpush1.bf16.msra.mxu1 %v1445_v49 }
 0x16e   : > { %2125 = vmatprep.subr.bf16.mxu0 %v2209_v23  ;;  %v385_v10 = vpop.permute.xlu0 %384  ;;  %v463_v29 = vpop.permute.xlu1 %462 }
 0x16f   : > { %v395_v32 = vsel %vm386_vm1, %v383_v0, %v385_v10  ;;  %v473_v54 = vsel %vm464_vm2, %v461_v25, %v463_v29 }
 0x170   : > { %413 = vst [vmem:[#allocation2 + $0x88] sm:$0xf] %v395_v32  ;;  %491 = vst [vmem:[#allocation2 + $0x88] sm:$0xf0] %v473_v54 }
 0x172   : > { %v693_v53 = vpop.permute.xlu0 %692  ;;  %v695_v33 = vpop.permute.xlu1 %694 }
 0x173   : > { %v705_v35 = vsel %vm698_vm5, %v2678_v5, %v693_v53  ;;  %v706_v36 = vsel %vm698_vm5, %v693_v53, %v695_v33  ;;  %v1455_v37 = vld [vmem:[#allocation2 + $0xc8] sm:$0xff]  ;;  %v1454_v58 = vld [vmem:[#allocation2 + $0xc0] sm:$0xff] }
 0x174   : > { %723 = vst [vmem:[#allocation2 + $0x108] sm:$0xf] %v705_v35  ;;  %724 = vst [vmem:[#allocation2 + $0x110] sm:$0xf] %v706_v36  ;;  %1641 = vmatprep.subr.bf16.mxu1 %v1455_v37 }
 0x175   : > { %1642 = vmatpush1.bf16.msra.mxu1 %v1454_v58 }
 0x176   : > { %v771_v39 = vpop.permute.xlu0 %770  ;;  %v773_v40 = vpop.permute.xlu1 %772 }
 0x177   : > { %v783_v41 = vsel %vm776_vm6, %v2687_v17, %v771_v39  ;;  %v784_v43 = vsel %vm776_vm6, %v771_v39, %v773_v40  ;;  %v1447_v48 = vld [vmem:[#allocation2 + $0x88] sm:$0xff] }
 0x178   : > { %801 = vst [vmem:[#allocation2 + $0x108] sm:$0xf0] %v783_v41  ;;  %802 = vst [vmem:[#allocation2 + $0x110] sm:$0xf0] %v784_v43  ;;  %2126 = vmatpush3.bf16.msra.mxu0 %v1447_v48 }
 0x179   : > { %2127 = vmatprep.subr.bf16.mxu0 %v2209_v23 }
 0x17a   : > { %v541_v5 = vpop.permute.xlu0 %540  ;;  %v619_v44 = vpop.permute.xlu1 %618 }
 0x17b   : > { %v551_v45 = vsel %vm542_vm3, %v539_v14, %v541_v5  ;;  %v629_v15 = vsel %vm620_vm4, %v617_v21, %v619_v44 }
 0x17c   : > { %569 = vst [vmem:[#allocation2 + $0xd0] sm:$0xf] %v551_v45  ;;  %647 = vst [vmem:[#allocation2 + $0xd0] sm:$0xf0] %v629_v15 }
 0x17e   : > { %v849_v34 = vpop.permute.xlu0 %848  ;;  %v851_v50 = vpop.permute.xlu1 %850 }
 0x17f   : > { %v861_v17 = vsel %vm854_vm7, %v2710_v38, %v849_v34  ;;  %v862_v6 = vsel %vm854_vm7, %v849_v34, %v851_v50  ;;  %v1464_v52 = vld [vmem:[#allocation2 + $0x110] sm:$0xff]  ;;  %v1463_v63 = vld [vmem:[#allocation2 + $0x108] sm:$0xff] }
 0x180   : > { %879 = vst [vmem:[#allocation2 + $0x150] sm:$0xf] %v861_v17  ;;  %880 = vst [vmem:[#allocation2 + $0x158] sm:$0xf] %v862_v6  ;;  %1643 = vmatprep.subr.bf16.mxu1 %v1464_v52 }
 0x181   : > { %1644 = vmatpush1.bf16.msra.mxu1 %v1463_v63  ;;  %v1725_v63 = vlaneseq }
 0x182   : > { %v927_v55 = vpop.permute.xlu0 %926  ;;  %v929_v2 = vpop.permute.xlu1 %928 }
 0x183   : > { %v939_v56 = vsel %vm932_vm8, %v2719_v30, %v927_v55  ;;  %v940_v57 = vsel %vm932_vm8, %v927_v55, %v929_v2  ;;  %v1456_v59 = vld [vmem:[#allocation2 + $0xd0] sm:$0xff] }
 0x184   : > { %957 = vst [vmem:[#allocation2 + $0x150] sm:$0xf0] %v939_v56  ;;  %958 = vst [vmem:[#allocation2 + $0x158] sm:$0xf0] %v940_v57  ;;  %2128 = vmatpush3.bf16.msra.mxu0 %v1456_v59  ;;  %v2875_v57 = vld [vmem:[%s2907_s2] sm:$0xff] }
 0x185   : > { %2129 = vmatprep.subr.bf16.mxu0 %v2209_v23 }
 0x186   : > { %v697_v38 = vpop.permute.xlu0 %696  ;;  %v775_v12 = vpop.permute.xlu1 %774 }
 0x187   : > { %v707_v61 = vsel %vm698_vm5, %v695_v33, %v697_v38  ;;  %v785_v62 = vsel %vm776_vm6, %v773_v40, %v775_v12 }
 0x188   : > { %725 = vst [vmem:[#allocation2 + $0x118] sm:$0xf] %v707_v61  ;;  %803 = vst [vmem:[#allocation2 + $0x118] sm:$0xf0] %v785_v62 }
 0x18a   : > { %v1005_v0 = vpop.permute.xlu0 %1004  ;;  %v1007_v1 = vpop.permute.xlu1 %1006 }
 0x18b   : > { %v1017_v30 = vsel %vm1010_vm9, %v2742_v60, %v1005_v0  ;;  %v1018_v3 = vsel %vm1010_vm9, %v1005_v0, %v1007_v1  ;;  %v1473_v4 = vld [vmem:[#allocation2 + $0x158] sm:$0xff]  ;;  %v1472_v25 = vld [vmem:[#allocation2 + $0x150] sm:$0xff] }
 0x18c   : > { %1035 = vst [vmem:[#allocation2 + $0x198] sm:$0xf] %v1017_v30  ;;  %1036 = vst [vmem:[#allocation2 + $0x1a0] sm:$0xf] %v1018_v3  ;;  %1645 = vmatprep.subr.bf16.mxu1 %v1473_v4 }
 0x18d   : > { %1646 = vmatpush1.bf16.msra.mxu1 %v1472_v25 }
 0x18e   : > { %v1083_v8 = vpop.permute.xlu0 %1082  ;;  %v1085_v47 = vpop.permute.xlu1 %1084 }
 0x18f   : > { %v1095_v9 = vsel %vm1088_vm10, %v2751_v42, %v1083_v8  ;;  %v1096_v46 = vsel %vm1088_vm10, %v1083_v8, %v1085_v47  ;;  %v1465_v11 = vld [vmem:[#allocation2 + $0x118] sm:$0xff] }
 0x190   : > { %1113 = vst [vmem:[#allocation2 + $0x198] sm:$0xf0] %v1095_v9  ;;  %1114 = vst [vmem:[#allocation2 + $0x1a0] sm:$0xf0] %v1096_v46  ;;  %2130 = vmatpush3.bf16.msra.mxu0 %v1465_v11 }
 0x191   : > { %2131 = vmatprep.subr.bf16.mxu0 %v2209_v23 }
 0x192   : > { %v853_v60 = vpop.permute.xlu0 %852  ;;  %v931_v13 = vpop.permute.xlu1 %930 }
 0x193   : > { %v863_v14 = vsel %vm854_vm7, %v851_v50, %v853_v60  ;;  %v941_v31 = vsel %vm932_vm8, %v929_v2, %v931_v13  ;;  %v2868_v2 = vshrl.u32 %v1725_v63, 7 }
 0x194   : > { %881 = vst [vmem:[#allocation2 + $0x160] sm:$0xf] %v863_v14  ;;  %959 = vst [vmem:[#allocation2 + $0x160] sm:$0xf0] %v941_v31 }
 0x195   : > { %v1727_v56 = vsub.s32 0, %v2868_v2  ;;  %v1731_v59 = vsub.s32 1, %v2868_v2  ;;  %v1735_v13 = vsub.s32 2, %v2868_v2  ;;  %v1739_v14 = vsub.s32 3, %v2868_v2 }
 0x196   : > { %v1161_v16 = vpop.permute.xlu0 %1160  ;;  %v1163_v19 = vpop.permute.xlu1 %1162 }
 0x197   : > { %v1173_v42 = vsel %vm1166_vm11, %v2770_v27, %v1161_v16  ;;  %v1174_v21 = vsel %vm1166_vm11, %v1161_v16, %v1163_v19  ;;  %v1482_v20 = vld [vmem:[#allocation2 + $0x1a0] sm:$0xff]  ;;  %v1481_v22 = vld [vmem:[#allocation2 + $0x198] sm:$0xff]  ;;  %v1728_v38 = vrot.slane %v2875_v57, %v1727_v56  ;;  %v1736_v31 = vrot.slane %v2875_v57, %v1735_v13 }
 0x198   : > { %1191 = vst [vmem:[#allocation2 + $0x1e0] sm:$0xf] %v1173_v42  ;;  %1192 = vst [vmem:[#allocation2 + $0x1e8] sm:$0xf] %v1174_v21  ;;  %1647 = vmatprep.subr.bf16.mxu1 %v1482_v20  ;;  %v1740_v16 = vrot.slane %v2875_v57, %v1739_v14 }
 0x199   : > { %1648 = vmatpush1.bf16.msra.mxu1 %v1481_v22 }
 0x19a   : > { %v1239_v24 = vpop.permute.xlu0 %1238  ;;  %v1241_v26 = vpop.permute.xlu1 %1240 }
 0x19b   : > { %v1251_v49 = vsel %vm1244_vm12, %v2775_v28, %v1239_v24  ;;  %v1252_v10 = vsel %vm1244_vm12, %v1239_v24, %v1241_v26  ;;  %v1474_v29 = vld [vmem:[#allocation2 + $0x160] sm:$0xff] }
 0x19c   : > { %1269 = vst [vmem:[#allocation2 + $0x1e0] sm:$0xf0] %v1251_v49  ;;  %1270 = vst [vmem:[#allocation2 + $0x1e8] sm:$0xf0] %v1252_v10  ;;  %2132 = vmatpush3.bf16.msra.mxu0 %v1474_v29 }
 0x19d   : > { %2133 = vmatprep.subr.bf16.mxu0 %v2209_v23 }
 0x19e   : > { %v1009_v27 = vpop.permute.xlu0 %1008  ;;  %v1087_v32 = vpop.permute.xlu1 %1086 }
 0x19f   : > { %v1019_v54 = vsel %vm1010_vm9, %v1007_v1, %v1009_v27  ;;  %v1097_v53 = vsel %vm1088_vm10, %v1085_v47, %v1087_v32  ;;  %v1743_v32 = vsub.s32 4, %v2868_v2 }
 0x1a0   : > { %1037 = vst [vmem:[#allocation2 + $0x1a8] sm:$0xf] %v1019_v54  ;;  %1115 = vst [vmem:[#allocation2 + $0x1a8] sm:$0xf0] %v1097_v53 }
 0x1a2   : > { %v1317_v33 = vpop.permute.xlu0 %1316  ;;  %v1319_v35 = vpop.permute.xlu1 %1318 }
 0x1a3   : > { %v1329_v28 = vsel %vm1322_vm13, %v2789_v51, %v1317_v33  ;;  %v1330_v36 = vsel %vm1322_vm13, %v1317_v33, %v1319_v35  ;;  %v1491_v37 = vld [vmem:[#allocation2 + $0x1e8] sm:$0xff]  ;;  %v1490_v58 = vld [vmem:[#allocation2 + $0x1e0] sm:$0xff] }
 0x1a4   : > { %1347 = vst [vmem:[#allocation2 + $0x228] sm:$0xf] %v1329_v28  ;;  %1348 = vst [vmem:[#allocation2 + $0x230] sm:$0xf] %v1330_v36  ;;  %1649 = vmatprep.subr.bf16.mxu1 %v1491_v37  ;;  %v1747_v36 = vsub.s32 5, %v2868_v2 }
 0x1a5   : > { %1650 = vmatpush1.bf16.msra.mxu1 %v1490_v58 }
 0x1a6   : > { %v1395_v39 = vpop.permute.xlu0 %1394  ;;  %v1397_v40 = vpop.permute.xlu1 %1396 }
 0x1a7   : > { %v1407_v41 = vsel %vm1400_vm14, %v2794_v7, %v1395_v39  ;;  %v1408_v43 = vsel %vm1400_vm14, %v1395_v39, %v1397_v40  ;;  %v1483_v48 = vld [vmem:[#allocation2 + $0x1a8] sm:$0xff] }
 0x1a8   : > { %1425 = vst [vmem:[#allocation2 + $0x228] sm:$0xf0] %v1407_v41  ;;  %1426 = vst [vmem:[#allocation2 + $0x230] sm:$0xf0] %v1408_v43  ;;  %2134 = vmatpush3.bf16.msra.mxu0 %v1483_v48  ;;  %v1744_v41 = vrot.slane %v2875_v57, %v1743_v32  ;;  %v1748_v43 = vrot.slane %v2875_v57, %v1747_v36 }
 0x1a9   : > { %2135 = vmatprep.subr.bf16.mxu0 %v2209_v23 }
 0x1aa   : > { %v1165_v51 = vpop.permute.xlu0 %1164  ;;  %v1243_v5 = vpop.permute.xlu1 %1242 }
 0x1ab   : > { %v1175_v44 = vsel %vm1166_vm11, %v1163_v19, %v1165_v51  ;;  %v1253_v45 = vsel %vm1244_vm12, %v1241_v26, %v1243_v5 }
 0x1ac   : > { %1193 = vst [vmem:[#allocation2 + $0x1f0] sm:$0xf] %v1175_v44  ;;  %1271 = vst [vmem:[#allocation2 + $0x1f0] sm:$0xf0] %v1253_v45 }
 0x1ae   : > { %v1321_v15 = vpop.permute.xlu0 %1320  ;;  %v1399_v34 = vpop.permute.xlu1 %1398 }
 0x1af   : > { %v1331_v7 = vsel %vm1322_vm13, %v1319_v35, %v1321_v15  ;;  %v1409_v50 = vsel %vm1400_vm14, %v1397_v40, %v1399_v34  ;;  %v1500_v17 = vld [vmem:[#allocation2 + $0x230] sm:$0xff]  ;;  %v1499_v6 = vld [vmem:[#allocation2 + $0x228] sm:$0xff] }
 0x1b0   : > { %1349 = vst [vmem:[#allocation2 + $0x238] sm:$0xf] %v1331_v7  ;;  %1427 = vst [vmem:[#allocation2 + $0x238] sm:$0xf0] %v1409_v50  ;;  %1651 = vmatprep.subr.bf16.mxu1 %v1500_v17 }
 0x1b1   : > { %1652 = vmatpush1.bf16.msra.mxu1 %v1499_v6 }
 0x1b3   : > { %v1492_v52 = vld [vmem:[#allocation2 + $0x1f0] sm:$0xff] }
 0x1b4   : > { %1670 = vmatmul.mubr.bf16.vlgmr.msra.gmra.mrb[4].mxu1 %v2604_v18  ;;  %2136 = vmatpush3.bf16.msra.mxu0 %v1492_v52 }
 0x1b5   : > { %2137 = vmatprep.subr.bf16.mxu0 %v2209_v23  ;;  %v1732_v23 = vrot.slane %v2875_v57, %v1731_v59 }
 0x1b7   : > { %v1501_v55 = vld [vmem:[#allocation2 + $0x238] sm:$0xff] }
 0x1b8   : > { %2138 = vmatpush3.bf16.msra.mxu0 %v1501_v55 }
 0x1bb   : > { %2140 = vmatmul.mubr.bf16.vlgmr.msra.gmra.mrb[8].mxu0 %v2604_v18 }
 0x1c4   : > { %v1542_v12 = vpop.f32.mrb[0].mxu0 }
 0x1c5   : > { %v1770_v61 = vmul.f32 %v1728_v38, %v1542_v12  ;;  %v1544_v62 = vpop.f32.mrb[1].mxu0 }
 0x1c6   : > { %v1771_v0 = vmul.f32 %v1732_v23, %v1544_v62  ;;  %v1546_v1 = vpop.f32.mrb[2].mxu0 }
 0x1c7   : > { %v1811_v30 = vmul.f32 %v1770_v61, %v1542_v12  ;;  %v1779_v18 = vmul.f32 %v1728_v38, %v1546_v1  ;;  %v1548_v3 = vpop.f32.mrb[3].mxu0 }
 0x1c8   : > { %v1788_v4 = vadd.f32 %v1771_v0, %v1770_v61  ;;  %v1812_v25 = vmul.f32 %v1771_v0, %v1544_v62  ;;  %v1780_v8 = vmul.f32 %v1732_v23, %v1548_v3  ;;  %v1751_v62 = vsub.s32 6, %v2868_v2 }
 0x1c9   : > { %v1820_v47 = vmul.f32 %v1779_v18, %v1546_v1  ;;  %v1755_v0 = vsub.s32 7, %v2868_v2  ;;  %v2109_v2 = vld [vmem:[%s2907_s2 + $0x8] ss:$0 sm:$0xff] }
 0x1ca   : > { %v1829_v9 = vadd.f32 %v1812_v25, %v1811_v30  ;;  %v1798_v46 = vadd.f32 %v1780_v8, %v1779_v18  ;;  %v1821_v11 = vmul.f32 %v1780_v8, %v1548_v3  ;;  %v1752_v1 = vrot.slane %v2875_v57, %v1751_v62 }
 0x1cb   : > { %v1756_v30 = vrot.slane %v2875_v57, %v1755_v0 }
 0x1cc   : > { %v1839_v60 = vadd.f32 %v1821_v11, %v1820_v47 }
 0x22f   : > { %v1585_v19 = vpop.f32.mrb[0].mxu1 }
 0x230   : > { %v1772_v42 = vmul.f32 %v1736_v31, %v1585_v19  ;;  %v1587_v21 = vpop.f32.mrb[1].mxu1 }
 0x231   : > { %v1773_v20 = vmul.f32 %v1740_v16, %v1587_v21  ;;  %v1589_v22 = vpop.f32.mrb[2].mxu1 }
 0x232   : > { %v1789_v24 = vadd.f32 %v1788_v4, %v1772_v42  ;;  %v1813_v26 = vmul.f32 %v1772_v42, %v1585_v19  ;;  %v1781_v49 = vmul.f32 %v1736_v31, %v1589_v22  ;;  %v1591_v10 = vpop.f32.mrb[3].mxu1 }
 0x233   : > { %v1814_v29 = vmul.f32 %v1773_v20, %v1587_v21  ;;  %v1782_v27 = vmul.f32 %v1740_v16, %v1591_v10 }
 0x234   : > { %v1830_v54 = vadd.f32 %v1829_v9, %v1813_v26  ;;  %v1790_v53 = vadd.f32 %v1789_v24, %v1773_v20  ;;  %v1799_v33 = vadd.f32 %v1798_v46, %v1781_v49  ;;  %v1822_v35 = vmul.f32 %v1781_v49, %v1589_v22 }
 0x235   : > { %v1823_v28 = vmul.f32 %v1782_v27, %v1591_v10 }
 0x236   : > { %v1831_v37 = vadd.f32 %v1830_v54, %v1814_v29  ;;  %v1840_v58 = vadd.f32 %v1839_v60, %v1822_v35  ;;  %v1800_v39 = vadd.f32 %v1799_v33, %v1782_v27 }
 0x238   : > { %v1841_v40 = vadd.f32 %v1840_v58, %v1823_v28 }
 0x23b   : > { %v1628_v48 = vpop.f32.mrb[4].mxu0 }
 0x23c   : > { %v1774_v51 = vmul.f32 %v1744_v41, %v1628_v48  ;;  %v1630_v5 = vpop.f32.mrb[5].mxu0 }
 0x23d   : > { %v1775_v44 = vmul.f32 %v1748_v43, %v1630_v5  ;;  %v1632_v45 = vpop.f32.mrb[6].mxu0 }
 0x23e   : > { %v1791_v15 = vadd.f32 %v1790_v53, %v1774_v51  ;;  %v1815_v34 = vmul.f32 %v1774_v51, %v1628_v48  ;;  %v1783_v7 = vmul.f32 %v1744_v41, %v1632_v45  ;;  %v1634_v50 = vpop.f32.mrb[7].mxu0 }
 0x23f   : > { %v1816_v17 = vmul.f32 %v1775_v44, %v1630_v5  ;;  %v1784_v6 = vmul.f32 %v1748_v43, %v1634_v50 }
 0x240   : > { %v1832_v52 = vadd.f32 %v1831_v37, %v1815_v34  ;;  %v1792_v63 = vadd.f32 %v1791_v15, %v1775_v44  ;;  %v1801_v55 = vadd.f32 %v1800_v39, %v1783_v7  ;;  %v1824_v56 = vmul.f32 %v1783_v7, %v1632_v45 }
 0x241   : > { %v1825_v59 = vmul.f32 %v1784_v6, %v1634_v50 }
 0x242   : > { %v1833_v38 = vadd.f32 %v1832_v52, %v1816_v17  ;;  %v1842_v23 = vadd.f32 %v1841_v40, %v1824_v56  ;;  %v1802_v12 = vadd.f32 %v1801_v55, %v1784_v6 }
 0x244   : > { %v1843_v61 = vadd.f32 %v1842_v23, %v1825_v59 }
 0x287   : > { %v1671_v18 = vpop.f32.mrb[4].mxu1 }
 0x288   : > { %v1776_v3 = vmul.f32 %v1752_v1, %v1671_v18  ;;  %v1673_v4 = vpop.f32.mrb[5].mxu1 }
 0x289   : > { %v1777_v25 = vmul.f32 %v1756_v30, %v1673_v4  ;;  %v1675_v8 = vpop.f32.mrb[6].mxu1 }
 0x28a   : > { %v1793_v47 = vadd.f32 %v1792_v63, %v1776_v3  ;;  %v1817_v9 = vmul.f32 %v1776_v3, %v1671_v18  ;;  %v1785_v46 = vmul.f32 %v1752_v1, %v1675_v8  ;;  %v1677_v11 = vpop.f32.mrb[7].mxu1 }
 0x28b   : > { %v1818_v60 = vmul.f32 %v1777_v25, %v1673_v4  ;;  %v1786_v13 = vmul.f32 %v1756_v30, %v1677_v11 }
 0x28c   : > { %v1834_v14 = vadd.f32 %v1833_v38, %v1817_v9  ;;  %v1794_v31 = vadd.f32 %v1793_v47, %v1777_v25  ;;  %v1803_v16 = vadd.f32 %v1802_v12, %v1785_v46  ;;  %v1826_v19 = vmul.f32 %v1785_v46, %v1675_v8 }
 0x28d   : > { %v1827_v57 = vmul.f32 %v1786_v13, %v1677_v11 }
 0x28e   : > { %v1835_v42 = vadd.f32 %v1834_v14, %v1818_v60  ;;  %v1844_v21 = vadd.f32 %v1843_v61, %v1826_v19  ;;  %v1804_v20 = vadd.f32 %v1803_v16, %v1786_v13  ;;  %v1714_v22 = vpop.f32.mrb[8].mxu0 }
 0x28f   : > { %v1778_v24 = vmul.f32 %v2109_v2, %v1714_v22  ;;  %v2141_v26 = vpop.f32.mrb[9].mxu0 }
 0x290   : > { %v1845_v49 = vadd.f32 %v1844_v21, %v1827_v57  ;;  %v1717_v10 = vpop.f32.mrb[10].mxu0 }
 0x291   : > { %v1795_v29 = vadd.f32 %v1794_v31, %v1778_v24  ;;  %v1819_v27 = vmul.f32 %v1778_v24, %v1714_v22  ;;  %v1787_v32 = vmul.f32 %v2109_v2, %v1717_v10  ;;  %v2142_v54 = vpop.f32.mrb[11].mxu0 }
 0x293   : > { %v1836_v53 = vadd.f32 %v1835_v42, %v1819_v27  ;;  %v1805_v33 = vadd.f32 %v1804_v20, %v1787_v32  ;;  %v1828_v35 = vmul.f32 %v1787_v32, %v1717_v10  ;;  %1796 = vadd.xlane.f32.xlu0 %v1795_v29 }
 0x295   : > { %v1846_v28 = vadd.f32 %v1845_v49, %v1828_v35  ;;  %1806 = vadd.xlane.f32.xlu1 %v1805_v33 }
 0x297   : > { %1837 = vadd.xlane.f32.xlu0 %v1836_v53 }
 0x29b   : > { %1847 = vadd.xlane.f32.xlu0 %v1846_v28 }
 0x320   : > { %v1797_v36 = vpop.xlane.xlu0 %1796 }
 0x321   : > { %1809 = vst.msk [vmem:[%s205_s21] sm:$0xff] %vm1808_vm0, %v1797_v36 }
 0x322   : > { %v1807_v37 = vpop.xlane.xlu1 %1806 }
 0x323   : > { %1810 = vst.msk [vmem:[%s205_s21 + $0x8] sm:$0xff] %vm1808_vm0, %v1807_v37 }
 0x324   : > { %v1838_v58 = vpop.xlane.xlu0 %1837 }
 0x325   : > { %1849 = vst.msk [vmem:[%s210_s24] sm:$0xff] %vm1808_vm0, %v1838_v58 }
 0x328   : > { %v1848_v39 = vpop.xlane.xlu0 %1847 }
 0x329   : > { %1850 = vst.msk [vmem:[%s210_s24 + $0x8] sm:$0xff] %vm1808_vm0, %v1848_v39 }
 0x32a PF: > { %s15_s15 = sadd.s32 1, %s2191_s15  }
 0x32b   : > { %p12_p4 = scmp.ge.s32.totalorder %s15_s15, 4  }
 0x32d   :  { %14 = sbr.rel (!%p12_p4) target bundleno = 1 (0x1), region = 74 }

// kernel: deconv_block_forward.3
= control target key start
LH: loop header
LB: loop body
LE: loop exit
PB: predicated region body
PF: predicated region fallthrough
CT: control target
= control target key end

     0   :  { %9 = vsyncpa [#allocation5], 0  ;;  %s14070_s0 = inlined_call_operand.vmem [shape: bf16[16,128], index: 0, kind: input, shape index: {}]   ;;  %s14071_s1 = inlined_call_operand.vmem [shape: bf16[2,8,1280], index: 1, kind: input, shape index: {}]   ;;  %s14072_s2 = inlined_call_operand.vmem [shape: f32[16,1], index: 2, kind: input, shape index: {}]   ;;  %s14073_s3 = inlined_call_operand.vmem [shape: f32[16,1], index: 3, kind: input, shape index: {}]   ;;  %s14074_s4 = inlined_call_operand.hbm [shape: f32[2,16,32,32], index: 4, kind: output, shape index: {}]  }
   0x1   :  { %11 = vsyncpa [#allocation5 + $0x1], 0  ;;  %s10330_s15 = smov 0   ;;  %s10332_s16 = smov 0  }
   0x2   :  { %s10334_s17 = smov 0   ;;  %s10336_s18 = smov 0  }
   0x3 LB: > { %s10351_s19 = sadd.s32 4294967295, %s10261_s18   ;;  %s9893_s20 = sadd.s32 4294967294, %s10261_s18   ;;  %s10261_s18 = sphi %s10336_s18, %s14086_s18   ;;  %s10257_s17 = sphi %s10334_s17, %s14085_s17   ;;  %s10253_s16 = sphi %s10332_s16, %s14084_s16   ;;  %s10249_s15 = sphi %s10330_s15, %s14083_s15  }
   0x4   : > { %s10355_s21 = sadd.s32 1, %s10261_s18   ;;  %s113_s22 = sadd.s32 1, %s10257_s17 }
   0x5   : > { %s110_s23 = ssub.s32 %s10261_s18, %s10355_s21  ;;  %p123_p0 = scmp.ne.s32.totalorder %s10257_s17, %s10253_s16 }
   0x6   : > { %p111_p1 = scmp.eq.s32.totalorder %s110_s23, 0  ;;  %p124_p2 = scmp.eq.s32.totalorder %s10351_s19, 1 }
   0x7   : > { %p129_p3 = scmp.ne.s32.totalorder %s10253_s16, %s10249_s15  ;;  %p130_p4 = scmp.eq.s32.totalorder %s9893_s20, 1 }
   0x8   : > { %s10366_s24 = scalar_select %p111_p1, %s10257_s17, %s113_s22  }
   0x9   : > { %p10368_p5 = por %p124_p2, %p123_p0  ;;  %p10372_p6 = por %p130_p4, %p129_p3 }
   0xa   : > { %p9896_p7 = scmp.ge.s32.totalorder %s10261_s18, 1  ;;  %p165_p8 = scmp.lt.s32.totalorder %s10261_s18, 3 }
   0xc   : > { %p166_p9 = pnand %p9896_p7, %p165_p8 }
   0xd   : > { %p191_p10 = scmp.lt.s32.totalorder (!%p166_p9), %s10351_s19, 1  ;;  %s10263_s6 = smov (!%p166_p9), 127   ;;  %vm293_vm0 = vcmask (!%p166_p9), 1039360   ;;  %vm371_vm1 = vcmask (!%p166_p9), 1031168   ;;  %vm449_vm2 = vcmask (!%p166_p9), 1022976   ;;  %vm527_vm3 = vcmask (!%p166_p9), 760832  }
   0xe   : > { %169 = sbr.rel (%p166_p9) target bundleno = 1978 (0x7ba), region = 36  ;;  %s10264_s7 = smov (!%p166_p9), 126   ;;  %vm605_vm4 = vcmask (!%p166_p9), 752640   ;;  %vm683_vm5 = vcmask (!%p166_p9), 744448   ;;  %vm761_vm6 = vcmask (!%p166_p9), 736256   ;;  %vm839_vm7 = vcmask (!%p166_p9), 474112  }
   0xf   : > { %s10265_s8 = smov (!%p166_p9), 125   ;;  %s10266_s9 = smov (!%p166_p9), 93   ;;  %vm917_vm8 = vcmask (!%p166_p9), 465920   ;;  %vm995_vm9 = vcmask (!%p166_p9), 457728   ;;  %vm1073_vm10 = vcmask (!%p166_p9), 449536   ;;  %vm1151_vm11 = vcmask (!%p166_p9), 187392  }
  0x10   : > { %s10267_s10 = smov (!%p166_p9), 92   ;;  %s10268_s11 = smov (!%p166_p9), 91   ;;  %vm1229_vm12 = vcmask (!%p166_p9), 179200   ;;  %vm1307_vm13 = vcmask (!%p166_p9), 171008   ;;  %vm1385_vm14 = vcmask (!%p166_p9), 162816   ;;  %vm10280_vm15 = vmmov (!%p166_p9), 0  }
  0x11   : > { %s10269_s12 = smov (!%p166_p9), 90   ;;  %s10270_s13 = smov (!%p166_p9), 58  }
  0x12   : > { %s10271_s14 = smov (!%p166_p9), 57   ;;  %s14077_s20 = smov (!%p166_p9), 56  }
  0x13   : > { %s10273_s22 = smov (!%p166_p9), 55   ;;  %s10274_s23 = smov (!%p166_p9), 23  }
  0x14   : > { %s10277_s29 = smov (!%p166_p9), 20   ;;  %s188_s30 = sand.u32 (!%p166_p9), 1, %s10253_s16  }
  0x15   : > { %s192_s27 = scalar_select %p191_p10, %s10351_s19, 1 }
  0x17   : > { %s10094_s28 = smul.u32 40, %s192_s27  ;;  %s10275_s27 = smov 22  }
  0x19   : > { %s10383_s5 = scalar_lea.vmem %s14071_s1, %s10094_s28  ;;  %s14075_s28 = smov 21  }
  0x1a   : > { %v244_v0 = vld [vmem:[%s10383_s5 + $0x8] sm:$0xff]  ;;  %v243_v1 = vld [vmem:[%s10383_s5] sm:$0xff]  ;;  %v1181_v6 = vld [vmem:[%s10383_s5 + $0x10] sm:$0xff] }
  0x1b   : > { %v10387_v2 = vcombine.low %v244_v0, %v244_v0  ;;  %v10389_v3 = vcombine.high %v244_v0, %v244_v0  ;;  %v10391_v4 = vcombine.low %v243_v1, %v243_v1  ;;  %v10393_v5 = vcombine.high %v243_v1, %v243_v1  ;;  %v1182_v7 = vld [vmem:[%s10383_s5 + $0x18] sm:$0xff]  ;;  %v245_v9 = vld [vmem:[%s10383_s5 + $0x10] sm:$0xff]  ;;  %v10198_v13 = vld [vmem:[%s10383_s5 + $0x20] ss:$0 sps:$4 sm:$0xff]  }
  0x1c   : > { %v10405_v8 = vcombine.high %v1181_v6, %v1181_v6  ;;  %v10408_v10 = vcombine.low %v1181_v6, %v1181_v6  ;;  %v10410_v11 = vcombine.low %v1182_v7, %v1182_v7  ;;  %v10413_v12 = vcombine.high %v1182_v7, %v1182_v7  ;;  %v246_v16 = vld [vmem:[%s10383_s5 + $0x18] sm:$0xff]  ;;  %242 = vst [vmem:[#allocation2 + $0x40] sm:$0xf] %v10198_v13  ;;  %v247_v19 = vld [vmem:[%s10383_s5 + $0x20] sm:$0xff] }
  0x1d   : > { %277 = vrot.lane.b32.xlu1 %v10387_v2, %s10263_s6  ;;  %273 = vrot.lane.b32.xlu0 %v10391_v4, %s10263_s6  ;;  %235 = vst [vmem:[#allocation2 + $0x8] sm:$0xf] %v10393_v5  ;;  %234 = vst [vmem:[#allocation2] sm:$0xf] %v10391_v4  ;;  %v10422_v14 = vcombine.high %v245_v9, %v245_v9  ;;  %v10424_v15 = vcombine.low %v245_v9, %v245_v9 }
  0x1e   : > { %237 = vst [vmem:[#allocation2 + $0x18] sm:$0xf] %v10389_v3  ;;  %236 = vst [vmem:[#allocation2 + $0x10] sm:$0xf] %v10387_v2  ;;  %v10432_v17 = vcombine.high %v246_v16, %v246_v16  ;;  %v10434_v18 = vcombine.low %v246_v16, %v246_v16  ;;  %v10441_v20 = vcombine.high %v247_v19, %v247_v19 }
  0x1f   : > { %239 = vst [vmem:[#allocation2 + $0x28] sm:$0xf] %v10405_v8  ;;  %238 = vst [vmem:[#allocation2 + $0x20] sm:$0xf] %v10408_v10  ;;  %v10443_v21 = vcombine.low %v247_v19, %v247_v19 }
  0x20   : > { %240 = vst [vmem:[#allocation2 + $0x30] sm:$0xf] %v10410_v11  ;;  %241 = vst [vmem:[#allocation2 + $0x38] sm:$0xf] %v10413_v12 }
  0x21   : > { %279 = vrot.lane.b32.xlu1 %v10389_v3, %s10263_s6  ;;  %275 = vrot.lane.b32.xlu0 %v10393_v5, %s10263_s6 }
  0x25   : > { %283 = vrot.lane.b32.xlu1 %v10422_v14, %s10263_s6  ;;  %281 = vrot.lane.b32.xlu0 %v10424_v15, %s10263_s6 }
  0x29   : > { %287 = vrot.lane.b32.xlu1 %v10432_v17, %s10263_s6  ;;  %285 = vrot.lane.b32.xlu0 %v10434_v18, %s10263_s6 }
  0x2d   : > { %291 = vrot.lane.b32.xlu1 %v10441_v20, %s10263_s6  ;;  %289 = vrot.lane.b32.xlu0 %v10443_v21, %s10263_s6 }
  0x31   : > { %353 = vrot.lane.b32.xlu1 %v10393_v5, %s10264_s7  ;;  %351 = vrot.lane.b32.xlu0 %v10391_v4, %s10264_s7 }
  0x35   : > { %357 = vrot.lane.b32.xlu1 %v10389_v3, %s10264_s7  ;;  %355 = vrot.lane.b32.xlu0 %v10387_v2, %s10264_s7 }
  0x39   : > { %361 = vrot.lane.b32.xlu1 %v10422_v14, %s10264_s7  ;;  %359 = vrot.lane.b32.xlu0 %v10424_v15, %s10264_s7 }
  0x3d   : > { %365 = vrot.lane.b32.xlu1 %v10432_v17, %s10264_s7  ;;  %363 = vrot.lane.b32.xlu0 %v10434_v18, %s10264_s7 }
  0x41   : > { %369 = vrot.lane.b32.xlu1 %v10441_v20, %s10264_s7  ;;  %367 = vrot.lane.b32.xlu0 %v10443_v21, %s10264_s7 }
  0x45   : > { %431 = vrot.lane.b32.xlu1 %v10393_v5, %s10265_s8  ;;  %429 = vrot.lane.b32.xlu0 %v10391_v4, %s10265_s8 }
  0x49   : > { %435 = vrot.lane.b32.xlu1 %v10389_v3, %s10265_s8  ;;  %433 = vrot.lane.b32.xlu0 %v10387_v2, %s10265_s8 }
  0x4d   : > { %439 = vrot.lane.b32.xlu1 %v10422_v14, %s10265_s8  ;;  %437 = vrot.lane.b32.xlu0 %v10424_v15, %s10265_s8 }
  0x51   : > { %443 = vrot.lane.b32.xlu1 %v10432_v17, %s10265_s8  ;;  %441 = vrot.lane.b32.xlu0 %v10434_v18, %s10265_s8 }
  0x55   : > { %447 = vrot.lane.b32.xlu1 %v10441_v20, %s10265_s8  ;;  %445 = vrot.lane.b32.xlu0 %v10443_v21, %s10265_s8 }
  0x59   : > { %509 = vrot.lane.b32.xlu1 %v10393_v5, %s10266_s9  ;;  %507 = vrot.lane.b32.xlu0 %v10391_v4, %s10266_s9 }
  0x5d   : > { %513 = vrot.lane.b32.xlu1 %v10389_v3, %s10266_s9  ;;  %511 = vrot.lane.b32.xlu0 %v10387_v2, %s10266_s9 }
  0x61   : > { %517 = vrot.lane.b32.xlu1 %v10422_v14, %s10266_s9  ;;  %515 = vrot.lane.b32.xlu0 %v10424_v15, %s10266_s9 }
  0x65   : > { %521 = vrot.lane.b32.xlu1 %v10432_v17, %s10266_s9  ;;  %519 = vrot.lane.b32.xlu0 %v10434_v18, %s10266_s9 }
  0x69   : > { %525 = vrot.lane.b32.xlu1 %v10441_v20, %s10266_s9  ;;  %523 = vrot.lane.b32.xlu0 %v10443_v21, %s10266_s9 }
  0x6d   : > { %587 = vrot.lane.b32.xlu1 %v10393_v5, %s10267_s10  ;;  %585 = vrot.lane.b32.xlu0 %v10391_v4, %s10267_s10 }
  0x71   : > { %591 = vrot.lane.b32.xlu1 %v10389_v3, %s10267_s10  ;;  %589 = vrot.lane.b32.xlu0 %v10387_v2, %s10267_s10 }
  0x75   : > { %595 = vrot.lane.b32.xlu1 %v10422_v14, %s10267_s10  ;;  %593 = vrot.lane.b32.xlu0 %v10424_v15, %s10267_s10 }
  0x79   : > { %599 = vrot.lane.b32.xlu1 %v10432_v17, %s10267_s10  ;;  %597 = vrot.lane.b32.xlu0 %v10434_v18, %s10267_s10 }
  0x7d   : > { %603 = vrot.lane.b32.xlu1 %v10441_v20, %s10267_s10  ;;  %601 = vrot.lane.b32.xlu0 %v10443_v21, %s10267_s10 }
  0x81   : > { %665 = vrot.lane.b32.xlu1 %v10393_v5, %s10268_s11  ;;  %663 = vrot.lane.b32.xlu0 %v10391_v4, %s10268_s11 }
  0x85   : > { %669 = vrot.lane.b32.xlu1 %v10389_v3, %s10268_s11  ;;  %667 = vrot.lane.b32.xlu0 %v10387_v2, %s10268_s11 }
  0x89   : > { %673 = vrot.lane.b32.xlu1 %v10422_v14, %s10268_s11  ;;  %671 = vrot.lane.b32.xlu0 %v10424_v15, %s10268_s11 }
  0x8d   : > { %677 = vrot.lane.b32.xlu1 %v10432_v17, %s10268_s11  ;;  %675 = vrot.lane.b32.xlu0 %v10434_v18, %s10268_s11 }
  0x8f   : > { %v278_v22 = vpop.permute.xlu1 %277  ;;  %v274_v23 = vpop.permute.xlu0 %273 }
  0x91   : > { %681 = vrot.lane.b32.xlu1 %v10441_v20, %s10268_s11  ;;  %679 = vrot.lane.b32.xlu0 %v10443_v21, %s10268_s11 }
  0x93   : > { %v280_v24 = vpop.permute.xlu1 %279  ;;  %v276_v25 = vpop.permute.xlu0 %275 }
  0x94   : > { %v296_v26 = vsel %vm293_vm0, %v278_v22, %v280_v24  ;;  %v294_v27 = vsel %vm293_vm0, %v274_v23, %v276_v25  ;;  %v295_v28 = vsel %vm293_vm0, %v276_v25, %v278_v22 }
  0x95   : > { %314 = vst [vmem:[#allocation2 + $0x10] sm:$0xf0] %v296_v26  ;;  %312 = vst [vmem:[#allocation2] sm:$0xf0] %v294_v27  ;;  %743 = vrot.lane.b32.xlu1 %v10393_v5, %s10269_s12  ;;  %741 = vrot.lane.b32.xlu0 %v10391_v4, %s10269_s12 }
  0x96   : > { %313 = vst [vmem:[#allocation2 + $0x8] sm:$0xf0] %v295_v28 }
  0x97   : > { %v284_v29 = vpop.permute.xlu1 %283  ;;  %v282_v30 = vpop.permute.xlu0 %281 }
  0x98   : > { %v297_v31 = vsel %vm293_vm0, %v280_v24, %v282_v30  ;;  %v298_v32 = vsel %vm293_vm0, %v282_v30, %v284_v29 }
  0x99   : > { %315 = vst [vmem:[#allocation2 + $0x18] sm:$0xf0] %v297_v31  ;;  %316 = vst [vmem:[#allocation2 + $0x20] sm:$0xf0] %v298_v32  ;;  %747 = vrot.lane.b32.xlu1 %v10389_v3, %s10269_s12  ;;  %745 = vrot.lane.b32.xlu0 %v10387_v2, %s10269_s12 }
  0x9b   : > { %v288_v33 = vpop.permute.xlu1 %287  ;;  %v286_v34 = vpop.permute.xlu0 %285 }
  0x9c   : > { %v299_v35 = vsel %vm293_vm0, %v284_v29, %v286_v34  ;;  %v300_v36 = vsel %vm293_vm0, %v286_v34, %v288_v33  ;;  %v1415_v38 = vld [vmem:[#allocation2] sm:$0xff]  ;;  %v1417_v44 = vld [vmem:[#allocation2 + $0x10] sm:$0xff] }
  0x9d   : > { %v1416_v37 = vld [vmem:[#allocation2 + $0x8] sm:$0xff]  ;;  %317 = vst [vmem:[#allocation2 + $0x28] sm:$0xf0] %v299_v35  ;;  %318 = vst [vmem:[#allocation2 + $0x30] sm:$0xf0] %v300_v36  ;;  %751 = vrot.lane.b32.xlu1 %v10422_v14, %s10269_s12  ;;  %749 = vrot.lane.b32.xlu0 %v10424_v15, %s10269_s12 }
  0x9e   : > { %1493 = vmatprep.subr.bf16.mxu0 %v1416_v37 }
  0x9f   : > { %1494 = vmatpush1.bf16.msra.mxu0 %v1415_v38  ;;  %v292_v39 = vpop.permute.xlu1 %291  ;;  %v290_v40 = vpop.permute.xlu0 %289 }
  0xa0   : > { %v301_v41 = vsel %vm293_vm0, %v288_v33, %v290_v40  ;;  %v302_v42 = vsel %vm293_vm0, %v290_v40, %v292_v39  ;;  %v1418_v43 = vld [vmem:[#allocation2 + $0x18] sm:$0xff] }
  0xa1   : > { %319 = vst [vmem:[#allocation2 + $0x38] sm:$0xf0] %v301_v41  ;;  %320 = vst [vmem:[#allocation2 + $0x40] sm:$0xf0] %v302_v42  ;;  %755 = vrot.lane.b32.xlu1 %v10432_v17, %s10269_s12  ;;  %753 = vrot.lane.b32.xlu0 %v10434_v18, %s10269_s12 }
  0xa2   : > { %1536 = vmatprep.subr.bf16.mxu1 %v1418_v43 }
  0xa3   : > { %1537 = vmatpush1.bf16.msra.mxu1 %v1417_v44  ;;  %v354_v45 = vpop.permute.xlu1 %353  ;;  %v352_v46 = vpop.permute.xlu0 %351 }
  0xa4   : > { %v372_v47 = vsel %vm371_vm1, %v352_v46, %v354_v45 }
  0xa5   : > { %390 = vst [vmem:[#allocation2 + $0x48] sm:$0xf] %v372_v47  ;;  %759 = vrot.lane.b32.xlu1 %v10441_v20, %s10269_s12  ;;  %757 = vrot.lane.b32.xlu0 %v10443_v21, %s10269_s12  ;;  %s10285_s12 = smov 11  }
  0xa7   : > { %v358_v48 = vpop.permute.xlu1 %357  ;;  %v356_v49 = vpop.permute.xlu0 %355 }
  0xa8   : > { %v373_v50 = vsel %vm371_vm1, %v354_v45, %v356_v49  ;;  %v374_v51 = vsel %vm371_vm1, %v356_v49, %v358_v48 }
  0xa9   : > { %391 = vst [vmem:[#allocation2 + $0x50] sm:$0xf] %v373_v50  ;;  %392 = vst [vmem:[#allocation2 + $0x58] sm:$0xf] %v374_v51  ;;  %821 = vrot.lane.b32.xlu1 %v10393_v5, %s10270_s13  ;;  %819 = vrot.lane.b32.xlu0 %v10391_v4, %s10270_s13 }
  0xab   : > { %v362_v52 = vpop.permute.xlu1 %361  ;;  %v360_v53 = vpop.permute.xlu0 %359 }
  0xac   : > { %v375_v54 = vsel %vm371_vm1, %v358_v48, %v360_v53  ;;  %v376_v55 = vsel %vm371_vm1, %v360_v53, %v362_v52 }
  0xad   : > { %393 = vst [vmem:[#allocation2 + $0x60] sm:$0xf] %v375_v54  ;;  %394 = vst [vmem:[#allocation2 + $0x68] sm:$0xf] %v376_v55  ;;  %825 = vrot.lane.b32.xlu1 %v10389_v3, %s10270_s13  ;;  %823 = vrot.lane.b32.xlu0 %v10387_v2, %s10270_s13 }
  0xaf   : > { %v366_v56 = vpop.permute.xlu1 %365  ;;  %v364_v57 = vpop.permute.xlu0 %363 }
  0xb0   : > { %v377_v58 = vsel %vm371_vm1, %v362_v52, %v364_v57  ;;  %v378_v59 = vsel %vm371_vm1, %v364_v57, %v366_v56 }
  0xb1   : > { %395 = vst [vmem:[#allocation2 + $0x70] sm:$0xf] %v377_v58  ;;  %396 = vst [vmem:[#allocation2 + $0x78] sm:$0xf] %v378_v59  ;;  %829 = vrot.lane.b32.xlu1 %v10422_v14, %s10270_s13  ;;  %827 = vrot.lane.b32.xlu0 %v10424_v15, %s10270_s13 }
  0xb3   : > { %v370_v60 = vpop.permute.xlu1 %369  ;;  %v368_v61 = vpop.permute.xlu0 %367 }
  0xb4   : > { %v379_v62 = vsel %vm371_vm1, %v366_v56, %v368_v61  ;;  %v380_v63 = vsel %vm371_vm1, %v368_v61, %v370_v60 }
  0xb5   : > { %397 = vst [vmem:[#allocation2 + $0x80] sm:$0xf] %v379_v62  ;;  %398 = vst [vmem:[#allocation2 + $0x88] sm:$0xf] %v380_v63  ;;  %833 = vrot.lane.b32.xlu1 %v10432_v17, %s10270_s13  ;;  %831 = vrot.lane.b32.xlu0 %v10434_v18, %s10270_s13 }
  0xb7   : > { %v432_v0 = vpop.permute.xlu1 %431  ;;  %v430_v1 = vpop.permute.xlu0 %429 }
  0xb8   : > { %v450_v6 = vsel %vm449_vm2, %v430_v1, %v432_v0 }
  0xb9   : > { %468 = vst [vmem:[#allocation2 + $0x48] sm:$0xf0] %v450_v6  ;;  %837 = vrot.lane.b32.xlu1 %v10441_v20, %s10270_s13  ;;  %835 = vrot.lane.b32.xlu0 %v10443_v21, %s10270_s13 }
  0xbb   : > { %v436_v7 = vpop.permute.xlu1 %435  ;;  %v434_v9 = vpop.permute.xlu0 %433 }
  0xbc   : > { %v451_v13 = vsel %vm449_vm2, %v432_v0, %v434_v9  ;;  %v452_v16 = vsel %vm449_vm2, %v434_v9, %v436_v7 }
  0xbd   : > { %469 = vst [vmem:[#allocation2 + $0x50] sm:$0xf0] %v451_v13  ;;  %470 = vst [vmem:[#allocation2 + $0x58] sm:$0xf0] %v452_v16  ;;  %899 = vrot.lane.b32.xlu1 %v10393_v5, %s10271_s14  ;;  %897 = vrot.lane.b32.xlu0 %v10391_v4, %s10271_s14 }
  0xbf   : > { %v440_v19 = vpop.permute.xlu1 %439  ;;  %v438_v22 = vpop.permute.xlu0 %437 }
  0xc0   : > { %v453_v23 = vsel %vm449_vm2, %v436_v7, %v438_v22  ;;  %v454_v24 = vsel %vm449_vm2, %v438_v22, %v440_v19  ;;  %v1424_v30 = vld [vmem:[#allocation2 + $0x48] sm:$0xff] }
  0xc1   : > { %471 = vst [vmem:[#allocation2 + $0x60] sm:$0xf0] %v453_v23  ;;  %472 = vst [vmem:[#allocation2 + $0x68] sm:$0xf0] %v454_v24  ;;  %903 = vrot.lane.b32.xlu1 %v10389_v3, %s10271_s14  ;;  %901 = vrot.lane.b32.xlu0 %v10387_v2, %s10271_s14 }
  0xc3   : > { %v444_v25 = vpop.permute.xlu1 %443  ;;  %v442_v26 = vpop.permute.xlu0 %441 }
  0xc4   : > { %v455_v27 = vsel %vm449_vm2, %v440_v19, %v442_v26  ;;  %v456_v28 = vsel %vm449_vm2, %v442_v26, %v444_v25  ;;  %v1425_v29 = vld [vmem:[#allocation2 + $0x50] sm:$0xff]  ;;  %v1426_v36 = vld [vmem:[#allocation2 + $0x58] sm:$0xff] }
  0xc5   : > { %473 = vst [vmem:[#allocation2 + $0x70] sm:$0xf0] %v455_v27  ;;  %474 = vst [vmem:[#allocation2 + $0x78] sm:$0xf0] %v456_v28  ;;  %907 = vrot.lane.b32.xlu1 %v10422_v14, %s10271_s14  ;;  %905 = vrot.lane.b32.xlu0 %v10424_v15, %s10271_s14 }
  0xc6   : > { %1495 = vmatprep.subr.bf16.mxu0 %v1425_v29 }
  0xc7   : > { %1496 = vmatpush1.bf16.msra.mxu0 %v1424_v30  ;;  %v448_v31 = vpop.permute.xlu1 %447  ;;  %v446_v32 = vpop.permute.xlu0 %445 }
  0xc8   : > { %v457_v33 = vsel %vm449_vm2, %v444_v25, %v446_v32  ;;  %v458_v34 = vsel %vm449_vm2, %v446_v32, %v448_v31  ;;  %v1427_v35 = vld [vmem:[#allocation2 + $0x60] sm:$0xff] }
  0xc9   : > { %475 = vst [vmem:[#allocation2 + $0x80] sm:$0xf0] %v457_v33  ;;  %476 = vst [vmem:[#allocation2 + $0x88] sm:$0xf0] %v458_v34  ;;  %911 = vrot.lane.b32.xlu1 %v10432_v17, %s10271_s14  ;;  %909 = vrot.lane.b32.xlu0 %v10434_v18, %s10271_s14 }
  0xca   : > { %1538 = vmatprep.subr.bf16.mxu1 %v1427_v35 }
  0xcb   : > { %1539 = vmatpush1.bf16.msra.mxu1 %v1426_v36  ;;  %v510_v37 = vpop.permute.xlu1 %509  ;;  %v508_v38 = vpop.permute.xlu0 %507 }
  0xcc   : > { %v528_v39 = vsel %vm527_vm3, %v508_v38, %v510_v37 }
  0xcd   : > { %546 = vst [vmem:[#allocation2 + $0x90] sm:$0xf] %v528_v39  ;;  %915 = vrot.lane.b32.xlu1 %v10441_v20, %s10271_s14  ;;  %913 = vrot.lane.b32.xlu0 %v10443_v21, %s10271_s14 }
  0xcf   : > { %v514_v40 = vpop.permute.xlu1 %513  ;;  %v512_v41 = vpop.permute.xlu0 %511 }
  0xd0   : > { %v529_v42 = vsel %vm527_vm3, %v510_v37, %v512_v41  ;;  %v530_v43 = vsel %vm527_vm3, %v512_v41, %v514_v40 }
  0xd1   : > { %547 = vst [vmem:[#allocation2 + $0x98] sm:$0xf] %v529_v42  ;;  %548 = vst [vmem:[#allocation2 + $0xa0] sm:$0xf] %v530_v43  ;;  %977 = vrot.lane.b32.xlu1 %v10393_v5, %s14077_s20  ;;  %975 = vrot.lane.b32.xlu0 %v10391_v4, %s14077_s20 }
  0xd3   : > { %v518_v44 = vpop.permute.xlu1 %517  ;;  %v516_v45 = vpop.permute.xlu0 %515 }
  0xd4   : > { %v531_v46 = vsel %vm527_vm3, %v514_v40, %v516_v45  ;;  %v532_v47 = vsel %vm527_vm3, %v516_v45, %v518_v44 }
  0xd5   : > { %549 = vst [vmem:[#allocation2 + $0xa8] sm:$0xf] %v531_v46  ;;  %550 = vst [vmem:[#allocation2 + $0xb0] sm:$0xf] %v532_v47  ;;  %981 = vrot.lane.b32.xlu1 %v10389_v3, %s14077_s20  ;;  %979 = vrot.lane.b32.xlu0 %v10387_v2, %s14077_s20 }
  0xd7   : > { %v522_v48 = vpop.permute.xlu1 %521  ;;  %v520_v49 = vpop.permute.xlu0 %519 }
  0xd8   : > { %v533_v50 = vsel %vm527_vm3, %v518_v44, %v520_v49  ;;  %v534_v51 = vsel %vm527_vm3, %v520_v49, %v522_v48 }
  0xd9   : > { %551 = vst [vmem:[#allocation2 + $0xb8] sm:$0xf] %v533_v50  ;;  %552 = vst [vmem:[#allocation2 + $0xc0] sm:$0xf] %v534_v51  ;;  %985 = vrot.lane.b32.xlu1 %v10422_v14, %s14077_s20  ;;  %983 = vrot.lane.b32.xlu0 %v10424_v15, %s14077_s20 }
  0xdb   : > { %v526_v52 = vpop.permute.xlu1 %525  ;;  %v524_v53 = vpop.permute.xlu0 %523 }
  0xdc   : > { %v535_v54 = vsel %vm527_vm3, %v522_v48, %v524_v53  ;;  %v536_v55 = vsel %vm527_vm3, %v524_v53, %v526_v52 }
  0xdd   : > { %553 = vst [vmem:[#allocation2 + $0xc8] sm:$0xf] %v535_v54  ;;  %554 = vst [vmem:[#allocation2 + $0xd0] sm:$0xf] %v536_v55  ;;  %989 = vrot.lane.b32.xlu1 %v10432_v17, %s14077_s20  ;;  %987 = vrot.lane.b32.xlu0 %v10434_v18, %s14077_s20 }
  0xdf   : > { %v588_v56 = vpop.permute.xlu1 %587  ;;  %v586_v57 = vpop.permute.xlu0 %585 }
  0xe0   : > { %v606_v58 = vsel %vm605_vm4, %v586_v57, %v588_v56 }
  0xe1   : > { %624 = vst [vmem:[#allocation2 + $0x90] sm:$0xf0] %v606_v58  ;;  %993 = vrot.lane.b32.xlu1 %v10441_v20, %s14077_s20  ;;  %991 = vrot.lane.b32.xlu0 %v10443_v21, %s14077_s20  ;;  %s10288_s20 = smov 34  }
  0xe3   : > { %v592_v59 = vpop.permute.xlu1 %591  ;;  %v590_v60 = vpop.permute.xlu0 %589 }
  0xe4   : > { %v607_v61 = vsel %vm605_vm4, %v588_v56, %v590_v60  ;;  %v608_v62 = vsel %vm605_vm4, %v590_v60, %v592_v59 }
  0xe5   : > { %625 = vst [vmem:[#allocation2 + $0x98] sm:$0xf0] %v607_v61  ;;  %626 = vst [vmem:[#allocation2 + $0xa0] sm:$0xf0] %v608_v62  ;;  %1055 = vrot.lane.b32.xlu1 %v10393_v5, %s10273_s22  ;;  %1053 = vrot.lane.b32.xlu0 %v10391_v4, %s10273_s22  ;;  %v1183_v61 = vld [vmem:[%s10383_s5 + $0x20] sm:$0xff] }
  0xe7   : > { %v596_v63 = vpop.permute.xlu1 %595  ;;  %v594_v0 = vpop.permute.xlu0 %593 }
  0xe8   : > { %v609_v1 = vsel %vm605_vm4, %v592_v59, %v594_v0  ;;  %v610_v6 = vsel %vm605_vm4, %v594_v0, %v596_v63  ;;  %v1433_v22 = vld [vmem:[#allocation2 + $0x90] sm:$0xff] }
  0xe9   : > { %627 = vst [vmem:[#allocation2 + $0xa8] sm:$0xf0] %v609_v1  ;;  %628 = vst [vmem:[#allocation2 + $0xb0] sm:$0xf0] %v610_v6  ;;  %1059 = vrot.lane.b32.xlu1 %v10389_v3, %s10273_s22  ;;  %1057 = vrot.lane.b32.xlu0 %v10387_v2, %s10273_s22 }
  0xeb   : > { %v600_v7 = vpop.permute.xlu1 %599  ;;  %v598_v9 = vpop.permute.xlu0 %597 }
  0xec   : > { %v611_v13 = vsel %vm605_vm4, %v596_v63, %v598_v9  ;;  %v612_v16 = vsel %vm605_vm4, %v598_v9, %v600_v7  ;;  %v1434_v19 = vld [vmem:[#allocation2 + $0x98] sm:$0xff]  ;;  %v1435_v28 = vld [vmem:[#allocation2 + $0xa0] sm:$0xff]  ;;  %v10751_v9 = vcombine.low %v1183_v61, %v1183_v61 }
  0xed   : > { %629 = vst [vmem:[#allocation2 + $0xb8] sm:$0xf0] %v611_v13  ;;  %630 = vst [vmem:[#allocation2 + $0xc0] sm:$0xf0] %v612_v16  ;;  %1063 = vrot.lane.b32.xlu1 %v10422_v14, %s10273_s22  ;;  %1061 = vrot.lane.b32.xlu0 %v10424_v15, %s10273_s22 }
  0xee   : > { %1497 = vmatprep.subr.bf16.mxu0 %v1434_v19 }
  0xef   : > { %1498 = vmatpush1.bf16.msra.mxu0 %v1433_v22  ;;  %v604_v23 = vpop.permute.xlu1 %603  ;;  %v602_v24 = vpop.permute.xlu0 %601 }
  0xf0   : > { %v613_v25 = vsel %vm605_vm4, %v600_v7, %v602_v24  ;;  %v614_v26 = vsel %vm605_vm4, %v602_v24, %v604_v23  ;;  %v1436_v27 = vld [vmem:[#allocation2 + $0xa8] sm:$0xff]  ;;  %v10749_v7 = vcombine.high %v1183_v61, %v1183_v61 }
  0xf1   : > { %631 = vst [vmem:[#allocation2 + $0xc8] sm:$0xf0] %v613_v25  ;;  %632 = vst [vmem:[#allocation2 + $0xd0] sm:$0xf0] %v614_v26  ;;  %1067 = vrot.lane.b32.xlu1 %v10432_v17, %s10273_s22  ;;  %1065 = vrot.lane.b32.xlu0 %v10434_v18, %s10273_s22 }
  0xf2   : > { %1540 = vmatprep.subr.bf16.mxu1 %v1436_v27 }
  0xf3   : > { %1541 = vmatpush1.bf16.msra.mxu1 %v1435_v28  ;;  %v666_v29 = vpop.permute.xlu1 %665  ;;  %v664_v30 = vpop.permute.xlu0 %663 }
  0xf4   : > { %v684_v31 = vsel %vm683_vm5, %v664_v30, %v666_v29 }
  0xf5   : > { %702 = vst [vmem:[#allocation2 + $0xd8] sm:$0xf] %v684_v31  ;;  %1071 = vrot.lane.b32.xlu1 %v10441_v20, %s10273_s22  ;;  %1069 = vrot.lane.b32.xlu0 %v10443_v21, %s10273_s22  ;;  %s10286_s22 = smov 104  }
  0xf7   : > { %v670_v32 = vpop.permute.xlu1 %669  ;;  %v668_v33 = vpop.permute.xlu0 %667 }
  0xf8   : > { %v685_v34 = vsel %vm683_vm5, %v666_v29, %v668_v33  ;;  %v686_v35 = vsel %vm683_vm5, %v668_v33, %v670_v32 }
  0xf9   : > { %703 = vst [vmem:[#allocation2 + $0xe0] sm:$0xf] %v685_v34  ;;  %704 = vst [vmem:[#allocation2 + $0xe8] sm:$0xf] %v686_v35  ;;  %1133 = vrot.lane.b32.xlu1 %v10393_v5, %s10274_s23  ;;  %1131 = vrot.lane.b32.xlu0 %v10391_v4, %s10274_s23 }
  0xfb   : > { %v674_v36 = vpop.permute.xlu1 %673  ;;  %v672_v37 = vpop.permute.xlu0 %671 }
  0xfc   : > { %v687_v38 = vsel %vm683_vm5, %v670_v32, %v672_v37  ;;  %v688_v39 = vsel %vm683_vm5, %v672_v37, %v674_v36 }
  0xfd   : > { %705 = vst [vmem:[#allocation2 + $0xf0] sm:$0xf] %v687_v38  ;;  %706 = vst [vmem:[#allocation2 + $0xf8] sm:$0xf] %v688_v39  ;;  %1137 = vrot.lane.b32.xlu1 %v10389_v3, %s10274_s23  ;;  %1135 = vrot.lane.b32.xlu0 %v10387_v2, %s10274_s23 }
  0xff   : > { %v678_v40 = vpop.permute.xlu1 %677  ;;  %v676_v41 = vpop.permute.xlu0 %675 }
 0x100   : > { %v689_v5 = vsel %vm683_vm5, %v674_v36, %v676_v41  ;;  %v690_v4 = vsel %vm683_vm5, %v676_v41, %v678_v40 }
 0x101   : > { %707 = vst [vmem:[#allocation2 + $0x100] sm:$0xf] %v689_v5  ;;  %708 = vst [vmem:[#allocation2 + $0x108] sm:$0xf] %v690_v4  ;;  %1141 = vrot.lane.b32.xlu1 %v10422_v14, %s10274_s23  ;;  %1139 = vrot.lane.b32.xlu0 %v10424_v15, %s10274_s23  ;;  %v1179_v14 = vld [vmem:[%s10383_s5] sm:$0xff] }
 0x102   : > { %v10715_v46 = vcombine.high %v1179_v14, %v1179_v14  ;;  %v10717_v47 = vcombine.low %v1179_v14, %v1179_v14 }
 0x103   : > { %v682_v42 = vpop.permute.xlu1 %681  ;;  %v680_v3 = vpop.permute.xlu0 %679 }
 0x104   : > { %v691_v43 = vsel %vm683_vm5, %v678_v40, %v680_v3  ;;  %v692_v2 = vsel %vm683_vm5, %v680_v3, %v682_v42  ;;  %vm1956_vm5 = vcmask 253952  }
 0x105   : > { %709 = vst [vmem:[#allocation2 + $0x110] sm:$0xf] %v691_v43  ;;  %710 = vst [vmem:[#allocation2 + $0x118] sm:$0xf] %v692_v2  ;;  %1145 = vrot.lane.b32.xlu1 %v10432_v17, %s10274_s23  ;;  %1143 = vrot.lane.b32.xlu0 %v10434_v18, %s10274_s23  ;;  %v1180_v17 = vld [vmem:[%s10383_s5 + $0x8] sm:$0xff]  ;;  %s9897_s5 = sshll.u32 %s188_s30, 9 }
 0x106   : > { %s10952_s8 = scalar_lea.vmem [#allocation4], %s9897_s5  ;;  %s10294_s5 = smov 68  }
 0x107   : > { %v744_v44 = vpop.permute.xlu1 %743  ;;  %v742_v45 = vpop.permute.xlu0 %741 }
 0x108   : > { %v762_v15 = vsel %vm761_vm6, %v742_v45, %v744_v44  ;;  %v10278_v45 = vmov 0  }
 0x109   : > { %780 = vst [vmem:[#allocation2 + $0xd8] sm:$0xf0] %v762_v15  ;;  %1149 = vrot.lane.b32.xlu1 %v10441_v20, %s10274_s23  ;;  %1147 = vrot.lane.b32.xlu0 %v10443_v21, %s10274_s23  ;;  %v10726_v20 = vcombine.high %v1180_v17, %v1180_v17  ;;  %v10728_v21 = vcombine.low %v1180_v17, %v1180_v17 }
 0x10a   : > { %1525 = vmatprep.mubr.bf16.mxu0 %v10278_v45  ;;  %1568 = vmatprep.mubr.bf16.mxu1 %v10278_v45 }
 0x10b   : > { %v748_v48 = vpop.permute.xlu1 %747  ;;  %v746_v18 = vpop.permute.xlu0 %745  ;;  %10176 = vset.pattern.permute.xlu1 %v10278_v45  ;;  %10175 = vset.pattern.permute.xlu0 %v10278_v45 }
 0x10c   : > { %v763_v49 = vsel %vm761_vm6, %v744_v44, %v746_v18  ;;  %v764_v50 = vsel %vm761_vm6, %v746_v18, %v748_v48 }
 0x10d   : > { %781 = vst [vmem:[#allocation2 + $0xe0] sm:$0xf0] %v763_v49  ;;  %782 = vst [vmem:[#allocation2 + $0xe8] sm:$0xf0] %v764_v50  ;;  %1211 = vrot.lane.b32.xlu1 %v10715_v46, %s10275_s27  ;;  %1209 = vrot.lane.b32.xlu0 %v10717_v47, %s10275_s27 }
 0x10f   : > { %v752_v51 = vpop.permute.xlu1 %751  ;;  %v750_v52 = vpop.permute.xlu0 %749 }
 0x110   : > { %v765_v53 = vsel %vm761_vm6, %v748_v48, %v750_v52  ;;  %v766_v54 = vsel %vm761_vm6, %v750_v52, %v752_v51  ;;  %v1442_v60 = vld [vmem:[#allocation2 + $0xd8] sm:$0xff] }
 0x111   : > { %783 = vst [vmem:[#allocation2 + $0xf0] sm:$0xf0] %v765_v53  ;;  %784 = vst [vmem:[#allocation2 + $0xf8] sm:$0xf0] %v766_v54  ;;  %1215 = vrot.lane.b32.xlu1 %v10726_v20, %s10275_s27  ;;  %1213 = vrot.lane.b32.xlu0 %v10728_v21, %s10275_s27 }
 0x113   : > { %v756_v55 = vpop.permute.xlu1 %755  ;;  %v754_v56 = vpop.permute.xlu0 %753 }
 0x114   : > { %v767_v57 = vsel %vm761_vm6, %v752_v51, %v754_v56  ;;  %v768_v58 = vsel %vm761_vm6, %v754_v56, %v756_v55  ;;  %v1443_v59 = vld [vmem:[#allocation2 + $0xe0] sm:$0xff]  ;;  %v1444_v13 = vld [vmem:[#allocation2 + $0xe8] sm:$0xff] }
 0x115   : > { %785 = vst [vmem:[#allocation2 + $0x100] sm:$0xf0] %v767_v57  ;;  %786 = vst [vmem:[#allocation2 + $0x108] sm:$0xf0] %v768_v58  ;;  %1219 = vrot.lane.b32.xlu1 %v10405_v8, %s10275_s27  ;;  %1217 = vrot.lane.b32.xlu0 %v10408_v10, %s10275_s27 }
 0x116   : > { %1499 = vmatprep.subr.bf16.mxu0 %v1443_v59 }
 0x117   : > { %1500 = vmatpush1.bf16.msra.mxu0 %v1442_v60  ;;  %v760_v62 = vpop.permute.xlu1 %759  ;;  %v758_v63 = vpop.permute.xlu0 %757 }
 0x118   : > { %v769_v0 = vsel %vm761_vm6, %v756_v55, %v758_v63  ;;  %v770_v1 = vsel %vm761_vm6, %v758_v63, %v760_v62  ;;  %v1445_v6 = vld [vmem:[#allocation2 + $0xf0] sm:$0xff] }
 0x119   : > { %787 = vst [vmem:[#allocation2 + $0x110] sm:$0xf0] %v769_v0  ;;  %788 = vst [vmem:[#allocation2 + $0x118] sm:$0xf0] %v770_v1  ;;  %1223 = vrot.lane.b32.xlu1 %v10413_v12, %s10275_s27  ;;  %1221 = vrot.lane.b32.xlu0 %v10410_v11, %s10275_s27 }
 0x11a   : > { %1542 = vmatprep.subr.bf16.mxu1 %v1445_v6 }
 0x11b   : > { %1543 = vmatpush1.bf16.msra.mxu1 %v1444_v13  ;;  %v822_v16 = vpop.permute.xlu1 %821  ;;  %v820_v19 = vpop.permute.xlu0 %819 }
 0x11c   : > { %v840_v22 = vsel %vm839_vm7, %v820_v19, %v822_v16 }
 0x11d   : > { %858 = vst [vmem:[#allocation2 + $0x120] sm:$0xf] %v840_v22  ;;  %1227 = vrot.lane.b32.xlu1 %v10749_v7, %s10275_s27  ;;  %1225 = vrot.lane.b32.xlu0 %v10751_v9, %s10275_s27 }
 0x11f   : > { %v826_v23 = vpop.permute.xlu1 %825  ;;  %v824_v24 = vpop.permute.xlu0 %823 }
 0x120   : > { %v841_v25 = vsel %vm839_vm7, %v822_v16, %v824_v24  ;;  %v842_v26 = vsel %vm839_vm7, %v824_v24, %v826_v23 }
 0x121   : > { %859 = vst [vmem:[#allocation2 + $0x128] sm:$0xf] %v841_v25  ;;  %860 = vst [vmem:[#allocation2 + $0x130] sm:$0xf] %v842_v26  ;;  %1289 = vrot.lane.b32.xlu1 %v10715_v46, %s14075_s28  ;;  %1287 = vrot.lane.b32.xlu0 %v10717_v47, %s14075_s28 }
 0x123   : > { %v830_v27 = vpop.permute.xlu1 %829  ;;  %v828_v28 = vpop.permute.xlu0 %827 }
 0x124   : > { %v843_v29 = vsel %vm839_vm7, %v826_v23, %v828_v28  ;;  %v844_v30 = vsel %vm839_vm7, %v828_v28, %v830_v27 }
 0x125   : > { %861 = vst [vmem:[#allocation2 + $0x138] sm:$0xf] %v843_v29  ;;  %862 = vst [vmem:[#allocation2 + $0x140] sm:$0xf] %v844_v30  ;;  %1293 = vrot.lane.b32.xlu1 %v10726_v20, %s14075_s28  ;;  %1291 = vrot.lane.b32.xlu0 %v10728_v21, %s14075_s28 }
 0x127   : > { %v834_v31 = vpop.permute.xlu1 %833  ;;  %v832_v32 = vpop.permute.xlu0 %831 }
 0x128   : > { %v845_v33 = vsel %vm839_vm7, %v830_v27, %v832_v32  ;;  %v846_v34 = vsel %vm839_vm7, %v832_v32, %v834_v31 }
 0x129   : > { %863 = vst [vmem:[#allocation2 + $0x148] sm:$0xf] %v845_v33  ;;  %864 = vst [vmem:[#allocation2 + $0x150] sm:$0xf] %v846_v34  ;;  %1297 = vrot.lane.b32.xlu1 %v10405_v8, %s14075_s28  ;;  %1295 = vrot.lane.b32.xlu0 %v10408_v10, %s14075_s28 }
 0x12b   : > { %v838_v35 = vpop.permute.xlu1 %837  ;;  %v836_v36 = vpop.permute.xlu0 %835 }
 0x12c   : > { %v847_v37 = vsel %vm839_vm7, %v834_v31, %v836_v36  ;;  %v848_v38 = vsel %vm839_vm7, %v836_v36, %v838_v35  ;;  %vm3772_vm7 = vcmask 89088  }
 0x12d   : > { %865 = vst [vmem:[#allocation2 + $0x158] sm:$0xf] %v847_v37  ;;  %866 = vst [vmem:[#allocation2 + $0x160] sm:$0xf] %v848_v38  ;;  %1301 = vrot.lane.b32.xlu1 %v10413_v12, %s14075_s28  ;;  %1299 = vrot.lane.b32.xlu0 %v10410_v11, %s14075_s28 }
 0x12f   : > { %v900_v39 = vpop.permute.xlu1 %899  ;;  %v898_v40 = vpop.permute.xlu0 %897 }
 0x130   : > { %v918_v41 = vsel %vm917_vm8, %v898_v40, %v900_v39 }
 0x131   : > { %936 = vst [vmem:[#allocation2 + $0x120] sm:$0xf0] %v918_v41  ;;  %1305 = vrot.lane.b32.xlu1 %v10749_v7, %s14075_s28  ;;  %1303 = vrot.lane.b32.xlu0 %v10751_v9, %s14075_s28  ;;  %s10293_s28 = smov 103  }
 0x133   : > { %v904_v5 = vpop.permute.xlu1 %903  ;;  %v902_v4 = vpop.permute.xlu0 %901 }
 0x134   : > { %v919_v42 = vsel %vm917_vm8, %v900_v39, %v902_v4  ;;  %v920_v3 = vsel %vm917_vm8, %v902_v4, %v904_v5 }
 0x135   : > { %937 = vst [vmem:[#allocation2 + $0x128] sm:$0xf0] %v919_v42  ;;  %938 = vst [vmem:[#allocation2 + $0x130] sm:$0xf0] %v920_v3  ;;  %1367 = vrot.lane.b32.xlu1 %v10715_v46, %s10277_s29  ;;  %1365 = vrot.lane.b32.xlu0 %v10717_v47, %s10277_s29 }
 0x137   : > { %v908_v43 = vpop.permute.xlu1 %907  ;;  %v906_v2 = vpop.permute.xlu0 %905 }
 0x138   : > { %v921_v14 = vsel %vm917_vm8, %v904_v5, %v906_v2  ;;  %v922_v44 = vsel %vm917_vm8, %v906_v2, %v908_v43  ;;  %v1451_v18 = vld [vmem:[#allocation2 + $0x120] sm:$0xff] }
 0x139   : > { %939 = vst [vmem:[#allocation2 + $0x138] sm:$0xf0] %v921_v14  ;;  %940 = vst [vmem:[#allocation2 + $0x140] sm:$0xf0] %v922_v44  ;;  %1371 = vrot.lane.b32.xlu1 %v10726_v20, %s10277_s29  ;;  %1369 = vrot.lane.b32.xlu0 %v10728_v21, %s10277_s29 }
 0x13b   : > { %v912_v15 = vpop.permute.xlu1 %911  ;;  %v910_v46 = vpop.permute.xlu0 %909 }
 0x13c   : > { %v923_v47 = vsel %vm917_vm8, %v908_v43, %v910_v46  ;;  %v924_v17 = vsel %vm917_vm8, %v910_v46, %v912_v15  ;;  %v1452_v48 = vld [vmem:[#allocation2 + $0x128] sm:$0xff] }
 0x13d   : > { %941 = vst [vmem:[#allocation2 + $0x148] sm:$0xf0] %v923_v47  ;;  %942 = vst [vmem:[#allocation2 + $0x150] sm:$0xf0] %v924_v17  ;;  %1375 = vrot.lane.b32.xlu1 %v10405_v8, %s10277_s29  ;;  %1373 = vrot.lane.b32.xlu0 %v10408_v10, %s10277_s29  ;;  %v1453_v8 = vld [vmem:[#allocation2 + $0x130] sm:$0xff] }
 0x13e   : > { %1501 = vmatprep.subr.bf16.mxu0 %v1452_v48 }
 0x13f   : > { %1502 = vmatpush1.bf16.msra.mxu0 %v1451_v18  ;;  %v916_v49 = vpop.permute.xlu1 %915  ;;  %v914_v50 = vpop.permute.xlu0 %913 }
 0x140   : > { %v925_v20 = vsel %vm917_vm8, %v912_v15, %v914_v50  ;;  %v926_v21 = vsel %vm917_vm8, %v914_v50, %v916_v49  ;;  %v1454_v51 = vld [vmem:[#allocation2 + $0x138] sm:$0xff]  ;;  %v1707_v49 = vld [vmem:[%s14072_s2 + $0x8] sm:$0xff]  ;;  %v1706_v50 = vld [vmem:[%s14072_s2] sm:$0xff] }
 0x141   : > { %943 = vst [vmem:[#allocation2 + $0x158] sm:$0xf0] %v925_v20  ;;  %944 = vst [vmem:[#allocation2 + $0x160] sm:$0xf0] %v926_v21  ;;  %1379 = vrot.lane.b32.xlu1 %v10413_v12, %s10277_s29  ;;  %1377 = vrot.lane.b32.xlu0 %v10410_v11, %s10277_s29 }
 0x142   : > { %1544 = vmatprep.subr.bf16.mxu1 %v1454_v51  ;;  %v1736_v51 = vld [vmem:[%s14073_s3] sm:$0xff] }
 0x143   : > { %1545 = vmatpush1.bf16.msra.mxu1 %v1453_v8  ;;  %v978_v10 = vpop.permute.xlu1 %977  ;;  %v976_v52 = vpop.permute.xlu0 %975  ;;  %v1737_v8 = vld [vmem:[%s14073_s3 + $0x8] sm:$0xff] }
 0x144   : > { %v996_v53 = vsel %vm995_vm9, %v976_v52, %v978_v10 }
 0x145   : > { %1014 = vst [vmem:[#allocation2 + $0x168] sm:$0xf] %v996_v53  ;;  %1383 = vrot.lane.b32.xlu1 %v10749_v7, %s10277_s29  ;;  %1381 = vrot.lane.b32.xlu0 %v10751_v9, %s10277_s29  ;;  %s10287_s29 = smov 69  }
 0x147   : > { %v982_v54 = vpop.permute.xlu1 %981  ;;  %v980_v12 = vpop.permute.xlu0 %979 }
 0x148   : > { %v997_v55 = vsel %vm995_vm9, %v978_v10, %v980_v12  ;;  %v998_v11 = vsel %vm995_vm9, %v980_v12, %v982_v54 }
 0x149   : > { %1015 = vst [vmem:[#allocation2 + $0x170] sm:$0xf] %v997_v55  ;;  %1016 = vst [vmem:[#allocation2 + $0x178] sm:$0xf] %v998_v11  ;;  %1715 = vperm.xlu1 %10176, %v1707_v49   ;;  %1710 = vperm.xlu0 %10175, %v1706_v50  }
 0x14b   : > { %v986_v56 = vpop.permute.xlu1 %985  ;;  %v984_v57 = vpop.permute.xlu0 %983 }
 0x14c   : > { %v999_v58 = vsel %vm995_vm9, %v982_v54, %v984_v57  ;;  %v1000_v59 = vsel %vm995_vm9, %v984_v57, %v986_v56 }
 0x14d   : > { %1017 = vst [vmem:[#allocation2 + $0x180] sm:$0xf] %v999_v58  ;;  %1018 = vst [vmem:[#allocation2 + $0x188] sm:$0xf] %v1000_v59  ;;  %1740 = vperm.xlu1 %10176, %v1736_v51   ;;  %1745 = vperm.xlu0 %10175, %v1737_v8   ;;  %v10886_v51 = vld [vmem:[%s14070_s0] sm:$0xff]   ;;  %v1420_v8 = vld [vmem:[#allocation2 + $0x28] sm:$0xff] }
 0x14f   : > { %v990_v60 = vpop.permute.xlu1 %989  ;;  %v988_v61 = vpop.permute.xlu0 %987 }
 0x150   : > { %v1001_v62 = vsel %vm995_vm9, %v986_v56, %v988_v61  ;;  %v1002_v63 = vsel %vm995_vm9, %v988_v61, %v990_v60 }
 0x151   : > { %1019 = vst [vmem:[#allocation2 + $0x190] sm:$0xf] %v1001_v62  ;;  %1020 = vst [vmem:[#allocation2 + $0x198] sm:$0xf] %v1002_v63 }
 0x153   : > { %v994_v0 = vpop.permute.xlu1 %993  ;;  %v992_v1 = vpop.permute.xlu0 %991 }
 0x154   : > { %v1003_v6 = vsel %vm995_vm9, %v990_v60, %v992_v1  ;;  %v1004_v7 = vsel %vm995_vm9, %v992_v1, %v994_v0 }
 0x155   : > { %1021 = vst [vmem:[#allocation2 + $0x1a0] sm:$0xf] %v1003_v6  ;;  %1022 = vst [vmem:[#allocation2 + $0x1a8] sm:$0xf] %v1004_v7 }
 0x157   : > { %v1056_v9 = vpop.permute.xlu1 %1055  ;;  %v1054_v13 = vpop.permute.xlu0 %1053 }
 0x158   : > { %v1074_v16 = vsel %vm1073_vm10, %v1054_v13, %v1056_v9 }
 0x159   : > { %1092 = vst [vmem:[#allocation2 + $0x168] sm:$0xf0] %v1074_v16 }
 0x15b   : > { %v1060_v19 = vpop.permute.xlu1 %1059  ;;  %v1058_v22 = vpop.permute.xlu0 %1057 }
 0x15c   : > { %v1075_v23 = vsel %vm1073_vm10, %v1056_v9, %v1058_v22  ;;  %v1076_v24 = vsel %vm1073_vm10, %v1058_v22, %v1060_v19 }
 0x15d   : > { %1093 = vst [vmem:[#allocation2 + $0x170] sm:$0xf0] %v1075_v23  ;;  %1094 = vst [vmem:[#allocation2 + $0x178] sm:$0xf0] %v1076_v24 }
 0x15f   : > { %v1064_v25 = vpop.permute.xlu1 %1063  ;;  %v1062_v26 = vpop.permute.xlu0 %1061 }
 0x160   : > { %v1077_v27 = vsel %vm1073_vm10, %v1060_v19, %v1062_v26  ;;  %v1078_v28 = vsel %vm1073_vm10, %v1062_v26, %v1064_v25  ;;  %v1460_v34 = vld [vmem:[#allocation2 + $0x168] sm:$0xff] }
 0x161   : > { %1095 = vst [vmem:[#allocation2 + $0x180] sm:$0xf0] %v1077_v27  ;;  %1096 = vst [vmem:[#allocation2 + $0x188] sm:$0xf0] %v1078_v28 }
 0x163   : > { %v1068_v29 = vpop.permute.xlu1 %1067  ;;  %v1066_v30 = vpop.permute.xlu0 %1065 }
 0x164   : > { %v1079_v31 = vsel %vm1073_vm10, %v1064_v25, %v1066_v30  ;;  %v1080_v32 = vsel %vm1073_vm10, %v1066_v30, %v1068_v29  ;;  %v1461_v33 = vld [vmem:[#allocation2 + $0x170] sm:$0xff]  ;;  %v1462_v40 = vld [vmem:[#allocation2 + $0x178] sm:$0xff] }
 0x165   : > { %1097 = vst [vmem:[#allocation2 + $0x190] sm:$0xf0] %v1079_v31  ;;  %1098 = vst [vmem:[#allocation2 + $0x198] sm:$0xf0] %v1080_v32  ;;  %1503 = vmatprep.subr.bf16.mxu0 %v1461_v33 }
 0x166   : > { %1504 = vmatpush1.bf16.msra.mxu0 %v1460_v34 }
 0x167   : > { %v1072_v35 = vpop.permute.xlu1 %1071  ;;  %v1070_v36 = vpop.permute.xlu0 %1069 }
 0x168   : > { %v1081_v37 = vsel %vm1073_vm10, %v1068_v29, %v1070_v36  ;;  %v1082_v38 = vsel %vm1073_vm10, %v1070_v36, %v1072_v35  ;;  %v1463_v39 = vld [vmem:[#allocation2 + $0x180] sm:$0xff] }
 0x169   : > { %1099 = vst [vmem:[#allocation2 + $0x1a0] sm:$0xf0] %v1081_v37  ;;  %1100 = vst [vmem:[#allocation2 + $0x1a8] sm:$0xf0] %v1082_v38  ;;  %1546 = vmatprep.subr.bf16.mxu1 %v1463_v39 }
 0x16a   : > { %1547 = vmatpush1.bf16.msra.mxu1 %v1462_v40 }
 0x16b   : > { %v1134_v41 = vpop.permute.xlu1 %1133  ;;  %v1132_v5 = vpop.permute.xlu0 %1131 }
 0x16c   : > { %v1152_v4 = vsel %vm1151_vm11, %v1132_v5, %v1134_v41 }
 0x16d   : > { %1170 = vst [vmem:[#allocation2 + $0x1b0] sm:$0xf] %v1152_v4 }
 0x16f   : > { %v1138_v42 = vpop.permute.xlu1 %1137  ;;  %v1136_v3 = vpop.permute.xlu0 %1135 }
 0x170   : > { %v1153_v43 = vsel %vm1151_vm11, %v1134_v41, %v1136_v3  ;;  %v1154_v2 = vsel %vm1151_vm11, %v1136_v3, %v1138_v42 }
 0x171   : > { %1171 = vst [vmem:[#allocation2 + $0x1b8] sm:$0xf] %v1153_v43  ;;  %1172 = vst [vmem:[#allocation2 + $0x1c0] sm:$0xf] %v1154_v2 }
 0x173   : > { %v1142_v14 = vpop.permute.xlu1 %1141  ;;  %v1140_v44 = vpop.permute.xlu0 %1139 }
 0x174   : > { %v1155_v15 = vsel %vm1151_vm11, %v1138_v42, %v1140_v44  ;;  %v1156_v46 = vsel %vm1151_vm11, %v1140_v44, %v1142_v14 }
 0x175   : > { %1173 = vst [vmem:[#allocation2 + $0x1c8] sm:$0xf] %v1155_v15  ;;  %1174 = vst [vmem:[#allocation2 + $0x1d0] sm:$0xf] %v1156_v46 }
 0x177   : > { %v1146_v47 = vpop.permute.xlu1 %1145  ;;  %v1144_v17 = vpop.permute.xlu0 %1143 }
 0x178   : > { %v1157_v48 = vsel %vm1151_vm11, %v1142_v14, %v1144_v17  ;;  %v1158_v18 = vsel %vm1151_vm11, %v1144_v17, %v1146_v47 }
 0x179   : > { %1175 = vst [vmem:[#allocation2 + $0x1d8] sm:$0xf] %v1157_v48  ;;  %1176 = vst [vmem:[#allocation2 + $0x1e0] sm:$0xf] %v1158_v18 }
 0x17b   : > { %v1150_v20 = vpop.permute.xlu1 %1149  ;;  %v1148_v21 = vpop.permute.xlu0 %1147 }
 0x17c   : > { %v1159_v10 = vsel %vm1151_vm11, %v1146_v47, %v1148_v21  ;;  %v1160_v52 = vsel %vm1151_vm11, %v1148_v21, %v1150_v20 }
 0x17d   : > { %1177 = vst [vmem:[#allocation2 + $0x1e8] sm:$0xf] %v1159_v10  ;;  %1178 = vst [vmem:[#allocation2 + $0x1f0] sm:$0xf] %v1160_v52 }
 0x17f   : > { %v1212_v53 = vpop.permute.xlu1 %1211  ;;  %v1210_v54 = vpop.permute.xlu0 %1209 }
 0x180   : > { %v1230_v12 = vsel %vm1229_vm12, %v1210_v54, %v1212_v53 }
 0x181   : > { %1248 = vst [vmem:[#allocation2 + $0x1b0] sm:$0xf0] %v1230_v12 }
 0x183   : > { %v1216_v55 = vpop.permute.xlu1 %1215  ;;  %v1214_v11 = vpop.permute.xlu0 %1213 }
 0x184   : > { %v1231_v56 = vsel %vm1229_vm12, %v1212_v53, %v1214_v11  ;;  %v1232_v57 = vsel %vm1229_vm12, %v1214_v11, %v1216_v55  ;;  %v1419_v11 = vld [vmem:[#allocation2 + $0x20] sm:$0xff] }
 0x185   : > { %1249 = vst [vmem:[#allocation2 + $0x1b8] sm:$0xf0] %v1231_v56  ;;  %1250 = vst [vmem:[#allocation2 + $0x1c0] sm:$0xf0] %v1232_v57  ;;  %v1429_v56 = vld [vmem:[#allocation2 + $0x70] sm:$0xff]  ;;  %v1422_v57 = vld [vmem:[#allocation2 + $0x38] sm:$0xff] }
 0x187   : > { %v1220_v58 = vpop.permute.xlu1 %1219  ;;  %v1218_v59 = vpop.permute.xlu0 %1217 }
 0x188   : > { %v1233_v60 = vsel %vm1229_vm12, %v1216_v55, %v1218_v59  ;;  %v1234_v61 = vsel %vm1229_vm12, %v1218_v59, %v1220_v58  ;;  %v1469_v7 = vld [vmem:[#allocation2 + $0x1b0] sm:$0xff] }
 0x189   : > { %1251 = vst [vmem:[#allocation2 + $0x1c8] sm:$0xf0] %v1233_v60  ;;  %1252 = vst [vmem:[#allocation2 + $0x1d0] sm:$0xf0] %v1234_v61  ;;  %v1421_v59 = vld [vmem:[#allocation2 + $0x30] sm:$0xff]  ;;  %v1438_v60 = vld [vmem:[#allocation2 + $0xb8] sm:$0xff] }
 0x18a   : > { %v1431_v61 = vld [vmem:[#allocation2 + $0x80] sm:$0xff] }
 0x18b   : > { %v1224_v62 = vpop.permute.xlu1 %1223  ;;  %v1222_v63 = vpop.permute.xlu0 %1221 }
 0x18c   : > { %v1235_v0 = vsel %vm1229_vm12, %v1220_v58, %v1222_v63  ;;  %v1236_v1 = vsel %vm1229_vm12, %v1222_v63, %v1224_v62  ;;  %v1470_v6 = vld [vmem:[#allocation2 + $0x1b8] sm:$0xff]  ;;  %v1471_v23 = vld [vmem:[#allocation2 + $0x1c0] sm:$0xff]  ;;  %v1428_v58 = vld [vmem:[#allocation2 + $0x68] sm:$0xff] }
 0x18d   : > { %1253 = vst [vmem:[#allocation2 + $0x1d8] sm:$0xf0] %v1235_v0  ;;  %1254 = vst [vmem:[#allocation2 + $0x1e0] sm:$0xf0] %v1236_v1  ;;  %1505 = vmatprep.subr.bf16.mxu0 %v1470_v6  ;;  %v1430_v63 = vld [vmem:[#allocation2 + $0x78] sm:$0xff]  ;;  %v1447_v0 = vld [vmem:[#allocation2 + $0x100] sm:$0xff] }
 0x18e   : > { %1506 = vmatpush1.bf16.msra.mxu0 %v1469_v7  ;;  %v1440_v1 = vld [vmem:[#allocation2 + $0xc8] sm:$0xff]  ;;  %v1446_v6 = vld [vmem:[#allocation2 + $0xf8] sm:$0xff]  ;;  %v1439_v7 = vld [vmem:[#allocation2 + $0xc0] sm:$0xff] }
 0x18f   : > { %v1228_v9 = vpop.permute.xlu1 %1227  ;;  %v1226_v13 = vpop.permute.xlu0 %1225 }
 0x190   : > { %v1237_v16 = vsel %vm1229_vm12, %v1224_v62, %v1226_v13  ;;  %v1238_v19 = vsel %vm1229_vm12, %v1226_v13, %v1228_v9  ;;  %v1472_v22 = vld [vmem:[#allocation2 + $0x1c8] sm:$0xff]  ;;  %v1437_v62 = vld [vmem:[#allocation2 + $0xb0] sm:$0xff] }
 0x191   : > { %1255 = vst [vmem:[#allocation2 + $0x1e8] sm:$0xf0] %v1237_v16  ;;  %1256 = vst [vmem:[#allocation2 + $0x1f0] sm:$0xf0] %v1238_v19  ;;  %1548 = vmatprep.subr.bf16.mxu1 %v1472_v22  ;;  %v1456_v9 = vld [vmem:[#allocation2 + $0x148] sm:$0xff]  ;;  %v1449_v13 = vld [vmem:[#allocation2 + $0x110] sm:$0xff] }
 0x192   : > { %1549 = vmatpush1.bf16.msra.mxu1 %v1471_v23  ;;  %v1455_v16 = vld [vmem:[#allocation2 + $0x140] sm:$0xff]  ;;  %v1448_v19 = vld [vmem:[#allocation2 + $0x108] sm:$0xff]  ;;  %v1458_v22 = vld [vmem:[#allocation2 + $0x158] sm:$0xff] }
 0x193   : > { %v1290_v24 = vpop.permute.xlu1 %1289  ;;  %v1288_v25 = vpop.permute.xlu0 %1287  ;;  %v1464_v23 = vld [vmem:[#allocation2 + $0x188] sm:$0xff] }
 0x194   : > { %v1308_v26 = vsel %vm1307_vm13, %v1288_v25, %v1290_v24  ;;  %v1474_v25 = vld [vmem:[#allocation2 + $0x1d8] sm:$0xff] }
 0x195   : > { %1326 = vst [vmem:[#allocation2 + $0x1f8] sm:$0xf] %v1308_v26  ;;  %v1467_v26 = vld [vmem:[#allocation2 + $0x1a0] sm:$0xff] }
 0x197   : > { %v1294_v27 = vpop.permute.xlu1 %1293  ;;  %v1292_v28 = vpop.permute.xlu0 %1291 }
 0x198   : > { %v1309_v29 = vsel %vm1307_vm13, %v1290_v24, %v1292_v28  ;;  %v1310_v30 = vsel %vm1307_vm13, %v1292_v28, %v1294_v27  ;;  %v1457_v24 = vld [vmem:[#allocation2 + $0x150] sm:$0xff]  ;;  %v1466_v28 = vld [vmem:[#allocation2 + $0x198] sm:$0xff] }
 0x199   : > { %1327 = vst [vmem:[#allocation2 + $0x200] sm:$0xf] %v1309_v29  ;;  %1328 = vst [vmem:[#allocation2 + $0x208] sm:$0xf] %v1310_v30  ;;  %v1476_v30 = vld [vmem:[#allocation2 + $0x1e8] sm:$0xff] }
 0x19b   : > { %v1298_v31 = vpop.permute.xlu1 %1297  ;;  %v1296_v32 = vpop.permute.xlu0 %1295 }
 0x19c   : > { %v1311_v33 = vsel %vm1307_vm13, %v1294_v27, %v1296_v32  ;;  %v1312_v34 = vsel %vm1307_vm13, %v1296_v32, %v1298_v31  ;;  %v1473_v27 = vld [vmem:[#allocation2 + $0x1d0] sm:$0xff]  ;;  %v1475_v32 = vld [vmem:[#allocation2 + $0x1e0] sm:$0xff] }
 0x19d   : > { %1329 = vst [vmem:[#allocation2 + $0x210] sm:$0xf] %v1311_v33  ;;  %1330 = vst [vmem:[#allocation2 + $0x218] sm:$0xf] %v1312_v34  ;;  %v10279_v34 = vmov 0.0  }
 0x19f   : > { %v1302_v35 = vpop.permute.xlu1 %1301  ;;  %v1300_v36 = vpop.permute.xlu0 %1299 }
 0x1a0   : > { %v1313_v37 = vsel %vm1307_vm13, %v1298_v31, %v1300_v36  ;;  %v1314_v38 = vsel %vm1307_vm13, %v1300_v36, %v1302_v35  ;;  %v1423_v36 = vld [vmem:[#allocation2 + $0x40] sm:$0xff] }
 0x1a1   : > { %1331 = vst [vmem:[#allocation2 + $0x220] sm:$0xf] %v1313_v37  ;;  %1332 = vst [vmem:[#allocation2 + $0x228] sm:$0xf] %v1314_v38  ;;  %v1432_v37 = vld [vmem:[#allocation2 + $0x88] sm:$0xff]  ;;  %v1441_v38 = vld [vmem:[#allocation2 + $0xd0] sm:$0xff] }
 0x1a3   : > { %v1306_v39 = vpop.permute.xlu1 %1305  ;;  %v1304_v40 = vpop.permute.xlu0 %1303 }
 0x1a4   : > { %v1315_v41 = vsel %vm1307_vm13, %v1302_v35, %v1304_v40  ;;  %v1316_v5 = vsel %vm1307_vm13, %v1304_v40, %v1306_v39  ;;  %v1450_v39 = vld [vmem:[#allocation2 + $0x118] sm:$0xff]  ;;  %v1459_v40 = vld [vmem:[#allocation2 + $0x160] sm:$0xff] }
 0x1a5   : > { %1333 = vst [vmem:[#allocation2 + $0x230] sm:$0xf] %v1315_v41  ;;  %1334 = vst [vmem:[#allocation2 + $0x238] sm:$0xf] %v1316_v5  ;;  %v1468_v41 = vld [vmem:[#allocation2 + $0x1a8] sm:$0xff]  ;;  %v1477_v5 = vld [vmem:[#allocation2 + $0x1f0] sm:$0xff] }
 0x1a7   : > { %v1368_v4 = vpop.permute.xlu1 %1367  ;;  %v1366_v42 = vpop.permute.xlu0 %1365 }
 0x1a8   : > { %v1386_v3 = vsel %vm1385_vm14, %v1366_v42, %v1368_v4 }
 0x1a9   : > { %1404 = vst [vmem:[#allocation2 + $0x1f8] sm:$0xf0] %v1386_v3  ;;  %v10281_v3 = vmov 1966171168  }
 0x1ab   : > { %v1372_v43 = vpop.permute.xlu1 %1371  ;;  %v1370_v2 = vpop.permute.xlu0 %1369 }
 0x1ac   : > { %v1387_v14 = vsel %vm1385_vm14, %v1368_v4, %v1370_v2  ;;  %v1388_v44 = vsel %vm1385_vm14, %v1370_v2, %v1372_v43  ;;  %v1846_v2 = vlaneseq }
 0x1ad   : > { %1405 = vst [vmem:[#allocation2 + $0x200] sm:$0xf0] %v1387_v14  ;;  %1406 = vst [vmem:[#allocation2 + $0x208] sm:$0xf0] %v1388_v44 }
 0x1af   : > { %v1376_v15 = vpop.permute.xlu1 %1375  ;;  %v1374_v46 = vpop.permute.xlu0 %1373 }
 0x1b0   : > { %v1389_v47 = vsel %vm1385_vm14, %v1372_v43, %v1374_v46  ;;  %v1390_v17 = vsel %vm1385_vm14, %v1374_v46, %v1376_v15  ;;  %v1478_v21 = vld [vmem:[#allocation2 + $0x1f8] sm:$0xff]  ;;  %v1844_v43 = vunpack.c.l.s4 %v10281_v3  ;;  %v10901_v46 = vshrl.u32 %v1846_v2, 7 }
 0x1b1   : > { %1407 = vst [vmem:[#allocation2 + $0x210] sm:$0xf0] %v1389_v47  ;;  %1408 = vst [vmem:[#allocation2 + $0x218] sm:$0xf0] %v1390_v17 }
 0x1b3   : > { %v1380_v48 = vpop.permute.xlu1 %1379  ;;  %v1378_v18 = vpop.permute.xlu0 %1377 }
 0x1b4   : > { %v1391_v49 = vsel %vm1385_vm14, %v1376_v15, %v1378_v18  ;;  %v1392_v50 = vsel %vm1385_vm14, %v1378_v18, %v1380_v48  ;;  %v1479_v20 = vld [vmem:[#allocation2 + $0x200] sm:$0xff]  ;;  %v1480_v55 = vld [vmem:[#allocation2 + $0x208] sm:$0xff]  ;;  %v1845_v15 = vunpack.c.0.s8 %v1844_v43 }
 0x1b5   : > { %1409 = vst [vmem:[#allocation2 + $0x220] sm:$0xf0] %v1391_v49  ;;  %1410 = vst [vmem:[#allocation2 + $0x228] sm:$0xf0] %v1392_v50  ;;  %1507 = vmatprep.subr.bf16.mxu0 %v1479_v20 }
 0x1b6   : > { %1508 = vmatpush1.bf16.msra.mxu0 %v1478_v21 }
 0x1b7   : > { %v1384_v10 = vpop.permute.xlu1 %1383  ;;  %v1382_v52 = vpop.permute.xlu0 %1381  ;;  %1579 = vmatprep.subr.bf16.mxu0 %v1420_v8  ;;  %v10912_v8 = vsub.s32 %v1845_v15, %v10901_v46 }
 0x1b8   : > { %v1393_v53 = vsel %vm1385_vm14, %v1380_v48, %v1382_v52  ;;  %v1394_v54 = vsel %vm1385_vm14, %v1382_v52, %v1384_v10  ;;  %v1481_v12 = vld [vmem:[#allocation2 + $0x210] sm:$0xff]  ;;  %v1482_v31 = vld [vmem:[#allocation2 + $0x218] sm:$0xff] }
 0x1b9   : > { %1411 = vst [vmem:[#allocation2 + $0x230] sm:$0xf0] %v1393_v53  ;;  %1412 = vst [vmem:[#allocation2 + $0x238] sm:$0xf0] %v1394_v54  ;;  %1526 = vmatmul.mubr.bf16.vlgmr.msra.gmra.mrb[0].mxu0 %v10886_v51  ;;  %1550 = vmatprep.subr.bf16.mxu1 %v1481_v12 }
 0x1ba   : > { %1551 = vmatpush1.bf16.msra.mxu1 %v1480_v55  ;;  %1580 = vmatpush1.bf16.msra.mxu0 %v1419_v11 }
 0x1bb   : > { %1581 = vmatprep.subr.bf16.mxu0 %v1429_v56  ;;  %1622 = vmatprep.subr.bf16.mxu1 %v1422_v57 }
 0x1bc   : > { %1611 = vmatprep.mubr.bf16.mxu0 %v10278_v45  ;;  %v1483_v29 = vld [vmem:[#allocation2 + $0x220] sm:$0xff]  ;;  %v1484_v35 = vld [vmem:[#allocation2 + $0x228] sm:$0xff] }
 0x1bd   : > { %1569 = vmatmul.mubr.bf16.vlgmr.msra.gmra.mrb[0].mxu1 %v10886_v51 }
 0x1be   : > { %1582 = vmatpush1.bf16.msra.mxu0 %v1428_v58  ;;  %1623 = vmatpush1.bf16.msra.mxu1 %v1421_v59 }
 0x1bf   : > { %1583 = vmatprep.subr.bf16.mxu0 %v1438_v60  ;;  %1624 = vmatprep.subr.bf16.mxu1 %v1431_v61 }
 0x1c0   : > { %1654 = vmatprep.mubr.bf16.mxu1 %v10278_v45  ;;  %v1465_v45 = vld [vmem:[#allocation2 + $0x190] sm:$0xff]  ;;  %v1486_v4 = vld [vmem:[#allocation2 + $0x238] sm:$0xff] }
 0x1c1   : > { %v1485_v33 = vld [vmem:[#allocation2 + $0x230] sm:$0xff] }
 0x1c2   : > { %1584 = vmatpush1.bf16.msra.mxu0 %v1437_v62  ;;  %1625 = vmatpush1.bf16.msra.mxu1 %v1430_v63 }
 0x1c3   : > { %1585 = vmatprep.subr.bf16.mxu0 %v1447_v0  ;;  %1626 = vmatprep.subr.bf16.mxu1 %v1440_v1 }
 0x1c6   : > { %1586 = vmatpush1.bf16.msra.mxu0 %v1446_v6  ;;  %1627 = vmatpush1.bf16.msra.mxu1 %v1439_v7 }
 0x1c7   : > { %1587 = vmatprep.subr.bf16.mxu0 %v1456_v9  ;;  %1628 = vmatprep.subr.bf16.mxu1 %v1449_v13 }
 0x1c8   : > { %v10897_v42 = vpop.permute.xlu1 %1715  ;;  %v10899_v14 = vpop.permute.xlu0 %1710 }
 0x1ca   : > { %1588 = vmatpush1.bf16.msra.mxu0 %v1455_v16  ;;  %1629 = vmatpush1.bf16.msra.mxu1 %v1448_v19 }
 0x1cb   : > { %1589 = vmatprep.subr.bf16.mxu0 %v1465_v45  ;;  %1630 = vmatprep.subr.bf16.mxu1 %v1458_v22 }
 0x1cc   : > { %v10904_v48 = vpop.permute.xlu1 %1740 }
 0x1ce   : > { %1590 = vmatpush1.bf16.msra.mxu0 %v1464_v23  ;;  %1631 = vmatpush1.bf16.msra.mxu1 %v1457_v24  ;;  %v10940_v23 = vsub.s32 0, %v10901_v46 }
 0x1cf   : > { %1591 = vmatprep.subr.bf16.mxu0 %v1474_v25  ;;  %1632 = vmatprep.subr.bf16.mxu1 %v1467_v26 }
 0x1d2   : > { %1592 = vmatpush1.bf16.msra.mxu0 %v1473_v27  ;;  %1633 = vmatpush1.bf16.msra.mxu1 %v1466_v28 }
 0x1d3   : > { %1593 = vmatprep.subr.bf16.mxu0 %v1483_v29  ;;  %1634 = vmatprep.subr.bf16.mxu1 %v1476_v30 }
 0x1d6   : > { %1594 = vmatpush1.bf16.msra.mxu0 %v1482_v31  ;;  %1635 = vmatpush1.bf16.msra.mxu1 %v1475_v32 }
 0x1d7   : > { %1636 = vmatprep.subr.bf16.mxu1 %v1485_v33  ;;  %10074 = vmatprep.subr.bf16.mxu0 %v10279_v34 }
 0x1d9   : > { %1612 = vmatmul.mubr.bf16.vlgmr.msra.gmra.mrb[4].mxu0 %v10886_v51 }
 0x1da   : > { %1637 = vmatpush1.bf16.msra.mxu1 %v1484_v35  ;;  %10075 = vmatpush3.bf16.msra.mxu0 %v1423_v36 }
 0x1db   : > { %10076 = vmatprep.subr.bf16.mxu0 %v10279_v34  ;;  %10090 = vmatprep.mubr.msk.bf16.mxu0 %vm10280_vm15, %v10279_v34 }
 0x1dd   : > { %1655 = vmatmul.mubr.bf16.vlgmr.msra.gmra.mrb[4].mxu1 %v10886_v51 }
 0x1de   : > { %10077 = vmatpush3.bf16.msra.mxu0 %v1432_v37 }
 0x1df   : > { %10078 = vmatprep.subr.bf16.mxu0 %v10279_v34 }
 0x1e2   : > { %10079 = vmatpush3.bf16.msra.mxu0 %v1441_v38 }
 0x1e3   : > { %10080 = vmatprep.subr.bf16.mxu0 %v10279_v34 }
 0x1e6   : > { %10081 = vmatpush3.bf16.msra.mxu0 %v1450_v39 }
 0x1e7   : > { %10082 = vmatprep.subr.bf16.mxu0 %v10279_v34 }
 0x1ea   : > { %10083 = vmatpush3.bf16.msra.mxu0 %v1459_v40 }
 0x1eb   : > { %10084 = vmatprep.subr.bf16.mxu0 %v10279_v34 }
 0x1ee   : > { %10085 = vmatpush3.bf16.msra.mxu0 %v1468_v41 }
 0x1ef   : > { %10086 = vmatprep.subr.bf16.mxu0 %v10279_v34 }
 0x1f2   : > { %10087 = vmatpush3.bf16.msra.mxu0 %v1477_v5 }
 0x1f3   : > { %10088 = vmatprep.subr.bf16.mxu0 %v10279_v34 }
 0x1f6   : > { %10089 = vmatpush3.bf16.msra.mxu0 %v1486_v4  ;;  %v10979_v4 = vsub.s32 1, %v10901_v46 }
 0x1f9   : > { %10091 = vmatmul.mubr.bf16.vlgmr.msra.gmra.mrb[8].mxu0 %v10886_v51  ;;  %v10909_v51 = vpop.permute.xlu0 %1745 }
 0x28c   : > { %v1527_v44 = vpop.f32.mrb[0].mxu0 }
 0x28d   : > { %v1718_v47 = vmul.f32 %v10899_v14, %v1527_v44  ;;  %v1529_v17 = vpop.f32.mrb[1].mxu0 }
 0x28e   : > { %v1719_v18 = vmul.f32 %v10899_v14, %v1529_v17  ;;  %v1531_v49 = vpop.f32.mrb[2].mxu0 }
 0x28f   : > { %v1748_v50 = vadd.f32 %v10904_v48, %v1718_v47  ;;  %v1727_v20 = vmul.f32 %v10897_v42, %v1531_v49  ;;  %v1533_v21 = vpop.f32.mrb[3].mxu0 }
 0x290   : > { %v1749_v10 = vadd.f32 %v10904_v48, %v1719_v18  ;;  %v1728_v52 = vmul.f32 %v10897_v42, %v1533_v21  ;;  %v1570_v53 = vpop.f32.mrb[0].mxu1 }
 0x291   : > { %vm1766_vm0 = vcmp.gt.f32.partialorder %v1748_v50, 0.0  ;;  %v1784_v54 = vmul.f32 0.2, %v1748_v50  ;;  %v1757_v12 = vadd.f32 %v10909_v51, %v1727_v20  ;;  %v1720_v55 = vmul.f32 %v10899_v14, %v1570_v53  ;;  %v10918_v11 = vpop.f32.mrb[1].mxu1 }
 0x292   : > { %v1574_v56 = vpop.f32.mrb[2].mxu1  ;;  %v1785_v58 = vmul.f32 0.2, %v1749_v10  ;;  %vm1767_vm1 = vcmp.gt.f32.partialorder %v1749_v10, 0.0  ;;  %v1758_v63 = vadd.f32 %v10909_v51, %v1728_v52 }
 0x293   : > { %v1802_v57 = vsel %vm1766_vm0, %v1748_v50, %v1784_v54  ;;  %v1750_v59 = vadd.f32 %v10904_v48, %v1720_v55  ;;  %v10921_v60 = vpop.f32.mrb[3].mxu1  ;;  %v1793_v62 = vmul.f32 0.2, %v1757_v12  ;;  %vm1775_vm3 = vcmp.gt.f32.partialorder %v1757_v12, 0.0 }
 0x294   : > { %v1849_v61 = vrot.slane %v1802_v57, %v10912_v8  ;;  %v1842_v1 = vcombine.high %v1802_v57, %v1802_v57  ;;  %v10926_v7 = vsel %vm1767_vm1, %v1749_v10, %v1785_v58  ;;  %v1729_v13 = vmul.f32 %v10897_v42, %v1574_v56 }
 0x295   : > { %vm1768_vm2 = vcmp.gt.f32.partialorder %v1750_v59, 0.0  ;;  %v1786_v0 = vmul.f32 0.2, %v1750_v59  ;;  %v10937_v45 = vsel %vm1775_vm3, %v1757_v12, %v1793_v62  ;;  %v1794_v22 = vmul.f32 0.2, %v1758_v63 }
 0x296   : > { %v1857_v6 = vcombine.high %v1849_v61, %v1849_v61  ;;  %v1856_v24 = vrot.slane %v1842_v1, %v10912_v8  ;;  %vm1776_vm4 = vcmp.gt.f32.partialorder %v1758_v63, 0.0  ;;  %v1759_v25 = vadd.f32 %v10909_v51, %v1729_v13 }
 0x297   : > { %v10928_v9 = vsel %vm1768_vm2, %v1750_v59, %v1786_v0  ;;  %v1865_v26 = vrot.slane %v1849_v61, %v10912_v8  ;;  %v2441_v28 = vcombine.low %v1802_v57, %v10926_v7  ;;  %v1898_v29 = vrot.slane %v10937_v45, %v10912_v8 }
 0x298   : > { %v3480_v16 = vcombine.low %v10926_v7, %v10928_v9  ;;  %v3481_v19 = vcombine.high %v10926_v7, %v10928_v9  ;;  %v1879_v27 = vrot.slane %v1857_v6, %v10912_v8  ;;  %vm1777_vm6 = vcmp.gt.f32.partialorder %v1759_v25, 0.0 }
 0x299   : > { %v1795_v30 = vmul.f32 0.2, %v1759_v25  ;;  %v10949_v31 = vsel %vm1776_vm4, %v1758_v63, %v1794_v22  ;;  %v2078_v32 = vrot.slane %v1865_v26, %v10940_v23  ;;  %1957 = vst.msk [vmem:[%s10952_s8] sm:$0x1] %vm1956_vm5, %v1865_v26  ;;  %v1887_v34 = vcombine.high %v1865_v26, %v1865_v26 }
 0x29a   : > { %v2082_v33 = vrot.slane %v1879_v27, %v10940_v23  ;;  %1958 = vst.msk [vmem:[%s10952_s8 + $0x20] sm:$0x1] %vm1956_vm5, %v1879_v27  ;;  %v10962_v36 = vrot.slane %v2441_v28, %v10912_v8  ;;  %v1872_v37 = vrot.slane %v1856_v24, %v10912_v8  ;;  %v2442_v38 = vcombine.high %v1802_v57, %v10926_v7 }
 0x29b   : > { %v10959_v35 = vsel %vm1777_vm6, %v1759_v25, %v1795_v30  ;;  %v1891_v39 = vcombine.high %v10937_v45, %v10937_v45  ;;  %2139 = vrot.lane.b32.xlu1 %v2078_v32, %s10266_s9  ;;  %1959 = vst.msk [vmem:[%s10952_s8 + $0x40] sm:$0x1] %vm1956_vm5, %v1887_v34  ;;  %v1906_v5 = vcombine.high %v1898_v29, %v1898_v29 }
 0x29c   : > { %v3530_v40 = vcombine.low %v10949_v31, %v10959_v35  ;;  %v3531_v41 = vcombine.high %v10949_v31, %v10959_v35  ;;  %2141 = vrot.lane.b32.xlu0 %v2082_v33, %s10266_s9  ;;  %1961 = vst.msk [vmem:[%s10952_s8 + $0x80] sm:$0x1] %vm1956_vm5, %v1872_v37  ;;  %v10983_v3 = vrot.slane %v10962_v36, %v10912_v8 }
 0x29d   : > { %v10986_v43 = vrot.slane %v2442_v38, %v10912_v8  ;;  %v1914_v2 = vrot.slane %v1898_v29, %v10912_v8  ;;  %v1889_v44 = vcombine.high %v1879_v27, %v1879_v27  ;;  %v1905_v15 = vrot.slane %v1891_v39, %v10912_v8 }
 0x29e   : > { %v1858_v47 = vcombine.high %v1856_v24, %v1856_v24  ;;  %v1928_v46 = vrot.slane %v1906_v5, %v10912_v8  ;;  %v2086_v17 = vrot.slane %v1887_v34, %v10940_v23  ;;  %v1888_v49 = vcombine.high %v1872_v37, %v1872_v37 }
 0x29f   : > { %2369 = vrot.lane.b32.xlu1 %v2078_v32, %s10270_s13  ;;  %1965 = vst.msk [vmem:[%s10952_s8 + $0x100] sm:$0x1] %vm1956_vm5, %v1914_v2  ;;  %1960 = vst.msk [vmem:[%s10952_s8 + $0x60] sm:$0x1] %vm1956_vm5, %v1889_v44  ;;  %v2548_v50 = vrot.slane %v10983_v3, %v10979_v4  ;;  %v11003_v20 = vrot.slane %v10986_v43, %v10912_v8  ;;  %v1936_v21 = vcombine.high %v1914_v2, %v1914_v2 }
 0x2a0   : > { %2371 = vrot.lane.b32.xlu0 %v2082_v33, %s10270_s13  ;;  %v1886_v18 = vrot.slane %v1858_v47, %v10912_v8  ;;  %1966 = vst.msk [vmem:[%s10952_s8 + $0x120] sm:$0x1] %vm1956_vm5, %v1928_v46  ;;  %1963 = vst.msk [vmem:[%s10952_s8 + $0xc0] sm:$0x1] %vm1956_vm5, %v1888_v49  ;;  %v1921_v10 = vrot.slane %v1905_v15, %v10912_v8  ;;  %v2094_v53 = vrot.slane %v1872_v37, %v10940_v23 }
 0x2a1   : > { %1967 = vst.msk [vmem:[%s10952_s8 + $0x140] sm:$0x1] %vm1956_vm5, %v1936_v21  ;;  %v11021_v54 = vcombine.high %v1928_v46, %v1928_v46  ;;  %v1907_v12 = vcombine.high %v1905_v15, %v1905_v15  ;;  %v2580_v55 = vrot.slane %v11003_v20, %v10979_v4  ;;  %v2110_v59 = vrot.slane %v1914_v2, %v10940_v23 }
 0x2a2   : > { %1962 = vst.msk [vmem:[%s10952_s8 + $0xa0] sm:$0x1] %vm1956_vm5, %v1886_v18  ;;  %v11016_v52 = vcombine.high %v1886_v18, %v1886_v18  ;;  %1969 = vst.msk [vmem:[%s10952_s8 + $0x180] sm:$0x1] %vm1956_vm5, %v1921_v10  ;;  %v11036_v58 = vcombine.high %v1921_v10, %v1921_v10  ;;  %v2491_v63 = vcombine.low %v10937_v45, %v10949_v31 }
 0x2a3   : > { %2143 = vrot.lane.b32.xlu1 %v2086_v17, %s10266_s9  ;;  %1968 = vst.msk [vmem:[%s10952_s8 + $0x160] sm:$0x1] %vm1956_vm5, %v11021_v54  ;;  %v1935_v56 = vrot.slane %v1907_v12, %v10912_v8  ;;  %v2090_v0 = vrot.slane %v1889_v44, %v10940_v23  ;;  %v2098_v24 = vrot.slane %v1886_v18, %v10940_v23 }
 0x2a4   : > { %2671 = vrot.lane.b32.xlu0 %v2548_v50, %s10274_s23  ;;  %1964 = vst.msk [vmem:[%s10952_s8 + $0xe0] sm:$0x1] %vm1956_vm5, %v11016_v52  ;;  %1971 = vst.msk [vmem:[%s10952_s8 + $0x1c0] sm:$0x1] %vm1956_vm5, %v11036_v58  ;;  %v2114_v27 = vrot.slane %v1928_v46, %v10940_v23  ;;  %v2492_v28 = vcombine.high %v10937_v45, %v10949_v31  ;;  %v2544_v29 = vrot.slane %v10983_v3, %v10940_v23 }
 0x2a5   : > { %1970 = vst.msk [vmem:[%s10952_s8 + $0x1a0] sm:$0x1] %vm1956_vm5, %v1935_v56  ;;  %v11043_v62 = vcombine.high %v1935_v56, %v1935_v56  ;;  %v2457_v30 = vcombine.high %v10962_v36, %v10962_v36  ;;  %v2576_v32 = vrot.slane %v11003_v20, %v10940_v23  ;;  %v2102_v34 = vrot.slane %v1888_v49, %v10940_v23 }
 0x2a6   : > { %v2487_v36 = vcombine.high %v10983_v3, %v10983_v3  ;;  %v2458_v38 = vcombine.high %v10986_v43, %v10986_v43  ;;  %v2118_v39 = vrot.slane %v1936_v21, %v10940_v23  ;;  %v2126_v3 = vrot.slane %v1921_v10, %v10940_v23 }
 0x2a7   : > { %2147 = vrot.lane.b32.xlu1 %v2094_v53, %s10266_s9  ;;  %1972 = vst.msk [vmem:[%s10952_s8 + $0x1e0] sm:$0x1] %vm1956_vm5, %v11043_v62  ;;  %v2479_v33 = vrot.slane %v2457_v30, %v10912_v8  ;;  %v2122_v18 = vrot.slane %v11021_v54, %v10940_v23  ;;  %v2130_v49 = vrot.slane %v1935_v56, %v10940_v23 }
 0x2a8   : > { %2687 = vrot.lane.b32.xlu0 %v2580_v55, %s10274_s23  ;;  %v2564_v5 = vrot.slane %v2487_v36, %v10979_v4  ;;  %v2486_v2 = vrot.slane %v2458_v38, %v10912_v8  ;;  %v2560_v21 = vrot.slane %v2487_v36, %v10940_v23  ;;  %v2134_v55 = vrot.slane %v11036_v58, %v10940_v23 }
 0x2a9   : > { %v2556_v37 = vrot.slane %v2479_v33, %v10979_v4  ;;  %v2552_v50 = vrot.slane %v2479_v33, %v10940_v23  ;;  %v2138_v56 = vrot.slane %v11043_v62, %v10940_v23 }
 0x2aa   : > { %v2588_v43 = vrot.slane %v2486_v2, %v10979_v4  ;;  %v2584_v10 = vrot.slane %v2486_v2, %v10940_v23 }
 0x2ab   : > { %2155 = vrot.lane.b32.xlu1 %v2110_v59, %s10266_s9 }
 0x2ac   : > { %v11034_v57 = vpop.f32.mrb[4].mxu0  ;;  %2145 = vrot.lane.b32.xlu0 %v2090_v0, %s10266_s9 }
 0x2ad   : > { %v11039_v61 = vpop.f32.mrb[5].mxu0 }
 0x2ae   : > { %v11048_v1 = vpop.f32.mrb[6].mxu0 }
 0x2af   : > { %v11054_v6 = vpop.f32.mrb[7].mxu0  ;;  %2373 = vrot.lane.b32.xlu1 %v2086_v17, %s10270_s13  ;;  %v2106_v17 = vrot.slane %v11016_v52, %v10940_v23  ;;  %v2488_v52 = vcombine.high %v11003_v20, %v11003_v20 }
 0x2b0   : > { %v11060_v13 = vpop.f32.mrb[4].mxu1  ;;  %2149 = vrot.lane.b32.xlu0 %v2098_v24, %s10266_s9 }
 0x2b1   : > { %v11062_v22 = vpop.f32.mrb[5].mxu1  ;;  %v2592_v54 = vrot.slane %v2488_v52, %v10940_v23  ;;  %v2596_v58 = vrot.slane %v2488_v52, %v10979_v4 }
 0x2b2   : > { %v11065_v25 = vpop.f32.mrb[6].mxu1 }
 0x2b3   : > { %v11068_v26 = vpop.f32.mrb[7].mxu1  ;;  %2377 = vrot.lane.b32.xlu1 %v2094_v53, %s10270_s13  ;;  %v2489_v53 = vcombine.high %v2479_v33, %v2479_v33 }
 0x2b4   : > { %2157 = vrot.lane.b32.xlu0 %v2114_v27, %s10266_s9 }
 0x2b5   : > { %v2572_v12 = vrot.slane %v2489_v53, %v10979_v4  ;;  %v2568_v20 = vrot.slane %v2489_v53, %v10940_v23 }
 0x2b7   : > { %2385 = vrot.lane.b32.xlu1 %v2110_v59, %s10270_s13  ;;  %v2490_v59 = vcombine.high %v2486_v2, %v2486_v2 }
 0x2b8   : > { %2375 = vrot.lane.b32.xlu0 %v2090_v0, %s10270_s13  ;;  %v2499_v0 = vrot.slane %v2491_v63, %v10912_v8 }
 0x2b9   : > { %v2600_v62 = vrot.slane %v2490_v59, %v10940_v23 }
 0x2bb   : > { %2669 = vrot.lane.b32.xlu1 %v2544_v29, %s10274_s23  ;;  %v2604_v29 = vrot.slane %v2490_v59, %v10979_v4 }
 0x2bc   : > { %2379 = vrot.lane.b32.xlu0 %v2098_v24, %s10270_s13  ;;  %v2515_v24 = vrot.slane %v2499_v0, %v10912_v8 }
 0x2be   : > { %v2608_v30 = vrot.slane %v2515_v24, %v10940_v23 }
 0x2bf   : > { %2685 = vrot.lane.b32.xlu1 %v2576_v32, %s10274_s23  ;;  %v2612_v32 = vrot.slane %v2515_v24, %v10979_v4 }
 0x2c0   : > { %2387 = vrot.lane.b32.xlu0 %v2114_v27, %s10270_s13  ;;  %v2507_v27 = vcombine.high %v2499_v0, %v2499_v0 }
 0x2c2   : > { %v2529_v63 = vrot.slane %v2507_v27, %v10912_v8 }
 0x2c3   : > { %2151 = vrot.lane.b32.xlu1 %v2102_v34, %s10266_s9 }
 0x2c4   : > { %2675 = vrot.lane.b32.xlu0 %v2556_v37, %s10274_s23  ;;  %v2616_v33 = vrot.slane %v2529_v63, %v10940_v23  ;;  %v2620_v37 = vrot.slane %v2529_v63, %v10979_v4  ;;  %v2539_v38 = vcombine.high %v2529_v63, %v2529_v63 }
 0x2c6   : > { %v2632_v2 = vrot.slane %v2539_v38, %v10940_v23 }
 0x2c7   : > { %2159 = vrot.lane.b32.xlu1 %v2118_v39, %s10266_s9 }
 0x2c8   : > { %2679 = vrot.lane.b32.xlu0 %v2564_v5, %s10274_s23 }
 0x2cb   : > { %2163 = vrot.lane.b32.xlu1 %v2126_v3, %s10266_s9 }
 0x2cc   : > { %v11102_v44 = vpop.f32.mrb[8].mxu0  ;;  %2691 = vrot.lane.b32.xlu0 %v2588_v43, %s10274_s23  ;;  %v2636_v43 = vrot.slane %v2539_v38, %v10979_v4 }
 0x2cd   : > { %v10092_v15 = vpop.f32.mrb[9].mxu0 }
 0x2ce   : > { %v11106_v47 = vpop.f32.mrb[10].mxu0 }
 0x2cf   : > { %v10093_v46 = vpop.f32.mrb[11].mxu0  ;;  %2381 = vrot.lane.b32.xlu1 %v2102_v34, %s10270_s13  ;;  %v2537_v34 = vcombine.high %v2515_v24, %v2515_v24 }
 0x2d0   : > { %2153 = vrot.lane.b32.xlu0 %v2106_v17, %s10266_s9 }
 0x2d1   : > { %v2624_v36 = vrot.slane %v2537_v34, %v10940_v23  ;;  %v2628_v5 = vrot.slane %v2537_v34, %v10979_v4 }
 0x2d3   : > { %2389 = vrot.lane.b32.xlu1 %v2118_v39, %s10270_s13  ;;  %v2506_v39 = vrot.slane %v2492_v28, %v10912_v8 }
 0x2d4   : > { %2161 = vrot.lane.b32.xlu0 %v2122_v18, %s10266_s9 }
 0x2d5   : > { %v2508_v15 = vcombine.high %v2506_v39, %v2506_v39 }
 0x2d7   : > { %2393 = vrot.lane.b32.xlu1 %v2126_v3, %s10270_s13  ;;  %v2522_v3 = vrot.slane %v2506_v39, %v10912_v8  ;;  %v2536_v28 = vrot.slane %v2508_v15, %v10912_v8 }
 0x2d8   : > { %2165 = vrot.lane.b32.xlu0 %v2130_v49, %s10266_s9 }
 0x2d9   : > { %v2640_v45 = vrot.slane %v2522_v3, %v10940_v23  ;;  %v2644_v46 = vrot.slane %v2522_v3, %v10979_v4 }
 0x2db   : > { %2673 = vrot.lane.b32.xlu1 %v2552_v50, %s10274_s23 }
 0x2dc   : > { %2383 = vrot.lane.b32.xlu0 %v2106_v17, %s10270_s13 }
 0x2df   : > { %2677 = vrot.lane.b32.xlu1 %v2560_v21, %s10274_s23  ;;  %v2652_v21 = vrot.slane %v2536_v28, %v10979_v4 }
 0x2e0   : > { %2391 = vrot.lane.b32.xlu0 %v2122_v18, %s10270_s13  ;;  %v2648_v18 = vrot.slane %v2536_v28, %v10940_v23 }
 0x2e3   : > { %2689 = vrot.lane.b32.xlu1 %v2584_v10, %s10274_s23  ;;  %v2793_v10 = vrot.slane %v10926_v7, %v10912_v8 }
 0x2e4   : > { %2395 = vrot.lane.b32.xlu0 %v2130_v49, %s10270_s13  ;;  %v2538_v49 = vcombine.high %v2522_v3, %v2522_v3 }
 0x2e6   : > { %v2656_v53 = vrot.slane %v2538_v49, %v10940_v23 }
 0x2e7   : > { %2693 = vrot.lane.b32.xlu1 %v2592_v54, %s10274_s23  ;;  %v2540_v54 = vcombine.high %v2536_v28, %v2536_v28 }
 0x2e8   : > { %2683 = vrot.lane.b32.xlu0 %v2572_v12, %s10274_s23 }
 0x2e9   : > { %v2664_v0 = vrot.slane %v2540_v54, %v10940_v23  ;;  %v2668_v24 = vrot.slane %v2540_v54, %v10979_v4 }
 0x2eb   : > { %2167 = vrot.lane.b32.xlu1 %v2134_v55, %s10266_s9 }
 0x2ec   : > { %2169 = vrot.lane.b32.xlu0 %v2138_v56, %s10266_s9  ;;  %s10282_s9 = smov 116  }
 0x2ef   : > { %2397 = vrot.lane.b32.xlu1 %v2134_v55, %s10270_s13  ;;  %v2660_v55 = vrot.slane %v2538_v49, %v10979_v4 }
 0x2f0   : > { %2399 = vrot.lane.b32.xlu0 %v2138_v56, %s10270_s13  ;;  %v2801_v56 = vcombine.high %v2793_v10, %v2793_v10  ;;  %s10283_s13 = smov 81  }
 0x2f2   : > { %v2823_v27 = vrot.slane %v2801_v56, %v10912_v8 }
 0x2f3   : > { %2681 = vrot.lane.b32.xlu1 %v2568_v20, %s10274_s23  ;;  %v2786_v20 = vcombine.high %v10926_v7, %v10926_v7 }
 0x2f4   : > { %2695 = vrot.lane.b32.xlu0 %v2596_v58, %s10274_s23  ;;  %v2809_v58 = vrot.slane %v2793_v10, %v10912_v8  ;;  %v11223_v34 = vrot.slane %v2823_v27, %v10940_v23 }
 0x2f6   : > { %v11216_v63 = vrot.slane %v2809_v58, %v10940_v23 }
 0x2f7   : > { %2697 = vrot.lane.b32.xlu1 %v2600_v62, %s10274_s23 }
 0x2f8   : > { %2699 = vrot.lane.b32.xlu0 %v2604_v29, %s10274_s23  ;;  %v2800_v29 = vrot.slane %v2786_v20, %v10912_v8 }
 0x2fb   : > { %2701 = vrot.lane.b32.xlu1 %v2608_v30, %s10274_s23 }
 0x2fc   : > { %2703 = vrot.lane.b32.xlu0 %v2612_v32, %s10274_s23  ;;  %v2831_v32 = vcombine.high %v2809_v58, %v2809_v58 }
 0x2fe   : > { %v11230_v39 = vrot.slane %v2831_v32, %v10940_v23 }
 0x2ff   : > { %2705 = vrot.lane.b32.xlu1 %v2616_v33, %s10274_s23 }
 0x300   : > { %2707 = vrot.lane.b32.xlu0 %v2620_v37, %s10274_s23  ;;  %v2833_v37 = vcombine.high %v2823_v27, %v2823_v27 }
 0x302   : > { %v11236_v3 = vrot.slane %v2833_v37, %v10940_v23 }
 0x303   : > { %2709 = vrot.lane.b32.xlu1 %v2624_v36, %s10274_s23  ;;  %v2802_v36 = vcombine.high %v2800_v29, %v2800_v29 }
 0x304   : > { %2711 = vrot.lane.b32.xlu0 %v2628_v5, %s10274_s23  ;;  %v2816_v5 = vrot.slane %v2800_v29, %v10912_v8 }
 0x305   : > { %v2830_v15 = vrot.slane %v2802_v36, %v10912_v8 }
 0x306   : > { %v11248_v28 = vrot.slane %v2816_v5, %v10940_v23 }
 0x307   : > { %2713 = vrot.lane.b32.xlu1 %v2632_v2, %s10274_s23  ;;  %v2834_v49 = vcombine.high %v2830_v15, %v2830_v15 }
 0x308   : > { %2715 = vrot.lane.b32.xlu0 %v2636_v43, %s10274_s23  ;;  %v2842_v43 = vrot.slane %v10949_v31, %v10912_v8 }
 0x30b   : > { %2717 = vrot.lane.b32.xlu1 %v2640_v45, %s10274_s23 }
 0x30c   : > { %2719 = vrot.lane.b32.xlu0 %v2644_v46, %s10274_s23  ;;  %v2832_v46 = vcombine.high %v2816_v5, %v2816_v5 }
 0x30d   : > { %v2140_v17 = vpop.permute.xlu1 %2139 }
 0x30e   : > { %2187 = vst.msk [vmem:[%s10952_s8 + $0x1] sm:$0x1] %vm1956_vm5, %v2140_v17  ;;  %v2142_v50 = vpop.permute.xlu0 %2141 }
 0x30f   : > { %2188 = vst.msk [vmem:[%s10952_s8 + $0x21] sm:$0x1] %vm1956_vm5, %v2142_v50  ;;  %2721 = vrot.lane.b32.xlu1 %v2648_v18, %s10274_s23  ;;  %v11253_v18 = vrot.slane %v2830_v15, %v10940_v23  ;;  %v2850_v50 = vcombine.high %v2842_v43, %v2842_v43 }
 0x310   : > { %2723 = vrot.lane.b32.xlu0 %v2652_v21, %s10274_s23  ;;  %v2835_v21 = vcombine.high %v10949_v31, %v10949_v31 }
 0x311   : > { %v2370_v52 = vpop.permute.xlu1 %2369 }
 0x312   : > { %2417 = vst.msk [vmem:[%s10952_s8 + $0x2] sm:$0x1] %vm1956_vm5, %v2370_v52  ;;  %v2372_v12 = vpop.permute.xlu0 %2371  ;;  %v11264_v52 = vrot.slane %v2832_v46, %v10940_v23  ;;  %v2849_v56 = vrot.slane %v2835_v21, %v10912_v8 }
 0x313   : > { %2418 = vst.msk [vmem:[%s10952_s8 + $0x22] sm:$0x1] %vm1956_vm5, %v2372_v12  ;;  %2725 = vrot.lane.b32.xlu1 %v2656_v53, %s10274_s23  ;;  %v2858_v53 = vrot.slane %v2842_v43, %v10912_v8  ;;  %v11270_v12 = vrot.slane %v2834_v49, %v10940_v23 }
 0x314   : > { %2727 = vrot.lane.b32.xlu0 %v2660_v55, %s10274_s23  ;;  %v2872_v55 = vrot.slane %v2850_v50, %v10912_v8  ;;  %v2851_v29 = vcombine.high %v2849_v56, %v2849_v56  ;;  %v2865_v37 = vrot.slane %v2849_v56, %v10912_v8 }
 0x315   : > { %v2144_v59 = vpop.permute.xlu1 %2143 }
 0x316   : > { %2189 = vst.msk [vmem:[%s10952_s8 + $0x41] sm:$0x1] %vm1956_vm5, %v2144_v59  ;;  %v11208_v62 = vpop.permute.xlu0 %2671  ;;  %v11281_v59 = vrot.slane %v2858_v53, %v10940_v23  ;;  %v2882_v27 = vcombine.high %v2872_v55, %v2872_v55  ;;  %v2881_v43 = vcombine.high %v2865_v37, %v2865_v37 }
 0x317   : > { %2729 = vrot.lane.b32.xlu1 %v2664_v0, %s10274_s23  ;;  %v2880_v0 = vcombine.high %v2858_v53, %v2858_v53 }
 0x318   : > { %2731 = vrot.lane.b32.xlu0 %v2668_v24, %s10274_s23  ;;  %v11286_v24 = vrot.slane %v2872_v55, %v10940_v23  ;;  %v11301_v5 = vrot.slane %v2882_v27, %v10940_v23  ;;  %s10284_s23 = smov 46  }
 0x319   : > { %v2148_v30 = vpop.permute.xlu1 %2147  ;;  %v11295_v32 = vrot.slane %v2880_v0, %v10940_v23 }
 0x31a   : > { %2191 = vst.msk [vmem:[%s10952_s8 + $0x81] sm:$0x1] %vm1956_vm5, %v2148_v30  ;;  %v11220_v33 = vpop.permute.xlu0 %2687 }
 0x31b   : > { %2948 = vrot.lane.b32.xlu1 %v11216_v63, %s10282_s9 }
 0x31c   : > { %2950 = vrot.lane.b32.xlu0 %v11223_v34, %s10282_s9 }
 0x31d   : > { %v2156_v38 = vpop.permute.xlu1 %2155 }
 0x31e   : > { %2195 = vst.msk [vmem:[%s10952_s8 + $0x101] sm:$0x1] %vm1956_vm5, %v2156_v38  ;;  %v2146_v2 = vpop.permute.xlu0 %2145 }
 0x31f   : > { %2190 = vst.msk [vmem:[%s10952_s8 + $0x61] sm:$0x1] %vm1956_vm5, %v2146_v2  ;;  %2952 = vrot.lane.b32.xlu1 %v11230_v39, %s10282_s9  ;;  %v2879_v2 = vrot.slane %v2851_v29, %v10912_v8 }
 0x320   : > { %2954 = vrot.lane.b32.xlu0 %v11236_v3, %s10282_s9 }
 0x321   : > { %v2374_v45 = vpop.permute.xlu1 %2373  ;;  %v2883_v49 = vcombine.high %v2879_v2, %v2879_v2 }
 0x322   : > { %2419 = vst.msk [vmem:[%s10952_s8 + $0x42] sm:$0x1] %vm1956_vm5, %v2374_v45  ;;  %v2150_v17 = vpop.permute.xlu0 %2149 }
 0x323   : > { %2192 = vst.msk [vmem:[%s10952_s8 + $0xa1] sm:$0x1] %vm1956_vm5, %v2150_v17  ;;  %2956 = vrot.lane.b32.xlu1 %v11248_v28, %s10282_s9  ;;  %v11318_v17 = vrot.slane %v2879_v2, %v10940_v23 }
 0x324   : > { %2958 = vrot.lane.b32.xlu0 %v11253_v18, %s10282_s9 }
 0x325   : > { %v2378_v10 = vpop.permute.xlu1 %2377 }
 0x326   : > { %2421 = vst.msk [vmem:[%s10952_s8 + $0x82] sm:$0x1] %vm1956_vm5, %v2378_v10  ;;  %v2158_v54 = vpop.permute.xlu0 %2157  ;;  %v11334_v10 = vrot.slane %v2883_v49, %v10940_v23 }
 0x327   : > { %2196 = vst.msk [vmem:[%s10952_s8 + $0x121] sm:$0x1] %vm1956_vm5, %v2158_v54  ;;  %2960 = vrot.lane.b32.xlu1 %v11264_v52, %s10282_s9 }
 0x328   : > { %2962 = vrot.lane.b32.xlu0 %v11270_v12, %s10282_s9 }
 0x329   : > { %v2386_v20 = vpop.permute.xlu1 %2385 }
 0x32a   : > { %2425 = vst.msk [vmem:[%s10952_s8 + $0x102] sm:$0x1] %vm1956_vm5, %v2386_v20  ;;  %v2376_v58 = vpop.permute.xlu0 %2375 }
 0x32b   : > { %2420 = vst.msk [vmem:[%s10952_s8 + $0x62] sm:$0x1] %vm1956_vm5, %v2376_v58  ;;  %2964 = vrot.lane.b32.xlu1 %v11281_v59, %s10282_s9 }
 0x32c   : > { %2966 = vrot.lane.b32.xlu0 %v11286_v24, %s10282_s9 }
 0x32d   : > { %v2670_v30 = vpop.permute.xlu1 %2669 }
 0x32e   : > { %v2734_v36 = vsel %vm1151_vm11, %v2670_v30, %v11208_v62  ;;  %v2380_v38 = vpop.permute.xlu0 %2379  ;;  %v11313_v62 = vrot.slane %v2865_v37, %v10940_v23 }
 0x32f   : > { %2766 = vst.msk [vmem:[%s10952_s8 + $0x3] sm:$0x1] %vm1956_vm5, %v2734_v36  ;;  %2422 = vst.msk [vmem:[%s10952_s8 + $0xa2] sm:$0x1] %vm1956_vm5, %v2380_v38  ;;  %2968 = vrot.lane.b32.xlu1 %v11295_v32, %s10282_s9 }
 0x330   : > { %2970 = vrot.lane.b32.xlu0 %v11301_v5, %s10282_s9 }
 0x331   : > { %v2686_v15 = vpop.permute.xlu1 %2685 }
 0x332   : > { %v2738_v45 = vsel %vm1151_vm11, %v2686_v15, %v11220_v33  ;;  %v2388_v46 = vpop.permute.xlu0 %2387  ;;  %v11329_v33 = vrot.slane %v2881_v43, %v10940_v23 }
 0x333   : > { %2770 = vst.msk [vmem:[%s10952_s8 + $0x83] sm:$0x1] %vm1956_vm5, %v2738_v45  ;;  %2426 = vst.msk [vmem:[%s10952_s8 + $0x122] sm:$0x1] %vm1956_vm5, %v2388_v46  ;;  %2972 = vrot.lane.b32.xlu1 %v11313_v62, %s10282_s9 }
 0x334   : > { %2974 = vrot.lane.b32.xlu0 %v11318_v17, %s10282_s9 }
 0x335   : > { %v2152_v50 = vpop.permute.xlu1 %2151 }
 0x336   : > { %2193 = vst.msk [vmem:[%s10952_s8 + $0xc1] sm:$0x1] %vm1956_vm5, %v2152_v50  ;;  %v2676_v21 = vpop.permute.xlu0 %2675 }
 0x337   : > { %2976 = vrot.lane.b32.xlu1 %v11329_v33, %s10282_s9 }
 0x338   : > { %2978 = vrot.lane.b32.xlu0 %v11334_v10, %s10282_s9  ;;  %s10295_s9 = smov 33  }
 0x339   : > { %v2160_v53 = vpop.permute.xlu1 %2159 }
 0x33a   : > { %2197 = vst.msk [vmem:[%s10952_s8 + $0x141] sm:$0x1] %vm1956_vm5, %v2160_v53  ;;  %v2680_v54 = vpop.permute.xlu0 %2679 }
 0x33b   : > { %3178 = vrot.lane.b32.xlu1 %v11216_v63, %s10283_s13 }
 0x33c   : > { %3180 = vrot.lane.b32.xlu0 %v11223_v34, %s10283_s13 }
 0x33d   : > { %v2164_v55 = vpop.permute.xlu1 %2163 }
 0x33e   : > { %2199 = vst.msk [vmem:[%s10952_s8 + $0x181] sm:$0x1] %vm1956_vm5, %v2164_v55  ;;  %v2692_v56 = vpop.permute.xlu0 %2691 }
 0x33f   : > { %3182 = vrot.lane.b32.xlu1 %v11230_v39, %s10283_s13 }
 0x340   : > { %3184 = vrot.lane.b32.xlu0 %v11236_v3, %s10283_s13 }
 0x341   : > { %v2382_v20 = vpop.permute.xlu1 %2381 }
 0x342   : > { %2423 = vst.msk [vmem:[%s10952_s8 + $0xc2] sm:$0x1] %vm1956_vm5, %v2382_v20  ;;  %v2154_v0 = vpop.permute.xlu0 %2153 }
 0x343   : > { %2194 = vst.msk [vmem:[%s10952_s8 + $0xe1] sm:$0x1] %vm1956_vm5, %v2154_v0  ;;  %3186 = vrot.lane.b32.xlu1 %v11248_v28, %s10283_s13 }
 0x344   : > { %3188 = vrot.lane.b32.xlu0 %v11253_v18, %s10283_s13 }
 0x345   : > { %v2390_v58 = vpop.permute.xlu1 %2389 }
 0x346   : > { %2427 = vst.msk [vmem:[%s10952_s8 + $0x142] sm:$0x1] %vm1956_vm5, %v2390_v58  ;;  %v2162_v27 = vpop.permute.xlu0 %2161 }
 0x347   : > { %2198 = vst.msk [vmem:[%s10952_s8 + $0x161] sm:$0x1] %vm1956_vm5, %v2162_v27  ;;  %3190 = vrot.lane.b32.xlu1 %v11264_v52, %s10283_s13 }
 0x348   : > { %3192 = vrot.lane.b32.xlu0 %v11270_v12, %s10283_s13 }
 0x349   : > { %v2394_v29 = vpop.permute.xlu1 %2393 }
 0x34a   : > { %2429 = vst.msk [vmem:[%s10952_s8 + $0x182] sm:$0x1] %vm1956_vm5, %v2394_v29  ;;  %v2166_v30 = vpop.permute.xlu0 %2165 }
 0x34b   : > { %2200 = vst.msk [vmem:[%s10952_s8 + $0x1a1] sm:$0x1] %vm1956_vm5, %v2166_v30  ;;  %3194 = vrot.lane.b32.xlu1 %v11281_v59, %s10283_s13 }
 0x34c   : > { %3196 = vrot.lane.b32.xlu0 %v11286_v24, %s10283_s13 }
 0x34d   : > { %v2674_v37 = vpop.permute.xlu1 %2673 }
 0x34e   : > { %v2735_v36 = vsel %vm1151_vm11, %v2674_v37, %v2676_v21  ;;  %v2384_v38 = vpop.permute.xlu0 %2383 }
 0x34f   : > { %2767 = vst.msk [vmem:[%s10952_s8 + $0x23] sm:$0x1] %vm1956_vm5, %v2735_v36  ;;  %2424 = vst.msk [vmem:[%s10952_s8 + $0xe2] sm:$0x1] %vm1956_vm5, %v2384_v38  ;;  %3198 = vrot.lane.b32.xlu1 %v11295_v32, %s10283_s13 }
 0x350   : > { %3200 = vrot.lane.b32.xlu0 %v11301_v5, %s10283_s13 }
 0x351   : > { %v2678_v2 = vpop.permute.xlu1 %2677 }
 0x352   : > { %v2736_v15 = vsel %vm1151_vm11, %v2678_v2, %v2680_v54  ;;  %v2392_v43 = vpop.permute.xlu0 %2391 }
 0x353   : > { %2768 = vst.msk [vmem:[%s10952_s8 + $0x43] sm:$0x1] %vm1956_vm5, %v2736_v15  ;;  %2428 = vst.msk [vmem:[%s10952_s8 + $0x162] sm:$0x1] %vm1956_vm5, %v2392_v43  ;;  %3202 = vrot.lane.b32.xlu1 %v11313_v62, %s10283_s13 }
 0x354   : > { %3204 = vrot.lane.b32.xlu0 %v11318_v17, %s10283_s13 }
 0x355   : > { %v2690_v45 = vpop.permute.xlu1 %2689 }
 0x356   : > { %v2739_v46 = vsel %vm1151_vm11, %v2690_v45, %v2692_v56  ;;  %v2396_v49 = vpop.permute.xlu0 %2395 }
 0x357   : > { %2771 = vst.msk [vmem:[%s10952_s8 + $0xa3] sm:$0x1] %vm1956_vm5, %v2739_v46  ;;  %2430 = vst.msk [vmem:[%s10952_s8 + $0x1a2] sm:$0x1] %vm1956_vm5, %v2396_v49  ;;  %3206 = vrot.lane.b32.xlu1 %v11329_v33, %s10283_s13  ;;  %v3495_v49 = vrot.slane %v3481_v19, %v10912_v8 }
 0x358   : > { %3208 = vrot.lane.b32.xlu0 %v11334_v10, %s10283_s13  ;;  %s10296_s13 = smov 114  }
 0x359   : > { %v2694_v50 = vpop.permute.xlu1 %2693  ;;  %v3511_v19 = vrot.slane %v3495_v49, %v10912_v8 }
 0x35a   : > { %v2684_v21 = vpop.permute.xlu0 %2683 }
 0x35b   : > { %3408 = vrot.lane.b32.xlu1 %v11216_v63, %s10284_s23 }
 0x35c   : > { %3410 = vrot.lane.b32.xlu0 %v11223_v34, %s10284_s23 }
 0x35d   : > { %v2168_v53 = vpop.permute.xlu1 %2167 }
 0x35e   : > { %2201 = vst.msk [vmem:[%s10952_s8 + $0x1c1] sm:$0x1] %vm1956_vm5, %v2168_v53  ;;  %v2170_v54 = vpop.permute.xlu0 %2169 }
 0x35f   : > { %2202 = vst.msk [vmem:[%s10952_s8 + $0x1e1] sm:$0x1] %vm1956_vm5, %v2170_v54  ;;  %3412 = vrot.lane.b32.xlu1 %v11230_v39, %s10284_s23 }
 0x360   : > { %3414 = vrot.lane.b32.xlu0 %v11236_v3, %s10284_s23 }
 0x361   : > { %v2398_v55 = vpop.permute.xlu1 %2397 }
 0x362   : > { %2431 = vst.msk [vmem:[%s10952_s8 + $0x1c2] sm:$0x1] %vm1956_vm5, %v2398_v55  ;;  %v2400_v63 = vpop.permute.xlu0 %2399 }
 0x363   : > { %2432 = vst.msk [vmem:[%s10952_s8 + $0x1e2] sm:$0x1] %vm1956_vm5, %v2400_v63  ;;  %3416 = vrot.lane.b32.xlu1 %v11248_v28, %s10284_s23 }
 0x364   : > { %3418 = vrot.lane.b32.xlu0 %v11253_v18, %s10284_s23 }
 0x365   : > { %v2682_v34 = vpop.permute.xlu1 %2681 }
 0x366   : > { %v2737_v56 = vsel %vm1151_vm11, %v2682_v34, %v2684_v21  ;;  %v2696_v39 = vpop.permute.xlu0 %2695 }
 0x367   : > { %2769 = vst.msk [vmem:[%s10952_s8 + $0x63] sm:$0x1] %vm1956_vm5, %v2737_v56  ;;  %v2740_v3 = vsel %vm1151_vm11, %v2694_v50, %v2696_v39  ;;  %3420 = vrot.lane.b32.xlu1 %v11264_v52, %s10284_s23  ;;  %v3497_v56 = vcombine.high %v3495_v49, %v3495_v49 }
 0x368   : > { %2772 = vst.msk [vmem:[%s10952_s8 + $0xc3] sm:$0x1] %vm1956_vm5, %v2740_v3  ;;  %3422 = vrot.lane.b32.xlu0 %v11270_v12, %s10284_s23  ;;  %v3488_v12 = vrot.slane %v3480_v16, %v10912_v8 }
 0x369   : > { %v2698_v28 = vpop.permute.xlu1 %2697 }
 0x36a   : > { %v2700_v20 = vpop.permute.xlu0 %2699  ;;  %v3496_v29 = vcombine.high %v3488_v12, %v3488_v12 }
 0x36b   : > { %v2741_v18 = vsel %vm1151_vm11, %v2698_v28, %v2700_v20  ;;  %3424 = vrot.lane.b32.xlu1 %v11281_v59, %s10284_s23 }
 0x36c   : > { %2773 = vst.msk [vmem:[%s10952_s8 + $0xe3] sm:$0x1] %vm1956_vm5, %v2741_v18  ;;  %3426 = vrot.lane.b32.xlu0 %v11286_v24, %s10284_s23  ;;  %v3615_v18 = vrot.slane %v3511_v19, %v10940_v23 }
 0x36d   : > { %v2702_v0 = vpop.permute.xlu1 %2701 }
 0x36e   : > { %v2704_v52 = vpop.permute.xlu0 %2703 }
 0x36f   : > { %v2742_v58 = vsel %vm1151_vm11, %v2702_v0, %v2704_v52  ;;  %3428 = vrot.lane.b32.xlu1 %v11295_v32, %s10284_s23  ;;  %v3525_v0 = vrot.slane %v3497_v56, %v10912_v8 }
 0x370   : > { %2774 = vst.msk [vmem:[%s10952_s8 + $0x103] sm:$0x1] %vm1956_vm5, %v2742_v58  ;;  %3430 = vrot.lane.b32.xlu0 %v11301_v5, %s10284_s23  ;;  %v3504_v5 = vrot.slane %v3488_v12, %v10912_v8  ;;  %v3619_v58 = vrot.slane %v3511_v19, %v10979_v4 }
 0x371   : > { %v2706_v59 = vpop.permute.xlu1 %2705 }
 0x372   : > { %v2708_v24 = vpop.permute.xlu0 %2707  ;;  %v3583_v37 = vrot.slane %v3504_v5, %v10940_v23  ;;  %v3587_v38 = vrot.slane %v3504_v5, %v10979_v4  ;;  %v3526_v15 = vcombine.high %v3504_v5, %v3504_v5  ;;  %v3627_v5 = vrot.slane %v3525_v0, %v10979_v4 }
 0x373   : > { %v2743_v27 = vsel %vm1151_vm11, %v2706_v59, %v2708_v24  ;;  %3432 = vrot.lane.b32.xlu1 %v11313_v62, %s10284_s23  ;;  %v3623_v24 = vrot.slane %v3525_v0, %v10940_v23 }
 0x374   : > { %2775 = vst.msk [vmem:[%s10952_s8 + $0x123] sm:$0x1] %vm1956_vm5, %v2743_v27  ;;  %3434 = vrot.lane.b32.xlu0 %v11318_v17, %s10284_s23  ;;  %v3518_v17 = vrot.slane %v3496_v29, %v10912_v8  ;;  %v3599_v21 = vrot.slane %v3526_v15, %v10940_v23  ;;  %v3603_v55 = vrot.slane %v3526_v15, %v10979_v4 }
 0x375   : > { %v2710_v32 = vpop.permute.xlu1 %2709  ;;  %v3527_v27 = vcombine.high %v3511_v19, %v3511_v19  ;;  %v3538_v29 = vrot.slane %v3530_v40, %v10912_v8 }
 0x376   : > { %v2712_v30 = vpop.permute.xlu0 %2711  ;;  %v3595_v45 = vrot.slane %v3518_v17, %v10979_v4  ;;  %v3528_v53 = vcombine.high %v3518_v17, %v3518_v17 }
 0x377   : > { %v2744_v16 = vsel %vm1151_vm11, %v2710_v32, %v2712_v30  ;;  %3436 = vrot.lane.b32.xlu1 %v11329_v33, %s10284_s23 }
 0x378   : > { %2776 = vst.msk [vmem:[%s10952_s8 + $0x143] sm:$0x1] %vm1956_vm5, %v2744_v16  ;;  %3438 = vrot.lane.b32.xlu0 %v11334_v10, %s10284_s23  ;;  %v3591_v10 = vrot.slane %v3518_v17, %v10940_v23  ;;  %v3607_v7 = vrot.slane %v3528_v53, %v10940_v23  ;;  %v3611_v3 = vrot.slane %v3528_v53, %v10979_v4  ;;  %s10297_s23 = smov 79  }
 0x379   : > { %v2714_v62 = vpop.permute.xlu1 %2713  ;;  %v3631_v16 = vrot.slane %v3527_v27, %v10940_v23  ;;  %v3635_v17 = vrot.slane %v3527_v27, %v10979_v4 }
 0x37a   : > { %v2716_v36 = vpop.permute.xlu0 %2715 }
 0x37b   : > { %v2745_v2 = vsel %vm1151_vm11, %v2714_v62, %v2716_v36  ;;  %3708 = vrot.lane.b32.xlu1 %v3583_v37, %s10285_s12  ;;  %v3529_v62 = vcombine.high %v3525_v0, %v3525_v0 }
 0x37c   : > { %2777 = vst.msk [vmem:[%s10952_s8 + $0x163] sm:$0x1] %vm1956_vm5, %v2745_v2  ;;  %3710 = vrot.lane.b32.xlu0 %v3587_v38, %s10285_s12  ;;  %v3554_v38 = vrot.slane %v3538_v29, %v10912_v8  ;;  %v3546_v2 = vcombine.high %v3538_v29, %v3538_v29 }
 0x37d   : > { %v2718_v33 = vpop.permute.xlu1 %2717  ;;  %v3639_v40 = vrot.slane %v3529_v62, %v10940_v23 }
 0x37e   : > { %v2720_v43 = vpop.permute.xlu0 %2719  ;;  %v3651_v49 = vrot.slane %v3554_v38, %v10979_v4  ;;  %v3576_v53 = vcombine.high %v3554_v38, %v3554_v38 }
 0x37f   : > { %v2746_v46 = vsel %vm1151_vm11, %v2718_v33, %v2720_v43  ;;  %3712 = vrot.lane.b32.xlu1 %v3591_v10, %s10285_s12  ;;  %v3643_v10 = vrot.slane %v3529_v62, %v10979_v4  ;;  %v3647_v43 = vrot.slane %v3554_v38, %v10940_v23 }
 0x380   : > { %2778 = vst.msk [vmem:[%s10952_s8 + $0x183] sm:$0x1] %vm1956_vm5, %v2746_v46  ;;  %3714 = vrot.lane.b32.xlu0 %v3595_v45, %s10285_s12  ;;  %v3568_v45 = vrot.slane %v3546_v2, %v10912_v8 }
 0x381   : > { %v2722_v50 = vpop.permute.xlu1 %2721 }
 0x382   : > { %v2724_v54 = vpop.permute.xlu0 %2723  ;;  %v3578_v19 = vcombine.high %v3568_v45, %v3568_v45 }
 0x383   : > { %v2747_v63 = vsel %vm1151_vm11, %v2722_v50, %v2724_v54  ;;  %3716 = vrot.lane.b32.xlu1 %v3599_v21, %s10285_s12  ;;  %v3655_v21 = vrot.slane %v3568_v45, %v10940_v23 }
 0x384   : > { %2779 = vst.msk [vmem:[%s10952_s8 + $0x1a3] sm:$0x1] %vm1956_vm5, %v2747_v63  ;;  %3718 = vrot.lane.b32.xlu0 %v3603_v55, %s10285_s12  ;;  %v3659_v55 = vrot.slane %v3568_v45, %v10979_v4  ;;  %v3545_v63 = vrot.slane %v3531_v41, %v10912_v8  ;;  %v3671_v31 = vrot.slane %v3578_v19, %v10940_v23 }
 0x385   : > { %v2726_v34 = vpop.permute.xlu1 %2725 }
 0x386   : > { %v2728_v39 = vpop.permute.xlu0 %2727  ;;  %v3561_v41 = vrot.slane %v3545_v63, %v10912_v8 }
 0x387   : > { %v2748_v28 = vsel %vm1151_vm11, %v2726_v34, %v2728_v39  ;;  %3720 = vrot.lane.b32.xlu1 %v3607_v7, %s10285_s12  ;;  %v3663_v7 = vrot.slane %v3576_v53, %v10940_v23  ;;  %v3667_v39 = vrot.slane %v3576_v53, %v10979_v4 }
 0x388   : > { %2780 = vst.msk [vmem:[%s10952_s8 + $0x1c3] sm:$0x1] %vm1956_vm5, %v2748_v28  ;;  %3722 = vrot.lane.b32.xlu0 %v3611_v3, %s10285_s12  ;;  %v3547_v28 = vcombine.high %v3545_v63, %v3545_v63 }
 0x389   : > { %v2730_v20 = vpop.permute.xlu1 %2729 }
 0x38a   : > { %v2732_v52 = vpop.permute.xlu0 %2731 }
 0x38b   : > { %v2749_v12 = vsel %vm1151_vm11, %v2730_v20, %v2732_v52  ;;  %3724 = vrot.lane.b32.xlu1 %v3615_v18, %s10285_s12  ;;  %v3675_v18 = vrot.slane %v3578_v19, %v10979_v4  ;;  %v3679_v52 = vrot.slane %v3561_v41, %v10940_v23  ;;  %v3881_v19 = vrot.slane %v10959_v35, %v10912_v8 }
 0x38c   : > { %2781 = vst.msk [vmem:[%s10952_s8 + $0x1e3] sm:$0x1] %vm1956_vm5, %v2749_v12  ;;  %3726 = vrot.lane.b32.xlu0 %v3619_v58, %s10285_s12  ;;  %v3575_v58 = vrot.slane %v3547_v28, %v10912_v8 }
 0x38d   : > { %v2949_v59 = vpop.permute.xlu1 %2948 }
 0x38e   : > { %2996 = vst.msk [vmem:[%s10952_s8 + $0x4] sm:$0x1] %vm1956_vm5, %v2949_v59  ;;  %v2951_v32 = vpop.permute.xlu0 %2950  ;;  %v3683_v59 = vrot.slane %v3561_v41, %v10979_v4  ;;  %v3687_v27 = vrot.slane %v3575_v58, %v10940_v23 }
 0x38f   : > { %2997 = vst.msk [vmem:[%s10952_s8 + $0x24] sm:$0x1] %vm1956_vm5, %v2951_v32  ;;  %3728 = vrot.lane.b32.xlu1 %v3623_v24, %s10285_s12  ;;  %v3577_v32 = vcombine.high %v3561_v41, %v3561_v41 }
 0x390   : > { %3730 = vrot.lane.b32.xlu0 %v3627_v5, %s10285_s12  ;;  %v3832_v5 = vrot.slane %v10928_v9, %v10912_v8 }
 0x391   : > { %v2953_v30 = vpop.permute.xlu1 %2952  ;;  %v3695_v62 = vrot.slane %v3577_v32, %v10940_v23 }
 0x392   : > { %2998 = vst.msk [vmem:[%s10952_s8 + $0x44] sm:$0x1] %vm1956_vm5, %v2953_v30  ;;  %v2955_v37 = vpop.permute.xlu0 %2954  ;;  %v3691_v30 = vrot.slane %v3575_v58, %v10979_v4  ;;  %v3840_v38 = vcombine.high %v3832_v5, %v3832_v5 }
 0x393   : > { %2999 = vst.msk [vmem:[%s10952_s8 + $0x64] sm:$0x1] %vm1956_vm5, %v2955_v37  ;;  %3732 = vrot.lane.b32.xlu1 %v3631_v16, %s10285_s12  ;;  %v3579_v37 = vcombine.high %v3575_v58, %v3575_v58  ;;  %v3889_v58 = vcombine.high %v3881_v19, %v3881_v19 }
 0x394   : > { %3734 = vrot.lane.b32.xlu0 %v3635_v17, %s10285_s12  ;;  %v3825_v17 = vcombine.high %v10928_v9, %v10928_v9 }
 0x395   : > { %v2957_v36 = vpop.permute.xlu1 %2956 }
 0x396   : > { %3000 = vst.msk [vmem:[%s10952_s8 + $0x84] sm:$0x1] %vm1956_vm5, %v2957_v36  ;;  %v2959_v33 = vpop.permute.xlu0 %2958  ;;  %v3839_v45 = vrot.slane %v3825_v17, %v10912_v8 }
 0x397   : > { %3001 = vst.msk [vmem:[%s10952_s8 + $0xa4] sm:$0x1] %vm1956_vm5, %v2959_v33  ;;  %3736 = vrot.lane.b32.xlu1 %v3639_v40, %s10285_s12  ;;  %v3699_v40 = vrot.slane %v3577_v32, %v10979_v4  ;;  %v3703_v33 = vrot.slane %v3579_v37, %v10940_v23  ;;  %v3911_v32 = vrot.slane %v3889_v58, %v10912_v8 }
 0x398   : > { %3738 = vrot.lane.b32.xlu0 %v3643_v10, %s10285_s12  ;;  %v3848_v10 = vrot.slane %v3832_v5, %v10912_v8 }
 0x399   : > { %v2961_v15 = vpop.permute.xlu1 %2960  ;;  %v3921_v17 = vcombine.high %v3911_v32, %v3911_v32 }
 0x39a   : > { %3002 = vst.msk [vmem:[%s10952_s8 + $0xc4] sm:$0x1] %vm1956_vm5, %v2961_v15  ;;  %v2963_v46 = vpop.permute.xlu0 %2962  ;;  %v3707_v15 = vrot.slane %v3579_v37, %v10979_v4  ;;  %v11686_v37 = vrot.slane %v3911_v32, %v10940_v23 }
 0x39b   : > { %3003 = vst.msk [vmem:[%s10952_s8 + $0xe4] sm:$0x1] %vm1956_vm5, %v2963_v46  ;;  %3740 = vrot.lane.b32.xlu1 %v3647_v43, %s10285_s12  ;;  %v3862_v43 = vrot.slane %v3840_v38, %v10912_v8 }
 0x39c   : > { %3742 = vrot.lane.b32.xlu0 %v3651_v49, %s10285_s12  ;;  %v11616_v49 = vrot.slane %v3848_v10, %v10940_v23 }
 0x39d   : > { %v2965_v50 = vpop.permute.xlu1 %2964  ;;  %v11621_v53 = vrot.slane %v3862_v43, %v10940_v23 }
 0x39e   : > { %3004 = vst.msk [vmem:[%s10952_s8 + $0x104] sm:$0x1] %vm1956_vm5, %v2965_v50  ;;  %v2967_v54 = vpop.permute.xlu0 %2966  ;;  %v3870_v50 = vcombine.high %v3848_v10, %v3848_v10  ;;  %v11701_v10 = vrot.slane %v3921_v17, %v10940_v23 }
 0x39f   : > { %3005 = vst.msk [vmem:[%s10952_s8 + $0x124] sm:$0x1] %vm1956_vm5, %v2967_v54  ;;  %3744 = vrot.lane.b32.xlu1 %v3655_v21, %s10285_s12  ;;  %v3872_v54 = vcombine.high %v3862_v43, %v3862_v43 }
 0x3a0   : > { %3746 = vrot.lane.b32.xlu0 %v3659_v55, %s10285_s12  ;;  %v3841_v55 = vcombine.high %v3839_v45, %v3839_v45 }
 0x3a1   : > { %v2969_v34 = vpop.permute.xlu1 %2968 }
 0x3a2   : > { %3006 = vst.msk [vmem:[%s10952_s8 + $0x144] sm:$0x1] %vm1956_vm5, %v2969_v34  ;;  %v2971_v56 = vpop.permute.xlu0 %2970  ;;  %v11630_v34 = vrot.slane %v3870_v50, %v10940_v23 }
 0x3a3   : > { %3007 = vst.msk [vmem:[%s10952_s8 + $0x164] sm:$0x1] %vm1956_vm5, %v2971_v56  ;;  %3748 = vrot.lane.b32.xlu1 %v3663_v7, %s10285_s12  ;;  %v3855_v7 = vrot.slane %v3839_v45, %v10912_v8 }
 0x3a4   : > { %3750 = vrot.lane.b32.xlu0 %v3667_v39, %s10285_s12  ;;  %v11638_v39 = vrot.slane %v3872_v54, %v10940_v23 }
 0x3a5   : > { %v2973_v3 = vpop.permute.xlu1 %2972  ;;  %v11648_v41 = vrot.slane %v3855_v7, %v10940_v23  ;;  %v3871_v28 = vcombine.high %v3855_v7, %v3855_v7 }
 0x3a6   : > { %3008 = vst.msk [vmem:[%s10952_s8 + $0x184] sm:$0x1] %vm1956_vm5, %v2973_v3  ;;  %v2975_v20 = vpop.permute.xlu0 %2974  ;;  %v3869_v3 = vrot.slane %v3841_v55, %v10912_v8 }
 0x3a7   : > { %3009 = vst.msk [vmem:[%s10952_s8 + $0x1a4] sm:$0x1] %vm1956_vm5, %v2975_v20  ;;  %3752 = vrot.lane.b32.xlu1 %v3671_v31, %s10285_s12  ;;  %v3874_v20 = vcombine.high %v10959_v35, %v10959_v35  ;;  %v11664_v35 = vrot.slane %v3871_v28, %v10940_v23 }
 0x3a8   : > { %3754 = vrot.lane.b32.xlu0 %v3675_v18, %s10285_s12 }
 0x3a9   : > { %v2977_v0 = vpop.permute.xlu1 %2976  ;;  %v3888_v5 = vrot.slane %v3874_v20, %v10912_v8 }
 0x3aa   : > { %3010 = vst.msk [vmem:[%s10952_s8 + $0x1c4] sm:$0x1] %vm1956_vm5, %v2977_v0  ;;  %v2979_v12 = vpop.permute.xlu0 %2978  ;;  %v11655_v0 = vrot.slane %v3869_v3, %v10940_v23 }
 0x3ab   : > { %3011 = vst.msk [vmem:[%s10952_s8 + $0x1e4] sm:$0x1] %vm1956_vm5, %v2979_v12  ;;  %3756 = vrot.lane.b32.xlu1 %v3679_v52, %s10285_s12  ;;  %v3873_v52 = vcombine.high %v3869_v3, %v3869_v3 }
 0x3ac   : > { %3758 = vrot.lane.b32.xlu0 %v3683_v59, %s10285_s12  ;;  %v3897_v59 = vrot.slane %v3881_v19, %v10912_v8 }
 0x3ad   : > { %v3179_v24 = vpop.permute.xlu1 %3178 }
 0x3ae   : > { %3226 = vst.msk [vmem:[%s10952_s8 + $0x5] sm:$0x1] %vm1956_vm5, %v3179_v24  ;;  %v3181_v29 = vpop.permute.xlu0 %3180 }
 0x3af   : > { %3227 = vst.msk [vmem:[%s10952_s8 + $0x25] sm:$0x1] %vm1956_vm5, %v3181_v29  ;;  %3760 = vrot.lane.b32.xlu1 %v3687_v27, %s10285_s12  ;;  %v11670_v27 = vrot.slane %v3873_v52, %v10940_v23 }
 0x3b0   : > { %3762 = vrot.lane.b32.xlu0 %v3691_v30, %s10285_s12  ;;  %v11681_v30 = vrot.slane %v3897_v59, %v10940_v23 }
 0x3b1   : > { %v3183_v16 = vpop.permute.xlu1 %3182 }
 0x3b2   : > { %3228 = vst.msk [vmem:[%s10952_s8 + $0x45] sm:$0x1] %vm1956_vm5, %v3183_v16  ;;  %v3185_v36 = vpop.permute.xlu0 %3184  ;;  %v3919_v16 = vcombine.high %v3897_v59, %v3897_v59 }
 0x3b3   : > { %3229 = vst.msk [vmem:[%s10952_s8 + $0x65] sm:$0x1] %vm1956_vm5, %v3185_v36  ;;  %3764 = vrot.lane.b32.xlu1 %v3695_v62, %s10285_s12  ;;  %v3890_v36 = vcombine.high %v3888_v5, %v3888_v5 }
 0x3b4   : > { %3766 = vrot.lane.b32.xlu0 %v3699_v40, %s10285_s12  ;;  %v11695_v38 = vrot.slane %v3919_v16, %v10940_v23 }
 0x3b5   : > { %v3187_v2 = vpop.permute.xlu1 %3186 }
 0x3b6   : > { %3230 = vst.msk [vmem:[%s10952_s8 + $0x85] sm:$0x1] %vm1956_vm5, %v3187_v2  ;;  %v3189_v9 = vpop.permute.xlu0 %3188  ;;  %v3904_v2 = vrot.slane %v3888_v5, %v10912_v8 }
 0x3b7   : > { %3231 = vst.msk [vmem:[%s10952_s8 + $0xa5] sm:$0x1] %vm1956_vm5, %v3189_v9  ;;  %3768 = vrot.lane.b32.xlu1 %v3703_v33, %s10285_s12  ;;  %v3918_v9 = vrot.slane %v3890_v36, %v10912_v8 }
 0x3b8   : > { %3770 = vrot.lane.b32.xlu0 %v3707_v15, %s10285_s12  ;;  %v11711_v43 = vrot.slane %v3904_v2, %v10940_v23  ;;  %v3920_v45 = vcombine.high %v3904_v2, %v3904_v2  ;;  %s10298_s12 = smov 44  }
 0x3b9   : > { %v3191_v46 = vpop.permute.xlu1 %3190  ;;  %v11716_v50 = vrot.slane %v3918_v9, %v10940_v23 }
 0x3ba   : > { %3232 = vst.msk [vmem:[%s10952_s8 + $0xc5] sm:$0x1] %vm1956_vm5, %v3191_v46  ;;  %v3193_v21 = vpop.permute.xlu0 %3192  ;;  %v11725_v55 = vrot.slane %v3920_v45, %v10940_v23  ;;  %v1721_v45 = vmul.f32 %v10899_v14, %v10918_v11 }
 0x3bb   : > { %3233 = vst.msk [vmem:[%s10952_s8 + $0xe5] sm:$0x1] %vm1956_vm5, %v3193_v21  ;;  %3987 = vrot.lane.b32.xlu1 %v11616_v49, %s10286_s22  ;;  %v3922_v21 = vcombine.high %v3918_v9, %v3918_v9 }
 0x3bc   : > { %3989 = vrot.lane.b32.xlu0 %v11621_v53, %s10286_s22 }
 0x3bd   : > { %v3195_v63 = vpop.permute.xlu1 %3194  ;;  %v11730_v7 = vrot.slane %v3922_v21, %v10940_v23 }
 0x3be   : > { %3234 = vst.msk [vmem:[%s10952_s8 + $0x105] sm:$0x1] %vm1956_vm5, %v3195_v63  ;;  %v3197_v56 = vpop.permute.xlu0 %3196 }
 0x3bf   : > { %3235 = vst.msk [vmem:[%s10952_s8 + $0x125] sm:$0x1] %vm1956_vm5, %v3197_v56  ;;  %3991 = vrot.lane.b32.xlu1 %v11630_v34, %s10286_s22 }
 0x3c0   : > { %3993 = vrot.lane.b32.xlu0 %v11638_v39, %s10286_s22 }
 0x3c1   : > { %v3199_v31 = vpop.permute.xlu1 %3198 }
 0x3c2   : > { %3236 = vst.msk [vmem:[%s10952_s8 + $0x145] sm:$0x1] %vm1956_vm5, %v3199_v31  ;;  %v3201_v18 = vpop.permute.xlu0 %3200 }
 0x3c3   : > { %3237 = vst.msk [vmem:[%s10952_s8 + $0x165] sm:$0x1] %vm1956_vm5, %v3201_v18  ;;  %3995 = vrot.lane.b32.xlu1 %v11648_v41, %s10286_s22 }
 0x3c4   : > { %3997 = vrot.lane.b32.xlu0 %v11655_v0, %s10286_s22 }
 0x3c5   : > { %v3203_v12 = vpop.permute.xlu1 %3202 }
 0x3c6   : > { %3238 = vst.msk [vmem:[%s10952_s8 + $0x185] sm:$0x1] %vm1956_vm5, %v3203_v12  ;;  %v3205_v24 = vpop.permute.xlu0 %3204 }
 0x3c7   : > { %3239 = vst.msk [vmem:[%s10952_s8 + $0x1a5] sm:$0x1] %vm1956_vm5, %v3205_v24  ;;  %3999 = vrot.lane.b32.xlu1 %v11664_v35, %s10286_s22 }
 0x3c8   : > { %4001 = vrot.lane.b32.xlu0 %v11670_v27, %s10286_s22 }
 0x3c9   : > { %v3207_v29 = vpop.permute.xlu1 %3206 }
 0x3ca   : > { %3240 = vst.msk [vmem:[%s10952_s8 + $0x1c5] sm:$0x1] %vm1956_vm5, %v3207_v29  ;;  %v3209_v62 = vpop.permute.xlu0 %3208 }
 0x3cb   : > { %3241 = vst.msk [vmem:[%s10952_s8 + $0x1e5] sm:$0x1] %vm1956_vm5, %v3209_v62  ;;  %4003 = vrot.lane.b32.xlu1 %v11681_v30, %s10286_s22 }
 0x3cc   : > { %4005 = vrot.lane.b32.xlu0 %v11686_v37, %s10286_s22 }
 0x3cd   : > { %v3409_v40 = vpop.permute.xlu1 %3408 }
 0x3ce   : > { %3456 = vst.msk [vmem:[%s10952_s8 + $0x6] sm:$0x1] %vm1956_vm5, %v3409_v40  ;;  %v3411_v33 = vpop.permute.xlu0 %3410 }
 0x3cf   : > { %3457 = vst.msk [vmem:[%s10952_s8 + $0x26] sm:$0x1] %vm1956_vm5, %v3411_v33  ;;  %4007 = vrot.lane.b32.xlu1 %v11695_v38, %s10286_s22 }
 0x3d0   : > { %4009 = vrot.lane.b32.xlu0 %v11701_v10, %s10286_s22 }
 0x3d1   : > { %v3413_v15 = vpop.permute.xlu1 %3412 }
 0x3d2   : > { %3458 = vst.msk [vmem:[%s10952_s8 + $0x46] sm:$0x1] %vm1956_vm5, %v3413_v15  ;;  %v3415_v46 = vpop.permute.xlu0 %3414 }
 0x3d3   : > { %3459 = vst.msk [vmem:[%s10952_s8 + $0x66] sm:$0x1] %vm1956_vm5, %v3415_v46  ;;  %4011 = vrot.lane.b32.xlu1 %v11711_v43, %s10286_s22 }
 0x3d4   : > { %4013 = vrot.lane.b32.xlu0 %v11716_v50, %s10286_s22 }
 0x3d5   : > { %v3417_v54 = vpop.permute.xlu1 %3416 }
 0x3d6   : > { %3460 = vst.msk [vmem:[%s10952_s8 + $0x86] sm:$0x1] %vm1956_vm5, %v3417_v54  ;;  %v3419_v63 = vpop.permute.xlu0 %3418 }
 0x3d7   : > { %3461 = vst.msk [vmem:[%s10952_s8 + $0xa6] sm:$0x1] %vm1956_vm5, %v3419_v63  ;;  %4015 = vrot.lane.b32.xlu1 %v11725_v55, %s10286_s22 }
 0x3d8   : > { %4017 = vrot.lane.b32.xlu0 %v11730_v7, %s10286_s22  ;;  %s10299_s22 = smov 9  }
 0x3d9   : > { %v3421_v19 = vpop.permute.xlu1 %3420 }
 0x3da   : > { %3462 = vst.msk [vmem:[%s10952_s8 + $0xc6] sm:$0x1] %vm1956_vm5, %v3421_v19  ;;  %v3423_v56 = vpop.permute.xlu0 %3422 }
 0x3db   : > { %3463 = vst.msk [vmem:[%s10952_s8 + $0xe6] sm:$0x1] %vm1956_vm5, %v3423_v56  ;;  %4217 = vrot.lane.b32.xlu1 %v11616_v49, %s10287_s29 }
 0x3dc   : > { %4219 = vrot.lane.b32.xlu0 %v11621_v53, %s10287_s29 }
 0x3dd   : > { %v3425_v3 = vpop.permute.xlu1 %3424 }
 0x3de   : > { %3464 = vst.msk [vmem:[%s10952_s8 + $0x106] sm:$0x1] %vm1956_vm5, %v3425_v3  ;;  %v3427_v31 = vpop.permute.xlu0 %3426 }
 0x3df   : > { %3465 = vst.msk [vmem:[%s10952_s8 + $0x126] sm:$0x1] %vm1956_vm5, %v3427_v31  ;;  %4221 = vrot.lane.b32.xlu1 %v11630_v34, %s10287_s29  ;;  %v1730_v31 = vmul.f32 %v10897_v42, %v10921_v60 }
 0x3e0   : > { %4223 = vrot.lane.b32.xlu0 %v11638_v39, %s10287_s29 }
 0x3e1   : > { %v3429_v28 = vpop.permute.xlu1 %3428 }
 0x3e2   : > { %3466 = vst.msk [vmem:[%s10952_s8 + $0x146] sm:$0x1] %vm1956_vm5, %v3429_v28  ;;  %v3431_v20 = vpop.permute.xlu0 %3430 }
 0x3e3   : > { %3467 = vst.msk [vmem:[%s10952_s8 + $0x166] sm:$0x1] %vm1956_vm5, %v3431_v20  ;;  %4225 = vrot.lane.b32.xlu1 %v11648_v41, %s10287_s29 }
 0x3e4   : > { %4227 = vrot.lane.b32.xlu0 %v11655_v0, %s10287_s29 }
 0x3e5   : > { %v3433_v18 = vpop.permute.xlu1 %3432 }
 0x3e6   : > { %3468 = vst.msk [vmem:[%s10952_s8 + $0x186] sm:$0x1] %vm1956_vm5, %v3433_v18  ;;  %v3435_v52 = vpop.permute.xlu0 %3434 }
 0x3e7   : > { %3469 = vst.msk [vmem:[%s10952_s8 + $0x1a6] sm:$0x1] %vm1956_vm5, %v3435_v52  ;;  %4229 = vrot.lane.b32.xlu1 %v11664_v35, %s10287_s29  ;;  %v1760_v52 = vadd.f32 %v10909_v51, %v1730_v31 }
 0x3e8   : > { %4231 = vrot.lane.b32.xlu0 %v11670_v27, %s10287_s29 }
 0x3e9   : > { %v3437_v58 = vpop.permute.xlu1 %3436  ;;  %vm1778_vm9 = vcmp.gt.f32.partialorder %v1760_v52, 0.0 }
 0x3ea   : > { %3470 = vst.msk [vmem:[%s10952_s8 + $0x1c6] sm:$0x1] %vm1956_vm5, %v3437_v58  ;;  %v3439_v12 = vpop.permute.xlu0 %3438 }
 0x3eb   : > { %3471 = vst.msk [vmem:[%s10952_s8 + $0x1e6] sm:$0x1] %vm1956_vm5, %v3439_v12  ;;  %4233 = vrot.lane.b32.xlu1 %v11681_v30, %s10287_s29 }
 0x3ec   : > { %4235 = vrot.lane.b32.xlu0 %v11686_v37, %s10287_s29 }
 0x3ed   : > { %v3709_v59 = vpop.permute.xlu1 %3708 }
 0x3ee   : > { %v3711_v24 = vpop.permute.xlu0 %3710 }
 0x3ef   : > { %v3773_v32 = vsel %vm3772_vm7, %v3709_v59, %v3711_v24  ;;  %4237 = vrot.lane.b32.xlu1 %v11695_v38, %s10287_s29  ;;  %v1796_v24 = vmul.f32 0.2, %v1760_v52 }
 0x3f0   : > { %3805 = vst.msk [vmem:[%s10952_s8 + $0x7] sm:$0x1] %vm1956_vm5, %v3773_v32  ;;  %4239 = vrot.lane.b32.xlu0 %v11701_v10, %s10287_s29 }
 0x3f1   : > { %v3713_v5 = vpop.permute.xlu1 %3712 }
 0x3f2   : > { %v3715_v29 = vpop.permute.xlu0 %3714 }
 0x3f3   : > { %v3774_v16 = vsel %vm3772_vm7, %v3713_v5, %v3715_v29  ;;  %4241 = vrot.lane.b32.xlu1 %v11711_v43, %s10287_s29 }
 0x3f4   : > { %3806 = vst.msk [vmem:[%s10952_s8 + $0x27] sm:$0x1] %vm1956_vm5, %v3774_v16  ;;  %4243 = vrot.lane.b32.xlu0 %v11716_v50, %s10287_s29 }
 0x3f5   : > { %v3717_v62 = vpop.permute.xlu1 %3716 }
 0x3f6   : > { %v3719_v17 = vpop.permute.xlu0 %3718 }
 0x3f7   : > { %v3775_v36 = vsel %vm3772_vm7, %v3717_v62, %v3719_v17  ;;  %4245 = vrot.lane.b32.xlu1 %v11725_v55, %s10287_s29 }
 0x3f8   : > { %3807 = vst.msk [vmem:[%s10952_s8 + $0x47] sm:$0x1] %vm1956_vm5, %v3775_v36  ;;  %4247 = vrot.lane.b32.xlu0 %v11730_v7, %s10287_s29  ;;  %v11876_v36 = vsel %vm1778_vm9, %v1760_v52, %v1796_v24  ;;  %s10300_s29 = smov 102  }
 0x3f9   : > { %v3721_v40 = vpop.permute.xlu1 %3720 }
 0x3fa   : > { %v3723_v2 = vpop.permute.xlu0 %3722 }
 0x3fb   : > { %v3776_v33 = vsel %vm3772_vm7, %v3721_v40, %v3723_v2  ;;  %4447 = vrot.lane.b32.xlu1 %v11616_v49, %s10288_s20 }
 0x3fc   : > { %3808 = vst.msk [vmem:[%s10952_s8 + $0x67] sm:$0x1] %vm1956_vm5, %v3776_v33  ;;  %4449 = vrot.lane.b32.xlu0 %v11621_v53, %s10288_s20  ;;  %v1751_v53 = vadd.f32 %v10904_v48, %v1721_v45  ;;  %v4571_v33 = vrot.slane %v11876_v36, %v10912_v8 }
 0x3fd   : > { %v3725_v9 = vpop.permute.xlu1 %3724 }
 0x3fe   : > { %v3727_v15 = vpop.permute.xlu0 %3726  ;;  %v1787_v63 = vmul.f32 0.2, %v1751_v53  ;;  %vm1769_vm8 = vcmp.gt.f32.partialorder %v1751_v53, 0.0 }
 0x3ff   : > { %v3777_v46 = vsel %vm3772_vm7, %v3725_v9, %v3727_v15  ;;  %4451 = vrot.lane.b32.xlu1 %v11630_v34, %s10288_s20 }
 0x400   : > { %3809 = vst.msk [vmem:[%s10952_s8 + $0x87] sm:$0x1] %vm1956_vm5, %v3777_v46  ;;  %4453 = vrot.lane.b32.xlu0 %v11638_v39, %s10288_s20  ;;  %v11830_v56 = vsel %vm1769_vm8, %v1751_v53, %v1787_v63 }
 0x401   : > { %v3729_v49 = vpop.permute.xlu1 %3728  ;;  %v4522_v3 = vrot.slane %v11830_v56, %v10912_v8 }
 0x402   : > { %v3731_v21 = vpop.permute.xlu0 %3730 }
 0x403   : > { %v3778_v54 = vsel %vm3772_vm7, %v3729_v49, %v3731_v21  ;;  %4455 = vrot.lane.b32.xlu1 %v11648_v41, %s10288_s20  ;;  %v4530_v18 = vcombine.high %v4522_v3, %v4522_v3 }
 0x404   : > { %3810 = vst.msk [vmem:[%s10952_s8 + $0xa7] sm:$0x1] %vm1956_vm5, %v3778_v54  ;;  %4457 = vrot.lane.b32.xlu0 %v11655_v0, %s10288_s20  ;;  %v4564_v54 = vcombine.high %v11876_v36, %v11876_v36 }
 0x405   : > { %v3733_v11 = vpop.permute.xlu1 %3732  ;;  %v4552_v12 = vrot.slane %v4530_v18, %v10912_v8 }
 0x406   : > { %v3735_v34 = vpop.permute.xlu0 %3734 }
 0x407   : > { %v3779_v39 = vsel %vm3772_vm7, %v3733_v11, %v3735_v34  ;;  %4459 = vrot.lane.b32.xlu1 %v11664_v35, %s10288_s20  ;;  %v11874_v16 = vrot.slane %v4552_v12, %v10940_v23  ;;  %v4562_v62 = vcombine.high %v4552_v12, %v4552_v12 }
 0x408   : > { %3811 = vst.msk [vmem:[%s10952_s8 + $0xc7] sm:$0x1] %vm1956_vm5, %v3779_v39  ;;  %4461 = vrot.lane.b32.xlu0 %v11670_v27, %s10288_s20  ;;  %v4579_v39 = vcombine.high %v4571_v33, %v4571_v33 }
 0x409   : > { %v3737_v41 = vpop.permute.xlu1 %3736  ;;  %v11892_v15 = vrot.slane %v4562_v62, %v10940_v23 }
 0x40a   : > { %v3739_v19 = vpop.permute.xlu0 %3738  ;;  %v4601_v31 = vrot.slane %v4579_v39, %v10912_v8 }
 0x40b   : > { %v3780_v0 = vsel %vm3772_vm7, %v3737_v41, %v3739_v19  ;;  %4463 = vrot.lane.b32.xlu1 %v11681_v30, %s10288_s20 }
 0x40c   : > { %3812 = vst.msk [vmem:[%s10952_s8 + $0xe7] sm:$0x1] %vm1956_vm5, %v3780_v0  ;;  %4465 = vrot.lane.b32.xlu0 %v11686_v37, %s10288_s20  ;;  %v4515_v37 = vcombine.high %v11830_v56, %v11830_v56 }
 0x40d   : > { %v3741_v35 = vpop.permute.xlu1 %3740 }
 0x40e   : > { %v3743_v27 = vpop.permute.xlu0 %3742  ;;  %v4529_v59 = vrot.slane %v4515_v37, %v10912_v8 }
 0x40f   : > { %v3781_v28 = vsel %vm3772_vm7, %v3741_v35, %v3743_v27  ;;  %4467 = vrot.lane.b32.xlu1 %v11695_v38, %s10288_s20  ;;  %v4587_v35 = vrot.slane %v4571_v33, %v10912_v8 }
 0x410   : > { %3813 = vst.msk [vmem:[%s10952_s8 + $0x107] sm:$0x1] %vm1956_vm5, %v3781_v28  ;;  %4469 = vrot.lane.b32.xlu0 %v11701_v10, %s10288_s20  ;;  %v4538_v10 = vrot.slane %v4522_v3, %v10912_v8  ;;  %v4531_v17 = vcombine.high %v4529_v59, %v4529_v59  ;;  %v4545_v2 = vrot.slane %v4529_v59, %v10912_v8 }
 0x411   : > { %v3745_v30 = vpop.permute.xlu1 %3744  ;;  %v4578_v28 = vrot.slane %v4564_v54, %v10912_v8  ;;  %v4609_v18 = vcombine.high %v4587_v35, %v4587_v35 }
 0x412   : > { %v3747_v20 = vpop.permute.xlu0 %3746  ;;  %v4560_v5 = vcombine.high %v4538_v10, %v4538_v10  ;;  %v4559_v45 = vrot.slane %v4531_v17, %v10912_v8  ;;  %v11903_v21 = vrot.slane %v4545_v2, %v10940_v23  ;;  %v4561_v53 = vcombine.high %v4545_v2, %v4545_v2 }
 0x413   : > { %v3782_v60 = vsel %vm3772_vm7, %v3745_v30, %v3747_v20  ;;  %4471 = vrot.lane.b32.xlu1 %v11711_v43, %s10288_s20  ;;  %v11934_v20 = vrot.slane %v4587_v35, %v10940_v23  ;;  %v11947_v59 = vrot.slane %v4609_v18, %v10940_v23  ;;  %v4594_v24 = vrot.slane %v4578_v28, %v10912_v8 }
 0x414   : > { %3814 = vst.msk [vmem:[%s10952_s8 + $0x127] sm:$0x1] %vm1956_vm5, %v3782_v60  ;;  %4473 = vrot.lane.b32.xlu0 %v11716_v50, %s10288_s20  ;;  %v11871_v50 = vrot.slane %v4538_v10, %v10940_v23  ;;  %v11886_v40 = vrot.slane %v4560_v5, %v10940_v23  ;;  %v11908_v34 = vrot.slane %v4559_v45, %v10940_v23 }
 0x415   : > { %v3749_v38 = vpop.permute.xlu1 %3748  ;;  %v4563_v63 = vcombine.high %v4559_v45, %v4559_v45  ;;  %v11918_v0 = vrot.slane %v4561_v53, %v10940_v23  ;;  %v11937_v60 = vrot.slane %v4601_v31, %v10940_v23  ;;  %v4580_v10 = vcombine.high %v4578_v28, %v4578_v28 }
 0x416   : > { %v3751_v58 = vpop.permute.xlu0 %3750  ;;  %v11963_v62 = vrot.slane %v4594_v24, %v10940_v23  ;;  %v4610_v17 = vcombine.high %v4594_v24, %v4594_v24 }
 0x417   : > { %v3783_v32 = vsel %vm3772_vm7, %v3749_v38, %v3751_v58  ;;  %4475 = vrot.lane.b32.xlu1 %v11725_v55, %s10288_s20  ;;  %v11922_v27 = vrot.slane %v4563_v63, %v10940_v23  ;;  %v4611_v38 = vcombine.high %v4601_v31, %v4601_v31  ;;  %v4608_v5 = vrot.slane %v4580_v10, %v10912_v8 }
 0x418   : > { %3815 = vst.msk [vmem:[%s10952_s8 + $0x147] sm:$0x1] %vm1956_vm5, %v3783_v32  ;;  %4477 = vrot.lane.b32.xlu0 %v11730_v7, %s10288_s20  ;;  %s10301_s20 = smov 67  }
 0x419   : > { %v3753_v43 = vpop.permute.xlu1 %3752  ;;  %v4612_v2 = vcombine.high %v4608_v5, %v4608_v5 }
 0x41a   : > { %v3755_v29 = vpop.permute.xlu0 %3754 }
 0x41b   : > { %v3784_v55 = vsel %vm3772_vm7, %v3753_v43, %v3755_v29  ;;  %4677 = vrot.lane.b32.xlu1 %v11871_v50, %s10263_s6  ;;  %v11953_v43 = vrot.slane %v4611_v38, %v10940_v23 }
 0x41c   : > { %3816 = vst.msk [vmem:[%s10952_s8 + $0x167] sm:$0x1] %vm1956_vm5, %v3784_v55  ;;  %4679 = vrot.lane.b32.xlu0 %v11874_v16, %s10263_s6 }
 0x41d   : > { %v3757_v7 = vpop.permute.xlu1 %3756 }
 0x41e   : > { %v3759_v9 = vpop.permute.xlu0 %3758 }
 0x41f   : > { %v3785_v46 = vsel %vm3772_vm7, %v3757_v7, %v3759_v9  ;;  %4681 = vrot.lane.b32.xlu1 %v11886_v40, %s10263_s6  ;;  %v11968_v7 = vrot.slane %v4608_v5, %v10940_v23  ;;  %v11977_v9 = vrot.slane %v4610_v17, %v10940_v23 }
 0x420   : > { %3817 = vst.msk [vmem:[%s10952_s8 + $0x187] sm:$0x1] %vm1956_vm5, %v3785_v46  ;;  %4683 = vrot.lane.b32.xlu0 %v11892_v15, %s10263_s6  ;;  %v11982_v46 = vrot.slane %v4612_v2, %v10940_v23 }
 0x421   : > { %v3761_v49 = vpop.permute.xlu1 %3760 }
 0x422   : > { %v3763_v11 = vpop.permute.xlu0 %3762 }
 0x423   : > { %v3786_v41 = vsel %vm3772_vm7, %v3761_v49, %v3763_v11  ;;  %4685 = vrot.lane.b32.xlu1 %v11903_v21, %s10263_s6 }
 0x424   : > { %3818 = vst.msk [vmem:[%s10952_s8 + $0x1a7] sm:$0x1] %vm1956_vm5, %v3786_v41  ;;  %4687 = vrot.lane.b32.xlu0 %v11908_v34, %s10263_s6 }
 0x425   : > { %v3765_v19 = vpop.permute.xlu1 %3764 }
 0x426   : > { %v3767_v3 = vpop.permute.xlu0 %3766 }
 0x427   : > { %v3787_v30 = vsel %vm3772_vm7, %v3765_v19, %v3767_v3  ;;  %4689 = vrot.lane.b32.xlu1 %v11918_v0, %s10263_s6 }
 0x428   : > { %3819 = vst.msk [vmem:[%s10952_s8 + $0x1c7] sm:$0x1] %vm1956_vm5, %v3787_v30  ;;  %4691 = vrot.lane.b32.xlu0 %v11922_v27, %s10263_s6 }
 0x429   : > { %v3769_v37 = vpop.permute.xlu1 %3768 }
 0x42a   : > { %v3771_v52 = vpop.permute.xlu0 %3770 }
 0x42b   : > { %v3788_v58 = vsel %vm3772_vm7, %v3769_v37, %v3771_v52  ;;  %4693 = vrot.lane.b32.xlu1 %v11934_v20, %s10263_s6 }
 0x42c   : > { %3820 = vst.msk [vmem:[%s10952_s8 + $0x1e7] sm:$0x1] %vm1956_vm5, %v3788_v58  ;;  %4695 = vrot.lane.b32.xlu0 %v11937_v60, %s10263_s6 }
 0x42d   : > { %v3988_v12 = vpop.permute.xlu1 %3987 }
 0x42e   : > { %4035 = vst.msk [vmem:[%s10952_s8 + $0x8] sm:$0x1] %vm1956_vm5, %v3988_v12  ;;  %v3990_v32 = vpop.permute.xlu0 %3989  ;;  %v1722_v12 = vmul.f32 %v10899_v14, %v11034_v57 }
 0x42f   : > { %4036 = vst.msk [vmem:[%s10952_s8 + $0x28] sm:$0x1] %vm1956_vm5, %v3990_v32  ;;  %4697 = vrot.lane.b32.xlu1 %v11947_v59, %s10263_s6 }
 0x430   : > { %4699 = vrot.lane.b32.xlu0 %v11953_v43, %s10263_s6 }
 0x431   : > { %v3992_v29 = vpop.permute.xlu1 %3991 }
 0x432   : > { %4037 = vst.msk [vmem:[%s10952_s8 + $0x48] sm:$0x1] %vm1956_vm5, %v3992_v29  ;;  %v3994_v55 = vpop.permute.xlu0 %3993 }
 0x433   : > { %4038 = vst.msk [vmem:[%s10952_s8 + $0x68] sm:$0x1] %vm1956_vm5, %v3994_v55  ;;  %4701 = vrot.lane.b32.xlu1 %v11963_v62, %s10263_s6 }
 0x434   : > { %4703 = vrot.lane.b32.xlu0 %v11968_v7, %s10263_s6 }
 0x435   : > { %v3996_v33 = vpop.permute.xlu1 %3995 }
 0x436   : > { %4039 = vst.msk [vmem:[%s10952_s8 + $0x88] sm:$0x1] %vm1956_vm5, %v3996_v33  ;;  %v3998_v45 = vpop.permute.xlu0 %3997 }
 0x437   : > { %4040 = vst.msk [vmem:[%s10952_s8 + $0xa8] sm:$0x1] %vm1956_vm5, %v3998_v45  ;;  %4705 = vrot.lane.b32.xlu1 %v11977_v9, %s10263_s6 }
 0x438   : > { %4707 = vrot.lane.b32.xlu0 %v11982_v46, %s10263_s6  ;;  %s10289_s6 = smov 115  }
 0x439   : > { %v4000_v49 = vpop.permute.xlu1 %3999 }
 0x43a   : > { %4041 = vst.msk [vmem:[%s10952_s8 + $0xc8] sm:$0x1] %vm1956_vm5, %v4000_v49  ;;  %v4002_v53 = vpop.permute.xlu0 %4001 }
 0x43b   : > { %4042 = vst.msk [vmem:[%s10952_s8 + $0xe8] sm:$0x1] %vm1956_vm5, %v4002_v53  ;;  %4907 = vrot.lane.b32.xlu1 %v11871_v50, %s10267_s10 }
 0x43c   : > { %4909 = vrot.lane.b32.xlu0 %v11874_v16, %s10267_s10 }
 0x43d   : > { %v4004_v54 = vpop.permute.xlu1 %4003 }
 0x43e   : > { %4043 = vst.msk [vmem:[%s10952_s8 + $0x108] sm:$0x1] %vm1956_vm5, %v4004_v54  ;;  %v4006_v11 = vpop.permute.xlu0 %4005 }
 0x43f   : > { %4044 = vst.msk [vmem:[%s10952_s8 + $0x128] sm:$0x1] %vm1956_vm5, %v4006_v11  ;;  %4911 = vrot.lane.b32.xlu1 %v11886_v40, %s10267_s10  ;;  %v1731_v11 = vmul.f32 %v10897_v42, %v11048_v1 }
 0x440   : > { %4913 = vrot.lane.b32.xlu0 %v11892_v15, %s10267_s10 }
 0x441   : > { %v4008_v63 = vpop.permute.xlu1 %4007  ;;  %v1761_v1 = vadd.f32 %v10909_v51, %v1731_v11 }
 0x442   : > { %4045 = vst.msk [vmem:[%s10952_s8 + $0x148] sm:$0x1] %vm1956_vm5, %v4008_v63  ;;  %v4010_v39 = vpop.permute.xlu0 %4009 }
 0x443   : > { %4046 = vst.msk [vmem:[%s10952_s8 + $0x168] sm:$0x1] %vm1956_vm5, %v4010_v39  ;;  %4915 = vrot.lane.b32.xlu1 %v11903_v21, %s10267_s10  ;;  %vm1779_vm11 = vcmp.gt.f32.partialorder %v1761_v1, 0.0 }
 0x444   : > { %4917 = vrot.lane.b32.xlu0 %v11908_v34, %s10267_s10 }
 0x445   : > { %v4012_v41 = vpop.permute.xlu1 %4011 }
 0x446   : > { %4047 = vst.msk [vmem:[%s10952_s8 + $0x188] sm:$0x1] %vm1956_vm5, %v4012_v41  ;;  %v4014_v19 = vpop.permute.xlu0 %4013 }
 0x447   : > { %4048 = vst.msk [vmem:[%s10952_s8 + $0x1a8] sm:$0x1] %vm1956_vm5, %v4014_v19  ;;  %4919 = vrot.lane.b32.xlu1 %v11918_v0, %s10267_s10 }
 0x448   : > { %4921 = vrot.lane.b32.xlu0 %v11922_v27, %s10267_s10 }
 0x449   : > { %v4016_v35 = vpop.permute.xlu1 %4015 }
 0x44a   : > { %4049 = vst.msk [vmem:[%s10952_s8 + $0x1c8] sm:$0x1] %vm1956_vm5, %v4016_v35  ;;  %v4018_v3 = vpop.permute.xlu0 %4017 }
 0x44b   : > { %4050 = vst.msk [vmem:[%s10952_s8 + $0x1e8] sm:$0x1] %vm1956_vm5, %v4018_v3  ;;  %4923 = vrot.lane.b32.xlu1 %v11934_v20, %s10267_s10 }
 0x44c   : > { %4925 = vrot.lane.b32.xlu0 %v11937_v60, %s10267_s10 }
 0x44d   : > { %v4218_v31 = vpop.permute.xlu1 %4217 }
 0x44e   : > { %4265 = vst.msk [vmem:[%s10952_s8 + $0x9] sm:$0x1] %vm1956_vm5, %v4218_v31  ;;  %v4220_v28 = vpop.permute.xlu0 %4219 }
 0x44f   : > { %4266 = vst.msk [vmem:[%s10952_s8 + $0x29] sm:$0x1] %vm1956_vm5, %v4220_v28  ;;  %4927 = vrot.lane.b32.xlu1 %v11947_v59, %s10267_s10 }
 0x450   : > { %4929 = vrot.lane.b32.xlu0 %v11953_v43, %s10267_s10 }
 0x451   : > { %v4222_v30 = vpop.permute.xlu1 %4221 }
 0x452   : > { %4267 = vst.msk [vmem:[%s10952_s8 + $0x49] sm:$0x1] %vm1956_vm5, %v4222_v30  ;;  %v4224_v37 = vpop.permute.xlu0 %4223 }
 0x453   : > { %4268 = vst.msk [vmem:[%s10952_s8 + $0x69] sm:$0x1] %vm1956_vm5, %v4224_v37  ;;  %4931 = vrot.lane.b32.xlu1 %v11963_v62, %s10267_s10 }
 0x454   : > { %4933 = vrot.lane.b32.xlu0 %v11968_v7, %s10267_s10 }
 0x455   : > { %v4226_v18 = vpop.permute.xlu1 %4225 }
 0x456   : > { %4269 = vst.msk [vmem:[%s10952_s8 + $0x89] sm:$0x1] %vm1956_vm5, %v4226_v18  ;;  %v4228_v52 = vpop.permute.xlu0 %4227 }
 0x457   : > { %4270 = vst.msk [vmem:[%s10952_s8 + $0xa9] sm:$0x1] %vm1956_vm5, %v4228_v52  ;;  %4935 = vrot.lane.b32.xlu1 %v11977_v9, %s10267_s10  ;;  %v1797_v52 = vmul.f32 0.2, %v1761_v1 }
 0x458   : > { %4937 = vrot.lane.b32.xlu0 %v11982_v46, %s10267_s10  ;;  %s10290_s10 = smov 80  }
 0x459   : > { %v4230_v38 = vpop.permute.xlu1 %4229 }
 0x45a   : > { %4271 = vst.msk [vmem:[%s10952_s8 + $0xc9] sm:$0x1] %vm1956_vm5, %v4230_v38  ;;  %v4232_v10 = vpop.permute.xlu0 %4231 }
 0x45b   : > { %4272 = vst.msk [vmem:[%s10952_s8 + $0xe9] sm:$0x1] %vm1956_vm5, %v4232_v10  ;;  %5137 = vrot.lane.b32.xlu1 %v11871_v50, %s10271_s14 }
 0x45c   : > { %5139 = vrot.lane.b32.xlu0 %v11874_v16, %s10271_s14  ;;  %v1752_v16 = vadd.f32 %v10904_v48, %v1722_v12 }
 0x45d   : > { %v4234_v58 = vpop.permute.xlu1 %4233 }
 0x45e   : > { %4273 = vst.msk [vmem:[%s10952_s8 + $0x109] sm:$0x1] %vm1956_vm5, %v4234_v58  ;;  %v4236_v24 = vpop.permute.xlu0 %4235  ;;  %vm1770_vm10 = vcmp.gt.f32.partialorder %v1752_v16, 0.0 }
 0x45f   : > { %4274 = vst.msk [vmem:[%s10952_s8 + $0x129] sm:$0x1] %vm1956_vm5, %v4236_v24  ;;  %5141 = vrot.lane.b32.xlu1 %v11886_v40, %s10271_s14  ;;  %v1788_v40 = vmul.f32 0.2, %v1752_v16 }
 0x460   : > { %5143 = vrot.lane.b32.xlu0 %v11892_v15, %s10271_s14 }
 0x461   : > { %v4238_v50 = vpop.permute.xlu1 %4237  ;;  %v12089_v5 = vsel %vm1770_vm10, %v1752_v16, %v1788_v40 }
 0x462   : > { %4275 = vst.msk [vmem:[%s10952_s8 + $0x149] sm:$0x1] %vm1956_vm5, %v4238_v50  ;;  %v4240_v32 = vpop.permute.xlu0 %4239  ;;  %v5210_v54 = vcombine.high %v11830_v56, %v12089_v5  ;;  %v12169_v50 = vsel %vm1779_vm11, %v1761_v1, %v1797_v52 }
 0x463   : > { %4276 = vst.msk [vmem:[%s10952_s8 + $0x169] sm:$0x1] %vm1956_vm5, %v4240_v32  ;;  %5145 = vrot.lane.b32.xlu1 %v11903_v21, %s10271_s14 }
 0x464   : > { %5147 = vrot.lane.b32.xlu0 %v11908_v34, %s10271_s14  ;;  %v5224_v35 = vrot.slane %v5210_v54, %v10912_v8 }
 0x465   : > { %v4242_v57 = vpop.permute.xlu1 %4241 }
 0x466   : > { %4277 = vst.msk [vmem:[%s10952_s8 + $0x189] sm:$0x1] %vm1956_vm5, %v4242_v57  ;;  %v4244_v15 = vpop.permute.xlu0 %4243  ;;  %v5240_v37 = vrot.slane %v5224_v35, %v10912_v8  ;;  %v5226_v18 = vcombine.high %v5224_v35, %v5224_v35 }
 0x467   : > { %4278 = vst.msk [vmem:[%s10952_s8 + $0x1a9] sm:$0x1] %vm1956_vm5, %v4244_v15  ;;  %5149 = vrot.lane.b32.xlu1 %v11918_v0, %s10271_s14 }
 0x468   : > { %5151 = vrot.lane.b32.xlu0 %v11922_v27, %s10271_s14  ;;  %v5209_v27 = vcombine.low %v11830_v56, %v12089_v5  ;;  %v5344_v12 = vrot.slane %v5240_v37, %v10940_v23  ;;  %v5254_v24 = vrot.slane %v5226_v18, %v10912_v8  ;;  %v5348_v32 = vrot.slane %v5240_v37, %v10979_v4 }
 0x469   : > { %v4246_v21 = vpop.permute.xlu1 %4245  ;;  %v5256_v15 = vcombine.high %v5240_v37, %v5240_v37 }
 0x46a   : > { %4279 = vst.msk [vmem:[%s10952_s8 + $0x1c9] sm:$0x1] %vm1956_vm5, %v4246_v21  ;;  %v4248_v34 = vpop.permute.xlu0 %4247  ;;  %v5352_v40 = vrot.slane %v5254_v24, %v10940_v23  ;;  %v5259_v21 = vcombine.low %v11876_v36, %v12169_v50 }
 0x46b   : > { %4280 = vst.msk [vmem:[%s10952_s8 + $0x1e9] sm:$0x1] %vm1956_vm5, %v4248_v34  ;;  %5153 = vrot.lane.b32.xlu1 %v11934_v20, %s10271_s14 }
 0x46c   : > { %5155 = vrot.lane.b32.xlu0 %v11937_v60, %s10271_s14  ;;  %v5217_v60 = vrot.slane %v5209_v27, %v10912_v8 }
 0x46d   : > { %v4448_v0 = vpop.permute.xlu1 %4447 }
 0x46e   : > { %4495 = vst.msk [vmem:[%s10952_s8 + $0xa] sm:$0x1] %vm1956_vm5, %v4448_v0  ;;  %v4450_v29 = vpop.permute.xlu0 %4449  ;;  %v5233_v55 = vrot.slane %v5217_v60, %v10912_v8  ;;  %v5356_v0 = vrot.slane %v5254_v24, %v10979_v4 }
 0x46f   : > { %4496 = vst.msk [vmem:[%s10952_s8 + $0x2a] sm:$0x1] %vm1956_vm5, %v4450_v29  ;;  %5157 = vrot.lane.b32.xlu1 %v11947_v59, %s10271_s14  ;;  %v5360_v29 = vrot.slane %v5256_v15, %v10940_v23 }
 0x470   : > { %5159 = vrot.lane.b32.xlu0 %v11953_v43, %s10271_s14  ;;  %v5225_v43 = vcombine.high %v5217_v60, %v5217_v60  ;;  %v5312_v33 = vrot.slane %v5233_v55, %v10940_v23  ;;  %v5316_v49 = vrot.slane %v5233_v55, %v10979_v4  ;;  %v5255_v53 = vcombine.high %v5233_v55, %v5233_v55 }
 0x471   : > { %v4452_v20 = vpop.permute.xlu1 %4451  ;;  %v5267_v60 = vrot.slane %v5259_v21, %v10912_v8 }
 0x472   : > { %4497 = vst.msk [vmem:[%s10952_s8 + $0x4a] sm:$0x1] %vm1956_vm5, %v4452_v20  ;;  %v4454_v17 = vpop.permute.xlu0 %4453  ;;  %v5328_v19 = vrot.slane %v5255_v53, %v10940_v23  ;;  %v5332_v31 = vrot.slane %v5255_v53, %v10979_v4  ;;  %v5258_v20 = vcombine.high %v5254_v24, %v5254_v24 }
 0x473   : > { %4498 = vst.msk [vmem:[%s10952_s8 + $0x6a] sm:$0x1] %vm1956_vm5, %v4454_v17  ;;  %5161 = vrot.lane.b32.xlu1 %v11963_v62, %s10271_s14 }
 0x474   : > { %5163 = vrot.lane.b32.xlu0 %v11968_v7, %s10271_s14  ;;  %v5247_v7 = vrot.slane %v5225_v43, %v10912_v8  ;;  %v5368_v43 = vrot.slane %v5258_v20, %v10940_v23 }
 0x475   : > { %v4456_v59 = vpop.permute.xlu1 %4455 }
 0x476   : > { %4499 = vst.msk [vmem:[%s10952_s8 + $0x8a] sm:$0x1] %vm1956_vm5, %v4456_v59  ;;  %v4458_v2 = vpop.permute.xlu0 %4457  ;;  %v5324_v39 = vrot.slane %v5247_v7, %v10979_v4  ;;  %v5257_v56 = vcombine.high %v5247_v7, %v5247_v7  ;;  %v5364_v59 = vrot.slane %v5256_v15, %v10979_v4 }
 0x477   : > { %4500 = vst.msk [vmem:[%s10952_s8 + $0xaa] sm:$0x1] %vm1956_vm5, %v4458_v2  ;;  %5165 = vrot.lane.b32.xlu1 %v11977_v9, %s10271_s14  ;;  %v5283_v2 = vrot.slane %v5267_v60, %v10912_v8 }
 0x478   : > { %5167 = vrot.lane.b32.xlu0 %v11982_v46, %s10271_s14  ;;  %v5320_v46 = vrot.slane %v5247_v7, %v10940_v23  ;;  %v5336_v30 = vrot.slane %v5257_v56, %v10940_v23  ;;  %v5340_v10 = vrot.slane %v5257_v56, %v10979_v4  ;;  %v5372_v7 = vrot.slane %v5258_v20, %v10979_v4  ;;  %s10291_s14 = smov 45  }
 0x479   : > { %v4460_v62 = vpop.permute.xlu1 %4459  ;;  %v5380_v53 = vrot.slane %v5283_v2, %v10979_v4 }
 0x47a   : > { %4501 = vst.msk [vmem:[%s10952_s8 + $0xca] sm:$0x1] %vm1956_vm5, %v4460_v62  ;;  %v4462_v45 = vpop.permute.xlu0 %4461  ;;  %v5275_v62 = vcombine.high %v5267_v60, %v5267_v60 }
 0x47b   : > { %4502 = vst.msk [vmem:[%s10952_s8 + $0xea] sm:$0x1] %vm1956_vm5, %v4462_v45  ;;  %5437 = vrot.lane.b32.xlu1 %v5312_v33, %s10275_s27 }
 0x47c   : > { %5439 = vrot.lane.b32.xlu0 %v5316_v49, %s10275_s27  ;;  %v5376_v49 = vrot.slane %v5283_v2, %v10940_v23 }
 0x47d   : > { %v4464_v9 = vpop.permute.xlu1 %4463 }
 0x47e   : > { %4503 = vst.msk [vmem:[%s10952_s8 + $0x10a] sm:$0x1] %vm1956_vm5, %v4464_v9  ;;  %v4466_v63 = vpop.permute.xlu0 %4465  ;;  %v5297_v9 = vrot.slane %v5275_v62, %v10912_v8 }
 0x47f   : > { %4504 = vst.msk [vmem:[%s10952_s8 + $0x12a] sm:$0x1] %vm1956_vm5, %v4466_v63  ;;  %5441 = vrot.lane.b32.xlu1 %v5320_v46, %s10275_s27  ;;  %v5305_v63 = vcombine.high %v5283_v2, %v5283_v2 }
 0x480   : > { %5443 = vrot.lane.b32.xlu0 %v5324_v39, %s10275_s27  ;;  %v5384_v11 = vrot.slane %v5297_v9, %v10940_v23  ;;  %v5260_v39 = vcombine.high %v11876_v36, %v12169_v50  ;;  %v5307_v1 = vcombine.high %v5297_v9, %v5297_v9 }
 0x481   : > { %v4468_v41 = vpop.permute.xlu1 %4467  ;;  %v5392_v35 = vrot.slane %v5305_v63, %v10940_v23 }
 0x482   : > { %4505 = vst.msk [vmem:[%s10952_s8 + $0x14a] sm:$0x1] %vm1956_vm5, %v4468_v41  ;;  %v4470_v3 = vpop.permute.xlu0 %4469 }
 0x483   : > { %4506 = vst.msk [vmem:[%s10952_s8 + $0x16a] sm:$0x1] %vm1956_vm5, %v4470_v3  ;;  %5445 = vrot.lane.b32.xlu1 %v5328_v19, %s10275_s27  ;;  %v5388_v19 = vrot.slane %v5297_v9, %v10979_v4  ;;  %v5274_v3 = vrot.slane %v5260_v39, %v10912_v8 }
 0x484   : > { %5447 = vrot.lane.b32.xlu0 %v5332_v31, %s10275_s27  ;;  %v5396_v31 = vrot.slane %v5305_v63, %v10979_v4 }
 0x485   : > { %v4472_v28 = vpop.permute.xlu1 %4471  ;;  %v5290_v37 = vrot.slane %v5274_v3, %v10912_v8  ;;  %v5276_v18 = vcombine.high %v5274_v3, %v5274_v3  ;;  %v5610_v3 = vrot.slane %v12169_v50, %v10912_v8 }
 0x486   : > { %4507 = vst.msk [vmem:[%s10952_s8 + $0x18a] sm:$0x1] %vm1956_vm5, %v4472_v28  ;;  %v4474_v38 = vpop.permute.xlu0 %4473 }
 0x487   : > { %4508 = vst.msk [vmem:[%s10952_s8 + $0x1aa] sm:$0x1] %vm1956_vm5, %v4474_v38  ;;  %5449 = vrot.lane.b32.xlu1 %v5336_v30, %s10275_s27  ;;  %v5400_v30 = vrot.slane %v5307_v1, %v10940_v23  ;;  %v5404_v38 = vrot.slane %v5307_v1, %v10979_v4 }
 0x488   : > { %5451 = vrot.lane.b32.xlu0 %v5340_v10, %s10275_s27 }
 0x489   : > { %v4476_v58 = vpop.permute.xlu1 %4475 }
 0x48a   : > { %4509 = vst.msk [vmem:[%s10952_s8 + $0x1ca] sm:$0x1] %vm1956_vm5, %v4476_v58  ;;  %v4478_v16 = vpop.permute.xlu0 %4477  ;;  %v5408_v58 = vrot.slane %v5290_v37, %v10940_v23 }
 0x48b   : > { %4510 = vst.msk [vmem:[%s10952_s8 + $0x1ea] sm:$0x1] %vm1956_vm5, %v4478_v16  ;;  %5453 = vrot.lane.b32.xlu1 %v5344_v12, %s10275_s27  ;;  %v5304_v12 = vrot.slane %v5276_v18, %v10912_v8  ;;  %v5412_v16 = vrot.slane %v5290_v37, %v10979_v4 }
 0x48c   : > { %5455 = vrot.lane.b32.xlu0 %v5348_v32, %s10275_s27 }
 0x48d   : > { %v4678_v57 = vpop.permute.xlu1 %4677  ;;  %v5420_v21 = vrot.slane %v5304_v12, %v10979_v4 }
 0x48e   : > { %4725 = vst.msk [vmem:[%s10952_s8 + $0xb] sm:$0x1] %vm1956_vm5, %v4678_v57  ;;  %v4680_v34 = vpop.permute.xlu0 %4679  ;;  %v5416_v57 = vrot.slane %v5304_v12, %v10940_v23 }
 0x48f   : > { %4726 = vst.msk [vmem:[%s10952_s8 + $0x2b] sm:$0x1] %vm1956_vm5, %v4680_v34  ;;  %5457 = vrot.lane.b32.xlu1 %v5352_v40, %s10275_s27  ;;  %v5306_v40 = vcombine.high %v5290_v37, %v5290_v37  ;;  %v5561_v34 = vrot.slane %v12089_v5, %v10912_v8 }
 0x490   : > { %5459 = vrot.lane.b32.xlu0 %v5356_v0, %s10275_s27 }
 0x491   : > { %v4682_v27 = vpop.permute.xlu1 %4681  ;;  %v5428_v60 = vrot.slane %v5306_v40, %v10979_v4  ;;  %v5577_v2 = vrot.slane %v5561_v34, %v10912_v8 }
 0x492   : > { %4727 = vst.msk [vmem:[%s10952_s8 + $0x4b] sm:$0x1] %vm1956_vm5, %v4682_v27  ;;  %v4684_v17 = vpop.permute.xlu0 %4683  ;;  %v5424_v27 = vrot.slane %v5306_v40, %v10940_v23 }
 0x493   : > { %4728 = vst.msk [vmem:[%s10952_s8 + $0x6b] sm:$0x1] %vm1956_vm5, %v4684_v17  ;;  %5461 = vrot.lane.b32.xlu1 %v5360_v29, %s10275_s27  ;;  %v5308_v29 = vcombine.high %v5304_v12, %v5304_v12  ;;  %v5569_v17 = vcombine.high %v5561_v34, %v5561_v34  ;;  %v12284_v9 = vrot.slane %v5577_v2, %v10940_v23 }
 0x494   : > { %5463 = vrot.lane.b32.xlu0 %v5364_v59, %s10275_s27  ;;  %v5554_v59 = vcombine.high %v12089_v5, %v12089_v5  ;;  %v5626_v12 = vrot.slane %v5610_v3, %v10912_v8 }
 0x495   : > { %v4686_v55 = vpop.permute.xlu1 %4685 }
 0x496   : > { %4729 = vst.msk [vmem:[%s10952_s8 + $0x8b] sm:$0x1] %vm1956_vm5, %v4686_v55  ;;  %v4688_v33 = vpop.permute.xlu0 %4687 }
 0x497   : > { %4730 = vst.msk [vmem:[%s10952_s8 + $0xab] sm:$0x1] %vm1956_vm5, %v4688_v33  ;;  %5465 = vrot.lane.b32.xlu1 %v5368_v43, %s10275_s27  ;;  %v5432_v43 = vrot.slane %v5308_v29, %v10940_v23  ;;  %v5436_v33 = vrot.slane %v5308_v29, %v10979_v4 }
 0x498   : > { %5467 = vrot.lane.b32.xlu0 %v5372_v7, %s10275_s27  ;;  %v5591_v7 = vrot.slane %v5569_v17, %v10912_v8 }
 0x499   : > { %v4690_v45 = vpop.permute.xlu1 %4689 }
 0x49a   : > { %4731 = vst.msk [vmem:[%s10952_s8 + $0xcb] sm:$0x1] %vm1956_vm5, %v4690_v45  ;;  %v4692_v46 = vpop.permute.xlu0 %4691  ;;  %v5568_v45 = vrot.slane %v5554_v59, %v10912_v8 }
 0x49b   : > { %4732 = vst.msk [vmem:[%s10952_s8 + $0xeb] sm:$0x1] %vm1956_vm5, %v4692_v46  ;;  %5469 = vrot.lane.b32.xlu1 %v5376_v49, %s10275_s27  ;;  %v5599_v46 = vcombine.high %v5577_v2, %v5577_v2 }
 0x49c   : > { %5471 = vrot.lane.b32.xlu0 %v5380_v53, %s10275_s27  ;;  %v5570_v63 = vcombine.high %v5568_v45, %v5568_v45 }
 0x49d   : > { %v4694_v54 = vpop.permute.xlu1 %4693 }
 0x49e   : > { %4733 = vst.msk [vmem:[%s10952_s8 + $0x10b] sm:$0x1] %vm1956_vm5, %v4694_v54  ;;  %v4696_v41 = vpop.permute.xlu0 %4695  ;;  %v12289_v54 = vrot.slane %v5591_v7, %v10940_v23  ;;  %v5598_v1 = vrot.slane %v5570_v63, %v10912_v8 }
 0x49f   : > { %4734 = vst.msk [vmem:[%s10952_s8 + $0x12b] sm:$0x1] %vm1956_vm5, %v4696_v41  ;;  %5473 = vrot.lane.b32.xlu1 %v5384_v11, %s10275_s27  ;;  %v5601_v11 = vcombine.high %v5591_v7, %v5591_v7  ;;  %v12298_v41 = vrot.slane %v5599_v46, %v10940_v23 }
 0x4a0   : > { %5475 = vrot.lane.b32.xlu0 %v5388_v19, %s10275_s27  ;;  %v5584_v19 = vrot.slane %v5568_v45, %v10912_v8  ;;  %v12321_v37 = vrot.slane %v5598_v1, %v10940_v23  ;;  %v5602_v18 = vcombine.high %v5598_v1, %v5598_v1 }
 0x4a1   : > { %v4698_v56 = vpop.permute.xlu1 %4697 }
 0x4a2   : > { %4735 = vst.msk [vmem:[%s10952_s8 + $0x14b] sm:$0x1] %vm1956_vm5, %v4698_v56  ;;  %v4700_v36 = vpop.permute.xlu0 %4699 }
 0x4a3   : > { %4736 = vst.msk [vmem:[%s10952_s8 + $0x16b] sm:$0x1] %vm1956_vm5, %v4700_v36  ;;  %5477 = vrot.lane.b32.xlu1 %v5392_v35, %s10275_s27  ;;  %v12304_v35 = vrot.slane %v5601_v11, %v10940_v23 }
 0x4a4   : > { %5479 = vrot.lane.b32.xlu0 %v5396_v31, %s10275_s27  ;;  %v12316_v31 = vrot.slane %v5584_v19, %v10940_v23 }
 0x4a5   : > { %v4702_v28 = vpop.permute.xlu1 %4701 }
 0x4a6   : > { %4737 = vst.msk [vmem:[%s10952_s8 + $0x18b] sm:$0x1] %vm1956_vm5, %v4702_v28  ;;  %v4704_v52 = vpop.permute.xlu0 %4703  ;;  %v5600_v28 = vcombine.high %v5584_v19, %v5584_v19 }
 0x4a7   : > { %4738 = vst.msk [vmem:[%s10952_s8 + $0x1ab] sm:$0x1] %vm1956_vm5, %v4704_v52  ;;  %5481 = vrot.lane.b32.xlu1 %v5400_v30, %s10275_s27  ;;  %v5618_v52 = vcombine.high %v5610_v3, %v5610_v3 }
 0x4a8   : > { %5483 = vrot.lane.b32.xlu0 %v5404_v38, %s10275_s27  ;;  %v5603_v38 = vcombine.high %v12169_v50, %v12169_v50 }
 0x4a9   : > { %v4706_v10 = vpop.permute.xlu1 %4705 }
 0x4aa   : > { %4739 = vst.msk [vmem:[%s10952_s8 + $0x1cb] sm:$0x1] %vm1956_vm5, %v4706_v10  ;;  %v4708_v24 = vpop.permute.xlu0 %4707 }
 0x4ab   : > { %4740 = vst.msk [vmem:[%s10952_s8 + $0x1eb] sm:$0x1] %vm1956_vm5, %v4708_v24  ;;  %5485 = vrot.lane.b32.xlu1 %v5408_v58, %s10275_s27  ;;  %v12332_v58 = vrot.slane %v5600_v28, %v10940_v23 }
 0x4ac   : > { %5487 = vrot.lane.b32.xlu0 %v5412_v16, %s10275_s27  ;;  %v12338_v16 = vrot.slane %v5602_v18, %v10940_v23 }
 0x4ad   : > { %v4908_v32 = vpop.permute.xlu1 %4907 }
 0x4ae   : > { %4955 = vst.msk [vmem:[%s10952_s8 + $0xc] sm:$0x1] %vm1956_vm5, %v4908_v32  ;;  %v4910_v15 = vpop.permute.xlu0 %4909  ;;  %v5640_v32 = vrot.slane %v5618_v52, %v10912_v8 }
 0x4af   : > { %4956 = vst.msk [vmem:[%s10952_s8 + $0x2c] sm:$0x1] %vm1956_vm5, %v4910_v15  ;;  %5489 = vrot.lane.b32.xlu1 %v5416_v57, %s10275_s27  ;;  %v5617_v57 = vrot.slane %v5603_v38, %v10912_v8  ;;  %v12349_v15 = vrot.slane %v5626_v12, %v10940_v23 }
 0x4b0   : > { %5491 = vrot.lane.b32.xlu0 %v5420_v21, %s10275_s27  ;;  %v5648_v21 = vcombine.high %v5626_v12, %v5626_v12 }
 0x4b1   : > { %v4912_v0 = vpop.permute.xlu1 %4911  ;;  %v5619_v29 = vcombine.high %v5617_v57, %v5617_v57  ;;  %v5633_v17 = vrot.slane %v5617_v57, %v10912_v8 }
 0x4b2   : > { %4957 = vst.msk [vmem:[%s10952_s8 + $0x4c] sm:$0x1] %vm1956_vm5, %v4912_v0  ;;  %v4914_v20 = vpop.permute.xlu0 %4913  ;;  %v12354_v0 = vrot.slane %v5640_v32, %v10940_v23 }
 0x4b3   : > { %4958 = vst.msk [vmem:[%s10952_s8 + $0x6c] sm:$0x1] %vm1956_vm5, %v4914_v20  ;;  %5493 = vrot.lane.b32.xlu1 %v5424_v27, %s10275_s27  ;;  %v5650_v27 = vcombine.high %v5640_v32, %v5640_v32 }
 0x4b4   : > { %5495 = vrot.lane.b32.xlu0 %v5428_v60, %s10275_s27  ;;  %v12363_v60 = vrot.slane %v5648_v21, %v10940_v23 }
 0x4b5   : > { %v4916_v55 = vpop.permute.xlu1 %4915 }
 0x4b6   : > { %4959 = vst.msk [vmem:[%s10952_s8 + $0x8c] sm:$0x1] %vm1956_vm5, %v4916_v55  ;;  %v4918_v62 = vpop.permute.xlu0 %4917  ;;  %v12369_v55 = vrot.slane %v5650_v27, %v10940_v23 }
 0x4b7   : > { %4960 = vst.msk [vmem:[%s10952_s8 + $0xac] sm:$0x1] %vm1956_vm5, %v4918_v62  ;;  %5497 = vrot.lane.b32.xlu1 %v5432_v43, %s10275_s27  ;;  %v5647_v43 = vrot.slane %v5619_v29, %v10912_v8  ;;  %v12379_v62 = vrot.slane %v5633_v17, %v10940_v23 }
 0x4b8   : > { %5499 = vrot.lane.b32.xlu0 %v5436_v33, %s10275_s27  ;;  %v5649_v33 = vcombine.high %v5633_v17, %v5633_v17  ;;  %s10292_s27 = smov 10  }
 0x4b9   : > { %v4920_v49 = vpop.permute.xlu1 %4919  ;;  %v12384_v45 = vrot.slane %v5647_v43, %v10940_v23 }
 0x4ba   : > { %4961 = vst.msk [vmem:[%s10952_s8 + $0xcc] sm:$0x1] %vm1956_vm5, %v4920_v49  ;;  %v4922_v53 = vpop.permute.xlu0 %4921  ;;  %v5651_v49 = vcombine.high %v5647_v43, %v5647_v43 }
 0x4bb   : > { %4962 = vst.msk [vmem:[%s10952_s8 + $0xec] sm:$0x1] %vm1956_vm5, %v4922_v53  ;;  %5716 = vrot.lane.b32.xlu1 %v12284_v9, %s10289_s6  ;;  %v12393_v53 = vrot.slane %v5649_v33, %v10940_v23 }
 0x4bc   : > { %5718 = vrot.lane.b32.xlu0 %v12289_v54, %s10289_s6  ;;  %v12398_v63 = vrot.slane %v5651_v49, %v10940_v23 }
 0x4bd   : > { %v4924_v39 = vpop.permute.xlu1 %4923 }
 0x4be   : > { %4963 = vst.msk [vmem:[%s10952_s8 + $0x10c] sm:$0x1] %vm1956_vm5, %v4924_v39  ;;  %v4926_v56 = vpop.permute.xlu0 %4925 }
 0x4bf   : > { %4964 = vst.msk [vmem:[%s10952_s8 + $0x12c] sm:$0x1] %vm1956_vm5, %v4926_v56  ;;  %5720 = vrot.lane.b32.xlu1 %v12298_v41, %s10289_s6 }
 0x4c0   : > { %5722 = vrot.lane.b32.xlu0 %v12304_v35, %s10289_s6 }
 0x4c1   : > { %v4928_v36 = vpop.permute.xlu1 %4927 }
 0x4c2   : > { %4965 = vst.msk [vmem:[%s10952_s8 + $0x14c] sm:$0x1] %vm1956_vm5, %v4928_v36  ;;  %v4930_v30 = vpop.permute.xlu0 %4929 }
 0x4c3   : > { %4966 = vst.msk [vmem:[%s10952_s8 + $0x16c] sm:$0x1] %vm1956_vm5, %v4930_v30  ;;  %5724 = vrot.lane.b32.xlu1 %v12316_v31, %s10289_s6 }
 0x4c4   : > { %5726 = vrot.lane.b32.xlu0 %v12321_v37, %s10289_s6 }
 0x4c5   : > { %v4932_v10 = vpop.permute.xlu1 %4931 }
 0x4c6   : > { %4967 = vst.msk [vmem:[%s10952_s8 + $0x18c] sm:$0x1] %vm1956_vm5, %v4932_v10  ;;  %v4934_v24 = vpop.permute.xlu0 %4933 }
 0x4c7   : > { %4968 = vst.msk [vmem:[%s10952_s8 + $0x1ac] sm:$0x1] %vm1956_vm5, %v4934_v24  ;;  %5728 = vrot.lane.b32.xlu1 %v12332_v58, %s10289_s6 }
 0x4c8   : > { %5730 = vrot.lane.b32.xlu0 %v12338_v16, %s10289_s6 }
 0x4c9   : > { %v4936_v40 = vpop.permute.xlu1 %4935 }
 0x4ca   : > { %4969 = vst.msk [vmem:[%s10952_s8 + $0x1cc] sm:$0x1] %vm1956_vm5, %v4936_v40  ;;  %v4938_v34 = vpop.permute.xlu0 %4937 }
 0x4cb   : > { %4970 = vst.msk [vmem:[%s10952_s8 + $0x1ec] sm:$0x1] %vm1956_vm5, %v4938_v34  ;;  %5732 = vrot.lane.b32.xlu1 %v12349_v15, %s10289_s6 }
 0x4cc   : > { %5734 = vrot.lane.b32.xlu0 %v12354_v0, %s10289_s6 }
 0x4cd   : > { %v5138_v20 = vpop.permute.xlu1 %5137 }
 0x4ce   : > { %5185 = vst.msk [vmem:[%s10952_s8 + $0xd] sm:$0x1] %vm1956_vm5, %v5138_v20  ;;  %v5140_v59 = vpop.permute.xlu0 %5139 }
 0x4cf   : > { %5186 = vst.msk [vmem:[%s10952_s8 + $0x2d] sm:$0x1] %vm1956_vm5, %v5140_v59  ;;  %5736 = vrot.lane.b32.xlu1 %v12363_v60, %s10289_s6  ;;  %v1723_v59 = vmul.f32 %v10899_v14, %v11039_v61 }
 0x4d0   : > { %5738 = vrot.lane.b32.xlu0 %v12369_v55, %s10289_s6 }
 0x4d1   : > { %v5142_v2 = vpop.permute.xlu1 %5141  ;;  %v1753_v33 = vadd.f32 %v10904_v48, %v1723_v59 }
 0x4d2   : > { %5187 = vst.msk [vmem:[%s10952_s8 + $0x4d] sm:$0x1] %vm1956_vm5, %v5142_v2  ;;  %v5144_v7 = vpop.permute.xlu0 %5143 }
 0x4d3   : > { %5188 = vst.msk [vmem:[%s10952_s8 + $0x6d] sm:$0x1] %vm1956_vm5, %v5144_v7  ;;  %5740 = vrot.lane.b32.xlu1 %v12379_v62, %s10289_s6  ;;  %vm1771_vm14 = vcmp.gt.f32.partialorder %v1753_v33, 0.0 }
 0x4d4   : > { %5742 = vrot.lane.b32.xlu0 %v12384_v45, %s10289_s6 }
 0x4d5   : > { %v5146_v46 = vpop.permute.xlu1 %5145 }
 0x4d6   : > { %5189 = vst.msk [vmem:[%s10952_s8 + $0x8d] sm:$0x1] %vm1956_vm5, %v5146_v46  ;;  %v5148_v11 = vpop.permute.xlu0 %5147 }
 0x4d7   : > { %5190 = vst.msk [vmem:[%s10952_s8 + $0xad] sm:$0x1] %vm1956_vm5, %v5148_v11  ;;  %5744 = vrot.lane.b32.xlu1 %v12393_v53, %s10289_s6 }
 0x4d8   : > { %5746 = vrot.lane.b32.xlu0 %v12398_v63, %s10289_s6  ;;  %s10064_s6 = sshll.u32 %s10351_s19, 13  ;;  %s14029_s19 = scalar_lea.sflag [#allocation5], %s188_s30 }
 0x4d9   : > { %v5150_v39 = vpop.permute.xlu1 %5149 }
 0x4da   : > { %5191 = vst.msk [vmem:[%s10952_s8 + $0xcd] sm:$0x1] %vm1956_vm5, %v5150_v39  ;;  %v5152_v19 = vpop.permute.xlu0 %5151 }
 0x4db   : > { %5192 = vst.msk [vmem:[%s10952_s8 + $0xed] sm:$0x1] %vm1956_vm5, %v5152_v19  ;;  %5946 = vrot.lane.b32.xlu1 %v12284_v9, %s10290_s10 }
 0x4dc   : > { %5948 = vrot.lane.b32.xlu0 %v12289_v54, %s10290_s10 }
 0x4dd   : > { %v5154_v56 = vpop.permute.xlu1 %5153 }
 0x4de   : > { %5193 = vst.msk [vmem:[%s10952_s8 + $0x10d] sm:$0x1] %vm1956_vm5, %v5154_v56  ;;  %v5156_v1 = vpop.permute.xlu0 %5155 }
 0x4df   : > { %5194 = vst.msk [vmem:[%s10952_s8 + $0x12d] sm:$0x1] %vm1956_vm5, %v5156_v1  ;;  %5950 = vrot.lane.b32.xlu1 %v12298_v41, %s10290_s10 }
 0x4e0   : > { %5952 = vrot.lane.b32.xlu0 %v12304_v35, %s10290_s10 }
 0x4e1   : > { %v5158_v3 = vpop.permute.xlu1 %5157 }
 0x4e2   : > { %5195 = vst.msk [vmem:[%s10952_s8 + $0x14d] sm:$0x1] %vm1956_vm5, %v5158_v3  ;;  %v5160_v36 = vpop.permute.xlu0 %5159 }
 0x4e3   : > { %5196 = vst.msk [vmem:[%s10952_s8 + $0x16d] sm:$0x1] %vm1956_vm5, %v5160_v36  ;;  %5954 = vrot.lane.b32.xlu1 %v12316_v31, %s10290_s10 }
 0x4e4   : > { %5956 = vrot.lane.b32.xlu0 %v12321_v37, %s10290_s10 }
 0x4e5   : > { %v5162_v28 = vpop.permute.xlu1 %5161 }
 0x4e6   : > { %5197 = vst.msk [vmem:[%s10952_s8 + $0x18d] sm:$0x1] %vm1956_vm5, %v5162_v28  ;;  %v5164_v30 = vpop.permute.xlu0 %5163 }
 0x4e7   : > { %5198 = vst.msk [vmem:[%s10952_s8 + $0x1ad] sm:$0x1] %vm1956_vm5, %v5164_v30  ;;  %5958 = vrot.lane.b32.xlu1 %v12332_v58, %s10290_s10 }
 0x4e8   : > { %5960 = vrot.lane.b32.xlu0 %v12338_v16, %s10290_s10 }
 0x4e9   : > { %v5166_v18 = vpop.permute.xlu1 %5165 }
 0x4ea   : > { %5199 = vst.msk [vmem:[%s10952_s8 + $0x1cd] sm:$0x1] %vm1956_vm5, %v5166_v18  ;;  %v5168_v52 = vpop.permute.xlu0 %5167 }
 0x4eb   : > { %5200 = vst.msk [vmem:[%s10952_s8 + $0x1ed] sm:$0x1] %vm1956_vm5, %v5168_v52  ;;  %5962 = vrot.lane.b32.xlu1 %v12349_v15, %s10290_s10 }
 0x4ec   : > { %5964 = vrot.lane.b32.xlu0 %v12354_v0, %s10290_s10 }
 0x4ed   : > { %v5438_v38 = vpop.permute.xlu1 %5437 }
 0x4ee   : > { %v5440_v10 = vpop.permute.xlu0 %5439 }
 0x4ef   : > { %v5502_v12 = vsel %vm1229_vm12, %v5438_v38, %v5440_v10  ;;  %5966 = vrot.lane.b32.xlu1 %v12363_v60, %s10290_s10 }
 0x4f0   : > { %5534 = vst.msk [vmem:[%s10952_s8 + $0xe] sm:$0x1] %vm1956_vm5, %v5502_v12  ;;  %5968 = vrot.lane.b32.xlu0 %v12369_v55, %s10290_s10 }
 0x4f1   : > { %v5442_v24 = vpop.permute.xlu1 %5441 }
 0x4f2   : > { %v5444_v32 = vpop.permute.xlu0 %5443 }
 0x4f3   : > { %v5503_v57 = vsel %vm1229_vm12, %v5442_v24, %v5444_v32  ;;  %5970 = vrot.lane.b32.xlu1 %v12379_v62, %s10290_s10  ;;  %v1732_v24 = vmul.f32 %v10897_v42, %v11054_v6 }
 0x4f4   : > { %5535 = vst.msk [vmem:[%s10952_s8 + $0x2e] sm:$0x1] %vm1956_vm5, %v5503_v57  ;;  %5972 = vrot.lane.b32.xlu0 %v12384_v45, %s10290_s10 }
 0x4f5   : > { %v5446_v40 = vpop.permute.xlu1 %5445  ;;  %v1762_v6 = vadd.f32 %v10909_v51, %v1732_v24 }
 0x4f6   : > { %v5448_v21 = vpop.permute.xlu0 %5447 }
 0x4f7   : > { %v5504_v34 = vsel %vm1229_vm12, %v5446_v40, %v5448_v21  ;;  %5974 = vrot.lane.b32.xlu1 %v12393_v53, %s10290_s10  ;;  %vm1780_vm15 = vcmp.gt.f32.partialorder %v1762_v6, 0.0 }
 0x4f8   : > { %5536 = vst.msk [vmem:[%s10952_s8 + $0x4e] sm:$0x1] %vm1956_vm5, %v5504_v34  ;;  %5976 = vrot.lane.b32.xlu0 %v12398_v63, %s10290_s10  ;;  %s9831_s10 = sshll.u32 %s10952_s8, 4  ;;  %s14021_s10 = int_to_ptr.vmem [resolvable:$true] %s9831_s10 }
 0x4f9   : > { %v5450_v27 = vpop.permute.xlu1 %5449 }
 0x4fa   : > { %v5452_v29 = vpop.permute.xlu0 %5451 }
 0x4fb   : > { %v5505_v20 = vsel %vm1229_vm12, %v5450_v27, %v5452_v29  ;;  %6176 = vrot.lane.b32.xlu1 %v12284_v9, %s10291_s14 }
 0x4fc   : > { %5537 = vst.msk [vmem:[%s10952_s8 + $0x6e] sm:$0x1] %vm1956_vm5, %v5505_v20  ;;  %6178 = vrot.lane.b32.xlu0 %v12289_v54, %s10291_s14 }
 0x4fd   : > { %v5454_v17 = vpop.permute.xlu1 %5453 }
 0x4fe   : > { %v5456_v43 = vpop.permute.xlu0 %5455 }
 0x4ff   : > { %v5506_v2 = vsel %vm1229_vm12, %v5454_v17, %v5456_v43  ;;  %6180 = vrot.lane.b32.xlu1 %v12298_v41, %s10291_s14  ;;  %v1789_v41 = vmul.f32 0.2, %v1753_v33 }
 0x500   : > { %5538 = vst.msk [vmem:[%s10952_s8 + $0x8e] sm:$0x1] %vm1956_vm5, %v5506_v2  ;;  %6182 = vrot.lane.b32.xlu0 %v12304_v35, %s10291_s14 }
 0x501   : > { %v5458_v9 = vpop.permute.xlu1 %5457  ;;  %v12498_v46 = vsel %vm1771_vm14, %v1753_v33, %v1789_v41  ;;  %v1798_v33 = vmul.f32 0.2, %v1762_v6 }
 0x502   : > { %v5460_v54 = vpop.permute.xlu0 %5459 }
 0x503   : > { %v5507_v7 = vsel %vm1229_vm12, %v5458_v9, %v5460_v54  ;;  %6184 = vrot.lane.b32.xlu1 %v12316_v31, %s10291_s14 }
 0x504   : > { %5539 = vst.msk [vmem:[%s10952_s8 + $0xae] sm:$0x1] %vm1956_vm5, %v5507_v7  ;;  %6186 = vrot.lane.b32.xlu0 %v12321_v37, %s10291_s14 }
 0x505   : > { %v5462_v61 = vpop.permute.xlu1 %5461 }
 0x506   : > { %v5464_v49 = vpop.permute.xlu0 %5463 }
 0x507   : > { %v5508_v35 = vsel %vm1229_vm12, %v5462_v61, %v5464_v49  ;;  %6188 = vrot.lane.b32.xlu1 %v12332_v58, %s10291_s14  ;;  %v6248_v58 = vcombine.low %v12089_v5, %v12498_v46 }
 0x508   : > { %5540 = vst.msk [vmem:[%s10952_s8 + $0xce] sm:$0x1] %vm1956_vm5, %v5508_v35  ;;  %6190 = vrot.lane.b32.xlu0 %v12338_v16, %s10291_s14 }
 0x509   : > { %v5466_v31 = vpop.permute.xlu1 %5465 }
 0x50a   : > { %v5468_v11 = vpop.permute.xlu0 %5467 }
 0x50b   : > { %v5509_v37 = vsel %vm1229_vm12, %v5466_v31, %v5468_v11  ;;  %6192 = vrot.lane.b32.xlu1 %v12349_v15, %s10291_s14  ;;  %v6256_v15 = vrot.slane %v6248_v58, %v10912_v8  ;;  %v12570_v31 = vsel %vm1780_vm15, %v1762_v6, %v1798_v33 }
 0x50c   : > { %5541 = vst.msk [vmem:[%s10952_s8 + $0xee] sm:$0x1] %vm1956_vm5, %v5509_v37  ;;  %6194 = vrot.lane.b32.xlu0 %v12354_v0, %s10291_s14 }
 0x50d   : > { %v5470_v39 = vpop.permute.xlu1 %5469  ;;  %v6272_v3 = vrot.slane %v6256_v15, %v10912_v8  ;;  %v6264_v36 = vcombine.high %v6256_v15, %v6256_v15 }
 0x50e   : > { %v5472_v16 = vpop.permute.xlu0 %5471 }
 0x50f   : > { %v5510_v19 = vsel %vm1229_vm12, %v5470_v39, %v5472_v16  ;;  %6196 = vrot.lane.b32.xlu1 %v12363_v60, %s10291_s14  ;;  %v6351_v30 = vrot.slane %v6272_v3, %v10940_v23  ;;  %v6355_v52 = vrot.slane %v6272_v3, %v10979_v4  ;;  %v6294_v12 = vcombine.high %v6272_v3, %v6272_v3 }
 0x510   : > { %5542 = vst.msk [vmem:[%s10952_s8 + $0x10e] sm:$0x1] %vm1956_vm5, %v5510_v19  ;;  %6198 = vrot.lane.b32.xlu0 %v12369_v55, %s10291_s14  ;;  %v6298_v39 = vcombine.low %v12169_v50, %v12570_v31 }
 0x511   : > { %v5474_v56 = vpop.permute.xlu1 %5473  ;;  %v6367_v34 = vrot.slane %v6294_v12, %v10940_v23  ;;  %v6371_v20 = vrot.slane %v6294_v12, %v10979_v4 }
 0x512   : > { %v5476_v0 = vpop.permute.xlu0 %5475 }
 0x513   : > { %v5511_v1 = vsel %vm1229_vm12, %v5474_v56, %v5476_v0  ;;  %6200 = vrot.lane.b32.xlu1 %v12379_v62, %s10291_s14 }
 0x514   : > { %5543 = vst.msk [vmem:[%s10952_s8 + $0x12e] sm:$0x1] %vm1956_vm5, %v5511_v1  ;;  %6202 = vrot.lane.b32.xlu0 %v12384_v45, %s10291_s14  ;;  %v6286_v45 = vrot.slane %v6264_v36, %v10912_v8  ;;  %v6306_v1 = vrot.slane %v6298_v39, %v10912_v8  ;;  %v6600_v39 = vrot.slane %v12498_v46, %v10912_v8 }
 0x515   : > { %v5478_v60 = vpop.permute.xlu1 %5477 }
 0x516   : > { %v5480_v55 = vpop.permute.xlu0 %5479  ;;  %v6359_v10 = vrot.slane %v6286_v45, %v10940_v23  ;;  %v6363_v57 = vrot.slane %v6286_v45, %v10979_v4  ;;  %v6296_v27 = vcombine.high %v6286_v45, %v6286_v45  ;;  %v6322_v45 = vrot.slane %v6306_v1, %v10912_v8 }
 0x517   : > { %v5512_v28 = vsel %vm1229_vm12, %v5478_v60, %v5480_v55  ;;  %6204 = vrot.lane.b32.xlu1 %v12393_v53, %s10291_s14  ;;  %v6249_v53 = vcombine.high %v12089_v5, %v12498_v46 }
 0x518   : > { %5544 = vst.msk [vmem:[%s10952_s8 + $0x14e] sm:$0x1] %vm1956_vm5, %v5512_v28  ;;  %6206 = vrot.lane.b32.xlu0 %v12398_v63, %s10291_s14  ;;  %v6375_v43 = vrot.slane %v6296_v27, %v10940_v23  ;;  %v6379_v7 = vrot.slane %v6296_v27, %v10979_v4  ;;  %v6419_v24 = vrot.slane %v6322_v45, %v10979_v4 }
 0x519   : > { %v5482_v62 = vpop.permute.xlu1 %5481  ;;  %v6263_v5 = vrot.slane %v6249_v53, %v10912_v8 }
 0x51a   : > { %v5484_v18 = vpop.permute.xlu0 %5483 }
 0x51b   : > { %v5513_v38 = vsel %vm1229_vm12, %v5482_v62, %v5484_v18  ;;  %6476 = vrot.lane.b32.xlu1 %v6351_v30, %s10292_s27  ;;  %v6279_v2 = vrot.slane %v6263_v5, %v10912_v8  ;;  %v6265_v9 = vcombine.high %v6263_v5, %v6263_v5  ;;  %v6314_v18 = vcombine.high %v6306_v1, %v6306_v1 }
 0x51c   : > { %5545 = vst.msk [vmem:[%s10952_s8 + $0x16e] sm:$0x1] %vm1956_vm5, %v5513_v38  ;;  %6478 = vrot.lane.b32.xlu0 %v6355_v52, %s10292_s27  ;;  %v6344_v5 = vcombine.high %v6322_v45, %v6322_v45  ;;  %v6593_v1 = vcombine.high %v12498_v46, %v12498_v46 }
 0x51d   : > { %v5486_v63 = vpop.permute.xlu1 %5485  ;;  %v6383_v49 = vrot.slane %v6279_v2, %v10940_v23  ;;  %v6293_v35 = vrot.slane %v6265_v9, %v10912_v8  ;;  %v6387_v37 = vrot.slane %v6279_v2, %v10979_v4  ;;  %v6295_v15 = vcombine.high %v6279_v2, %v6279_v2 }
 0x51e   : > { %v5488_v32 = vpop.permute.xlu0 %5487  ;;  %v6431_v6 = vrot.slane %v6344_v5, %v10940_v23 }
 0x51f   : > { %v5514_v40 = vsel %vm1229_vm12, %v5486_v63, %v5488_v32  ;;  %6480 = vrot.lane.b32.xlu1 %v6359_v10, %s10292_s27  ;;  %v6391_v19 = vrot.slane %v6293_v35, %v10940_v23  ;;  %v6395_v0 = vrot.slane %v6293_v35, %v10979_v4  ;;  %v6399_v3 = vrot.slane %v6295_v15, %v10940_v23 }
 0x520   : > { %5546 = vst.msk [vmem:[%s10952_s8 + $0x18e] sm:$0x1] %vm1956_vm5, %v5514_v40  ;;  %6482 = vrot.lane.b32.xlu0 %v6363_v57, %s10292_s27  ;;  %v6297_v36 = vcombine.high %v6293_v35, %v6293_v35  ;;  %v6403_v28 = vrot.slane %v6295_v15, %v10979_v4  ;;  %v6415_v63 = vrot.slane %v6322_v45, %v10940_v23 }
 0x521   : > { %v5490_v21 = vpop.permute.xlu1 %5489  ;;  %v6336_v10 = vrot.slane %v6314_v18, %v10912_v8  ;;  %v6299_v32 = vcombine.high %v12169_v50, %v12570_v31  ;;  %v6607_v18 = vrot.slane %v6593_v1, %v10912_v8 }
 0x522   : > { %v5492_v29 = vpop.permute.xlu0 %5491  ;;  %v6407_v30 = vrot.slane %v6297_v36, %v10940_v23  ;;  %v6411_v38 = vrot.slane %v6297_v36, %v10979_v4  ;;  %v6608_v36 = vcombine.high %v6600_v39, %v6600_v39 }
 0x523   : > { %v5515_v17 = vsel %vm1229_vm12, %v5490_v21, %v5492_v29  ;;  %6484 = vrot.lane.b32.xlu1 %v6367_v34, %s10292_s27  ;;  %v6423_v40 = vrot.slane %v6336_v10, %v10940_v23  ;;  %v6427_v34 = vrot.slane %v6336_v10, %v10979_v4  ;;  %v6313_v27 = vrot.slane %v6299_v32, %v10912_v8 }
 0x524   : > { %5547 = vst.msk [vmem:[%s10952_s8 + $0x1ae] sm:$0x1] %vm1956_vm5, %v5515_v17  ;;  %6486 = vrot.lane.b32.xlu0 %v6371_v20, %s10292_s27  ;;  %v6346_v29 = vcombine.high %v6336_v10, %v6336_v10  ;;  %v6435_v17 = vrot.slane %v6344_v5, %v10979_v4  ;;  %v6630_v45 = vrot.slane %v6608_v36, %v10912_v8 }
 0x525   : > { %v5494_v59 = vpop.permute.xlu1 %5493  ;;  %v6329_v2 = vrot.slane %v6313_v27, %v10912_v8  ;;  %v6315_v9 = vcombine.high %v6313_v27, %v6313_v27  ;;  %v6649_v5 = vrot.slane %v12570_v31, %v10912_v8 }
 0x526   : > { %v5496_v54 = vpop.permute.xlu0 %5495  ;;  %v12689_v10 = vrot.slane %v6630_v45, %v10940_v23 }
 0x527   : > { %v5516_v61 = vsel %vm1229_vm12, %v5494_v59, %v5496_v54  ;;  %6488 = vrot.lane.b32.xlu1 %v6375_v43, %s10292_s27  ;;  %v6439_v43 = vrot.slane %v6346_v29, %v10940_v23  ;;  %v6443_v54 = vrot.slane %v6346_v29, %v10979_v4  ;;  %v6451_v35 = vrot.slane %v6329_v2, %v10979_v4 }
 0x528   : > { %5548 = vst.msk [vmem:[%s10952_s8 + $0x1ce] sm:$0x1] %vm1956_vm5, %v5516_v61  ;;  %6490 = vrot.lane.b32.xlu0 %v6379_v7, %s10292_s27  ;;  %v6447_v61 = vrot.slane %v6329_v2, %v10940_v23 }
 0x529   : > { %v5498_v41 = vpop.permute.xlu1 %5497 }
 0x52a   : > { %v5500_v11 = vpop.permute.xlu0 %5499 }
 0x52b   : > { %v5517_v58 = vsel %vm1229_vm12, %v5498_v41, %v5500_v11  ;;  %6492 = vrot.lane.b32.xlu1 %v6383_v49, %s10292_s27  ;;  %v6343_v41 = vrot.slane %v6315_v9, %v10912_v8  ;;  %vm6540_vm12 = vcmask 80896  }
 0x52c   : > { %5549 = vst.msk [vmem:[%s10952_s8 + $0x1ee] sm:$0x1] %vm1956_vm5, %v5517_v58  ;;  %6494 = vrot.lane.b32.xlu0 %v6387_v37, %s10292_s27  ;;  %v6345_v58 = vcombine.high %v6329_v2, %v6329_v2  ;;  %v6657_v2 = vcombine.high %v6649_v5, %v6649_v5 }
 0x52d   : > { %v5717_v16 = vpop.permute.xlu1 %5716  ;;  %v6455_v37 = vrot.slane %v6343_v41, %v10940_v23 }
 0x52e   : > { %5764 = vst.msk [vmem:[%s10952_s8 + $0xf] sm:$0x1] %vm1956_vm5, %v5717_v16  ;;  %v5719_v56 = vpop.permute.xlu0 %5718 }
 0x52f   : > { %5765 = vst.msk [vmem:[%s10952_s8 + $0x2f] sm:$0x1] %vm1956_vm5, %v5719_v56  ;;  %6496 = vrot.lane.b32.xlu1 %v6391_v19, %s10292_s27  ;;  %v6459_v19 = vrot.slane %v6343_v41, %v10979_v4  ;;  %v6463_v56 = vrot.slane %v6345_v58, %v10940_v23 }
 0x530   : > { %6498 = vrot.lane.b32.xlu0 %v6395_v0, %s10292_s27  ;;  %v6347_v0 = vcombine.high %v6343_v41, %v6343_v41 }
 0x531   : > { %v5721_v60 = vpop.permute.xlu1 %5720 }
 0x532   : > { %5766 = vst.msk [vmem:[%s10952_s8 + $0x4f] sm:$0x1] %vm1956_vm5, %v5721_v60  ;;  %v5723_v55 = vpop.permute.xlu0 %5722 }
 0x533   : > { %5767 = vst.msk [vmem:[%s10952_s8 + $0x6f] sm:$0x1] %vm1956_vm5, %v5723_v55  ;;  %6500 = vrot.lane.b32.xlu1 %v6399_v3, %s10292_s27  ;;  %v6467_v3 = vrot.slane %v6345_v58, %v10979_v4 }
 0x534   : > { %6502 = vrot.lane.b32.xlu0 %v6403_v28, %s10292_s27  ;;  %v6471_v28 = vrot.slane %v6347_v0, %v10940_v23 }
 0x535   : > { %v5725_v62 = vpop.permute.xlu1 %5724 }
 0x536   : > { %5768 = vst.msk [vmem:[%s10952_s8 + $0x8f] sm:$0x1] %vm1956_vm5, %v5725_v62  ;;  %v5727_v52 = vpop.permute.xlu0 %5726  ;;  %v6616_v62 = vrot.slane %v6600_v39, %v10912_v8 }
 0x537   : > { %5769 = vst.msk [vmem:[%s10952_s8 + $0xaf] sm:$0x1] %vm1956_vm5, %v5727_v52  ;;  %6504 = vrot.lane.b32.xlu1 %v6407_v30, %s10292_s27  ;;  %v6475_v30 = vrot.slane %v6347_v0, %v10979_v4 }
 0x538   : > { %6506 = vrot.lane.b32.xlu0 %v6411_v38, %s10292_s27  ;;  %v12684_v38 = vrot.slane %v6616_v62, %v10940_v23 }
 0x539   : > { %v5729_v53 = vpop.permute.xlu1 %5728 }
 0x53a   : > { %5770 = vst.msk [vmem:[%s10952_s8 + $0xcf] sm:$0x1] %vm1956_vm5, %v5729_v53  ;;  %v5731_v12 = vpop.permute.xlu0 %5730  ;;  %v6638_v53 = vcombine.high %v6616_v62, %v6616_v62 }
 0x53b   : > { %5771 = vst.msk [vmem:[%s10952_s8 + $0xef] sm:$0x1] %vm1956_vm5, %v5731_v12  ;;  %6508 = vrot.lane.b32.xlu1 %v6415_v63, %s10292_s27  ;;  %v6640_v12 = vcombine.high %v6630_v45, %v6630_v45 }
 0x53c   : > { %6510 = vrot.lane.b32.xlu0 %v6419_v24, %s10292_s27  ;;  %v6609_v24 = vcombine.high %v6607_v18, %v6607_v18 }
 0x53d   : > { %v5733_v57 = vpop.permute.xlu1 %5732 }
 0x53e   : > { %5772 = vst.msk [vmem:[%s10952_s8 + $0x10f] sm:$0x1] %vm1956_vm5, %v5733_v57  ;;  %v5735_v21 = vpop.permute.xlu0 %5734  ;;  %v12698_v57 = vrot.slane %v6638_v53, %v10940_v23  ;;  %v6637_v27 = vrot.slane %v6609_v24, %v10912_v8 }
 0x53f   : > { %5773 = vst.msk [vmem:[%s10952_s8 + $0x12f] sm:$0x1] %vm1956_vm5, %v5735_v21  ;;  %6512 = vrot.lane.b32.xlu1 %v6423_v40, %s10292_s27  ;;  %v6623_v40 = vrot.slane %v6607_v18, %v10912_v8 }
 0x540   : > { %6514 = vrot.lane.b32.xlu0 %v6427_v34, %s10292_s27  ;;  %v12706_v34 = vrot.slane %v6640_v12, %v10940_v23 }
 0x541   : > { %v5737_v50 = vpop.permute.xlu1 %5736  ;;  %v6639_v29 = vcombine.high %v6623_v40, %v6623_v40 }
 0x542   : > { %5774 = vst.msk [vmem:[%s10952_s8 + $0x14f] sm:$0x1] %vm1956_vm5, %v5737_v50  ;;  %v5739_v20 = vpop.permute.xlu0 %5738 }
 0x543   : > { %5775 = vst.msk [vmem:[%s10952_s8 + $0x16f] sm:$0x1] %vm1956_vm5, %v5739_v20  ;;  %6516 = vrot.lane.b32.xlu1 %v6431_v6, %s10292_s27  ;;  %v12716_v6 = vrot.slane %v6623_v40, %v10940_v23  ;;  %v6642_v20 = vcombine.high %v12570_v31, %v12570_v31  ;;  %v12732_v31 = vrot.slane %v6639_v29, %v10940_v23 }
 0x544   : > { %6518 = vrot.lane.b32.xlu0 %v6435_v17, %s10292_s27 }
 0x545   : > { %v5741_v59 = vpop.permute.xlu1 %5740  ;;  %v6656_v41 = vrot.slane %v6642_v20, %v10912_v8 }
 0x546   : > { %5776 = vst.msk [vmem:[%s10952_s8 + $0x18f] sm:$0x1] %vm1956_vm5, %v5741_v59  ;;  %v5743_v33 = vpop.permute.xlu0 %5742  ;;  %v12723_v59 = vrot.slane %v6637_v27, %v10940_v23 }
 0x547   : > { %5777 = vst.msk [vmem:[%s10952_s8 + $0x1af] sm:$0x1] %vm1956_vm5, %v5743_v33  ;;  %6520 = vrot.lane.b32.xlu1 %v6439_v43, %s10292_s27  ;;  %v6641_v43 = vcombine.high %v6637_v27, %v6637_v27  ;;  %v6665_v33 = vrot.slane %v6649_v5, %v10912_v8 }
 0x548   : > { %6522 = vrot.lane.b32.xlu0 %v6443_v54, %s10292_s27 }
 0x549   : > { %v5745_v7 = vpop.permute.xlu1 %5744 }
 0x54a   : > { %5778 = vst.msk [vmem:[%s10952_s8 + $0x1cf] sm:$0x1] %vm1956_vm5, %v5745_v7  ;;  %v5747_v49 = vpop.permute.xlu0 %5746  ;;  %v12738_v7 = vrot.slane %v6641_v43, %v10940_v23 }
 0x54b   : > { %5779 = vst.msk [vmem:[%s10952_s8 + $0x1ef] sm:$0x1] %vm1956_vm5, %v5747_v49  ;;  %6524 = vrot.lane.b32.xlu1 %v6447_v61, %s10292_s27  ;;  %v6679_v61 = vrot.slane %v6657_v2, %v10912_v8 }
 0x54c   : > { %6526 = vrot.lane.b32.xlu0 %v6451_v35, %s10292_s27  ;;  %v12749_v35 = vrot.slane %v6665_v33, %v10940_v23 }
 0x54d   : > { %v5947_v11 = vpop.permute.xlu1 %5946  ;;  %v12754_v58 = vrot.slane %v6679_v61, %v10940_v23  ;;  %v6689_v39 = vcombine.high %v6679_v61, %v6679_v61 }
 0x54e   : > { %5994 = vst.msk [vmem:[%s10952_s8 + $0x10] sm:$0x1] %vm1956_vm5, %v5947_v11  ;;  %v5949_v16 = vpop.permute.xlu0 %5948  ;;  %v6687_v11 = vcombine.high %v6665_v33, %v6665_v33 }
 0x54f   : > { %5995 = vst.msk [vmem:[%s10952_s8 + $0x30] sm:$0x1] %vm1956_vm5, %v5949_v16  ;;  %6528 = vrot.lane.b32.xlu1 %v6455_v37, %s10292_s27  ;;  %v6658_v16 = vcombine.high %v6656_v41, %v6656_v41  ;;  %v12769_v1 = vrot.slane %v6689_v39, %v10940_v23 }
 0x550   : > { %6530 = vrot.lane.b32.xlu0 %v6459_v19, %s10292_s27 }
 0x551   : > { %v5951_v15 = vpop.permute.xlu1 %5950 }
 0x552   : > { %5996 = vst.msk [vmem:[%s10952_s8 + $0x50] sm:$0x1] %vm1956_vm5, %v5951_v15  ;;  %v5953_v60 = vpop.permute.xlu0 %5952  ;;  %v12763_v15 = vrot.slane %v6687_v11, %v10940_v23 }
 0x553   : > { %5997 = vst.msk [vmem:[%s10952_s8 + $0x70] sm:$0x1] %vm1956_vm5, %v5953_v60  ;;  %6532 = vrot.lane.b32.xlu1 %v6463_v56, %s10292_s27  ;;  %v6672_v56 = vrot.slane %v6656_v41, %v10912_v8  ;;  %v6686_v60 = vrot.slane %v6658_v16, %v10912_v8  ;;  %v1724_v16 = vmul.f32 %v10899_v14, %v11060_v13 }
 0x554   : > { %6534 = vrot.lane.b32.xlu0 %v6467_v3, %s10292_s27 }
 0x555   : > { %v5955_v55 = vpop.permute.xlu1 %5954  ;;  %v12779_v36 = vrot.slane %v6672_v56, %v10940_v23  ;;  %v12784_v62 = vrot.slane %v6686_v60, %v10940_v23 }
 0x556   : > { %5998 = vst.msk [vmem:[%s10952_s8 + $0x90] sm:$0x1] %vm1956_vm5, %v5955_v55  ;;  %v5957_v46 = vpop.permute.xlu0 %5956  ;;  %v6688_v55 = vcombine.high %v6672_v56, %v6672_v56 }
 0x557   : > { %5999 = vst.msk [vmem:[%s10952_s8 + $0xb0] sm:$0x1] %vm1956_vm5, %v5957_v46  ;;  %6536 = vrot.lane.b32.xlu1 %v6471_v28, %s10292_s27  ;;  %v6690_v46 = vcombine.high %v6686_v60, %v6686_v60 }
 0x558   : > { %6538 = vrot.lane.b32.xlu0 %v6475_v30, %s10292_s27  ;;  %v12793_v45 = vrot.slane %v6688_v55, %v10940_v23 }
 0x559   : > { %v5959_v52 = vpop.permute.xlu1 %5958 }
 0x55a   : > { %6000 = vst.msk [vmem:[%s10952_s8 + $0xd0] sm:$0x1] %vm1956_vm5, %v5959_v52  ;;  %v5961_v63 = vpop.permute.xlu0 %5960  ;;  %v12798_v52 = vrot.slane %v6690_v46, %v10940_v23  ;;  %v1733_v46 = vmul.f32 %v10897_v42, %v11065_v25 }
 0x55b   : > { %6001 = vst.msk [vmem:[%s10952_s8 + $0xf0] sm:$0x1] %vm1956_vm5, %v5961_v63  ;;  %6755 = vrot.lane.b32.xlu1 %v12684_v38, %s10293_s28 }
 0x55c   : > { %6757 = vrot.lane.b32.xlu0 %v12689_v10, %s10293_s28 }
 0x55d   : > { %v5963_v32 = vpop.permute.xlu1 %5962 }
 0x55e   : > { %6002 = vst.msk [vmem:[%s10952_s8 + $0x110] sm:$0x1] %vm1956_vm5, %v5963_v32  ;;  %v5965_v21 = vpop.permute.xlu0 %5964 }
 0x55f   : > { %6003 = vst.msk [vmem:[%s10952_s8 + $0x130] sm:$0x1] %vm1956_vm5, %v5965_v21  ;;  %6759 = vrot.lane.b32.xlu1 %v12698_v57, %s10293_s28 }
 0x560   : > { %6761 = vrot.lane.b32.xlu0 %v12706_v34, %s10293_s28 }
 0x561   : > { %v5967_v50 = vpop.permute.xlu1 %5966 }
 0x562   : > { %6004 = vst.msk [vmem:[%s10952_s8 + $0x150] sm:$0x1] %vm1956_vm5, %v5967_v50  ;;  %v5969_v17 = vpop.permute.xlu0 %5968 }
 0x563   : > { %6005 = vst.msk [vmem:[%s10952_s8 + $0x170] sm:$0x1] %vm1956_vm5, %v5969_v17  ;;  %6763 = vrot.lane.b32.xlu1 %v12716_v6, %s10293_s28 }
 0x564   : > { %6765 = vrot.lane.b32.xlu0 %v12723_v59, %s10293_s28 }
 0x565   : > { %v5971_v9 = vpop.permute.xlu1 %5970 }
 0x566   : > { %6006 = vst.msk [vmem:[%s10952_s8 + $0x190] sm:$0x1] %vm1956_vm5, %v5971_v9  ;;  %v5973_v54 = vpop.permute.xlu0 %5972 }
 0x567   : > { %6007 = vst.msk [vmem:[%s10952_s8 + $0x1b0] sm:$0x1] %vm1956_vm5, %v5973_v54  ;;  %6767 = vrot.lane.b32.xlu1 %v12732_v31, %s10293_s28 }
 0x568   : > { %6769 = vrot.lane.b32.xlu0 %v12738_v7, %s10293_s28 }
 0x569   : > { %v5975_v49 = vpop.permute.xlu1 %5974 }
 0x56a   : > { %6008 = vst.msk [vmem:[%s10952_s8 + $0x1d0] sm:$0x1] %vm1956_vm5, %v5975_v49  ;;  %v5977_v37 = vpop.permute.xlu0 %5976 }
 0x56b   : > { %6009 = vst.msk [vmem:[%s10952_s8 + $0x1f0] sm:$0x1] %vm1956_vm5, %v5977_v37  ;;  %6771 = vrot.lane.b32.xlu1 %v12749_v35, %s10293_s28 }
 0x56c   : > { %6773 = vrot.lane.b32.xlu0 %v12754_v58, %s10293_s28 }
 0x56d   : > { %v6177_v19 = vpop.permute.xlu1 %6176 }
 0x56e   : > { %6224 = vst.msk [vmem:[%s10952_s8 + $0x11] sm:$0x1] %vm1956_vm5, %v6177_v19  ;;  %v6179_v0 = vpop.permute.xlu0 %6178 }
 0x56f   : > { %6225 = vst.msk [vmem:[%s10952_s8 + $0x31] sm:$0x1] %vm1956_vm5, %v6179_v0  ;;  %6775 = vrot.lane.b32.xlu1 %v12763_v15, %s10293_s28 }
 0x570   : > { %6777 = vrot.lane.b32.xlu0 %v12769_v1, %s10293_s28 }
 0x571   : > { %v6181_v3 = vpop.permute.xlu1 %6180 }
 0x572   : > { %6226 = vst.msk [vmem:[%s10952_s8 + $0x51] sm:$0x1] %vm1956_vm5, %v6181_v3  ;;  %v6183_v28 = vpop.permute.xlu0 %6182 }
 0x573   : > { %6227 = vst.msk [vmem:[%s10952_s8 + $0x71] sm:$0x1] %vm1956_vm5, %v6183_v28  ;;  %6779 = vrot.lane.b32.xlu1 %v12779_v36, %s10293_s28 }
 0x574   : > { %6781 = vrot.lane.b32.xlu0 %v12784_v62, %s10293_s28 }
 0x575   : > { %v6185_v30 = vpop.permute.xlu1 %6184 }
 0x576   : > { %6228 = vst.msk [vmem:[%s10952_s8 + $0x91] sm:$0x1] %vm1956_vm5, %v6185_v30  ;;  %v6187_v18 = vpop.permute.xlu0 %6186 }
 0x577   : > { %6229 = vst.msk [vmem:[%s10952_s8 + $0xb1] sm:$0x1] %vm1956_vm5, %v6187_v18  ;;  %6783 = vrot.lane.b32.xlu1 %v12793_v45, %s10293_s28 }
 0x578   : > { %6785 = vrot.lane.b32.xlu0 %v12798_v52, %s10293_s28  ;;  %s14019_s28 = scalar_lea.hbm %s14074_s4, %s10064_s6 }
 0x579   : > { %v6189_v53 = vpop.permute.xlu1 %6188 }
 0x57a   : > { %6230 = vst.msk [vmem:[%s10952_s8 + $0xd1] sm:$0x1] %vm1956_vm5, %v6189_v53  ;;  %v6191_v63 = vpop.permute.xlu0 %6190 }
 0x57b   : > { %6231 = vst.msk [vmem:[%s10952_s8 + $0xf1] sm:$0x1] %vm1956_vm5, %v6191_v63  ;;  %6985 = vrot.lane.b32.xlu1 %v12684_v38, %s10294_s5  ;;  %v1763_v63 = vadd.f32 %v10909_v51, %v1733_v46 }
 0x57c   : > { %6987 = vrot.lane.b32.xlu0 %v12689_v10, %s10294_s5 }
 0x57d   : > { %v6193_v12 = vpop.permute.xlu1 %6192  ;;  %vm1781_vm1 = vcmp.gt.f32.partialorder %v1763_v63, 0.0 }
 0x57e   : > { %6232 = vst.msk [vmem:[%s10952_s8 + $0x111] sm:$0x1] %vm1956_vm5, %v6193_v12  ;;  %v6195_v24 = vpop.permute.xlu0 %6194 }
 0x57f   : > { %6233 = vst.msk [vmem:[%s10952_s8 + $0x131] sm:$0x1] %vm1956_vm5, %v6195_v24  ;;  %6989 = vrot.lane.b32.xlu1 %v12698_v57, %s10294_s5 }
 0x580   : > { %6991 = vrot.lane.b32.xlu0 %v12706_v34, %s10294_s5 }
 0x581   : > { %v6197_v32 = vpop.permute.xlu1 %6196 }
 0x582   : > { %6234 = vst.msk [vmem:[%s10952_s8 + $0x151] sm:$0x1] %vm1956_vm5, %v6197_v32  ;;  %v6199_v40 = vpop.permute.xlu0 %6198 }
 0x583   : > { %6235 = vst.msk [vmem:[%s10952_s8 + $0x171] sm:$0x1] %vm1956_vm5, %v6199_v40  ;;  %6993 = vrot.lane.b32.xlu1 %v12716_v6, %s10294_s5  ;;  %v1799_v40 = vmul.f32 0.2, %v1763_v63 }
 0x584   : > { %6995 = vrot.lane.b32.xlu0 %v12723_v59, %s10294_s5 }
 0x585   : > { %v6201_v5 = vpop.permute.xlu1 %6200 }
 0x586   : > { %6236 = vst.msk [vmem:[%s10952_s8 + $0x191] sm:$0x1] %vm1956_vm5, %v6201_v5  ;;  %v6203_v21 = vpop.permute.xlu0 %6202 }
 0x587   : > { %6237 = vst.msk [vmem:[%s10952_s8 + $0x1b1] sm:$0x1] %vm1956_vm5, %v6203_v21  ;;  %6997 = vrot.lane.b32.xlu1 %v12732_v31, %s10294_s5 }
 0x588   : > { %6999 = vrot.lane.b32.xlu0 %v12738_v7, %s10294_s5 }
 0x589   : > { %v6205_v27 = vpop.permute.xlu1 %6204 }
 0x58a   : > { %6238 = vst.msk [vmem:[%s10952_s8 + $0x1d1] sm:$0x1] %vm1956_vm5, %v6205_v27  ;;  %v6207_v50 = vpop.permute.xlu0 %6206 }
 0x58b   : > { %6239 = vst.msk [vmem:[%s10952_s8 + $0x1f1] sm:$0x1] %vm1956_vm5, %v6207_v50  ;;  %7001 = vrot.lane.b32.xlu1 %v12749_v35, %s10294_s5 }
 0x58c   : > { %7003 = vrot.lane.b32.xlu0 %v12754_v58, %s10294_s5 }
 0x58d   : > { %v6477_v29 = vpop.permute.xlu1 %6476 }
 0x58e   : > { %v6479_v20 = vpop.permute.xlu0 %6478 }
 0x58f   : > { %v6541_v17 = vsel %vm6540_vm12, %v6477_v29, %v6479_v20  ;;  %7005 = vrot.lane.b32.xlu1 %v12763_v15, %s10294_s5 }
 0x590   : > { %6573 = vst.msk [vmem:[%s10952_s8 + $0x12] sm:$0x1] %vm1956_vm5, %v6541_v17  ;;  %7007 = vrot.lane.b32.xlu0 %v12769_v1, %s10294_s5  ;;  %v12944_v17 = vsel %vm1781_vm1, %v1763_v63, %v1799_v40 }
 0x591   : > { %v6481_v43 = vpop.permute.xlu1 %6480 }
 0x592   : > { %v6483_v2 = vpop.permute.xlu0 %6482 }
 0x593   : > { %v6542_v9 = vsel %vm6540_vm12, %v6481_v43, %v6483_v2  ;;  %7009 = vrot.lane.b32.xlu1 %v12779_v36, %s10294_s5 }
 0x594   : > { %6574 = vst.msk [vmem:[%s10952_s8 + $0x32] sm:$0x1] %vm1956_vm5, %v6542_v9  ;;  %7011 = vrot.lane.b32.xlu0 %v12784_v62, %s10294_s5  ;;  %v7339_v9 = vrot.slane %v12944_v17, %v10912_v8 }
 0x595   : > { %v6485_v33 = vpop.permute.xlu1 %6484 }
 0x596   : > { %v6487_v54 = vpop.permute.xlu0 %6486 }
 0x597   : > { %v6543_v61 = vsel %vm6540_vm12, %v6485_v33, %v6487_v54  ;;  %7013 = vrot.lane.b32.xlu1 %v12793_v45, %s10294_s5 }
 0x598   : > { %6575 = vst.msk [vmem:[%s10952_s8 + $0x52] sm:$0x1] %vm1956_vm5, %v6543_v61  ;;  %7015 = vrot.lane.b32.xlu0 %v12798_v52, %s10294_s5  ;;  %s10199_s5 = scalar_lea.vmem %s14021_s10, 8192 }
 0x599   : > { %v6489_v41 = vpop.permute.xlu1 %6488  ;;  %p10200_p11 = scmp.ne.s32.totalorder %s14021_s10, %s10199_s5 }
 0x59a   : > { %v6491_v49 = vpop.permute.xlu0 %6490 }
 0x59b   : > { %v6544_v11 = vsel %vm6540_vm12, %v6489_v41, %v6491_v49  ;;  %7215 = vrot.lane.b32.xlu1 %v12684_v38, %s10295_s9  ;;  %p10201_p12 = pnand %p10200_p11, %p10368_p5 }
 0x59c   : > { %6576 = vst.msk [vmem:[%s10952_s8 + $0x72] sm:$0x1] %vm1956_vm5, %v6544_v11  ;;  %7217 = vrot.lane.b32.xlu0 %v12689_v10, %s10295_s9  ;;  %v1754_v10 = vadd.f32 %v10904_v48, %v1724_v16 }
 0x59d   : > { %v6493_v37 = vpop.permute.xlu1 %6492  ;;  %p10202_p13 = pneg %p10201_p12 }
 0x59e   : > { %v6495_v39 = vpop.permute.xlu0 %6494  ;;  %v1790_v60 = vmul.f32 0.2, %v1754_v10  ;;  %vm1772_vm0 = vcmp.gt.f32.partialorder %v1754_v10, 0.0 }
 0x59f   : > { %v6545_v19 = vsel %vm6540_vm12, %v6493_v37, %v6495_v39  ;;  %7219 = vrot.lane.b32.xlu1 %v12698_v57, %s10295_s9  ;;  %v7332_v39 = vcombine.high %v12944_v17, %v12944_v17 }
 0x5a0   : > { %6577 = vst.msk [vmem:[%s10952_s8 + $0x92] sm:$0x1] %vm1956_vm5, %v6545_v19  ;;  %7221 = vrot.lane.b32.xlu0 %v12706_v34, %s10295_s9  ;;  %v12898_v55 = vsel %vm1772_vm0, %v1754_v10, %v1790_v60 }
 0x5a1   : > { %v6497_v38 = vpop.permute.xlu1 %6496  ;;  %v7290_v28 = vrot.slane %v12898_v55, %v10912_v8 }
 0x5a2   : > { %v6499_v56 = vpop.permute.xlu0 %6498 }
 0x5a3   : > { %v6546_v0 = vsel %vm6540_vm12, %v6497_v38, %v6499_v56  ;;  %7223 = vrot.lane.b32.xlu1 %v12716_v6, %s10295_s9  ;;  %v7298_v53 = vcombine.high %v7290_v28, %v7290_v28  ;;  %v7347_v56 = vcombine.high %v7339_v9, %v7339_v9 }
 0x5a4   : > { %6578 = vst.msk [vmem:[%s10952_s8 + $0xb2] sm:$0x1] %vm1956_vm5, %v6546_v0  ;;  %7225 = vrot.lane.b32.xlu0 %v12723_v59, %s10295_s9 }
 0x5a5   : > { %v6501_v13 = vpop.permute.xlu1 %6500  ;;  %v7320_v24 = vrot.slane %v7298_v53, %v10912_v8 }
 0x5a6   : > { %v6503_v57 = vpop.permute.xlu0 %6502 }
 0x5a7   : > { %v6547_v34 = vsel %vm6540_vm12, %v6501_v13, %v6503_v57  ;;  %7227 = vrot.lane.b32.xlu1 %v12732_v31, %s10295_s9  ;;  %v12942_v50 = vrot.slane %v7320_v24, %v10940_v23  ;;  %v7330_v29 = vcombine.high %v7320_v24, %v7320_v24  ;;  %v7355_v57 = vrot.slane %v7339_v9, %v10912_v8 }
 0x5a8   : > { %6579 = vst.msk [vmem:[%s10952_s8 + $0xd2] sm:$0x1] %vm1956_vm5, %v6547_v34  ;;  %7229 = vrot.lane.b32.xlu0 %v12738_v7, %s10295_s9 }
 0x5a9   : > { %v6505_v6 = vpop.permute.xlu1 %6504  ;;  %v12960_v54 = vrot.slane %v7330_v29, %v10940_v23 }
 0x5aa   : > { %v6507_v3 = vpop.permute.xlu0 %6506 }
 0x5ab   : > { %v6548_v59 = vsel %vm6540_vm12, %v6505_v6, %v6507_v3  ;;  %7231 = vrot.lane.b32.xlu1 %v12749_v35, %s10295_s9  ;;  %v7369_v6 = vrot.slane %v7347_v56, %v10912_v8  ;;  %v7346_v3 = vrot.slane %v7332_v39, %v10912_v8 }
 0x5ac   : > { %6580 = vst.msk [vmem:[%s10952_s8 + $0xf2] sm:$0x1] %vm1956_vm5, %v6548_v59  ;;  %7233 = vrot.lane.b32.xlu0 %v12754_v58, %s10295_s9  ;;  %v7283_v58 = vcombine.high %v12898_v55, %v12898_v55 }
 0x5ad   : > { %v6509_v31 = vpop.permute.xlu1 %6508 }
 0x5ae   : > { %v6511_v7 = vpop.permute.xlu0 %6510  ;;  %v7297_v32 = vrot.slane %v7283_v58, %v10912_v8  ;;  %v7348_v58 = vcombine.high %v7346_v3, %v7346_v3 }
 0x5af   : > { %v6549_v30 = vsel %vm6540_vm12, %v6509_v31, %v6511_v7  ;;  %7235 = vrot.lane.b32.xlu1 %v12763_v15, %s10295_s9  ;;  %v7377_v7 = vcombine.high %v7355_v57, %v7355_v57 }
 0x5b0   : > { %6581 = vst.msk [vmem:[%s10952_s8 + $0x112] sm:$0x1] %vm1956_vm5, %v6549_v30  ;;  %7237 = vrot.lane.b32.xlu0 %v12769_v1, %s10295_s9  ;;  %v7306_v1 = vrot.slane %v7290_v28, %v10912_v8  ;;  %v7299_v20 = vcombine.high %v7297_v32, %v7297_v32  ;;  %v7313_v2 = vrot.slane %v7297_v32, %v10912_v8 }
 0x5b1   : > { %v6513_v35 = vpop.permute.xlu1 %6512  ;;  %v13002_v28 = vrot.slane %v7355_v57, %v10940_v23  ;;  %v13005_v30 = vrot.slane %v7369_v6, %v10940_v23  ;;  %v13015_v63 = vrot.slane %v7377_v7, %v10940_v23 }
 0x5b2   : > { %v6515_v18 = vpop.permute.xlu0 %6514  ;;  %v7328_v21 = vcombine.high %v7306_v1, %v7306_v1  ;;  %v7327_v61 = vrot.slane %v7299_v20, %v10912_v8  ;;  %v12971_v11 = vrot.slane %v7313_v2, %v10940_v23  ;;  %v7329_v37 = vcombine.high %v7313_v2, %v7313_v2 }
 0x5b3   : > { %v6550_v25 = vsel %vm6540_vm12, %v6513_v35, %v6515_v18  ;;  %7239 = vrot.lane.b32.xlu1 %v12779_v36, %s10295_s9  ;;  %v7379_v35 = vcombine.high %v7369_v6, %v7369_v6 }
 0x5b4   : > { %6582 = vst.msk [vmem:[%s10952_s8 + $0x132] sm:$0x1] %vm1956_vm5, %v6550_v25  ;;  %7241 = vrot.lane.b32.xlu0 %v12784_v62, %s10295_s9  ;;  %v12939_v62 = vrot.slane %v7306_v1, %v10940_v23  ;;  %v12954_v43 = vrot.slane %v7328_v21, %v10940_v23  ;;  %v12976_v19 = vrot.slane %v7327_v61, %v10940_v23 }
 0x5b5   : > { %v6517_v15 = vpop.permute.xlu1 %6516  ;;  %v7331_v38 = vcombine.high %v7327_v61, %v7327_v61  ;;  %v12986_v13 = vrot.slane %v7329_v37, %v10940_v23  ;;  %v7362_v25 = vrot.slane %v7346_v3, %v10912_v8  ;;  %v13021_v1 = vrot.slane %v7379_v35, %v10940_v23 }
 0x5b6   : > { %v6519_v12 = vpop.permute.xlu0 %6518 }
 0x5b7   : > { %v6551_v5 = vsel %vm6540_vm12, %v6517_v15, %v6519_v12  ;;  %7243 = vrot.lane.b32.xlu1 %v12793_v45, %s10295_s9  ;;  %v12990_v34 = vrot.slane %v7331_v38, %v10940_v23  ;;  %v7376_v12 = vrot.slane %v7348_v58, %v10912_v8  ;;  %v13031_v32 = vrot.slane %v7362_v25, %v10940_v23 }
 0x5b8   : > { %6583 = vst.msk [vmem:[%s10952_s8 + $0x152] sm:$0x1] %vm1956_vm5, %v6551_v5  ;;  %7245 = vrot.lane.b32.xlu0 %v12798_v52, %s10295_s9  ;;  %v7378_v40 = vcombine.high %v7362_v25, %v7362_v25  ;;  %s10302_s9 = smov [#allocation4]  }
 0x5b9   : > { %v6521_v36 = vpop.permute.xlu1 %6520  ;;  %v7380_v21 = vcombine.high %v7376_v12, %v7376_v12 }
 0x5ba   : > { %v6523_v27 = vpop.permute.xlu0 %6522  ;;  %v13045_v29 = vrot.slane %v7378_v40, %v10940_v23 }
 0x5bb   : > { %v6552_v45 = vsel %vm6540_vm12, %v6521_v36, %v6523_v27  ;;  %7445 = vrot.lane.b32.xlu1 %v12939_v62, %s10264_s7  ;;  %v13036_v36 = vrot.slane %v7376_v12, %v10940_v23 }
 0x5bc   : > { %6584 = vst.msk [vmem:[%s10952_s8 + $0x172] sm:$0x1] %vm1956_vm5, %v6552_v45  ;;  %7447 = vrot.lane.b32.xlu0 %v12942_v50, %s10264_s7  ;;  %v13050_v45 = vrot.slane %v7380_v21, %v10940_v23 }
 0x5bd   : > { %v6525_v52 = vpop.permute.xlu1 %6524 }
 0x5be   : > { %v6527_v33 = vpop.permute.xlu0 %6526 }
 0x5bf   : > { %v6553_v41 = vsel %vm6540_vm12, %v6525_v52, %v6527_v33  ;;  %7449 = vrot.lane.b32.xlu1 %v12954_v43, %s10264_s7 }
 0x5c0   : > { %6585 = vst.msk [vmem:[%s10952_s8 + $0x192] sm:$0x1] %vm1956_vm5, %v6553_v41  ;;  %7451 = vrot.lane.b32.xlu0 %v12960_v54, %s10264_s7 }
 0x5c1   : > { %v6529_v49 = vpop.permute.xlu1 %6528 }
 0x5c2   : > { %v6531_v16 = vpop.permute.xlu0 %6530 }
 0x5c3   : > { %v6554_v10 = vsel %vm6540_vm12, %v6529_v49, %v6531_v16  ;;  %7453 = vrot.lane.b32.xlu1 %v12971_v11, %s10264_s7 }
 0x5c4   : > { %6586 = vst.msk [vmem:[%s10952_s8 + $0x1b2] sm:$0x1] %vm1956_vm5, %v6554_v10  ;;  %7455 = vrot.lane.b32.xlu0 %v12976_v19, %s10264_s7 }
 0x5c5   : > { %v6533_v0 = vpop.permute.xlu1 %6532 }
 0x5c6   : > { %v6535_v60 = vpop.permute.xlu0 %6534 }
 0x5c7   : > { %v6555_v59 = vsel %vm6540_vm12, %v6533_v0, %v6535_v60  ;;  %7457 = vrot.lane.b32.xlu1 %v12986_v13, %s10264_s7 }
 0x5c8   : > { %6587 = vst.msk [vmem:[%s10952_s8 + $0x1d2] sm:$0x1] %vm1956_vm5, %v6555_v59  ;;  %7459 = vrot.lane.b32.xlu0 %v12990_v34, %s10264_s7 }
 0x5c9   : > { %v6537_v31 = vpop.permute.xlu1 %6536 }
 0x5ca   : > { %v6539_v46 = vpop.permute.xlu0 %6538 }
 0x5cb   : > { %v6556_v18 = vsel %vm6540_vm12, %v6537_v31, %v6539_v46  ;;  %7461 = vrot.lane.b32.xlu1 %v13002_v28, %s10264_s7  ;;  %v1725_v31 = vmul.f32 %v10899_v14, %v11062_v22 }
 0x5cc   : > { %6588 = vst.msk [vmem:[%s10952_s8 + $0x1f2] sm:$0x1] %vm1956_vm5, %v6556_v18  ;;  %7463 = vrot.lane.b32.xlu0 %v13005_v30, %s10264_s7 }
 0x5cd   : > { %v6756_v53 = vpop.permute.xlu1 %6755 }
 0x5ce   : > { %6803 = vst.msk [vmem:[%s10952_s8 + $0x13] sm:$0x1] %vm1956_vm5, %v6756_v53  ;;  %v6758_v15 = vpop.permute.xlu0 %6757 }
 0x5cf   : > { %6804 = vst.msk [vmem:[%s10952_s8 + $0x33] sm:$0x1] %vm1956_vm5, %v6758_v15  ;;  %7465 = vrot.lane.b32.xlu1 %v13015_v63, %s10264_s7 }
 0x5d0   : > { %7467 = vrot.lane.b32.xlu0 %v13021_v1, %s10264_s7 }
 0x5d1   : > { %v6760_v24 = vpop.permute.xlu1 %6759 }
 0x5d2   : > { %6805 = vst.msk [vmem:[%s10952_s8 + $0x53] sm:$0x1] %vm1956_vm5, %v6760_v24  ;;  %v6762_v5 = vpop.permute.xlu0 %6761 }
 0x5d3   : > { %6806 = vst.msk [vmem:[%s10952_s8 + $0x73] sm:$0x1] %vm1956_vm5, %v6762_v5  ;;  %7469 = vrot.lane.b32.xlu1 %v13031_v32, %s10264_s7 }
 0x5d4   : > { %7471 = vrot.lane.b32.xlu0 %v13036_v36, %s10264_s7 }
 0x5d5   : > { %v6764_v27 = vpop.permute.xlu1 %6763 }
 0x5d6   : > { %6807 = vst.msk [vmem:[%s10952_s8 + $0x93] sm:$0x1] %vm1956_vm5, %v6764_v27  ;;  %v6766_v20 = vpop.permute.xlu0 %6765 }
 0x5d7   : > { %6808 = vst.msk [vmem:[%s10952_s8 + $0xb3] sm:$0x1] %vm1956_vm5, %v6766_v20  ;;  %7473 = vrot.lane.b32.xlu1 %v13045_v29, %s10264_s7 }
 0x5d8   : > { %7475 = vrot.lane.b32.xlu0 %v13050_v45, %s10264_s7  ;;  %s14081_s7 = smov 56  }
 0x5d9   : > { %v6768_v52 = vpop.permute.xlu1 %6767 }
 0x5da   : > { %6809 = vst.msk [vmem:[%s10952_s8 + $0xd3] sm:$0x1] %vm1956_vm5, %v6768_v52  ;;  %v6770_v2 = vpop.permute.xlu0 %6769 }
 0x5db   : > { %6810 = vst.msk [vmem:[%s10952_s8 + $0xf3] sm:$0x1] %vm1956_vm5, %v6770_v2  ;;  %7675 = vrot.lane.b32.xlu1 %v12939_v62, %s10268_s11 }
 0x5dc   : > { %7677 = vrot.lane.b32.xlu0 %v12942_v50, %s10268_s11 }
 0x5dd   : > { %v6772_v9 = vpop.permute.xlu1 %6771 }
 0x5de   : > { %6811 = vst.msk [vmem:[%s10952_s8 + $0x113] sm:$0x1] %vm1956_vm5, %v6772_v9  ;;  %v6774_v33 = vpop.permute.xlu0 %6773 }
 0x5df   : > { %6812 = vst.msk [vmem:[%s10952_s8 + $0x133] sm:$0x1] %vm1956_vm5, %v6774_v33  ;;  %7679 = vrot.lane.b32.xlu1 %v12954_v43, %s10268_s11 }
 0x5e0   : > { %7681 = vrot.lane.b32.xlu0 %v12960_v54, %s10268_s11 }
 0x5e1   : > { %v6776_v61 = vpop.permute.xlu1 %6775 }
 0x5e2   : > { %6813 = vst.msk [vmem:[%s10952_s8 + $0x153] sm:$0x1] %vm1956_vm5, %v6776_v61  ;;  %v6778_v41 = vpop.permute.xlu0 %6777 }
 0x5e3   : > { %6814 = vst.msk [vmem:[%s10952_s8 + $0x173] sm:$0x1] %vm1956_vm5, %v6778_v41  ;;  %7683 = vrot.lane.b32.xlu1 %v12971_v11, %s10268_s11 }
 0x5e4   : > { %7685 = vrot.lane.b32.xlu0 %v12976_v19, %s10268_s11 }
 0x5e5   : > { %v6780_v49 = vpop.permute.xlu1 %6779 }
 0x5e6   : > { %6815 = vst.msk [vmem:[%s10952_s8 + $0x193] sm:$0x1] %vm1956_vm5, %v6780_v49  ;;  %v6782_v37 = vpop.permute.xlu0 %6781 }
 0x5e7   : > { %6816 = vst.msk [vmem:[%s10952_s8 + $0x1b3] sm:$0x1] %vm1956_vm5, %v6782_v37  ;;  %7687 = vrot.lane.b32.xlu1 %v12986_v13, %s10268_s11 }
 0x5e8   : > { %7689 = vrot.lane.b32.xlu0 %v12990_v34, %s10268_s11 }
 0x5e9   : > { %v6784_v39 = vpop.permute.xlu1 %6783 }
 0x5ea   : > { %6817 = vst.msk [vmem:[%s10952_s8 + $0x1d3] sm:$0x1] %vm1956_vm5, %v6784_v39  ;;  %v6786_v16 = vpop.permute.xlu0 %6785 }
 0x5eb   : > { %6818 = vst.msk [vmem:[%s10952_s8 + $0x1f3] sm:$0x1] %vm1956_vm5, %v6786_v16  ;;  %7691 = vrot.lane.b32.xlu1 %v13002_v28, %s10268_s11 }
 0x5ec   : > { %7693 = vrot.lane.b32.xlu0 %v13005_v30, %s10268_s11 }
 0x5ed   : > { %v6986_v38 = vpop.permute.xlu1 %6985 }
 0x5ee   : > { %7033 = vst.msk [vmem:[%s10952_s8 + $0x14] sm:$0x1] %vm1956_vm5, %v6986_v38  ;;  %v6988_v56 = vpop.permute.xlu0 %6987 }
 0x5ef   : > { %7034 = vst.msk [vmem:[%s10952_s8 + $0x34] sm:$0x1] %vm1956_vm5, %v6988_v56  ;;  %7695 = vrot.lane.b32.xlu1 %v13015_v63, %s10268_s11 }
 0x5f0   : > { %7697 = vrot.lane.b32.xlu0 %v13021_v1, %s10268_s11 }
 0x5f1   : > { %v6990_v10 = vpop.permute.xlu1 %6989 }
 0x5f2   : > { %7035 = vst.msk [vmem:[%s10952_s8 + $0x54] sm:$0x1] %vm1956_vm5, %v6990_v10  ;;  %v6992_v0 = vpop.permute.xlu0 %6991 }
 0x5f3   : > { %7036 = vst.msk [vmem:[%s10952_s8 + $0x74] sm:$0x1] %vm1956_vm5, %v6992_v0  ;;  %7699 = vrot.lane.b32.xlu1 %v13031_v32, %s10268_s11 }
 0x5f4   : > { %7701 = vrot.lane.b32.xlu0 %v13036_v36, %s10268_s11 }
 0x5f5   : > { %v6994_v57 = vpop.permute.xlu1 %6993 }
 0x5f6   : > { %7037 = vst.msk [vmem:[%s10952_s8 + $0x94] sm:$0x1] %vm1956_vm5, %v6994_v57  ;;  %v6996_v60 = vpop.permute.xlu0 %6995 }
 0x5f7   : > { %7038 = vst.msk [vmem:[%s10952_s8 + $0xb4] sm:$0x1] %vm1956_vm5, %v6996_v60  ;;  %7703 = vrot.lane.b32.xlu1 %v13045_v29, %s10268_s11 }
 0x5f8   : > { %7705 = vrot.lane.b32.xlu0 %v13050_v45, %s10268_s11  ;;  %s14082_s11 = smov 21  }
 0x5f9   : > { %v6998_v6 = vpop.permute.xlu1 %6997 }
 0x5fa   : > { %7039 = vst.msk [vmem:[%s10952_s8 + $0xd4] sm:$0x1] %vm1956_vm5, %v6998_v6  ;;  %v7000_v3 = vpop.permute.xlu0 %6999 }
 0x5fb   : > { %7040 = vst.msk [vmem:[%s10952_s8 + $0xf4] sm:$0x1] %vm1956_vm5, %v7000_v3  ;;  %7905 = vrot.lane.b32.xlu1 %v12939_v62, %s14081_s7 }
 0x5fc   : > { %7907 = vrot.lane.b32.xlu0 %v12942_v50, %s14081_s7  ;;  %v1755_v50 = vadd.f32 %v10904_v48, %v1725_v31 }
 0x5fd   : > { %v7002_v59 = vpop.permute.xlu1 %7001 }
 0x5fe   : > { %7041 = vst.msk [vmem:[%s10952_s8 + $0x114] sm:$0x1] %vm1956_vm5, %v7002_v59  ;;  %v7004_v7 = vpop.permute.xlu0 %7003  ;;  %vm1773_vm2 = vcmp.gt.f32.partialorder %v1755_v50, 0.0 }
 0x5ff   : > { %7042 = vst.msk [vmem:[%s10952_s8 + $0x134] sm:$0x1] %vm1956_vm5, %v7004_v7  ;;  %7909 = vrot.lane.b32.xlu1 %v12954_v43, %s14081_s7  ;;  %v1791_v43 = vmul.f32 0.2, %v1755_v50 }
 0x600   : > { %7911 = vrot.lane.b32.xlu0 %v12960_v54, %s14081_s7 }
 0x601   : > { %v7006_v62 = vpop.permute.xlu1 %7005  ;;  %v13157_v35 = vsel %vm1773_vm2, %v1755_v50, %v1791_v43 }
 0x602   : > { %7043 = vst.msk [vmem:[%s10952_s8 + $0x154] sm:$0x1] %vm1956_vm5, %v7006_v62  ;;  %v7008_v46 = vpop.permute.xlu0 %7007  ;;  %v7978_v27 = vcombine.high %v12898_v55, %v13157_v35 }
 0x603   : > { %7044 = vst.msk [vmem:[%s10952_s8 + $0x174] sm:$0x1] %vm1956_vm5, %v7008_v46  ;;  %7913 = vrot.lane.b32.xlu1 %v12971_v11, %s14081_s7 }
 0x604   : > { %7915 = vrot.lane.b32.xlu0 %v12976_v19, %s14081_s7  ;;  %v7992_v9 = vrot.slane %v7978_v27, %v10912_v8 }
 0x605   : > { %v7010_v22 = vpop.permute.xlu1 %7009 }
 0x606   : > { %7045 = vst.msk [vmem:[%s10952_s8 + $0x194] sm:$0x1] %vm1956_vm5, %v7010_v22  ;;  %v7012_v54 = vpop.permute.xlu0 %7011  ;;  %v8008_v37 = vrot.slane %v7992_v9, %v10912_v8  ;;  %v7994_v39 = vcombine.high %v7992_v9, %v7992_v9 }
 0x607   : > { %7046 = vst.msk [vmem:[%s10952_s8 + $0x1b4] sm:$0x1] %vm1956_vm5, %v7012_v54  ;;  %7917 = vrot.lane.b32.xlu1 %v12986_v13, %s14081_s7 }
 0x608   : > { %7919 = vrot.lane.b32.xlu0 %v12990_v34, %s14081_s7  ;;  %v7977_v34 = vcombine.low %v12898_v55, %v13157_v35  ;;  %v8112_v0 = vrot.slane %v8008_v37, %v10940_v23  ;;  %v8022_v57 = vrot.slane %v7994_v39, %v10912_v8  ;;  %v8116_v3 = vrot.slane %v8008_v37, %v10979_v4 }
 0x609   : > { %v7014_v11 = vpop.permute.xlu1 %7013  ;;  %v8024_v7 = vcombine.high %v8008_v37, %v8008_v37 }
 0x60a   : > { %7047 = vst.msk [vmem:[%s10952_s8 + $0x1d4] sm:$0x1] %vm1956_vm5, %v7014_v11  ;;  %v7016_v19 = vpop.permute.xlu0 %7015  ;;  %v8120_v31 = vrot.slane %v8022_v57, %v10940_v23  ;;  %v8124_v46 = vrot.slane %v8022_v57, %v10979_v4  ;;  %v8026_v54 = vcombine.high %v8022_v57, %v8022_v57 }
 0x60b   : > { %7048 = vst.msk [vmem:[%s10952_s8 + $0x1f4] sm:$0x1] %vm1956_vm5, %v7016_v19  ;;  %7921 = vrot.lane.b32.xlu1 %v13002_v28, %s14081_s7  ;;  %v8128_v43 = vrot.slane %v8024_v7, %v10940_v23 }
 0x60c   : > { %7923 = vrot.lane.b32.xlu0 %v13005_v30, %s14081_s7  ;;  %v7985_v30 = vrot.slane %v7977_v34, %v10912_v8 }
 0x60d   : > { %v7216_v13 = vpop.permute.xlu1 %7215 }
 0x60e   : > { %7263 = vst.msk [vmem:[%s10952_s8 + $0x15] sm:$0x1] %vm1956_vm5, %v7216_v13  ;;  %v7218_v58 = vpop.permute.xlu0 %7217  ;;  %v7993_v25 = vcombine.high %v7985_v30, %v7985_v30  ;;  %v8132_v13 = vrot.slane %v8024_v7, %v10979_v4 }
 0x60f   : > { %7264 = vst.msk [vmem:[%s10952_s8 + $0x35] sm:$0x1] %vm1956_vm5, %v7218_v58  ;;  %7925 = vrot.lane.b32.xlu1 %v13015_v63, %s14081_s7  ;;  %v8001_v63 = vrot.slane %v7985_v30, %v10912_v8  ;;  %v8136_v58 = vrot.slane %v8026_v54, %v10940_v23 }
 0x610   : > { %7927 = vrot.lane.b32.xlu0 %v13021_v1, %s14081_s7  ;;  %v8015_v24 = vrot.slane %v7993_v25, %v10912_v8 }
 0x611   : > { %v7220_v28 = vpop.permute.xlu1 %7219  ;;  %v8080_v12 = vrot.slane %v8001_v63, %v10940_v23  ;;  %v8084_v40 = vrot.slane %v8001_v63, %v10979_v4  ;;  %v8023_v21 = vcombine.high %v8001_v63, %v8001_v63 }
 0x612   : > { %7265 = vst.msk [vmem:[%s10952_s8 + $0x55] sm:$0x1] %vm1956_vm5, %v7220_v28  ;;  %v7222_v18 = vpop.permute.xlu0 %7221  ;;  %v8025_v55 = vcombine.high %v8015_v24, %v8015_v24 }
 0x613   : > { %7266 = vst.msk [vmem:[%s10952_s8 + $0x75] sm:$0x1] %vm1956_vm5, %v7222_v18  ;;  %7929 = vrot.lane.b32.xlu1 %v13031_v32, %s14081_s7  ;;  %v8096_v2 = vrot.slane %v8023_v21, %v10940_v23  ;;  %v8100_v61 = vrot.slane %v8023_v21, %v10979_v4 }
 0x614   : > { %7931 = vrot.lane.b32.xlu0 %v13036_v36, %s14081_s7  ;;  %v8088_v36 = vrot.slane %v8015_v24, %v10940_v23  ;;  %v8104_v49 = vrot.slane %v8025_v55, %v10940_v23  ;;  %v8108_v56 = vrot.slane %v8025_v55, %v10979_v4 }
 0x615   : > { %v7224_v53 = vpop.permute.xlu1 %7223 }
 0x616   : > { %7267 = vst.msk [vmem:[%s10952_s8 + $0x95] sm:$0x1] %vm1956_vm5, %v7224_v53  ;;  %v7226_v15 = vpop.permute.xlu0 %7225  ;;  %v8140_v53 = vrot.slane %v8026_v54, %v10979_v4 }
 0x617   : > { %7268 = vst.msk [vmem:[%s10952_s8 + $0xb5] sm:$0x1] %vm1956_vm5, %v7226_v15  ;;  %7933 = vrot.lane.b32.xlu1 %v13045_v29, %s14081_s7  ;;  %v1734_v29 = vmul.f32 %v10897_v42, %v11068_v26 }
 0x618   : > { %7935 = vrot.lane.b32.xlu0 %v13050_v45, %s14081_s7  ;;  %v8092_v45 = vrot.slane %v8015_v24, %v10979_v4  ;;  %s10203_s7 = sshll.u32 %s10302_s9, 4  ;;  %s10204_s7 = int_to_ptr.vmem [resolvable:$false] %s10203_s7 }
 0x619   : > { %v7228_v1 = vpop.permute.xlu1 %7227  ;;  %v1764_v26 = vadd.f32 %v10909_v51, %v1734_v29  ;;  %p10206_p0 = scmp.lt.s32.totalorder %s14021_s10, %s10204_s7 }
 0x61a   : > { %7269 = vst.msk [vmem:[%s10952_s8 + $0xd5] sm:$0x1] %vm1956_vm5, %v7228_v1  ;;  %v7230_v32 = vpop.permute.xlu0 %7229 }
 0x61b   : > { %7270 = vst.msk [vmem:[%s10952_s8 + $0xf5] sm:$0x1] %vm1956_vm5, %v7230_v32  ;;  %8205 = vrot.lane.b32.xlu1 %v8080_v12, %s14082_s11  ;;  %v1800_v16 = vmul.f32 0.2, %v1764_v26  ;;  %vm1782_vm3 = vcmp.gt.f32.partialorder %v1764_v26, 0.0 }
 0x61c   : > { %8207 = vrot.lane.b32.xlu0 %v8084_v40, %s14082_s11 }
 0x61d   : > { %v7232_v5 = vpop.permute.xlu1 %7231  ;;  %v13237_v60 = vsel %vm1782_vm3, %v1764_v26, %v1800_v16 }
 0x61e   : > { %7271 = vst.msk [vmem:[%s10952_s8 + $0x115] sm:$0x1] %vm1956_vm5, %v7232_v5  ;;  %v7234_v20 = vpop.permute.xlu0 %7233  ;;  %v8027_v62 = vcombine.low %v12944_v17, %v13237_v60  ;;  %v8028_v5 = vcombine.high %v12944_v17, %v13237_v60 }
 0x61f   : > { %7272 = vst.msk [vmem:[%s10952_s8 + $0x135] sm:$0x1] %vm1956_vm5, %v7234_v20  ;;  %8209 = vrot.lane.b32.xlu1 %v8088_v36, %s14082_s11 }
 0x620   : > { %8211 = vrot.lane.b32.xlu0 %v8092_v45, %s14082_s11  ;;  %v8035_v11 = vrot.slane %v8027_v62, %v10912_v8  ;;  %v8042_v45 = vrot.slane %v8028_v5, %v10912_v8  ;;  %v8378_v5 = vrot.slane %v13237_v60, %v10912_v8 }
 0x621   : > { %v7236_v52 = vpop.permute.xlu1 %7235 }
 0x622   : > { %7273 = vst.msk [vmem:[%s10952_s8 + $0x155] sm:$0x1] %vm1956_vm5, %v7236_v52  ;;  %v7238_v33 = vpop.permute.xlu0 %7237  ;;  %v8051_v28 = vrot.slane %v8035_v11, %v10912_v8  ;;  %v8043_v30 = vcombine.high %v8035_v11, %v8035_v11  ;;  %v8058_v9 = vrot.slane %v8042_v45, %v10912_v8  ;;  %v8044_v26 = vcombine.high %v8042_v45, %v8042_v45 }
 0x623   : > { %7274 = vst.msk [vmem:[%s10952_s8 + $0x175] sm:$0x1] %vm1956_vm5, %v7238_v33  ;;  %8213 = vrot.lane.b32.xlu1 %v8096_v2, %s14082_s11 }
 0x624   : > { %8215 = vrot.lane.b32.xlu0 %v8100_v61, %s14082_s11  ;;  %v8144_v25 = vrot.slane %v8051_v28, %v10940_v23  ;;  %v8065_v15 = vrot.slane %v8043_v30, %v10912_v8  ;;  %v8148_v12 = vrot.slane %v8051_v28, %v10979_v4  ;;  %v8073_v40 = vcombine.high %v8051_v28, %v8051_v28 }
 0x625   : > { %v7240_v41 = vpop.permute.xlu1 %7239  ;;  %v8072_v37 = vrot.slane %v8044_v26, %v10912_v8  ;;  %v8180_v16 = vrot.slane %v8058_v9, %v10979_v4 }
 0x626   : > { %7275 = vst.msk [vmem:[%s10952_s8 + $0x195] sm:$0x1] %vm1956_vm5, %v7240_v41  ;;  %v7242_v38 = vpop.permute.xlu0 %7241  ;;  %v8152_v32 = vrot.slane %v8065_v15, %v10940_v23  ;;  %v8156_v21 = vrot.slane %v8065_v15, %v10979_v4  ;;  %v8160_v29 = vrot.slane %v8073_v40, %v10940_v23  ;;  %v8075_v20 = vcombine.high %v8065_v15, %v8065_v15 }
 0x627   : > { %7276 = vst.msk [vmem:[%s10952_s8 + $0x1b5] sm:$0x1] %vm1956_vm5, %v7242_v38  ;;  %8217 = vrot.lane.b32.xlu1 %v8104_v49, %s14082_s11  ;;  %v8164_v52 = vrot.slane %v8073_v40, %v10979_v4  ;;  %v8176_v49 = vrot.slane %v8058_v9, %v10940_v23  ;;  %v8188_v57 = vrot.slane %v8072_v37, %v10979_v4 }
 0x628   : > { %8219 = vrot.lane.b32.xlu0 %v8108_v56, %s14082_s11  ;;  %v8168_v55 = vrot.slane %v8075_v20, %v10940_v23  ;;  %v8172_v61 = vrot.slane %v8075_v20, %v10979_v4  ;;  %v8184_v56 = vrot.slane %v8072_v37, %v10940_v23 }
 0x629   : > { %v7244_v10 = vpop.permute.xlu1 %7243 }
 0x62a   : > { %7277 = vst.msk [vmem:[%s10952_s8 + $0x1d5] sm:$0x1] %vm1956_vm5, %v7244_v10  ;;  %v7246_v6 = vpop.permute.xlu0 %7245  ;;  %v8074_v10 = vcombine.high %v8058_v9, %v8058_v9  ;;  %v8394_v9 = vrot.slane %v8378_v5, %v10912_v8 }
 0x62b   : > { %7278 = vst.msk [vmem:[%s10952_s8 + $0x1f5] sm:$0x1] %vm1956_vm5, %v7246_v6  ;;  %8221 = vrot.lane.b32.xlu1 %v8112_v0, %s14082_s11  ;;  %v8329_v6 = vrot.slane %v13157_v35, %v10912_v8 }
 0x62c   : > { %8223 = vrot.lane.b32.xlu0 %v8116_v3, %s14082_s11  ;;  %v8196_v62 = vrot.slane %v8074_v10, %v10979_v4 }
 0x62d   : > { %v7446_v59 = vpop.permute.xlu1 %7445  ;;  %v8345_v54 = vrot.slane %v8329_v6, %v10912_v8 }
 0x62e   : > { %7493 = vst.msk [vmem:[%s10952_s8 + $0x16] sm:$0x1] %vm1956_vm5, %v7446_v59  ;;  %v7448_v50 = vpop.permute.xlu0 %7447  ;;  %v8192_v59 = vrot.slane %v8074_v10, %v10940_v23 }
 0x62f   : > { %7494 = vst.msk [vmem:[%s10952_s8 + $0x36] sm:$0x1] %vm1956_vm5, %v7448_v50  ;;  %8225 = vrot.lane.b32.xlu1 %v8120_v31, %s14082_s11  ;;  %v8076_v31 = vcombine.high %v8072_v37, %v8072_v37  ;;  %v8337_v50 = vcombine.high %v8329_v6, %v8329_v6  ;;  %v13352_v28 = vrot.slane %v8345_v54, %v10940_v23 }
 0x630   : > { %8227 = vrot.lane.b32.xlu0 %v8124_v46, %s14082_s11  ;;  %v8322_v46 = vcombine.high %v13157_v35, %v13157_v35  ;;  %v8367_v30 = vcombine.high %v8345_v54, %v8345_v54  ;;  %v13417_v37 = vrot.slane %v8394_v9, %v10940_v23 }
 0x631   : > { %v7450_v22 = vpop.permute.xlu1 %7449 }
 0x632   : > { %7495 = vst.msk [vmem:[%s10952_s8 + $0x56] sm:$0x1] %vm1956_vm5, %v7450_v22  ;;  %v7452_v19 = vpop.permute.xlu0 %7451 }
 0x633   : > { %7496 = vst.msk [vmem:[%s10952_s8 + $0x76] sm:$0x1] %vm1956_vm5, %v7452_v19  ;;  %8229 = vrot.lane.b32.xlu1 %v8128_v43, %s14082_s11  ;;  %v8200_v43 = vrot.slane %v8076_v31, %v10940_v23  ;;  %v8204_v19 = vrot.slane %v8076_v31, %v10979_v4 }
 0x634   : > { %8231 = vrot.lane.b32.xlu0 %v8132_v13, %s14082_s11  ;;  %v8359_v13 = vrot.slane %v8337_v50, %v10912_v8 }
 0x635   : > { %v7454_v34 = vpop.permute.xlu1 %7453 }
 0x636   : > { %7497 = vst.msk [vmem:[%s10952_s8 + $0x96] sm:$0x1] %vm1956_vm5, %v7454_v34  ;;  %v7456_v18 = vpop.permute.xlu0 %7455  ;;  %v8336_v34 = vrot.slane %v8322_v46, %v10912_v8 }
 0x637   : > { %7498 = vst.msk [vmem:[%s10952_s8 + $0xb6] sm:$0x1] %vm1956_vm5, %v7456_v18  ;;  %8233 = vrot.lane.b32.xlu1 %v8136_v58, %s14082_s11 }
 0x638   : > { %8235 = vrot.lane.b32.xlu0 %v8140_v53, %s14082_s11  ;;  %v13357_v53 = vrot.slane %v8359_v13, %v10940_v23 }
 0x639   : > { %v7458_v63 = vpop.permute.xlu1 %7457 }
 0x63a   : > { %7499 = vst.msk [vmem:[%s10952_s8 + $0xd6] sm:$0x1] %vm1956_vm5, %v7458_v63  ;;  %v7460_v1 = vpop.permute.xlu0 %7459  ;;  %v8369_v63 = vcombine.high %v8359_v13, %v8359_v13 }
 0x63b   : > { %7500 = vst.msk [vmem:[%s10952_s8 + $0xf6] sm:$0x1] %vm1956_vm5, %v7460_v1  ;;  %8237 = vrot.lane.b32.xlu1 %v8144_v25, %s14082_s11  ;;  %v8338_v25 = vcombine.high %v8336_v34, %v8336_v34  ;;  %v13366_v1 = vrot.slane %v8367_v30, %v10940_v23 }
 0x63c   : > { %8239 = vrot.lane.b32.xlu0 %v8148_v12, %s14082_s11  ;;  %v8352_v12 = vrot.slane %v8336_v34, %v10912_v8 }
 0x63d   : > { %v7462_v24 = vpop.permute.xlu1 %7461  ;;  %v8366_v40 = vrot.slane %v8338_v25, %v10912_v8 }
 0x63e   : > { %7501 = vst.msk [vmem:[%s10952_s8 + $0x116] sm:$0x1] %vm1956_vm5, %v7462_v24  ;;  %v7464_v36 = vpop.permute.xlu0 %7463 }
 0x63f   : > { %7502 = vst.msk [vmem:[%s10952_s8 + $0x136] sm:$0x1] %vm1956_vm5, %v7464_v36  ;;  %8241 = vrot.lane.b32.xlu1 %v8152_v32, %s14082_s11  ;;  %v13372_v32 = vrot.slane %v8369_v63, %v10940_v23  ;;  %v13389_v20 = vrot.slane %v8366_v40, %v10940_v23  ;;  %v8370_v45 = vcombine.high %v8366_v40, %v8366_v40 }
 0x640   : > { %8243 = vrot.lane.b32.xlu0 %v8156_v21, %s14082_s11  ;;  %v13384_v21 = vrot.slane %v8352_v12, %v10940_v23 }
 0x641   : > { %v7466_v27 = vpop.permute.xlu1 %7465 }
 0x642   : > { %7503 = vst.msk [vmem:[%s10952_s8 + $0x156] sm:$0x1] %vm1956_vm5, %v7466_v27  ;;  %v7468_v17 = vpop.permute.xlu0 %7467  ;;  %v8368_v27 = vcombine.high %v8352_v12, %v8352_v12 }
 0x643   : > { %7504 = vst.msk [vmem:[%s10952_s8 + $0x176] sm:$0x1] %vm1956_vm5, %v7468_v17  ;;  %8245 = vrot.lane.b32.xlu1 %v8160_v29, %s14082_s11  ;;  %v8386_v17 = vcombine.high %v8378_v5, %v8378_v5 }
 0x644   : > { %8247 = vrot.lane.b32.xlu0 %v8164_v52, %s14082_s11  ;;  %v8371_v52 = vcombine.high %v13237_v60, %v13237_v60 }
 0x645   : > { %v7470_v2 = vpop.permute.xlu1 %7469 }
 0x646   : > { %7505 = vst.msk [vmem:[%s10952_s8 + $0x196] sm:$0x1] %vm1956_vm5, %v7470_v2  ;;  %v7472_v33 = vpop.permute.xlu0 %7471 }
 0x647   : > { %7506 = vst.msk [vmem:[%s10952_s8 + $0x1b6] sm:$0x1] %vm1956_vm5, %v7472_v33  ;;  %8249 = vrot.lane.b32.xlu1 %v8168_v55, %s14082_s11  ;;  %v13400_v55 = vrot.slane %v8368_v27, %v10940_v23  ;;  %v13406_v33 = vrot.slane %v8370_v45, %v10940_v23 }
 0x648   : > { %8251 = vrot.lane.b32.xlu0 %v8172_v61, %s14082_s11  ;;  %v8408_v61 = vrot.slane %v8386_v17, %v10912_v8 }
 0x649   : > { %v7474_v41 = vpop.permute.xlu1 %7473 }
 0x64a   : > { %7507 = vst.msk [vmem:[%s10952_s8 + $0x1d6] sm:$0x1] %vm1956_vm5, %v7474_v41  ;;  %v7476_v39 = vpop.permute.xlu0 %7475  ;;  %v8385_v41 = vrot.slane %v8371_v52, %v10912_v8 }
 0x64b   : > { %7508 = vst.msk [vmem:[%s10952_s8 + $0x1f6] sm:$0x1] %vm1956_vm5, %v7476_v39  ;;  %8253 = vrot.lane.b32.xlu1 %v8176_v49, %s14082_s11  ;;  %v8416_v39 = vcombine.high %v8394_v9, %v8394_v9 }
 0x64c   : > { %8255 = vrot.lane.b32.xlu0 %v8180_v16, %s14082_s11  ;;  %v8387_v10 = vcombine.high %v8385_v41, %v8385_v41  ;;  %v8401_v6 = vrot.slane %v8385_v41, %v10912_v8 }
 0x64d   : > { %v7676_v38 = vpop.permute.xlu1 %7675 }
 0x64e   : > { %7723 = vst.msk [vmem:[%s10952_s8 + $0x17] sm:$0x1] %vm1956_vm5, %v7676_v38  ;;  %v7678_v0 = vpop.permute.xlu0 %7677  ;;  %v13422_v38 = vrot.slane %v8408_v61, %v10940_v23  ;;  %v8415_v31 = vrot.slane %v8387_v10, %v10912_v8  ;;  %v8417_v50 = vcombine.high %v8401_v6, %v8401_v6 }
 0x64f   : > { %7724 = vst.msk [vmem:[%s10952_s8 + $0x37] sm:$0x1] %vm1956_vm5, %v7678_v0  ;;  %8257 = vrot.lane.b32.xlu1 %v8184_v56, %s14082_s11  ;;  %v8418_v56 = vcombine.high %v8408_v61, %v8408_v61 }
 0x650   : > { %8259 = vrot.lane.b32.xlu0 %v8188_v57, %s14082_s11  ;;  %v13431_v57 = vrot.slane %v8416_v39, %v10940_v23  ;;  %v1726_v39 = vmul.f32 %v10899_v14, %v11102_v44 }
 0x651   : > { %v7680_v3 = vpop.permute.xlu1 %7679 }
 0x652   : > { %7725 = vst.msk [vmem:[%s10952_s8 + $0x57] sm:$0x1] %vm1956_vm5, %v7680_v3  ;;  %v7682_v7 = vpop.permute.xlu0 %7681  ;;  %v1756_v10 = vadd.f32 %v10904_v48, %v1726_v39 }
 0x653   : > { %7726 = vst.msk [vmem:[%s10952_s8 + $0x77] sm:$0x1] %vm1956_vm5, %v7682_v7  ;;  %8261 = vrot.lane.b32.xlu1 %v8192_v59, %s14082_s11  ;;  %v13437_v59 = vrot.slane %v8418_v56, %v10940_v23 }
 0x654   : > { %8263 = vrot.lane.b32.xlu0 %v8196_v62, %s14082_s11  ;;  %v13447_v62 = vrot.slane %v8401_v6, %v10940_v23  ;;  %v1792_v44 = vmul.f32 0.2, %v1756_v10  ;;  %vm1774_vm4 = vcmp.gt.f32.partialorder %v1756_v10, 0.0 }
 0x655   : > { %v7684_v22 = vpop.permute.xlu1 %7683 }
 0x656   : > { %7727 = vst.msk [vmem:[%s10952_s8 + $0x97] sm:$0x1] %vm1956_vm5, %v7684_v22  ;;  %v7686_v11 = vpop.permute.xlu0 %7685  ;;  %v13452_v22 = vrot.slane %v8415_v31, %v10940_v23 }
 0x657   : > { %7728 = vst.msk [vmem:[%s10952_s8 + $0xb7] sm:$0x1] %vm1956_vm5, %v7686_v11  ;;  %8265 = vrot.lane.b32.xlu1 %v8200_v43, %s14082_s11  ;;  %v8419_v43 = vcombine.high %v8415_v31, %v8415_v31  ;;  %v13461_v11 = vrot.slane %v8417_v50, %v10940_v23 }
 0x658   : > { %8267 = vrot.lane.b32.xlu0 %v8204_v19, %s14082_s11  ;;  %s10205_s11 = scalar_lea.vmem %s10204_s7, 16384 }
 0x659   : > { %v7688_v58 = vpop.permute.xlu1 %7687  ;;  %v13466_v13 = vrot.slane %v8419_v43, %v10940_v23  ;;  %p10207_p1 = scmp.lt.s32.totalorder %s10205_s11, %s10199_s5 }
 0x65a   : > { %7729 = vst.msk [vmem:[%s10952_s8 + $0xd7] sm:$0x1] %vm1956_vm5, %v7688_v58  ;;  %v7690_v18 = vpop.permute.xlu0 %7689 }
 0x65b   : > { %7730 = vst.msk [vmem:[%s10952_s8 + $0xf7] sm:$0x1] %vm1956_vm5, %v7690_v18  ;;  %8484 = vrot.lane.b32.xlu1 %v13352_v28, %s10296_s13  ;;  %p10208_p2 = por %p10207_p1, %p10206_p0 }
 0x65c   : > { %8486 = vrot.lane.b32.xlu0 %v13357_v53, %s10296_s13 }
 0x65d   : > { %v7692_v15 = vpop.permute.xlu1 %7691  ;;  %p10209_p3 = pnand %p10208_p2, %p10202_p13 }
 0x65e   : > { %7731 = vst.msk [vmem:[%s10952_s8 + $0x117] sm:$0x1] %vm1956_vm5, %v7692_v15  ;;  %v7694_v24 = vpop.permute.xlu0 %7693 }
 0x65f   : > { %7732 = vst.msk [vmem:[%s10952_s8 + $0x137] sm:$0x1] %vm1956_vm5, %v7694_v24  ;;  %8488 = vrot.lane.b32.xlu1 %v13366_v1, %s10296_s13 }
 0x660   : > { %8490 = vrot.lane.b32.xlu0 %v13372_v32, %s10296_s13 }
 0x661   : > { %v7696_v36 = vpop.permute.xlu1 %7695 }
 0x662   : > { %7733 = vst.msk [vmem:[%s10952_s8 + $0x157] sm:$0x1] %vm1956_vm5, %v7696_v36  ;;  %v7698_v29 = vpop.permute.xlu0 %7697 }
 0x663   : > { %7734 = vst.msk [vmem:[%s10952_s8 + $0x177] sm:$0x1] %vm1956_vm5, %v7698_v29  ;;  %8492 = vrot.lane.b32.xlu1 %v13384_v21, %s10296_s13 }
 0x664   : > { %8494 = vrot.lane.b32.xlu0 %v13389_v20, %s10296_s13 }
 0x665   : > { %v7700_v2 = vpop.permute.xlu1 %7699 }
 0x666   : > { %7735 = vst.msk [vmem:[%s10952_s8 + $0x197] sm:$0x1] %vm1956_vm5, %v7700_v2  ;;  %v7702_v26 = vpop.permute.xlu0 %7701 }
 0x667   : > { %7736 = vst.msk [vmem:[%s10952_s8 + $0x1b7] sm:$0x1] %vm1956_vm5, %v7702_v26  ;;  %8496 = vrot.lane.b32.xlu1 %v13400_v55, %s10296_s13 }
 0x668   : > { %8498 = vrot.lane.b32.xlu0 %v13406_v33, %s10296_s13 }
 0x669   : > { %v7704_v49 = vpop.permute.xlu1 %7703 }
 0x66a   : > { %7737 = vst.msk [vmem:[%s10952_s8 + $0x1d7] sm:$0x1] %vm1956_vm5, %v7704_v49  ;;  %v7706_v16 = vpop.permute.xlu0 %7705 }
 0x66b   : > { %7738 = vst.msk [vmem:[%s10952_s8 + $0x1f7] sm:$0x1] %vm1956_vm5, %v7706_v16  ;;  %8500 = vrot.lane.b32.xlu1 %v13417_v37, %s10296_s13 }
 0x66c   : > { %8502 = vrot.lane.b32.xlu0 %v13422_v38, %s10296_s13 }
 0x66d   : > { %v7906_v0 = vpop.permute.xlu1 %7905 }
 0x66e   : > { %7953 = vst.msk [vmem:[%s10952_s8 + $0x18] sm:$0x1] %vm1956_vm5, %v7906_v0  ;;  %v7908_v3 = vpop.permute.xlu0 %7907 }
 0x66f   : > { %7954 = vst.msk [vmem:[%s10952_s8 + $0x38] sm:$0x1] %vm1956_vm5, %v7908_v3  ;;  %8504 = vrot.lane.b32.xlu1 %v13431_v57, %s10296_s13 }
 0x670   : > { %8506 = vrot.lane.b32.xlu0 %v13437_v59, %s10296_s13 }
 0x671   : > { %v7910_v7 = vpop.permute.xlu1 %7909 }
 0x672   : > { %7955 = vst.msk [vmem:[%s10952_s8 + $0x58] sm:$0x1] %vm1956_vm5, %v7910_v7  ;;  %v7912_v46 = vpop.permute.xlu0 %7911 }
 0x673   : > { %7956 = vst.msk [vmem:[%s10952_s8 + $0x78] sm:$0x1] %vm1956_vm5, %v7912_v46  ;;  %8508 = vrot.lane.b32.xlu1 %v13447_v62, %s10296_s13 }
 0x674   : > { %8510 = vrot.lane.b32.xlu0 %v13452_v22, %s10296_s13 }
 0x675   : > { %v7914_v54 = vpop.permute.xlu1 %7913 }
 0x676   : > { %7957 = vst.msk [vmem:[%s10952_s8 + $0x98] sm:$0x1] %vm1956_vm5, %v7914_v54  ;;  %v7916_v19 = vpop.permute.xlu0 %7915 }
 0x677   : > { %7958 = vst.msk [vmem:[%s10952_s8 + $0xb8] sm:$0x1] %vm1956_vm5, %v7916_v19  ;;  %8512 = vrot.lane.b32.xlu1 %v13461_v11, %s10296_s13 }
 0x678   : > { %8514 = vrot.lane.b32.xlu0 %v13466_v13, %s10296_s13 }
 0x679   : > { %v7918_v34 = vpop.permute.xlu1 %7917 }
 0x67a   : > { %7959 = vst.msk [vmem:[%s10952_s8 + $0xd8] sm:$0x1] %vm1956_vm5, %v7918_v34  ;;  %v7920_v58 = vpop.permute.xlu0 %7919 }
 0x67b   : > { %7960 = vst.msk [vmem:[%s10952_s8 + $0xf8] sm:$0x1] %vm1956_vm5, %v7920_v58  ;;  %8714 = vrot.lane.b32.xlu1 %v13352_v28, %s10297_s23 }
 0x67c   : > { %8716 = vrot.lane.b32.xlu0 %v13357_v53, %s10297_s23 }
 0x67d   : > { %v7922_v30 = vpop.permute.xlu1 %7921 }
 0x67e   : > { %7961 = vst.msk [vmem:[%s10952_s8 + $0x118] sm:$0x1] %vm1956_vm5, %v7922_v30  ;;  %v7924_v18 = vpop.permute.xlu0 %7923 }
 0x67f   : > { %7962 = vst.msk [vmem:[%s10952_s8 + $0x138] sm:$0x1] %vm1956_vm5, %v7924_v18  ;;  %8718 = vrot.lane.b32.xlu1 %v13366_v1, %s10297_s23 }
 0x680   : > { %8720 = vrot.lane.b32.xlu0 %v13372_v32, %s10297_s23 }
 0x681   : > { %v7926_v63 = vpop.permute.xlu1 %7925 }
 0x682   : > { %7963 = vst.msk [vmem:[%s10952_s8 + $0x158] sm:$0x1] %vm1956_vm5, %v7926_v63  ;;  %v7928_v25 = vpop.permute.xlu0 %7927 }
 0x683   : > { %7964 = vst.msk [vmem:[%s10952_s8 + $0x178] sm:$0x1] %vm1956_vm5, %v7928_v25  ;;  %8722 = vrot.lane.b32.xlu1 %v13384_v21, %s10297_s23  ;;  %v1735_v25 = vmul.f32 %v10897_v42, %v11106_v47 }
 0x684   : > { %8724 = vrot.lane.b32.xlu0 %v13389_v20, %s10297_s23 }
 0x685   : > { %v7930_v15 = vpop.permute.xlu1 %7929  ;;  %v1765_v42 = vadd.f32 %v10909_v51, %v1735_v25 }
 0x686   : > { %7965 = vst.msk [vmem:[%s10952_s8 + $0x198] sm:$0x1] %vm1956_vm5, %v7930_v15  ;;  %v7932_v12 = vpop.permute.xlu0 %7931 }
 0x687   : > { %7966 = vst.msk [vmem:[%s10952_s8 + $0x1b8] sm:$0x1] %vm1956_vm5, %v7932_v12  ;;  %8726 = vrot.lane.b32.xlu1 %v13400_v55, %s10297_s23  ;;  %vm1783_vm6 = vcmp.gt.f32.partialorder %v1765_v42, 0.0 }
 0x688   : > { %8728 = vrot.lane.b32.xlu0 %v13406_v33, %s10297_s23 }
 0x689   : > { %v7934_v24 = vpop.permute.xlu1 %7933 }
 0x68a   : > { %7967 = vst.msk [vmem:[%s10952_s8 + $0x1d8] sm:$0x1] %vm1956_vm5, %v7934_v24  ;;  %v7936_v40 = vpop.permute.xlu0 %7935 }
 0x68b   : > { %7968 = vst.msk [vmem:[%s10952_s8 + $0x1f8] sm:$0x1] %vm1956_vm5, %v7936_v40  ;;  %8730 = vrot.lane.b32.xlu1 %v13417_v37, %s10297_s23 }
 0x68c   : > { %8732 = vrot.lane.b32.xlu0 %v13422_v38, %s10297_s23 }
 0x68d   : > { %v8206_v5 = vpop.permute.xlu1 %8205 }
 0x68e   : > { %v8208_v36 = vpop.permute.xlu0 %8207 }
 0x68f   : > { %v8270_v27 = vsel %vm1307_vm13, %v8206_v5, %v8208_v36  ;;  %8734 = vrot.lane.b32.xlu1 %v13431_v57, %s10297_s23 }
 0x690   : > { %8302 = vst.msk [vmem:[%s10952_s8 + $0x19] sm:$0x1] %vm1956_vm5, %v8270_v27  ;;  %8736 = vrot.lane.b32.xlu0 %v13437_v59, %s10297_s23 }
 0x691   : > { %v8210_v29 = vpop.permute.xlu1 %8209 }
 0x692   : > { %v8212_v45 = vpop.permute.xlu0 %8211 }
 0x693   : > { %v8271_v17 = vsel %vm1307_vm13, %v8210_v29, %v8212_v45  ;;  %8738 = vrot.lane.b32.xlu1 %v13447_v62, %s10297_s23 }
 0x694   : > { %8303 = vst.msk [vmem:[%s10952_s8 + $0x39] sm:$0x1] %vm1956_vm5, %v8271_v17  ;;  %8740 = vrot.lane.b32.xlu0 %v13452_v22, %s10297_s23 }
 0x695   : > { %v8214_v52 = vpop.permute.xlu1 %8213 }
 0x696   : > { %v8216_v2 = vpop.permute.xlu0 %8215 }
 0x697   : > { %v8272_v9 = vsel %vm1307_vm13, %v8214_v52, %v8216_v2  ;;  %8742 = vrot.lane.b32.xlu1 %v13461_v11, %s10297_s23 }
 0x698   : > { %8304 = vst.msk [vmem:[%s10952_s8 + $0x59] sm:$0x1] %vm1956_vm5, %v8272_v9  ;;  %8744 = vrot.lane.b32.xlu0 %v13466_v13, %s10297_s23  ;;  %v1801_v9 = vmul.f32 0.2, %v1765_v42 }
 0x699   : > { %v8218_v26 = vpop.permute.xlu1 %8217 }
 0x69a   : > { %v8220_v61 = vpop.permute.xlu0 %8219 }
 0x69b   : > { %v8273_v41 = vsel %vm1307_vm13, %v8218_v26, %v8220_v61  ;;  %8944 = vrot.lane.b32.xlu1 %v13352_v28, %s10298_s12 }
 0x69c   : > { %8305 = vst.msk [vmem:[%s10952_s8 + $0x79] sm:$0x1] %vm1956_vm5, %v8273_v41  ;;  %8946 = vrot.lane.b32.xlu0 %v13357_v53, %s10298_s12 }
 0x69d   : > { %v8222_v49 = vpop.permute.xlu1 %8221 }
 0x69e   : > { %v8224_v16 = vpop.permute.xlu0 %8223 }
 0x69f   : > { %v8274_v56 = vsel %vm1307_vm13, %v8222_v49, %v8224_v16  ;;  %8948 = vrot.lane.b32.xlu1 %v13366_v1, %s10298_s12  ;;  %v13638_v16 = vsel %vm1783_vm6, %v1765_v42, %v1801_v9 }
 0x6a0   : > { %8306 = vst.msk [vmem:[%s10952_s8 + $0x99] sm:$0x1] %vm1956_vm5, %v8274_v56  ;;  %8950 = vrot.lane.b32.xlu0 %v13372_v32, %s10298_s12 }
 0x6a1   : > { %v8226_v28 = vpop.permute.xlu1 %8225 }
 0x6a2   : > { %v8228_v53 = vpop.permute.xlu0 %8227 }
 0x6a3   : > { %v8275_v0 = vsel %vm1307_vm13, %v8226_v28, %v8228_v53  ;;  %8952 = vrot.lane.b32.xlu1 %v13384_v21, %s10298_s12  ;;  %v13566_v21 = vsel %vm1774_vm4, %v1756_v10, %v1792_v44  ;;  %v9066_v53 = vcombine.low %v13237_v60, %v13638_v16 }
 0x6a4   : > { %8307 = vst.msk [vmem:[%s10952_s8 + $0xb9] sm:$0x1] %vm1956_vm5, %v8275_v0  ;;  %8954 = vrot.lane.b32.xlu0 %v13389_v20, %s10298_s12  ;;  %v9368_v9 = vrot.slane %v13566_v21, %v10912_v8 }
 0x6a5   : > { %v8230_v14 = vpop.permute.xlu1 %8229 }
 0x6a6   : > { %v8232_v1 = vpop.permute.xlu0 %8231 }
 0x6a7   : > { %v8276_v32 = vsel %vm1307_vm13, %v8230_v14, %v8232_v1  ;;  %8956 = vrot.lane.b32.xlu1 %v13400_v55, %s10298_s12  ;;  %v9016_v55 = vcombine.low %v13157_v35, %v13566_v21 }
 0x6a8   : > { %8308 = vst.msk [vmem:[%s10952_s8 + $0xd9] sm:$0x1] %vm1956_vm5, %v8276_v32  ;;  %8958 = vrot.lane.b32.xlu0 %v13406_v33, %s10298_s12 }
 0x6a9   : > { %v8234_v48 = vpop.permute.xlu1 %8233 }
 0x6aa   : > { %v8236_v6 = vpop.permute.xlu0 %8235 }
 0x6ab   : > { %v8277_v20 = vsel %vm1307_vm13, %v8234_v48, %v8236_v6  ;;  %8960 = vrot.lane.b32.xlu1 %v13417_v37, %s10298_s12  ;;  %v9024_v37 = vrot.slane %v9016_v55, %v10912_v8  ;;  %v9074_v48 = vrot.slane %v9066_v53, %v10912_v8 }
 0x6ac   : > { %8309 = vst.msk [vmem:[%s10952_s8 + $0xf9] sm:$0x1] %vm1956_vm5, %v8277_v20  ;;  %8962 = vrot.lane.b32.xlu0 %v13422_v38, %s10298_s12 }
 0x6ad   : > { %v8238_v3 = vpop.permute.xlu1 %8237  ;;  %v9040_v46 = vrot.slane %v9024_v37, %v10912_v8  ;;  %v9032_v43 = vcombine.high %v9024_v37, %v9024_v37 }
 0x6ae   : > { %v8240_v33 = vpop.permute.xlu0 %8239 }
 0x6af   : > { %v8278_v31 = vsel %vm1307_vm13, %v8238_v3, %v8240_v33  ;;  %8964 = vrot.lane.b32.xlu1 %v13431_v57, %s10298_s12  ;;  %v9119_v19 = vrot.slane %v9040_v46, %v10940_v23  ;;  %v9123_v58 = vrot.slane %v9040_v46, %v10979_v4  ;;  %v9062_v63 = vcombine.high %v9040_v46, %v9040_v46 }
 0x6b0   : > { %8310 = vst.msk [vmem:[%s10952_s8 + $0x119] sm:$0x1] %vm1956_vm5, %v8278_v31  ;;  %8966 = vrot.lane.b32.xlu0 %v13437_v59, %s10298_s12 }
 0x6b1   : > { %v8242_v7 = vpop.permute.xlu1 %8241  ;;  %v9135_v5 = vrot.slane %v9062_v63, %v10940_v23  ;;  %v9139_v27 = vrot.slane %v9062_v63, %v10979_v4 }
 0x6b2   : > { %v8244_v38 = vpop.permute.xlu0 %8243 }
 0x6b3   : > { %v8279_v50 = vsel %vm1307_vm13, %v8242_v7, %v8244_v38  ;;  %8968 = vrot.lane.b32.xlu1 %v13447_v62, %s10298_s12  ;;  %v9090_v7 = vrot.slane %v9074_v48, %v10912_v8  ;;  %v9082_v38 = vcombine.high %v9074_v48, %v9074_v48 }
 0x6b4   : > { %8311 = vst.msk [vmem:[%s10952_s8 + $0x139] sm:$0x1] %vm1956_vm5, %v8279_v50  ;;  %8970 = vrot.lane.b32.xlu0 %v13452_v22, %s10298_s12  ;;  %v9054_v22 = vrot.slane %v9032_v43, %v10912_v8 }
 0x6b5   : > { %v8246_v57 = vpop.permute.xlu1 %8245  ;;  %v9183_v43 = vrot.slane %v9090_v7, %v10940_v23 }
 0x6b6   : > { %v8248_v59 = vpop.permute.xlu0 %8247  ;;  %v9127_v18 = vrot.slane %v9054_v22, %v10940_v23  ;;  %v9131_v12 = vrot.slane %v9054_v22, %v10979_v4  ;;  %v9064_v36 = vcombine.high %v9054_v22, %v9054_v22 }
 0x6b7   : > { %v8280_v54 = vsel %vm1307_vm13, %v8246_v57, %v8248_v59  ;;  %8972 = vrot.lane.b32.xlu1 %v13461_v11, %s10298_s12  ;;  %v9017_v11 = vcombine.high %v13157_v35, %v13566_v21  ;;  %v9104_v59 = vrot.slane %v9082_v38, %v10912_v8  ;;  %v9417_v38 = vrot.slane %v13638_v16, %v10912_v8 }
 0x6b8   : > { %8312 = vst.msk [vmem:[%s10952_s8 + $0x159] sm:$0x1] %vm1956_vm5, %v8280_v54  ;;  %8974 = vrot.lane.b32.xlu0 %v13466_v13, %s10298_s12  ;;  %v9143_v17 = vrot.slane %v9064_v36, %v10940_v23  ;;  %v9147_v26 = vrot.slane %v9064_v36, %v10979_v4 }
 0x6b9   : > { %v8250_v62 = vpop.permute.xlu1 %8249  ;;  %v9031_v35 = vrot.slane %v9017_v11, %v10912_v8  ;;  %v9195_v11 = vrot.slane %v9104_v59, %v10979_v4  ;;  %v9114_v63 = vcombine.high %v9104_v59, %v9104_v59 }
 0x6ba   : > { %v8252_v34 = vpop.permute.xlu0 %8251 }
 0x6bb   : > { %v8281_v30 = vsel %vm1307_vm13, %v8250_v62, %v8252_v34  ;;  %9244 = vrot.lane.b32.xlu1 %v9119_v19, %s10299_s22  ;;  %v9047_v52 = vrot.slane %v9031_v35, %v10912_v8  ;;  %v9033_v2 = vcombine.high %v9031_v35, %v9031_v35  ;;  %v9187_v62 = vrot.slane %v9090_v7, %v10979_v4 }
 0x6bc   : > { %8313 = vst.msk [vmem:[%s10952_s8 + $0x179] sm:$0x1] %vm1956_vm5, %v8281_v30  ;;  %9246 = vrot.lane.b32.xlu0 %v9123_v58, %s10299_s22  ;;  %v9067_v19 = vcombine.high %v13237_v60, %v13638_v16  ;;  %v9191_v34 = vrot.slane %v9104_v59, %v10940_v23  ;;  %v9112_v58 = vcombine.high %v9090_v7, %v9090_v7 }
 0x6bd   : > { %v8254_v13 = vpop.permute.xlu1 %8253  ;;  %v9151_v49 = vrot.slane %v9047_v52, %v10940_v23  ;;  %v9061_v39 = vrot.slane %v9033_v2, %v10912_v8  ;;  %v9155_v28 = vrot.slane %v9047_v52, %v10979_v4  ;;  %v9063_v44 = vcombine.high %v9047_v52, %v9047_v52 }
 0x6be   : > { %v8256_v15 = vpop.permute.xlu0 %8255  ;;  %v9211_v36 = vrot.slane %v9114_v63, %v10979_v4 }
 0x6bf   : > { %v8282_v24 = vsel %vm1307_vm13, %v8254_v13, %v8256_v15  ;;  %9248 = vrot.lane.b32.xlu1 %v9127_v18, %s10299_s22  ;;  %v9159_v14 = vrot.slane %v9061_v39, %v10940_v23  ;;  %v9163_v32 = vrot.slane %v9061_v39, %v10979_v4  ;;  %v9167_v20 = vrot.slane %v9063_v44, %v10940_v23 }
 0x6c0   : > { %8314 = vst.msk [vmem:[%s10952_s8 + $0x199] sm:$0x1] %vm1956_vm5, %v8282_v24  ;;  %9250 = vrot.lane.b32.xlu0 %v9131_v12, %s10299_s22  ;;  %v9065_v55 = vcombine.high %v9061_v39, %v9061_v39  ;;  %v9171_v33 = vrot.slane %v9063_v44, %v10979_v4  ;;  %v9081_v13 = vrot.slane %v9067_v19, %v10912_v8 }
 0x6c1   : > { %v8258_v40 = vpop.permute.xlu1 %8257  ;;  %v9199_v18 = vrot.slane %v9112_v58, %v10940_v23  ;;  %v9203_v15 = vrot.slane %v9112_v58, %v10979_v4  ;;  %v9207_v24 = vrot.slane %v9114_v63, %v10940_v23  ;;  %v9361_v39 = vcombine.high %v13566_v21, %v13566_v21 }
 0x6c2   : > { %v8260_v47 = vpop.permute.xlu0 %8259  ;;  %v9175_v37 = vrot.slane %v9065_v55, %v10940_v23  ;;  %v9179_v57 = vrot.slane %v9065_v55, %v10979_v4  ;;  %v9097_v35 = vrot.slane %v9081_v13, %v10912_v8  ;;  %v9425_v58 = vcombine.high %v9417_v38, %v9417_v38 }
 0x6c3   : > { %v8283_v29 = vsel %vm1307_vm13, %v8258_v40, %v8260_v47  ;;  %9252 = vrot.lane.b32.xlu1 %v9135_v5, %s10299_s22  ;;  %v9083_v40 = vcombine.high %v9081_v13, %v9081_v13 }
 0x6c4   : > { %8315 = vst.msk [vmem:[%s10952_s8 + $0x1b9] sm:$0x1] %vm1956_vm5, %v8283_v29  ;;  %9254 = vrot.lane.b32.xlu0 %v9139_v27, %s10299_s22  ;;  %v9215_v47 = vrot.slane %v9097_v35, %v10940_v23  ;;  %v9113_v2 = vcombine.high %v9097_v35, %v9097_v35 }
 0x6c5   : > { %v8262_v45 = vpop.permute.xlu1 %8261  ;;  %v9111_v27 = vrot.slane %v9083_v40, %v10912_v8 }
 0x6c6   : > { %v8264_v51 = vpop.permute.xlu0 %8263 }
 0x6c7   : > { %v8284_v61 = vsel %vm1307_vm13, %v8262_v45, %v8264_v51  ;;  %9256 = vrot.lane.b32.xlu1 %v9143_v17, %s10299_s22  ;;  %v9219_v45 = vrot.slane %v9097_v35, %v10979_v4  ;;  %v9223_v52 = vrot.slane %v9111_v27, %v10940_v23 }
 0x6c8   : > { %8316 = vst.msk [vmem:[%s10952_s8 + $0x1d9] sm:$0x1] %vm1956_vm5, %v8284_v61  ;;  %9258 = vrot.lane.b32.xlu0 %v9147_v26, %s10299_s22  ;;  %v9227_v26 = vrot.slane %v9111_v27, %v10979_v4 }
 0x6c9   : > { %v8266_v41 = vpop.permute.xlu1 %8265 }
 0x6ca   : > { %v8268_v56 = vpop.permute.xlu0 %8267 }
 0x6cb   : > { %v8285_v10 = vsel %vm1307_vm13, %v8266_v41, %v8268_v56  ;;  %9260 = vrot.lane.b32.xlu1 %v9151_v49, %s10299_s22  ;;  %v9231_v41 = vrot.slane %v9113_v2, %v10940_v23  ;;  %v9115_v49 = vcombine.high %v9111_v27, %v9111_v27  ;;  %vm9308_vm13 = vcmask 72704  }
 0x6cc   : > { %8317 = vst.msk [vmem:[%s10952_s8 + $0x1f9] sm:$0x1] %vm1956_vm5, %v8285_v10  ;;  %9262 = vrot.lane.b32.xlu0 %v9155_v28, %s10299_s22  ;;  %v9235_v28 = vrot.slane %v9113_v2, %v10979_v4  ;;  %v9376_v10 = vcombine.high %v9368_v9, %v9368_v9 }
 0x6cd   : > { %v8485_v0 = vpop.permute.xlu1 %8484  ;;  %v9243_v44 = vrot.slane %v9115_v49, %v10979_v4 }
 0x6ce   : > { %8532 = vst.msk [vmem:[%s10952_s8 + $0x1a] sm:$0x1] %vm1956_vm5, %v8485_v0  ;;  %v8487_v1 = vpop.permute.xlu0 %8486  ;;  %v9239_v0 = vrot.slane %v9115_v49, %v10940_v23 }
 0x6cf   : > { %8533 = vst.msk [vmem:[%s10952_s8 + $0x3a] sm:$0x1] %vm1956_vm5, %v8487_v1  ;;  %9264 = vrot.lane.b32.xlu1 %v9159_v14, %s10299_s22  ;;  %v9384_v14 = vrot.slane %v9368_v9, %v10912_v8  ;;  %v9398_v1 = vrot.slane %v9376_v10, %v10912_v8 }
 0x6d0   : > { %9266 = vrot.lane.b32.xlu0 %v9163_v32, %s10299_s22  ;;  %v9375_v32 = vrot.slane %v9361_v39, %v10912_v8 }
 0x6d1   : > { %v8489_v6 = vpop.permute.xlu1 %8488  ;;  %v13757_v4 = vrot.slane %v9398_v1, %v10940_v23 }
 0x6d2   : > { %8534 = vst.msk [vmem:[%s10952_s8 + $0x5a] sm:$0x1] %vm1956_vm5, %v8489_v6  ;;  %v8491_v3 = vpop.permute.xlu0 %8490  ;;  %v13752_v6 = vrot.slane %v9384_v14, %v10940_v23  ;;  %v9391_v7 = vrot.slane %v9375_v32, %v10912_v8 }
 0x6d3   : > { %8535 = vst.msk [vmem:[%s10952_s8 + $0x7a] sm:$0x1] %vm1956_vm5, %v8491_v3  ;;  %9268 = vrot.lane.b32.xlu1 %v9167_v20, %s10299_s22  ;;  %v9406_v20 = vcombine.high %v9384_v14, %v9384_v14  ;;  %v9408_v3 = vcombine.high %v9398_v1, %v9398_v1 }
 0x6d4   : > { %9270 = vrot.lane.b32.xlu0 %v9171_v33, %s10299_s22  ;;  %v9377_v33 = vcombine.high %v9375_v32, %v9375_v32  ;;  %v13784_v59 = vrot.slane %v9391_v7, %v10940_v23 }
 0x6d5   : > { %v8493_v31 = vpop.permute.xlu1 %8492 }
 0x6d6   : > { %8536 = vst.msk [vmem:[%s10952_s8 + $0x9a] sm:$0x1] %vm1956_vm5, %v8493_v31  ;;  %v8495_v50 = vpop.permute.xlu0 %8494 }
 0x6d7   : > { %8537 = vst.msk [vmem:[%s10952_s8 + $0xba] sm:$0x1] %vm1956_vm5, %v8495_v50  ;;  %9272 = vrot.lane.b32.xlu1 %v9175_v37, %s10299_s22  ;;  %v13766_v37 = vrot.slane %v9406_v20, %v10940_v23 }
 0x6d8   : > { %9274 = vrot.lane.b32.xlu0 %v9179_v57, %s10299_s22  ;;  %v13774_v57 = vrot.slane %v9408_v3, %v10940_v23 }
 0x6d9   : > { %v8497_v46 = vpop.permute.xlu1 %8496 }
 0x6da   : > { %8538 = vst.msk [vmem:[%s10952_s8 + $0xda] sm:$0x1] %vm1956_vm5, %v8497_v46  ;;  %v8499_v54 = vpop.permute.xlu0 %8498  ;;  %v9405_v46 = vrot.slane %v9377_v33, %v10912_v8 }
 0x6db   : > { %8539 = vst.msk [vmem:[%s10952_s8 + $0xfa] sm:$0x1] %vm1956_vm5, %v8499_v54  ;;  %9276 = vrot.lane.b32.xlu1 %v9183_v43, %s10299_s22  ;;  %v9407_v54 = vcombine.high %v9391_v7, %v9391_v7 }
 0x6dc   : > { %9278 = vrot.lane.b32.xlu0 %v9187_v62, %s10299_s22  ;;  %v9410_v62 = vcombine.high %v13638_v16, %v13638_v16 }
 0x6dd   : > { %v8501_v22 = vpop.permute.xlu1 %8500  ;;  %v13800_v16 = vrot.slane %v9407_v54, %v10940_v23 }
 0x6de   : > { %8540 = vst.msk [vmem:[%s10952_s8 + $0x11a] sm:$0x1] %vm1956_vm5, %v8501_v22  ;;  %v8503_v30 = vpop.permute.xlu0 %8502  ;;  %v13791_v22 = vrot.slane %v9405_v46, %v10940_v23  ;;  %v9424_v63 = vrot.slane %v9410_v62, %v10912_v8 }
 0x6df   : > { %8541 = vst.msk [vmem:[%s10952_s8 + $0x13a] sm:$0x1] %vm1956_vm5, %v8503_v30  ;;  %9280 = vrot.lane.b32.xlu1 %v9191_v34, %s10299_s22  ;;  %v9409_v34 = vcombine.high %v9405_v46, %v9405_v46 }
 0x6e0   : > { %9282 = vrot.lane.b32.xlu0 %v9195_v11, %s10299_s22  ;;  %v9433_v11 = vrot.slane %v9417_v38, %v10912_v8 }
 0x6e1   : > { %v8505_v60 = vpop.permute.xlu1 %8504 }
 0x6e2   : > { %8542 = vst.msk [vmem:[%s10952_s8 + $0x15a] sm:$0x1] %vm1956_vm5, %v8505_v60  ;;  %v8507_v25 = vpop.permute.xlu0 %8506  ;;  %v13806_v60 = vrot.slane %v9409_v34, %v10940_v23 }
 0x6e3   : > { %8543 = vst.msk [vmem:[%s10952_s8 + $0x17a] sm:$0x1] %vm1956_vm5, %v8507_v25  ;;  %9284 = vrot.lane.b32.xlu1 %v9199_v18, %s10299_s22  ;;  %v9447_v18 = vrot.slane %v9425_v58, %v10912_v8 }
 0x6e4   : > { %9286 = vrot.lane.b32.xlu0 %v9203_v15, %s10299_s22  ;;  %v13817_v15 = vrot.slane %v9433_v11, %v10940_v23 }
 0x6e5   : > { %v8509_v12 = vpop.permute.xlu1 %8508  ;;  %v13822_v35 = vrot.slane %v9447_v18, %v10940_v23  ;;  %v9457_v40 = vcombine.high %v9447_v18, %v9447_v18 }
 0x6e6   : > { %8544 = vst.msk [vmem:[%s10952_s8 + $0x19a] sm:$0x1] %vm1956_vm5, %v8509_v12  ;;  %v8511_v5 = vpop.permute.xlu0 %8510  ;;  %v9455_v12 = vcombine.high %v9433_v11, %v9433_v11 }
 0x6e7   : > { %8545 = vst.msk [vmem:[%s10952_s8 + $0x1ba] sm:$0x1] %vm1956_vm5, %v8511_v5  ;;  %9288 = vrot.lane.b32.xlu1 %v9207_v24, %s10299_s22  ;;  %v9426_v5 = vcombine.high %v9424_v63, %v9424_v63 }
 0x6e8   : > { %9290 = vrot.lane.b32.xlu0 %v9211_v36, %s10299_s22 }
 0x6e9   : > { %v8513_v42 = vpop.permute.xlu1 %8512 }
 0x6ea   : > { %8546 = vst.msk [vmem:[%s10952_s8 + $0x1da] sm:$0x1] %vm1956_vm5, %v8513_v42  ;;  %v8515_v29 = vpop.permute.xlu0 %8514  ;;  %v13831_v42 = vrot.slane %v9455_v12, %v10940_v23 }
 0x6eb   : > { %8547 = vst.msk [vmem:[%s10952_s8 + $0x1fa] sm:$0x1] %vm1956_vm5, %v8515_v29  ;;  %9292 = vrot.lane.b32.xlu1 %v9215_v47, %s10299_s22  ;;  %v9440_v47 = vrot.slane %v9424_v63, %v10912_v8  ;;  %v9506_v29 = vrot.slane %v9457_v40, %v10940_v23 }
 0x6ec   : > { %9294 = vrot.lane.b32.xlu0 %v9219_v45, %s10299_s22  ;;  %v9454_v45 = vrot.slane %v9426_v5, %v10912_v8 }
 0x6ed   : > { %v8715_v17 = vpop.permute.xlu1 %8714  ;;  %v9456_v2 = vcombine.high %v9440_v47, %v9440_v47 }
 0x6ee   : > { %8762 = vst.msk [vmem:[%s10952_s8 + $0x1b] sm:$0x1] %vm1956_vm5, %v8715_v17  ;;  %v8717_v51 = vpop.permute.xlu0 %8716  ;;  %v9458_v8 = vcombine.high %v9454_v45, %v9454_v45 }
 0x6ef   : > { %8763 = vst.msk [vmem:[%s10952_s8 + $0x3b] sm:$0x1] %vm1956_vm5, %v8717_v51  ;;  %9296 = vrot.lane.b32.xlu1 %v9223_v52, %s10299_s22  ;;  %v9510_v52 = vrot.slane %v9440_v47, %v10940_v23  ;;  %v9514_v51 = vrot.slane %v9454_v45, %v10940_v23 }
 0x6f0   : > { %9298 = vrot.lane.b32.xlu0 %v9227_v26, %s10299_s22  ;;  %v9522_v49 = vrot.slane %v9458_v8, %v10940_v23 }
 0x6f1   : > { %v8719_v61 = vpop.permute.xlu1 %8718 }
 0x6f2   : > { %8764 = vst.msk [vmem:[%s10952_s8 + $0x5b] sm:$0x1] %vm1956_vm5, %v8719_v61  ;;  %v8721_v56 = vpop.permute.xlu0 %8720  ;;  %v9518_v61 = vrot.slane %v9456_v2, %v10940_v23 }
 0x6f3   : > { %8765 = vst.msk [vmem:[%s10952_s8 + $0x7b] sm:$0x1] %vm1956_vm5, %v8721_v56  ;;  %9300 = vrot.lane.b32.xlu1 %v9231_v41, %s10299_s22 }
 0x6f4   : > { %9302 = vrot.lane.b32.xlu0 %v9235_v28, %s10299_s22 }
 0x6f5   : > { %v8723_v53 = vpop.permute.xlu1 %8722 }
 0x6f6   : > { %8766 = vst.msk [vmem:[%s10952_s8 + $0x9b] sm:$0x1] %vm1956_vm5, %v8723_v53  ;;  %v8725_v21 = vpop.permute.xlu0 %8724 }
 0x6f7   : > { %8767 = vst.msk [vmem:[%s10952_s8 + $0xbb] sm:$0x1] %vm1956_vm5, %v8725_v21  ;;  %9304 = vrot.lane.b32.xlu1 %v9239_v0, %s10299_s22 }
 0x6f8   : > { %9306 = vrot.lane.b32.xlu0 %v9243_v44, %s10299_s22 }
 0x6f9   : > { %v8727_v48 = vpop.permute.xlu1 %8726 }
 0x6fa   : > { %8768 = vst.msk [vmem:[%s10952_s8 + $0xdb] sm:$0x1] %vm1956_vm5, %v8727_v48  ;;  %v8729_v55 = vpop.permute.xlu0 %8728 }
 0x6fb   : > { %8769 = vst.msk [vmem:[%s10952_s8 + $0xfb] sm:$0x1] %vm1956_vm5, %v8729_v55  ;;  %9523 = vrot.lane.b32.xlu1 %v13752_v6, %s10300_s29 }
 0x6fc   : > { %9525 = vrot.lane.b32.xlu0 %v13757_v4, %s10300_s29 }
 0x6fd   : > { %v8731_v31 = vpop.permute.xlu1 %8730 }
 0x6fe   : > { %8770 = vst.msk [vmem:[%s10952_s8 + $0x11b] sm:$0x1] %vm1956_vm5, %v8731_v31  ;;  %v8733_v50 = vpop.permute.xlu0 %8732 }
 0x6ff   : > { %8771 = vst.msk [vmem:[%s10952_s8 + $0x13b] sm:$0x1] %vm1956_vm5, %v8733_v50  ;;  %9527 = vrot.lane.b32.xlu1 %v13766_v37, %s10300_s29 }
 0x700   : > { %9529 = vrot.lane.b32.xlu0 %v13774_v57, %s10300_s29 }
 0x701   : > { %v8735_v43 = vpop.permute.xlu1 %8734 }
 0x702   : > { %8772 = vst.msk [vmem:[%s10952_s8 + $0x15b] sm:$0x1] %vm1956_vm5, %v8735_v43  ;;  %v8737_v19 = vpop.permute.xlu0 %8736 }
 0x703   : > { %8773 = vst.msk [vmem:[%s10952_s8 + $0x17b] sm:$0x1] %vm1956_vm5, %v8737_v19  ;;  %9531 = vrot.lane.b32.xlu1 %v13784_v59, %s10300_s29 }
 0x704   : > { %9533 = vrot.lane.b32.xlu0 %v13791_v22, %s10300_s29 }
 0x705   : > { %v8739_v30 = vpop.permute.xlu1 %8738 }
 0x706   : > { %8774 = vst.msk [vmem:[%s10952_s8 + $0x19b] sm:$0x1] %vm1956_vm5, %v8739_v30  ;;  %v8741_v13 = vpop.permute.xlu0 %8740 }
 0x707   : > { %8775 = vst.msk [vmem:[%s10952_s8 + $0x1bb] sm:$0x1] %vm1956_vm5, %v8741_v13  ;;  %9535 = vrot.lane.b32.xlu1 %v13800_v16, %s10300_s29 }
 0x708   : > { %9537 = vrot.lane.b32.xlu0 %v13806_v60, %s10300_s29 }
 0x709   : > { %v8743_v25 = vpop.permute.xlu1 %8742 }
 0x70a   : > { %8776 = vst.msk [vmem:[%s10952_s8 + $0x1db] sm:$0x1] %vm1956_vm5, %v8743_v25  ;;  %v8745_v24 = vpop.permute.xlu0 %8744 }
 0x70b   : > { %8777 = vst.msk [vmem:[%s10952_s8 + $0x1fb] sm:$0x1] %vm1956_vm5, %v8745_v24  ;;  %9539 = vrot.lane.b32.xlu1 %v13817_v15, %s10300_s29 }
 0x70c   : > { %9541 = vrot.lane.b32.xlu0 %v13822_v35, %s10300_s29 }
 0x70d   : > { %v8945_v36 = vpop.permute.xlu1 %8944 }
 0x70e   : > { %8992 = vst.msk [vmem:[%s10952_s8 + $0x1c] sm:$0x1] %vm1956_vm5, %v8945_v36  ;;  %v8947_v27 = vpop.permute.xlu0 %8946 }
 0x70f   : > { %8993 = vst.msk [vmem:[%s10952_s8 + $0x3c] sm:$0x1] %vm1956_vm5, %v8947_v27  ;;  %9543 = vrot.lane.b32.xlu1 %v13831_v42, %s10300_s29 }
 0x710   : > { %9545 = vrot.lane.b32.xlu0 %v9506_v29, %s10300_s29 }
 0x711   : > { %v8949_v17 = vpop.permute.xlu1 %8948 }
 0x712   : > { %8994 = vst.msk [vmem:[%s10952_s8 + $0x5c] sm:$0x1] %vm1956_vm5, %v8949_v17  ;;  %v8951_v9 = vpop.permute.xlu0 %8950 }
 0x713   : > { %8995 = vst.msk [vmem:[%s10952_s8 + $0x7c] sm:$0x1] %vm1956_vm5, %v8951_v9  ;;  %9547 = vrot.lane.b32.xlu1 %v9510_v52, %s10300_s29 }
 0x714   : > { %9549 = vrot.lane.b32.xlu0 %v9514_v51, %s10300_s29 }
 0x715   : > { %v8953_v26 = vpop.permute.xlu1 %8952 }
 0x716   : > { %8996 = vst.msk [vmem:[%s10952_s8 + $0x9c] sm:$0x1] %vm1956_vm5, %v8953_v26  ;;  %v8955_v41 = vpop.permute.xlu0 %8954 }
 0x717   : > { %8997 = vst.msk [vmem:[%s10952_s8 + $0xbc] sm:$0x1] %vm1956_vm5, %v8955_v41  ;;  %9551 = vrot.lane.b32.xlu1 %v9518_v61, %s10300_s29 }
 0x718   : > { %9553 = vrot.lane.b32.xlu0 %v9522_v49, %s10300_s29 }
 0x719   : > { %v8957_v39 = vpop.permute.xlu1 %8956 }
 0x71a   : > { %8998 = vst.msk [vmem:[%s10952_s8 + $0xdc] sm:$0x1] %vm1956_vm5, %v8957_v39  ;;  %v8959_v56 = vpop.permute.xlu0 %8958 }
 0x71b   : > { %8999 = vst.msk [vmem:[%s10952_s8 + $0xfc] sm:$0x1] %vm1956_vm5, %v8959_v56  ;;  %9753 = vrot.lane.b32.xlu1 %v13752_v6, %s10301_s20 }
 0x71c   : > { %9755 = vrot.lane.b32.xlu0 %v13757_v4, %s10301_s20 }
 0x71d   : > { %v8961_v23 = vpop.permute.xlu1 %8960 }
 0x71e   : > { %9000 = vst.msk [vmem:[%s10952_s8 + $0x11c] sm:$0x1] %vm1956_vm5, %v8961_v23  ;;  %v8963_v28 = vpop.permute.xlu0 %8962 }
 0x71f   : > { %9001 = vst.msk [vmem:[%s10952_s8 + $0x13c] sm:$0x1] %vm1956_vm5, %v8963_v28  ;;  %9757 = vrot.lane.b32.xlu1 %v13766_v37, %s10301_s20 }
 0x720   : > { %9759 = vrot.lane.b32.xlu0 %v13774_v57, %s10301_s20 }
 0x721   : > { %v8965_v10 = vpop.permute.xlu1 %8964 }
 0x722   : > { %9002 = vst.msk [vmem:[%s10952_s8 + $0x15c] sm:$0x1] %vm1956_vm5, %v8965_v10  ;;  %v8967_v53 = vpop.permute.xlu0 %8966 }
 0x723   : > { %9003 = vst.msk [vmem:[%s10952_s8 + $0x17c] sm:$0x1] %vm1956_vm5, %v8967_v53  ;;  %9761 = vrot.lane.b32.xlu1 %v13784_v59, %s10301_s20 }
 0x724   : > { %9763 = vrot.lane.b32.xlu0 %v13791_v22, %s10301_s20 }
 0x725   : > { %v8969_v0 = vpop.permute.xlu1 %8968 }
 0x726   : > { %9004 = vst.msk [vmem:[%s10952_s8 + $0x19c] sm:$0x1] %vm1956_vm5, %v8969_v0  ;;  %v8971_v14 = vpop.permute.xlu0 %8970 }
 0x727   : > { %9005 = vst.msk [vmem:[%s10952_s8 + $0x1bc] sm:$0x1] %vm1956_vm5, %v8971_v14  ;;  %9765 = vrot.lane.b32.xlu1 %v13800_v16, %s10301_s20 }
 0x728   : > { %9767 = vrot.lane.b32.xlu0 %v13806_v60, %s10301_s20 }
 0x729   : > { %v8973_v21 = vpop.permute.xlu1 %8972 }
 0x72a   : > { %9006 = vst.msk [vmem:[%s10952_s8 + $0x1dc] sm:$0x1] %vm1956_vm5, %v8973_v21  ;;  %v8975_v44 = vpop.permute.xlu0 %8974 }
 0x72b   : > { %9007 = vst.msk [vmem:[%s10952_s8 + $0x1fc] sm:$0x1] %vm1956_vm5, %v8975_v44  ;;  %9769 = vrot.lane.b32.xlu1 %v13817_v15, %s10301_s20 }
 0x72c   : > { %9771 = vrot.lane.b32.xlu0 %v13822_v35, %s10301_s20 }
 0x72d   : > { %v9245_v1 = vpop.permute.xlu1 %9244 }
 0x72e   : > { %v9247_v32 = vpop.permute.xlu0 %9246 }
 0x72f   : > { %v9309_v48 = vsel %vm9308_vm13, %v9245_v1, %v9247_v32  ;;  %9773 = vrot.lane.b32.xlu1 %v13831_v42, %s10301_s20 }
 0x730   : > { %9341 = vst.msk [vmem:[%s10952_s8 + $0x1d] sm:$0x1] %vm1956_vm5, %v9309_v48  ;;  %9775 = vrot.lane.b32.xlu0 %v9506_v29, %s10301_s20 }
 0x731   : > { %v9249_v6 = vpop.permute.xlu1 %9248 }
 0x732   : > { %v9251_v20 = vpop.permute.xlu0 %9250 }
 0x733   : > { %v9310_v55 = vsel %vm9308_vm13, %v9249_v6, %v9251_v20  ;;  %9777 = vrot.lane.b32.xlu1 %v9510_v52, %s10301_s20 }
 0x734   : > { %9342 = vst.msk [vmem:[%s10952_s8 + $0x3d] sm:$0x1] %vm1956_vm5, %v9310_v55  ;;  %9779 = vrot.lane.b32.xlu0 %v9514_v51, %s10301_s20 }
 0x735   : > { %v9253_v4 = vpop.permute.xlu1 %9252 }
 0x736   : > { %v9255_v3 = vpop.permute.xlu0 %9254 }
 0x737   : > { %v9311_v33 = vsel %vm9308_vm13, %v9253_v4, %v9255_v3  ;;  %9781 = vrot.lane.b32.xlu1 %v9518_v61, %s10301_s20 }
 0x738   : > { %9343 = vst.msk [vmem:[%s10952_s8 + $0x5d] sm:$0x1] %vm1956_vm5, %v9311_v33  ;;  %9783 = vrot.lane.b32.xlu0 %v9522_v49, %s10301_s20 }
 0x739   : > { %v9257_v31 = vpop.permute.xlu1 %9256 }
 0x73a   : > { %v9259_v37 = vpop.permute.xlu0 %9258 }
 0x73b   : > { %v9312_v7 = vsel %vm9308_vm13, %v9257_v31, %v9259_v37 }
 0x73c   : > { %9344 = vst.msk [vmem:[%s10952_s8 + $0x7d] sm:$0x1] %vm1956_vm5, %v9312_v7 }
 0x73d   : > { %v9261_v38 = vpop.permute.xlu1 %9260 }
 0x73e   : > { %v9263_v50 = vpop.permute.xlu0 %9262 }
 0x73f   : > { %v9313_v57 = vsel %vm9308_vm13, %v9261_v38, %v9263_v50 }
 0x740   : > { %9345 = vst.msk [vmem:[%s10952_s8 + $0x9d] sm:$0x1] %vm1956_vm5, %v9313_v57 }
 0x741   : > { %v9265_v46 = vpop.permute.xlu1 %9264 }
 0x742   : > { %v9267_v43 = vpop.permute.xlu0 %9266 }
 0x743   : > { %v9314_v59 = vsel %vm9308_vm13, %v9265_v46, %v9267_v43 }
 0x744   : > { %9346 = vst.msk [vmem:[%s10952_s8 + $0xbd] sm:$0x1] %vm1956_vm5, %v9314_v59 }
 0x745   : > { %v9269_v54 = vpop.permute.xlu1 %9268 }
 0x746   : > { %v9271_v62 = vpop.permute.xlu0 %9270 }
 0x747   : > { %v9315_v19 = vsel %vm9308_vm13, %v9269_v54, %v9271_v62 }
 0x748   : > { %9347 = vst.msk [vmem:[%s10952_s8 + $0xdd] sm:$0x1] %vm1956_vm5, %v9315_v19 }
 0x749   : > { %v9273_v22 = vpop.permute.xlu1 %9272 }
 0x74a   : > { %v9275_v34 = vpop.permute.xlu0 %9274 }
 0x74b   : > { %v9316_v58 = vsel %vm9308_vm13, %v9273_v22, %v9275_v34 }
 0x74c   : > { %9348 = vst.msk [vmem:[%s10952_s8 + $0xfd] sm:$0x1] %vm1956_vm5, %v9316_v58 }
 0x74d   : > { %v9277_v30 = vpop.permute.xlu1 %9276 }
 0x74e   : > { %v9279_v16 = vpop.permute.xlu0 %9278 }
 0x74f   : > { %v9317_v11 = vsel %vm9308_vm13, %v9277_v30, %v9279_v16 }
 0x750   : > { %9349 = vst.msk [vmem:[%s10952_s8 + $0x11d] sm:$0x1] %vm1956_vm5, %v9317_v11 }
 0x751   : > { %v9281_v13 = vpop.permute.xlu1 %9280 }
 0x752   : > { %v9283_v60 = vpop.permute.xlu0 %9282 }
 0x753   : > { %v9318_v18 = vsel %vm9308_vm13, %v9281_v13, %v9283_v60 }
 0x754   : > { %9350 = vst.msk [vmem:[%s10952_s8 + $0x13d] sm:$0x1] %vm1956_vm5, %v9318_v18 }
 0x755   : > { %v9285_v63 = vpop.permute.xlu1 %9284 }
 0x756   : > { %v9287_v25 = vpop.permute.xlu0 %9286 }
 0x757   : > { %v9319_v15 = vsel %vm9308_vm13, %v9285_v63, %v9287_v25 }
 0x758   : > { %9351 = vst.msk [vmem:[%s10952_s8 + $0x15d] sm:$0x1] %vm1956_vm5, %v9319_v15 }
 0x759   : > { %v9289_v12 = vpop.permute.xlu1 %9288 }
 0x75a   : > { %v9291_v24 = vpop.permute.xlu0 %9290 }
 0x75b   : > { %v9320_v35 = vsel %vm9308_vm13, %v9289_v12, %v9291_v24 }
 0x75c   : > { %9352 = vst.msk [vmem:[%s10952_s8 + $0x17d] sm:$0x1] %vm1956_vm5, %v9320_v35 }
 0x75d   : > { %v9293_v40 = vpop.permute.xlu1 %9292 }
 0x75e   : > { %v9295_v5 = vpop.permute.xlu0 %9294 }
 0x75f   : > { %v9321_v36 = vsel %vm9308_vm13, %v9293_v40, %v9295_v5 }
 0x760   : > { %9353 = vst.msk [vmem:[%s10952_s8 + $0x19d] sm:$0x1] %vm1956_vm5, %v9321_v36 }
 0x761   : > { %v9297_v42 = vpop.permute.xlu1 %9296 }
 0x762   : > { %v9299_v47 = vpop.permute.xlu0 %9298 }
 0x763   : > { %v9322_v27 = vsel %vm9308_vm13, %v9297_v42, %v9299_v47 }
 0x764   : > { %9354 = vst.msk [vmem:[%s10952_s8 + $0x1bd] sm:$0x1] %vm1956_vm5, %v9322_v27 }
 0x765   : > { %v9301_v29 = vpop.permute.xlu1 %9300 }
 0x766   : > { %v9303_v45 = vpop.permute.xlu0 %9302 }
 0x767   : > { %v9323_v17 = vsel %vm9308_vm13, %v9301_v29, %v9303_v45 }
 0x768   : > { %9355 = vst.msk [vmem:[%s10952_s8 + $0x1dd] sm:$0x1] %vm1956_vm5, %v9323_v17 }
 0x769   : > { %v9305_v52 = vpop.permute.xlu1 %9304 }
 0x76a   : > { %v9307_v2 = vpop.permute.xlu0 %9306 }
 0x76b   : > { %v9324_v9 = vsel %vm9308_vm13, %v9305_v52, %v9307_v2 }
 0x76c   : > { %9356 = vst.msk [vmem:[%s10952_s8 + $0x1fd] sm:$0x1] %vm1956_vm5, %v9324_v9 }
 0x76d   : > { %v9524_v51 = vpop.permute.xlu1 %9523 }
 0x76e   : > { %9571 = vst.msk [vmem:[%s10952_s8 + $0x1e] sm:$0x1] %vm1956_vm5, %v9524_v51  ;;  %v9526_v8 = vpop.permute.xlu0 %9525 }
 0x76f   : > { %9572 = vst.msk [vmem:[%s10952_s8 + $0x3e] sm:$0x1] %vm1956_vm5, %v9526_v8 }
 0x771   : > { %v9528_v26 = vpop.permute.xlu1 %9527 }
 0x772   : > { %9573 = vst.msk [vmem:[%s10952_s8 + $0x5e] sm:$0x1] %vm1956_vm5, %v9528_v26  ;;  %v9530_v61 = vpop.permute.xlu0 %9529 }
 0x773   : > { %9574 = vst.msk [vmem:[%s10952_s8 + $0x7e] sm:$0x1] %vm1956_vm5, %v9530_v61 }
 0x775   : > { %v9532_v41 = vpop.permute.xlu1 %9531 }
 0x776   : > { %9575 = vst.msk [vmem:[%s10952_s8 + $0x9e] sm:$0x1] %vm1956_vm5, %v9532_v41  ;;  %v9534_v49 = vpop.permute.xlu0 %9533 }
 0x777   : > { %9576 = vst.msk [vmem:[%s10952_s8 + $0xbe] sm:$0x1] %vm1956_vm5, %v9534_v49 }
 0x779   : > { %v9536_v39 = vpop.permute.xlu1 %9535 }
 0x77a   : > { %9577 = vst.msk [vmem:[%s10952_s8 + $0xde] sm:$0x1] %vm1956_vm5, %v9536_v39  ;;  %v9538_v56 = vpop.permute.xlu0 %9537 }
 0x77b   : > { %9578 = vst.msk [vmem:[%s10952_s8 + $0xfe] sm:$0x1] %vm1956_vm5, %v9538_v56 }
 0x77d   : > { %v9540_v23 = vpop.permute.xlu1 %9539 }
 0x77e   : > { %9579 = vst.msk [vmem:[%s10952_s8 + $0x11e] sm:$0x1] %vm1956_vm5, %v9540_v23  ;;  %v9542_v28 = vpop.permute.xlu0 %9541 }
 0x77f   : > { %9580 = vst.msk [vmem:[%s10952_s8 + $0x13e] sm:$0x1] %vm1956_vm5, %v9542_v28 }
 0x781   : > { %v9544_v10 = vpop.permute.xlu1 %9543 }
 0x782   : > { %9581 = vst.msk [vmem:[%s10952_s8 + $0x15e] sm:$0x1] %vm1956_vm5, %v9544_v10  ;;  %v9546_v53 = vpop.permute.xlu0 %9545 }
 0x783   : > { %9582 = vst.msk [vmem:[%s10952_s8 + $0x17e] sm:$0x1] %vm1956_vm5, %v9546_v53 }
 0x785   : > { %v9548_v0 = vpop.permute.xlu1 %9547 }
 0x786   : > { %9583 = vst.msk [vmem:[%s10952_s8 + $0x19e] sm:$0x1] %vm1956_vm5, %v9548_v0  ;;  %v9550_v14 = vpop.permute.xlu0 %9549 }
 0x787   : > { %9584 = vst.msk [vmem:[%s10952_s8 + $0x1be] sm:$0x1] %vm1956_vm5, %v9550_v14 }
 0x789   : > { %v9552_v21 = vpop.permute.xlu1 %9551 }
 0x78a   : > { %9585 = vst.msk [vmem:[%s10952_s8 + $0x1de] sm:$0x1] %vm1956_vm5, %v9552_v21  ;;  %v9554_v44 = vpop.permute.xlu0 %9553 }
 0x78b   : > { %9586 = vst.msk [vmem:[%s10952_s8 + $0x1fe] sm:$0x1] %vm1956_vm5, %v9554_v44 }
 0x78d   : > { %v9754_v1 = vpop.permute.xlu1 %9753 }
 0x78e   : > { %9801 = vst.msk [vmem:[%s10952_s8 + $0x1f] sm:$0x1] %vm1956_vm5, %v9754_v1  ;;  %v9756_v32 = vpop.permute.xlu0 %9755 }
 0x78f   : > { %9802 = vst.msk [vmem:[%s10952_s8 + $0x3f] sm:$0x1] %vm1956_vm5, %v9756_v32 }
 0x791   : > { %v9758_v48 = vpop.permute.xlu1 %9757 }
 0x792   : > { %9803 = vst.msk [vmem:[%s10952_s8 + $0x5f] sm:$0x1] %vm1956_vm5, %v9758_v48  ;;  %v9760_v6 = vpop.permute.xlu0 %9759 }
 0x793   : > { %9804 = vst.msk [vmem:[%s10952_s8 + $0x7f] sm:$0x1] %vm1956_vm5, %v9760_v6 }
 0x795   : > { %v9762_v20 = vpop.permute.xlu1 %9761 }
 0x796   : > { %9805 = vst.msk [vmem:[%s10952_s8 + $0x9f] sm:$0x1] %vm1956_vm5, %v9762_v20  ;;  %v9764_v55 = vpop.permute.xlu0 %9763 }
 0x797   : > { %9806 = vst.msk [vmem:[%s10952_s8 + $0xbf] sm:$0x1] %vm1956_vm5, %v9764_v55 }
 0x799   : > { %v9766_v4 = vpop.permute.xlu1 %9765 }
 0x79a   : > { %9807 = vst.msk [vmem:[%s10952_s8 + $0xdf] sm:$0x1] %vm1956_vm5, %v9766_v4  ;;  %v9768_v3 = vpop.permute.xlu0 %9767 }
 0x79b   : > { %9808 = vst.msk [vmem:[%s10952_s8 + $0xff] sm:$0x1] %vm1956_vm5, %v9768_v3 }
 0x79d   : > { %v9770_v33 = vpop.permute.xlu1 %9769 }
 0x79e   : > { %9809 = vst.msk [vmem:[%s10952_s8 + $0x11f] sm:$0x1] %vm1956_vm5, %v9770_v33  ;;  %v9772_v31 = vpop.permute.xlu0 %9771 }
 0x79f   : > { %9810 = vst.msk [vmem:[%s10952_s8 + $0x13f] sm:$0x1] %vm1956_vm5, %v9772_v31 }
 0x7a1   : > { %v9774_v37 = vpop.permute.xlu1 %9773 }
 0x7a2   : > { %9811 = vst.msk [vmem:[%s10952_s8 + $0x15f] sm:$0x1] %vm1956_vm5, %v9774_v37  ;;  %v9776_v7 = vpop.permute.xlu0 %9775 }
 0x7a3   : > { %9812 = vst.msk [vmem:[%s10952_s8 + $0x17f] sm:$0x1] %vm1956_vm5, %v9776_v7 }
 0x7a5   : > { %v9778_v38 = vpop.permute.xlu1 %9777 }
 0x7a6   : > { %9813 = vst.msk [vmem:[%s10952_s8 + $0x19f] sm:$0x1] %vm1956_vm5, %v9778_v38  ;;  %v9780_v50 = vpop.permute.xlu0 %9779 }
 0x7a7   : > { %9814 = vst.msk [vmem:[%s10952_s8 + $0x1bf] sm:$0x1] %vm1956_vm5, %v9780_v50 }
 0x7a9   : > { %v9782_v57 = vpop.permute.xlu1 %9781 }
 0x7aa   : > { %9815 = vst.msk [vmem:[%s10952_s8 + $0x1df] sm:$0x1] %vm1956_vm5, %v9782_v57  ;;  %v9784_v46 = vpop.permute.xlu0 %9783 }
 0x7ab   : > { %9816 = vst.msk [vmem:[%s10952_s8 + $0x1ff] sm:$0x1] %vm1956_vm5, %v9784_v46 }
 0x7ac   : > { %10212 = shalt.err (!%p10209_p3)
}
 0x7ad   : > { %s10213_s30 = scalar_lea.hbm %s14019_s28, 8192  ;;  %s10217_s23 = scalar_lea.hbm %s14074_s4, 16384 }
 0x7ae   : > { %p10214_p4 = scmp.ne.s32.totalorder %s14019_s28, %s10213_s30  ;;  %p10218_p9 = scmp.lt.u32.totalorder %s14019_s28, %s14074_s4 }
 0x7af   : > { %p10219_p10 = scmp.lt.u32.totalorder %s10217_s23, %s10213_s30  ;;  %p10221_p12 = scmp.lt.u32.totalorder %s10213_s30, %s14019_s28 }
 0x7b0   : > { %p10215_p7 = pnand %p10214_p4, %p10368_p5 }
 0x7b1   : > { %p10220_p11 = por %p10219_p10, %p10218_p9 }
 0x7b2   : > { %p10216_p8 = pneg %p10215_p7 }
 0x7b3   : > { %p10222_p13 = por %p10221_p12, %p10220_p11 }
 0x7b5   : > { %p10223_p0 = pnand %p10222_p13, %p10216_p8 }
 0x7b7   : > { %10226 = shalt.err (!%p10223_p0)
}
 0x7b8   : > { %s10303_s29 = smov 128   ;;  %s10304_s20 = smov 8  }
 0x7b9   : > { %10095 = dma.vmem_to_hbm [thread:$0]  (%p10368_p5), %s14021_s10, 8192, %s14019_s28, %s14029_s19, %s10303_s29, %s10303_s29, %s10304_s20  }
 0x7ba PF: > { %p10101_p1 = scmp.ge.s32.totalorder %s10261_s18, 2  ;;  %s9846_s6 = sand.u32 1, %s10249_s15  }
 0x7bb   : > { %s9847_s14 = scalar_lea.sflag [#allocation5], %s9846_s6 }
 0x7bc   : > { %p10098_p2 = pnand %p10101_p1, %p10372_p6 }
 0x7be   : > { %10244 = dma.done.wait (!%p10098_p2), %s9847_s14, 8192  }
 0x7bf   : > { %10246 = vsyncadd (!%p10098_p2), %s9847_s14, 4294959104  ;;  %p14_p3 = scmp.ge.s32.totalorder %s10355_s21, 4   ;;  %s14083_s15 = smov %s10253_s16 }
 0x7c0   : > { %s14084_s16 = smov %s10257_s17  ;;  %s14085_s17 = smov %s10366_s24 }
 0x7c1   : > { %s14086_s18 = smov %s10355_s21  ;;  %16 = sbr.rel (!%p14_p3) target bundleno = 3 (0x3), region = 71 }
 0x7c8   :  { %9852 = vsyncpa [#allocation5], 1 }
 0x7c9   :  { %9854 = vsyncpa [#allocation5 + $0x1], 1 }

</bundles_post_ra>
